<compile_context>
chip_gen: v5e
topology: v5e:2x2
jax: 0.10.0
libtpu: 0.0.40
codegen_flags: <defaults>
</compile_context>

<pallas_src>
import functools
import numpy as np
import jax
import jax.numpy as jnp
from jax.experimental import pallas as pl
from jax.experimental.pallas import tpu as pltpu

# ----------------------------------------------------------------------------
# Config (the `params` object of the PyTorch module)
# ----------------------------------------------------------------------------
CFG = dict(
    d_model=32,
    d_ff=64,
    d_k=8,
    d_v=8,
    num_heads=4,
    num_layers=2,
    vocab_size=50,
    dropout=0.0,          # identity  # TODO(synk): dropout only as eval/identity
    with_copy=True,
    eps=1e-5,             # nn.LayerNorm default
)

_EXTRA_W = 128  # lane-dense width of the [attn_mean | gate | zeros] output slab

_WEIGHT_ORDER = [
    "sa_wq", "sa_bq", "sa_wkv", "sa_bkv", "sa_wo", "sa_bo", "sa_g", "sa_b",
    "ma_wq", "ma_bq", "ma_wkv", "ma_bkv", "ma_wo", "ma_bo", "ma_g", "ma_b",
    "ma_wc", "ma_bc",
    "ff_w1", "ff_b1", "ff_w2", "ff_b2", "ff_g", "ff_b",
    "w_out_pad", "b_out_pad", "wg_x", "wg_c", "bg",
]


# ----------------------------------------------------------------------------
# Fused decoder kernel (one grid step per batch chunk of Bc examples)
# ----------------------------------------------------------------------------
def _decoder_kernel(
    # per-chunk data
    x_ref, enc_ref, sbias_ref, mbias_ref,
    # stacked per-layer self-attention weights
    sa_wq_ref, sa_bq_ref, sa_wkv_ref, sa_bkv_ref,
    sa_wo_ref, sa_bo_ref, sa_g_ref, sa_b_ref,
    # stacked per-layer mutual-attention weights (+ last-layer context proj)
    ma_wq_ref, ma_bq_ref, ma_wkv_ref, ma_bkv_ref,
    ma_wo_ref, ma_bo_ref, ma_g_ref, ma_b_ref,
    ma_wc_ref, ma_bc_ref,
    # stacked per-layer FFN weights
    ff_w1_ref, ff_b1_ref, ff_w2_ref, ff_b2_ref, ff_g_ref, ff_b_ref,
    # output head (lane padded) and copy gate (split halves)
    wout_ref, bout_ref, wgx_ref, wgc_ref, bg_ref,
    # outputs
    probs_ref, extras_ref,
    *, cfg, bc, lo, li):
    d = cfg["d_model"]
    H = cfg["num_heads"]
    dk = cfg["d_k"]
    dv = cfg["d_v"]
    L = cfg["num_layers"]
    eps = cfg["eps"]
    f32 = jnp.float32
    bf16 = jnp.bfloat16
    M = bc * lo

    def layer_norm(y, g, b):
        mu = jnp.mean(y, axis=-1, keepdims=True)
        var = jnp.mean((y - mu) ** 2, axis=-1, keepdims=True)
        return (y - mu) * jax.lax.rsqrt(var + eps) * g + b

    def softmax_last(s):
        m = jnp.max(s, axis=-1, keepdims=True)
        p = jnp.exp(s - m)
        # divide moved onto the EUP via approximate reciprocal
        return p * pl.reciprocal(jnp.sum(p, axis=-1, keepdims=True), approx=True)

    def dense(a, w, b):
        # bf16 MXU inputs, f32 accumulation, f32 bias
        return jnp.dot(a.astype(bf16), w, preferred_element_type=f32) + b

    def mha(x_q, x_kv, lq, lk, bias, wq, bq, wkv, bkv, wo, bo, g, b,
            wc=None, bcx=None, need_attn=False):
        # x_q: [bc*lq, d], x_kv: [bc*lk, d], bias: [bc, lq|1, lk] additive
        q_all = dense(x_q, wq, bq)        # [bc*lq, H*dk]   (1/sqrt(dk) folded in)
        kv_all = dense(x_kv, wkv, bkv)    # [bc*lk, H*(dk+dv)]
        q4 = q_all.reshape(bc, lq, H, dk)
        k4 = kv_all[:, :H * dk].reshape(bc, lk, H, dk)
        v4 = kv_all[:, H * dk:].reshape(bc, lk, H, dv)
        ctx_rows, attn_rows = [], []
        for bi in range(bc):  # static unroll over the examples of this chunk
            # batched-over-heads score contraction, one softmax on [H, lq, lk]
            s = jnp.einsum('qhd,khd->hqk', q4[bi], k4[bi],
                           preferred_element_type=f32)
            s = s + bias[bi][None, :, :]          # additive mask bias
            attn = softmax_last(s)                # [H, lq, lk] f32
            ctx = jnp.einsum('hqk,khv->qhv', attn, v4[bi],
                             preferred_element_type=f32)   # [lq, H, dv]
            ctx_rows.append(ctx.reshape(lq, H * dv))
            if need_attn:
                attn_rows.append(jnp.mean(attn, axis=0))    # [lq, lk]
        ctx_all = ctx_rows[0] if bc == 1 else jnp.concatenate(ctx_rows, axis=0)
        out = layer_norm(dense(ctx_all, wo, bo) + x_q, g, b)   # residual + LN
        ctx_vec = dense(ctx_all, wc, bcx) if wc is not None else None
        return out, attn_rows, ctx_vec

    x = x_ref[...].reshape(M, d)              # [Bc*Lo, d]  (batch flattened)
    enc = enc_ref[...].reshape(bc * li, d)    # [Bc*Li, d]
    sbias = sbias_ref[...]                    # [Bc, Lo, Lo]
    mbias = mbias_ref[...]                    # [Bc, 1, Li]

    attn_rows = None
    ctx_vec = None
    for l in range(L):
        # masked self-attention (attention / context outputs are unused)
        x, _, _ = mha(x, x, lo, lo, sbias,
                      sa_wq_ref[l], sa_bq_ref[l], sa_wkv_ref[l], sa_bkv_ref[l],
                      sa_wo_ref[l], sa_bo_ref[l], sa_g_ref[l], sa_b_ref[l])
        last = (l == L - 1)
        # encoder-decoder (mutual) attention; only the last layer's attention
        # mean / context vector are consumed downstream.
        x, am, cv = mha(x, enc, lo, li, mbias,
                        ma_wq_ref[l], ma_bq_ref[l], ma_wkv_ref[l], ma_bkv_ref[l],
                        ma_wo_ref[l], ma_bo_ref[l], ma_g_ref[l], ma_b_ref[l],
                        wc=(ma_wc_ref[...] if last else None),
                        bcx=(ma_bc_ref[...] if last else None),
                        need_attn=last)
        if last:
            attn_rows, ctx_vec = am, cv
        # feed-forward block (linear -> relu -> linear -> +residual -> LN)
        h1 = jnp.maximum(dense(x, ff_w1_ref[l], ff_b1_ref[l]), 0.0)
        x = layer_norm(dense(h1, ff_w2_ref[l], ff_b2_ref[l]) + x,
                       ff_g_ref[l], ff_b_ref[l])

    # copy gate: sigmoid(Linear(concat(x, context))) with split weight halves
    # (no in-kernel concat); sigmoid as exp + EUP reciprocal.
    gate_logit = (jnp.sum(x * wgx_ref[...], axis=-1, keepdims=True)
                  + jnp.sum(ctx_vec * wgc_ref[...], axis=-1, keepdims=True)
                  + bg_ref[...])                                    # [M, 1]
    gate = pl.reciprocal(1.0 + jnp.exp(-gate_logit), approx=True)

    # output projection + softmax over lane-padded vocab (padded cols have
    # bias -1e30 -> exp() == 0, so the real-vocab probabilities are exact).
    logits = jnp.dot(x.astype(bf16), wout_ref[...],
                     preferred_element_type=f32) + bout_ref[...]    # [M, Vpad]
    probs = softmax_last(logits)
    probs_ref[...] = probs.reshape(bc, lo, probs.shape[-1])

    # lane-dense extras slab: cols [0:Li) = head-mean attention, col Li = gate
    attn_cat = attn_rows[0] if bc == 1 else jnp.concatenate(attn_rows, axis=0)
    pad_w = extras_ref.shape[-1] - li - 1
    extras = jnp.concatenate(
        [attn_cat, gate, jnp.zeros((M, pad_w), f32)], axis=-1)      # [M, 128]
    extras_ref[...] = extras.reshape(bc, lo, extras.shape[-1])


def fused_decoder(packed, x_emb, enc, self_bias, mut_bias, cfg, grid_steps=None):
    B, Lo, d = x_emb.shape
    Li = enc.shape[1]
    Vpad = packed["w_out_pad"].shape[1]

    if grid_steps is None:
        # Minimum grid: 1 step flattens the whole batch into the matmul M-dim
        # (best on single-TC v5e/v6e and fine at tiny B); 2 steps for larger
        # even batches so both v7x TensorCores get B/2 examples each.
        grid_steps = 2 if (B % 2 == 0 and B >= 4) else 1
    assert B % grid_steps == 0
    Bc = B // grid_steps

    def batch_spec(*tail):
        n = len(tail)
        return pl.BlockSpec((Bc,) + tail, lambda g, _n=n: (g,) + (0,) * _n)

    def const_spec(a):
        n = a.ndim
        return pl.BlockSpec(a.shape, lambda g, _n=n: (0,) * _n)

    weights = [packed[name] for name in _WEIGHT_ORDER]

    in_specs = [
        batch_spec(Lo, d),     # decoder-side embeddings
        batch_spec(Li, d),     # encoder hiddens
        batch_spec(Lo, Lo),    # additive self-attention mask bias
        batch_spec(1, Li),     # additive mutual-attention mask bias (row bcast)
    ] + [const_spec(w) for w in weights]

    out_shape = (
        jax.ShapeDtypeStruct((B, Lo, Vpad), jnp.float32),      # padded softmax probs
        jax.ShapeDtypeStruct((B, Lo, _EXTRA_W), jnp.float32),  # [attn_mean|gate|0...]
    )
    out_specs = (batch_spec(Lo, Vpad), batch_spec(Lo, _EXTRA_W))

    kernel = functools.partial(_decoder_kernel, cfg=cfg, bc=Bc, lo=Lo, li=Li)
    return pl.pallas_call(
        kernel,
        out_shape=out_shape,
        grid=(grid_steps,),
        in_specs=in_specs,
        out_specs=out_specs,
        compiler_params=pltpu.CompilerParams(
            dimension_semantics=("parallel",)),
    )(x_emb, enc, self_bias, mut_bias, *weights)


# ----------------------------------------------------------------------------
# Parameter initialization (deterministic, PyTorch-like shapes) + packing
# ----------------------------------------------------------------------------
def init_linear(key, fan_in, fan_out):
    k1, k2 = jax.random.split(key)
    bound = 1.0 / np.sqrt(fan_in)
    w = jax.random.uniform(k1, (fan_in, fan_out), jnp.float32, -bound, bound)
    b = jax.random.uniform(k2, (1, fan_out), jnp.float32, -bound, bound)
    return w, b


def init_mha(key, cfg):
    d, H, dk, dv = cfg["d_model"], cfg["num_heads"], cfg["d_k"], cfg["d_v"]
    ks = jax.random.split(key, 5)
    p = {}
    p["wq"], p["bq"] = init_linear(ks[0], d, H * dk)
    p["wk"], p["bk"] = init_linear(ks[1], d, H * dk)
    p["wv"], p["bv"] = init_linear(ks[2], d, H * dv)
    p["wo"], p["bo"] = init_linear(ks[3], H * dv, d)
    p["wc"], p["bc"] = init_linear(ks[4], H * dv, d)
    p["ln_g"] = jnp.ones((1, d), jnp.float32)
    p["ln_b"] = jnp.zeros((1, d), jnp.float32)
    return p


def init_ffn(key, cfg):
    d, f = cfg["d_model"], cfg["d_ff"]
    k1, k2 = jax.random.split(key)
    p = {}
    p["w1"], p["b1"] = init_linear(k1, d, f)
    p["w2"], p["b2"] = init_linear(k2, f, d)
    p["ln_g"] = jnp.ones((1, d), jnp.float32)
    p["ln_b"] = jnp.zeros((1, d), jnp.float32)
    return p


def init_decoder_params(key, cfg):
    V, d = cfg["vocab_size"], cfg["d_model"]
    keys = jax.random.split(key, 4 + cfg["num_layers"])
    params = {
        "word_emb": jax.random.normal(keys[0], (V, d), jnp.float32),
        "pos_emb": jax.random.normal(keys[1], (V, d), jnp.float32),
        "layers": [],
    }
    params["w_out"], params["b_out"] = init_linear(keys[2], d, V)
    params["w_gate"], params["b_gate"] = init_linear(keys[3], 2 * d, 1)
    for l in range(cfg["num_layers"]):
        k_self, k_mut, k_ffn = jax.random.split(keys[4 + l], 3)
        params["layers"].append(
            {
                "self_att": init_mha(k_self, cfg),
                "mut_att": init_mha(k_mut, cfg),
                "ffn": init_ffn(k_ffn, cfg),
            }
        )
    return params


def pack_decoder_params(params, cfg):
    """Stack per-layer weights, fuse K|V, fold the 1/sqrt(d_k) score scale into
    wq/bq, cast matmul weights to bf16 (biases / LN / gate stay f32)."""
    L = cfg["num_layers"]
    d, V = cfg["d_model"], cfg["vocab_size"]
    scale = 1.0 / np.sqrt(cfg["d_k"])
    layers = params["layers"]
    bf16 = jnp.bfloat16

    def stack(fn, dtype=None):
        a = jnp.stack([fn(layers[l]) for l in range(L)], axis=0)
        return a.astype(dtype) if dtype is not None else a

    cat1 = lambda a, b: jnp.concatenate([a, b], axis=1)
    packed = {
        "word_emb": params["word_emb"],
        "pos_emb": params["pos_emb"],
        # self-attention (its linear_context output is discarded by the
        # reference decoder layer, so wc/bc are dropped here)
        "sa_wq":  stack(lambda p: p["self_att"]["wq"] * scale, bf16),
        "sa_bq":  stack(lambda p: p["self_att"]["bq"] * scale),
        "sa_wkv": stack(lambda p: cat1(p["self_att"]["wk"], p["self_att"]["wv"]), bf16),
        "sa_bkv": stack(lambda p: cat1(p["self_att"]["bk"], p["self_att"]["bv"])),
        "sa_wo":  stack(lambda p: p["self_att"]["wo"], bf16),
        "sa_bo":  stack(lambda p: p["self_att"]["bo"]),
        "sa_g":   stack(lambda p: p["self_att"]["ln_g"]),
        "sa_b":   stack(lambda p: p["self_att"]["ln_b"]),
        # mutual attention
        "ma_wq":  stack(lambda p: p["mut_att"]["wq"] * scale, bf16),
        "ma_bq":  stack(lambda p: p["mut_att"]["bq"] * scale),
        "ma_wkv": stack(lambda p: cat1(p["mut_att"]["wk"], p["mut_att"]["wv"]), bf16),
        "ma_bkv": stack(lambda p: cat1(p["mut_att"]["bk"], p["mut_att"]["bv"])),
        "ma_wo":  stack(lambda p: p["mut_att"]["wo"], bf16),
        "ma_bo":  stack(lambda p: p["mut_att"]["bo"]),
        "ma_g":   stack(lambda p: p["mut_att"]["ln_g"]),
        "ma_b":   stack(lambda p: p["mut_att"]["ln_b"]),
        # only the LAST layer's linear_context output is consumed downstream
        "ma_wc":  layers[L - 1]["mut_att"]["wc"].astype(bf16),
        "ma_bc":  layers[L - 1]["mut_att"]["bc"],
        # FFN
        "ff_w1": stack(lambda p: p["ffn"]["w1"], bf16),
        "ff_b1": stack(lambda p: p["ffn"]["b1"]),
        "ff_w2": stack(lambda p: p["ffn"]["w2"], bf16),
        "ff_b2": stack(lambda p: p["ffn"]["b2"]),
        "ff_g":  stack(lambda p: p["ffn"]["ln_g"]),
        "ff_b":  stack(lambda p: p["ffn"]["ln_b"]),
    }
    # pad the vocab dim of the output head to a full 128-lane slab
    Vpad = int(np.ceil(V / 128.0) * 128)
    w_out_pad = jnp.zeros((d, Vpad), jnp.float32).at[:, :V].set(params["w_out"])
    packed["w_out_pad"] = w_out_pad.astype(bf16)
    packed["b_out_pad"] = jnp.full((1, Vpad), -1e30, jnp.float32).at[:, :V].set(params["b_out"])
    # copy-gate weight split into x-half / context-half (avoids in-kernel concat)
    packed["wg_x"] = params["w_gate"][:d, :].T   # [1, d]
    packed["wg_c"] = params["w_gate"][d:, :].T   # [1, d]
    packed["bg"] = params["b_gate"]              # [1, 1]
    return packed


# ----------------------------------------------------------------------------
# Forward pass (one fused Pallas kernel + thin JAX glue)
# ----------------------------------------------------------------------------
def copy_scatter(attention, input_ids, vocab_size):
    # TODO(synk): torch scatter_ picks an arbitrary winner for duplicate input
    # ids; kept as plain-JAX .at[].set() scatter (not an in-kernel one-hot
    # matmul, which would *sum* duplicates and change semantics).
    B, Lo, Li = attention.shape
    copy = jnp.zeros((B, Lo, vocab_size), jnp.float32)
    b_idx = jnp.arange(B)[:, None, None]
    t_idx = jnp.arange(Lo)[None, :, None]
    ids = jnp.broadcast_to(input_ids[:, None, :], (B, Lo, Li))
    return copy.at[b_idx, t_idx, ids].set(attention)


def decoder_forward(packed, output_ids, input_ids, encoder_hiddens, cfg):
    B, Lo = output_ids.shape
    Li = input_ids.shape[1]
    d, V = cfg["d_model"], cfg["vocab_size"]

    # --- additive mask biases (0 keep / -1e18 drop == masked_fill(-1e18)) ---
    # Note: a fully-masked row degenerates to softmax over the raw scores here
    # (vs. an exactly-uniform row in the reference); no such rows exist because
    # position 0 of every sequence is a real token.
    mut_bias = jnp.where(input_ids != 0, 0.0, -1e18).astype(jnp.float32)[:, None, :]
    tri = np.tril(np.ones((Lo, Lo), dtype=bool))
    self_keep = (output_ids != 0)[:, None, :] & tri[None, :, :]
    self_bias = jnp.where(self_keep, 0.0, -1e18).astype(jnp.float32)

    # --- embeddings (the reference indexes *both* tables with token ids) ---
    x_emb = packed["word_emb"][output_ids] * np.sqrt(d) + packed["pos_emb"][output_ids]

    # --- whole decoder stack in one pallas_call ---
    probs_pad, extras = fused_decoder(
        packed, x_emb, encoder_hiddens, self_bias, mut_bias, cfg)
    probs = probs_pad[:, :, :V]

    if cfg["with_copy"]:
        attn_mean = extras[:, :, :Li]            # last-layer head-mean attention
        gate = extras[:, :, Li:Li + 1]           # copy gate
        copy_probs = copy_scatter(attn_mean, input_ids, V)
        probs = gate * probs + (1.0 - gate) * copy_probs
    return probs


# ----------------------------------------------------------------------------
# Main
# ----------------------------------------------------------------------------
if __name__ == "__main__":
    key = jax.random.PRNGKey(0)
    k_param, k_out, k_in, k_enc = jax.random.split(key, 4)

    B, Lo, Li = 2, 8, 8
    params = init_decoder_params(k_param, CFG)
    packed = pack_decoder_params(params, CFG)

    output_ids = jax.random.randint(k_out, (B, Lo), 1, CFG["vocab_size"], jnp.int32)
    input_ids = jax.random.randint(k_in, (B, Li), 1, CFG["vocab_size"], jnp.int32)
    # add some padding (token id 0) to exercise the pad masks
    output_ids = output_ids.at[:, -2:].set(0)
    input_ids = input_ids.at[1, -3:].set(0)

    encoder_hiddens = jax.random.normal(k_enc, (B, Li, CFG["d_model"]), jnp.float32)

    fwd = jax.jit(functools.partial(decoder_forward, cfg=CFG))
    probs = fwd(packed, output_ids, input_ids, encoder_hiddens)
    probs = jax.block_until_ready(probs)

    assert probs.shape == (B, Lo, CFG["vocab_size"])
    assert bool(jnp.all(jnp.isfinite(probs)))
    assert bool(jnp.all(probs >= 0.0))
    print("KERNEL_OK")
</pallas_src>

<mosaic_0001>
module attributes {stable_mosaic.version = 11 : i64} {
  func.func @_decoder_kernel(%arg0: i32, %arg1: memref<2x8x32xf32, #tpu.memory_space<vmem>>, %arg2: memref<2x8x32xf32, #tpu.memory_space<vmem>>, %arg3: memref<2x8x8xf32, #tpu.memory_space<vmem>>, %arg4: memref<2x1x8xf32, #tpu.memory_space<vmem>>, %arg5: memref<2x32x32xbf16, #tpu.memory_space<vmem>>, %arg6: memref<2x1x32xf32, #tpu.memory_space<vmem>>, %arg7: memref<2x32x64xbf16, #tpu.memory_space<vmem>>, %arg8: memref<2x1x64xf32, #tpu.memory_space<vmem>>, %arg9: memref<2x32x32xbf16, #tpu.memory_space<vmem>>, %arg10: memref<2x1x32xf32, #tpu.memory_space<vmem>>, %arg11: memref<2x1x32xf32, #tpu.memory_space<vmem>>, %arg12: memref<2x1x32xf32, #tpu.memory_space<vmem>>, %arg13: memref<2x32x32xbf16, #tpu.memory_space<vmem>>, %arg14: memref<2x1x32xf32, #tpu.memory_space<vmem>>, %arg15: memref<2x32x64xbf16, #tpu.memory_space<vmem>>, %arg16: memref<2x1x64xf32, #tpu.memory_space<vmem>>, %arg17: memref<2x32x32xbf16, #tpu.memory_space<vmem>>, %arg18: memref<2x1x32xf32, #tpu.memory_space<vmem>>, %arg19: memref<2x1x32xf32, #tpu.memory_space<vmem>>, %arg20: memref<2x1x32xf32, #tpu.memory_space<vmem>>, %arg21: memref<32x32xbf16, #tpu.memory_space<vmem>>, %arg22: memref<1x32xf32, #tpu.memory_space<vmem>>, %arg23: memref<2x32x64xbf16, #tpu.memory_space<vmem>>, %arg24: memref<2x1x64xf32, #tpu.memory_space<vmem>>, %arg25: memref<2x64x32xbf16, #tpu.memory_space<vmem>>, %arg26: memref<2x1x32xf32, #tpu.memory_space<vmem>>, %arg27: memref<2x1x32xf32, #tpu.memory_space<vmem>>, %arg28: memref<2x1x32xf32, #tpu.memory_space<vmem>>, %arg29: memref<32x128xbf16, #tpu.memory_space<vmem>>, %arg30: memref<1x128xf32, #tpu.memory_space<vmem>>, %arg31: memref<1x32xf32, #tpu.memory_space<vmem>>, %arg32: memref<1x32xf32, #tpu.memory_space<vmem>>, %arg33: memref<1x1xf32, #tpu.memory_space<vmem>>, %arg34: memref<2x8x128xf32, #tpu.memory_space<vmem>>, %arg35: memref<2x8x128xf32, #tpu.memory_space<vmem>>) attributes {dimension_semantics = [#tpu.dimension_semantics<parallel>], iteration_bounds = array<i64: 1>, scalar_prefetch = 0 : i64, scratch_operands = 0 : i64, tpu.core_type = #tpu.core_type<tc>, window_params = [{transform_indices = @transform_0, window_bounds = array<i64: 2, 8, 32>}, {transform_indices = @transform_1, window_bounds = array<i64: 2, 8, 32>}, {transform_indices = @transform_2, window_bounds = array<i64: 2, 8, 8>}, {transform_indices = @transform_3, window_bounds = array<i64: 2, 1, 8>}, {pipeline_mode = #tpu.pipeline_mode<synchronous>, transform_indices = @transform_4, window_bounds = array<i64: 2, 32, 32>}, {pipeline_mode = #tpu.pipeline_mode<synchronous>, transform_indices = @transform_5, window_bounds = array<i64: 2, 1, 32>}, {pipeline_mode = #tpu.pipeline_mode<synchronous>, transform_indices = @transform_6, window_bounds = array<i64: 2, 32, 64>}, {pipeline_mode = #tpu.pipeline_mode<synchronous>, transform_indices = @transform_7, window_bounds = array<i64: 2, 1, 64>}, {pipeline_mode = #tpu.pipeline_mode<synchronous>, transform_indices = @transform_8, window_bounds = array<i64: 2, 32, 32>}, {pipeline_mode = #tpu.pipeline_mode<synchronous>, transform_indices = @transform_9, window_bounds = array<i64: 2, 1, 32>}, {pipeline_mode = #tpu.pipeline_mode<synchronous>, transform_indices = @transform_10, window_bounds = array<i64: 2, 1, 32>}, {pipeline_mode = #tpu.pipeline_mode<synchronous>, transform_indices = @transform_11, window_bounds = array<i64: 2, 1, 32>}, {pipeline_mode = #tpu.pipeline_mode<synchronous>, transform_indices = @transform_12, window_bounds = array<i64: 2, 32, 32>}, {pipeline_mode = #tpu.pipeline_mode<synchronous>, transform_indices = @transform_13, window_bounds = array<i64: 2, 1, 32>}, {pipeline_mode = #tpu.pipeline_mode<synchronous>, transform_indices = @transform_14, window_bounds = array<i64: 2, 32, 64>}, {pipeline_mode = #tpu.pipeline_mode<synchronous>, transform_indices = @transform_15, window_bounds = array<i64: 2, 1, 64>}, {pipeline_mode = #tpu.pipeline_mode<synchronous>, transform_indices = @transform_16, window_bounds = array<i64: 2, 32, 32>}, {pipeline_mode = #tpu.pipeline_mode<synchronous>, transform_indices = @transform_17, window_bounds = array<i64: 2, 1, 32>}, {pipeline_mode = #tpu.pipeline_mode<synchronous>, transform_indices = @transform_18, window_bounds = array<i64: 2, 1, 32>}, {pipeline_mode = #tpu.pipeline_mode<synchronous>, transform_indices = @transform_19, window_bounds = array<i64: 2, 1, 32>}, {pipeline_mode = #tpu.pipeline_mode<synchronous>, transform_indices = @transform_20, window_bounds = array<i64: 32, 32>}, {pipeline_mode = #tpu.pipeline_mode<synchronous>, transform_indices = @transform_21, window_bounds = array<i64: 1, 32>}, {pipeline_mode = #tpu.pipeline_mode<synchronous>, transform_indices = @transform_22, window_bounds = array<i64: 2, 32, 64>}, {pipeline_mode = #tpu.pipeline_mode<synchronous>, transform_indices = @transform_23, window_bounds = array<i64: 2, 1, 64>}, {pipeline_mode = #tpu.pipeline_mode<synchronous>, transform_indices = @transform_24, window_bounds = array<i64: 2, 64, 32>}, {pipeline_mode = #tpu.pipeline_mode<synchronous>, transform_indices = @transform_25, window_bounds = array<i64: 2, 1, 32>}, {pipeline_mode = #tpu.pipeline_mode<synchronous>, transform_indices = @transform_26, window_bounds = array<i64: 2, 1, 32>}, {pipeline_mode = #tpu.pipeline_mode<synchronous>, transform_indices = @transform_27, window_bounds = array<i64: 2, 1, 32>}, {pipeline_mode = #tpu.pipeline_mode<synchronous>, transform_indices = @transform_28, window_bounds = array<i64: 32, 128>}, {pipeline_mode = #tpu.pipeline_mode<synchronous>, transform_indices = @transform_29, window_bounds = array<i64: 1, 128>}, {pipeline_mode = #tpu.pipeline_mode<synchronous>, transform_indices = @transform_30, window_bounds = array<i64: 1, 32>}, {pipeline_mode = #tpu.pipeline_mode<synchronous>, transform_indices = @transform_31, window_bounds = array<i64: 1, 32>}, {pipeline_mode = #tpu.pipeline_mode<synchronous>, transform_indices = @transform_32, window_bounds = array<i64: 1, 1>}, {transform_indices = @transform_33, window_bounds = array<i64: 2, 8, 128>}, {transform_indices = @transform_34, window_bounds = array<i64: 2, 8, 128>}]} {
    %c0 = arith.constant 0 : index
    %c0_0 = arith.constant 0 : index
    %c0_1 = arith.constant 0 : index
    %0 = vector.load %arg1[%c0, %c0_0, %c0_1] : memref<2x8x32xf32, #tpu.memory_space<vmem>>, vector<2x8x32xf32>
    %1 = vector.shape_cast %0 : vector<2x8x32xf32> to vector<16x32xf32>
    %c0_2 = arith.constant 0 : index
    %c0_3 = arith.constant 0 : index
    %c0_4 = arith.constant 0 : index
    %2 = vector.load %arg2[%c0_2, %c0_3, %c0_4] : memref<2x8x32xf32, #tpu.memory_space<vmem>>, vector<2x8x32xf32>
    %3 = vector.shape_cast %2 : vector<2x8x32xf32> to vector<16x32xf32>
    %c0_5 = arith.constant 0 : index
    %c0_6 = arith.constant 0 : index
    %c0_7 = arith.constant 0 : index
    %4 = vector.load %arg3[%c0_5, %c0_6, %c0_7] : memref<2x8x8xf32, #tpu.memory_space<vmem>>, vector<2x8x8xf32>
    %c0_8 = arith.constant 0 : index
    %c0_9 = arith.constant 0 : index
    %c0_10 = arith.constant 0 : index
    %5 = vector.load %arg4[%c0_8, %c0_9, %c0_10] : memref<2x1x8xf32, #tpu.memory_space<vmem>>, vector<2x1x8xf32>
    %c0_11 = arith.constant 0 : index
    %c0_12 = arith.constant 0 : index
    %c0_13 = arith.constant 0 : index
    %6 = vector.load %arg5[%c0_11, %c0_12, %c0_13] : memref<2x32x32xbf16, #tpu.memory_space<vmem>>, vector<1x32x32xbf16>
    %7 = vector.shape_cast %6 : vector<1x32x32xbf16> to vector<32x32xbf16>
    %c0_14 = arith.constant 0 : index
    %c0_15 = arith.constant 0 : index
    %c0_16 = arith.constant 0 : index
    %8 = vector.load %arg6[%c0_14, %c0_15, %c0_16] : memref<2x1x32xf32, #tpu.memory_space<vmem>>, vector<1x1x32xf32>
    %9 = vector.shape_cast %8 : vector<1x1x32xf32> to vector<1x32xf32>
    %c0_17 = arith.constant 0 : index
    %c0_18 = arith.constant 0 : index
    %c0_19 = arith.constant 0 : index
    %10 = vector.load %arg7[%c0_17, %c0_18, %c0_19] : memref<2x32x64xbf16, #tpu.memory_space<vmem>>, vector<1x32x64xbf16>
    %11 = vector.shape_cast %10 : vector<1x32x64xbf16> to vector<32x64xbf16>
    %c0_20 = arith.constant 0 : index
    %c0_21 = arith.constant 0 : index
    %c0_22 = arith.constant 0 : index
    %12 = vector.load %arg8[%c0_20, %c0_21, %c0_22] : memref<2x1x64xf32, #tpu.memory_space<vmem>>, vector<1x1x64xf32>
    %13 = vector.shape_cast %12 : vector<1x1x64xf32> to vector<1x64xf32>
    %c0_23 = arith.constant 0 : index
    %c0_24 = arith.constant 0 : index
    %c0_25 = arith.constant 0 : index
    %14 = vector.load %arg9[%c0_23, %c0_24, %c0_25] : memref<2x32x32xbf16, #tpu.memory_space<vmem>>, vector<1x32x32xbf16>
    %15 = vector.shape_cast %14 : vector<1x32x32xbf16> to vector<32x32xbf16>
    %c0_26 = arith.constant 0 : index
    %c0_27 = arith.constant 0 : index
    %c0_28 = arith.constant 0 : index
    %16 = vector.load %arg10[%c0_26, %c0_27, %c0_28] : memref<2x1x32xf32, #tpu.memory_space<vmem>>, vector<1x1x32xf32>
    %17 = vector.shape_cast %16 : vector<1x1x32xf32> to vector<1x32xf32>
    %c0_29 = arith.constant 0 : index
    %c0_30 = arith.constant 0 : index
    %c0_31 = arith.constant 0 : index
    %18 = vector.load %arg11[%c0_29, %c0_30, %c0_31] : memref<2x1x32xf32, #tpu.memory_space<vmem>>, vector<1x1x32xf32>
    %19 = vector.shape_cast %18 : vector<1x1x32xf32> to vector<1x32xf32>
    %c0_32 = arith.constant 0 : index
    %c0_33 = arith.constant 0 : index
    %c0_34 = arith.constant 0 : index
    %20 = vector.load %arg12[%c0_32, %c0_33, %c0_34] : memref<2x1x32xf32, #tpu.memory_space<vmem>>, vector<1x1x32xf32>
    %21 = vector.shape_cast %20 : vector<1x1x32xf32> to vector<1x32xf32>
    %22 = arith.truncf %1 : vector<16x32xf32> to vector<16x32xbf16>
    %cst = arith.constant dense<0.000000e+00> : vector<16x32xf32>
    %23 = tpu.matmul %22, %7, %cst {dimension_numbers = #tpu.dot_dimension_numbers<[1], [0], [0], [1], [0, 0, 1, 1], [], []>} : vector<16x32xbf16>, vector<32x32xbf16>, vector<16x32xf32> -> vector<16x32xf32>
    %24 = vector.broadcast %9 : vector<1x32xf32> to vector<16x32xf32>
    %25 = arith.addf %23, %24 : vector<16x32xf32>
    %26 = arith.truncf %1 : vector<16x32xf32> to vector<16x32xbf16>
    %cst_35 = arith.constant dense<0.000000e+00> : vector<16x64xf32>
    %27 = tpu.matmul %26, %11, %cst_35 {dimension_numbers = #tpu.dot_dimension_numbers<[1], [0], [0], [1], [0, 0, 1, 1], [], []>} : vector<16x32xbf16>, vector<32x64xbf16>, vector<16x64xf32> -> vector<16x64xf32>
    %28 = vector.broadcast %13 : vector<1x64xf32> to vector<16x64xf32>
    %29 = arith.addf %27, %28 : vector<16x64xf32>
    %30 = vector.shape_cast %25 : vector<16x32xf32> to vector<2x8x4x8xf32>
    %31 = vector.extract_strided_slice %29 {offsets = [0, 0], sizes = [16, 32], strides = [1, 1]} : vector<16x64xf32> to vector<16x32xf32>
    %32 = vector.shape_cast %31 : vector<16x32xf32> to vector<2x8x4x8xf32>
    %33 = vector.extract_strided_slice %29 {offsets = [0, 32], sizes = [16, 32], strides = [1, 1]} : vector<16x64xf32> to vector<16x32xf32>
    %34 = vector.shape_cast %33 : vector<16x32xf32> to vector<2x8x4x8xf32>
    %35 = vector.extract_strided_slice %30 {offsets = [0, 0, 0, 0], sizes = [1, 8, 4, 8], strides = [1, 1, 1, 1]} : vector<2x8x4x8xf32> to vector<1x8x4x8xf32>
    %36 = vector.shape_cast %35 : vector<1x8x4x8xf32> to vector<8x4x8xf32>
    %37 = vector.extract_strided_slice %32 {offsets = [0, 0, 0, 0], sizes = [1, 8, 4, 8], strides = [1, 1, 1, 1]} : vector<2x8x4x8xf32> to vector<1x8x4x8xf32>
    %38 = vector.shape_cast %37 : vector<1x8x4x8xf32> to vector<8x4x8xf32>
    "tpu.trace_start"() <{level = 10 : i32, message = "qhd,khd->hqk"}> : () -> ()
    %cst_36 = arith.constant dense<0.000000e+00> : vector<4x8x8xf32>
    %39 = tpu.matmul %36, %38, %cst_36 {dimension_numbers = #tpu.dot_dimension_numbers<[2], [2], [0], [0], [0, 1, 0, 0, 1, 0], [1], [1]>} : vector<8x4x8xf32>, vector<8x4x8xf32>, vector<4x8x8xf32> -> vector<4x8x8xf32>
    "tpu.trace_stop"() : () -> ()
    %40 = vector.extract_strided_slice %4 {offsets = [0, 0, 0], sizes = [1, 8, 8], strides = [1, 1, 1]} : vector<2x8x8xf32> to vector<1x8x8xf32>
    %41 = vector.shape_cast %40 : vector<1x8x8xf32> to vector<8x8xf32>
    %42 = vector.shape_cast %41 : vector<8x8xf32> to vector<1x8x8xf32>
    %43 = vector.broadcast %42 : vector<1x8x8xf32> to vector<4x8x8xf32>
    %44 = arith.addf %39, %43 : vector<4x8x8xf32>
    %cst_37 = arith.constant dense<0xFF800000> : vector<4x8xf32>
    %45 = vector.multi_reduction <maximumf>, %44, %cst_37 [2] : vector<4x8x8xf32> to vector<4x8xf32>
    %46 = vector.shape_cast %45 : vector<4x8xf32> to vector<4x8x1xf32>
    %47 = vector.broadcast %46 : vector<4x8x1xf32> to vector<4x8x8xf32>
    %48 = arith.subf %44, %47 : vector<4x8x8xf32>
    %49 = math.exp %48 : vector<4x8x8xf32>
    %cst_38 = arith.constant dense<0.000000e+00> : vector<4x8xf32>
    %50 = vector.multi_reduction <add>, %49, %cst_38 [2] : vector<4x8x8xf32> to vector<4x8xf32>
    %51 = vector.shape_cast %50 : vector<4x8xf32> to vector<4x8x1xf32>
    %52 = tpu.reciprocal %51 {approx = true} : vector<4x8x1xf32> -> vector<4x8x1xf32>
    %53 = vector.broadcast %52 : vector<4x8x1xf32> to vector<4x8x8xf32>
    %54 = arith.mulf %49, %53 : vector<4x8x8xf32>
    %55 = vector.extract_strided_slice %34 {offsets = [0, 0, 0, 0], sizes = [1, 8, 4, 8], strides = [1, 1, 1, 1]} : vector<2x8x4x8xf32> to vector<1x8x4x8xf32>
    %56 = vector.shape_cast %55 : vector<1x8x4x8xf32> to vector<8x4x8xf32>
    "tpu.trace_start"() <{level = 10 : i32, message = "hqk,khv->qhv"}> : () -> ()
    %cst_39 = arith.constant dense<0.000000e+00> : vector<4x8x8xf32>
    %57 = tpu.matmul %56, %54, %cst_39 {dimension_numbers = #tpu.dot_dimension_numbers<[0], [2], [2], [1], [0, 1, 0, 2, 1, 1], [1], [0]>} : vector<8x4x8xf32>, vector<4x8x8xf32>, vector<4x8x8xf32> -> vector<4x8x8xf32>
    %58 = tpu.transpose %57, [2, 0, 1] : vector<4x8x8xf32> -> vector<8x4x8xf32>
    "tpu.trace_stop"() : () -> ()
    %59 = vector.shape_cast %58 : vector<8x4x8xf32> to vector<8x32xf32>
    %60 = vector.extract_strided_slice %30 {offsets = [1, 0, 0, 0], sizes = [1, 8, 4, 8], strides = [1, 1, 1, 1]} : vector<2x8x4x8xf32> to vector<1x8x4x8xf32>
    %61 = vector.shape_cast %60 : vector<1x8x4x8xf32> to vector<8x4x8xf32>
    %62 = vector.extract_strided_slice %32 {offsets = [1, 0, 0, 0], sizes = [1, 8, 4, 8], strides = [1, 1, 1, 1]} : vector<2x8x4x8xf32> to vector<1x8x4x8xf32>
    %63 = vector.shape_cast %62 : vector<1x8x4x8xf32> to vector<8x4x8xf32>
    "tpu.trace_start"() <{level = 10 : i32, message = "qhd,khd->hqk"}> : () -> ()
    %cst_40 = arith.constant dense<0.000000e+00> : vector<4x8x8xf32>
    %64 = tpu.matmul %61, %63, %cst_40 {dimension_numbers = #tpu.dot_dimension_numbers<[2], [2], [0], [0], [0, 1, 0, 0, 1, 0], [1], [1]>} : vector<8x4x8xf32>, vector<8x4x8xf32>, vector<4x8x8xf32> -> vector<4x8x8xf32>
    "tpu.trace_stop"() : () -> ()
    %65 = vector.extract_strided_slice %4 {offsets = [1, 0, 0], sizes = [1, 8, 8], strides = [1, 1, 1]} : vector<2x8x8xf32> to vector<1x8x8xf32>
    %66 = vector.shape_cast %65 : vector<1x8x8xf32> to vector<8x8xf32>
    %67 = vector.shape_cast %66 : vector<8x8xf32> to vector<1x8x8xf32>
    %68 = vector.broadcast %67 : vector<1x8x8xf32> to vector<4x8x8xf32>
    %69 = arith.addf %64, %68 : vector<4x8x8xf32>
    %cst_41 = arith.constant dense<0xFF800000> : vector<4x8xf32>
    %70 = vector.multi_reduction <maximumf>, %69, %cst_41 [2] : vector<4x8x8xf32> to vector<4x8xf32>
    %71 = vector.shape_cast %70 : vector<4x8xf32> to vector<4x8x1xf32>
    %72 = vector.broadcast %71 : vector<4x8x1xf32> to vector<4x8x8xf32>
    %73 = arith.subf %69, %72 : vector<4x8x8xf32>
    %74 = math.exp %73 : vector<4x8x8xf32>
    %cst_42 = arith.constant dense<0.000000e+00> : vector<4x8xf32>
    %75 = vector.multi_reduction <add>, %74, %cst_42 [2] : vector<4x8x8xf32> to vector<4x8xf32>
    %76 = vector.shape_cast %75 : vector<4x8xf32> to vector<4x8x1xf32>
    %77 = tpu.reciprocal %76 {approx = true} : vector<4x8x1xf32> -> vector<4x8x1xf32>
    %78 = vector.broadcast %77 : vector<4x8x1xf32> to vector<4x8x8xf32>
    %79 = arith.mulf %74, %78 : vector<4x8x8xf32>
    %80 = vector.extract_strided_slice %34 {offsets = [1, 0, 0, 0], sizes = [1, 8, 4, 8], strides = [1, 1, 1, 1]} : vector<2x8x4x8xf32> to vector<1x8x4x8xf32>
    %81 = vector.shape_cast %80 : vector<1x8x4x8xf32> to vector<8x4x8xf32>
    "tpu.trace_start"() <{level = 10 : i32, message = "hqk,khv->qhv"}> : () -> ()
    %cst_43 = arith.constant dense<0.000000e+00> : vector<4x8x8xf32>
    %82 = tpu.matmul %81, %79, %cst_43 {dimension_numbers = #tpu.dot_dimension_numbers<[0], [2], [2], [1], [0, 1, 0, 2, 1, 1], [1], [0]>} : vector<8x4x8xf32>, vector<4x8x8xf32>, vector<4x8x8xf32> -> vector<4x8x8xf32>
    %83 = tpu.transpose %82, [2, 0, 1] : vector<4x8x8xf32> -> vector<8x4x8xf32>
    "tpu.trace_stop"() : () -> ()
    %84 = vector.shape_cast %83 : vector<8x4x8xf32> to vector<8x32xf32>
    %85 = tpu.concatenate %59, %84 in 0 : vector<8x32xf32>, vector<8x32xf32> -> vector<16x32xf32>
    %86 = arith.truncf %85 : vector<16x32xf32> to vector<16x32xbf16>
    %cst_44 = arith.constant dense<0.000000e+00> : vector<16x32xf32>
    %87 = tpu.matmul %86, %15, %cst_44 {dimension_numbers = #tpu.dot_dimension_numbers<[1], [0], [0], [1], [0, 0, 1, 1], [], []>} : vector<16x32xbf16>, vector<32x32xbf16>, vector<16x32xf32> -> vector<16x32xf32>
    %88 = vector.broadcast %17 : vector<1x32xf32> to vector<16x32xf32>
    %89 = arith.addf %87, %88 : vector<16x32xf32>
    %90 = arith.addf %89, %1 : vector<16x32xf32>
    %cst_45 = arith.constant dense<0.000000e+00> : vector<16xf32>
    %91 = vector.multi_reduction <add>, %90, %cst_45 [1] : vector<16x32xf32> to vector<16xf32>
    %92 = vector.shape_cast %91 : vector<16xf32> to vector<16x1xf32>
    %cst_46 = arith.constant 3.200000e+01 : f32
    %93 = vector.broadcast %cst_46 : f32 to vector<16x1xf32>
    %94 = arith.divf %92, %93 : vector<16x1xf32>
    %95 = vector.broadcast %94 : vector<16x1xf32> to vector<16x32xf32>
    %96 = arith.subf %90, %95 : vector<16x32xf32>
    %97 = arith.mulf %96, %96 : vector<16x32xf32>
    %cst_47 = arith.constant dense<0.000000e+00> : vector<16xf32>
    %98 = vector.multi_reduction <add>, %97, %cst_47 [1] : vector<16x32xf32> to vector<16xf32>
    %99 = vector.shape_cast %98 : vector<16xf32> to vector<16x1xf32>
    %cst_48 = arith.constant 3.200000e+01 : f32
    %100 = vector.broadcast %cst_48 : f32 to vector<16x1xf32>
    %101 = arith.divf %99, %100 : vector<16x1xf32>
    %102 = vector.broadcast %94 : vector<16x1xf32> to vector<16x32xf32>
    %103 = arith.subf %90, %102 : vector<16x32xf32>
    %cst_49 = arith.constant 9.99999974E-6 : f32
    %104 = vector.broadcast %cst_49 : f32 to vector<16x1xf32>
    %105 = arith.addf %101, %104 : vector<16x1xf32>
    %106 = math.rsqrt %105 : vector<16x1xf32>
    %107 = vector.broadcast %106 : vector<16x1xf32> to vector<16x32xf32>
    %108 = arith.mulf %103, %107 : vector<16x32xf32>
    %109 = vector.broadcast %19 : vector<1x32xf32> to vector<16x32xf32>
    %110 = arith.mulf %108, %109 : vector<16x32xf32>
    %111 = vector.broadcast %21 : vector<1x32xf32> to vector<16x32xf32>
    %112 = arith.addf %110, %111 : vector<16x32xf32>
    %c0_50 = arith.constant 0 : index
    %c0_51 = arith.constant 0 : index
    %c0_52 = arith.constant 0 : index
    %113 = vector.load %arg13[%c0_50, %c0_51, %c0_52] : memref<2x32x32xbf16, #tpu.memory_space<vmem>>, vector<1x32x32xbf16>
    %114 = vector.shape_cast %113 : vector<1x32x32xbf16> to vector<32x32xbf16>
    %c0_53 = arith.constant 0 : index
    %c0_54 = arith.constant 0 : index
    %c0_55 = arith.constant 0 : index
    %115 = vector.load %arg14[%c0_53, %c0_54, %c0_55] : memref<2x1x32xf32, #tpu.memory_space<vmem>>, vector<1x1x32xf32>
    %116 = vector.shape_cast %115 : vector<1x1x32xf32> to vector<1x32xf32>
    %c0_56 = arith.constant 0 : index
    %c0_57 = arith.constant 0 : index
    %c0_58 = arith.constant 0 : index
    %117 = vector.load %arg15[%c0_56, %c0_57, %c0_58] : memref<2x32x64xbf16, #tpu.memory_space<vmem>>, vector<1x32x64xbf16>
    %118 = vector.shape_cast %117 : vector<1x32x64xbf16> to vector<32x64xbf16>
    %c0_59 = arith.constant 0 : index
    %c0_60 = arith.constant 0 : index
    %c0_61 = arith.constant 0 : index
    %119 = vector.load %arg16[%c0_59, %c0_60, %c0_61] : memref<2x1x64xf32, #tpu.memory_space<vmem>>, vector<1x1x64xf32>
    %120 = vector.shape_cast %119 : vector<1x1x64xf32> to vector<1x64xf32>
    %c0_62 = arith.constant 0 : index
    %c0_63 = arith.constant 0 : index
    %c0_64 = arith.constant 0 : index
    %121 = vector.load %arg17[%c0_62, %c0_63, %c0_64] : memref<2x32x32xbf16, #tpu.memory_space<vmem>>, vector<1x32x32xbf16>
    %122 = vector.shape_cast %121 : vector<1x32x32xbf16> to vector<32x32xbf16>
    %c0_65 = arith.constant 0 : index
    %c0_66 = arith.constant 0 : index
    %c0_67 = arith.constant 0 : index
    %123 = vector.load %arg18[%c0_65, %c0_66, %c0_67] : memref<2x1x32xf32, #tpu.memory_space<vmem>>, vector<1x1x32xf32>
    %124 = vector.shape_cast %123 : vector<1x1x32xf32> to vector<1x32xf32>
    %c0_68 = arith.constant 0 : index
    %c0_69 = arith.constant 0 : index
    %c0_70 = arith.constant 0 : index
    %125 = vector.load %arg19[%c0_68, %c0_69, %c0_70] : memref<2x1x32xf32, #tpu.memory_space<vmem>>, vector<1x1x32xf32>
    %126 = vector.shape_cast %125 : vector<1x1x32xf32> to vector<1x32xf32>
    %c0_71 = arith.constant 0 : index
    %c0_72 = arith.constant 0 : index
    %c0_73 = arith.constant 0 : index
    %127 = vector.load %arg20[%c0_71, %c0_72, %c0_73] : memref<2x1x32xf32, #tpu.memory_space<vmem>>, vector<1x1x32xf32>
    %128 = vector.shape_cast %127 : vector<1x1x32xf32> to vector<1x32xf32>
    %129 = arith.truncf %112 : vector<16x32xf32> to vector<16x32xbf16>
    %cst_74 = arith.constant dense<0.000000e+00> : vector<16x32xf32>
    %130 = tpu.matmul %129, %114, %cst_74 {dimension_numbers = #tpu.dot_dimension_numbers<[1], [0], [0], [1], [0, 0, 1, 1], [], []>} : vector<16x32xbf16>, vector<32x32xbf16>, vector<16x32xf32> -> vector<16x32xf32>
    %131 = vector.broadcast %116 : vector<1x32xf32> to vector<16x32xf32>
    %132 = arith.addf %130, %131 : vector<16x32xf32>
    %133 = arith.truncf %3 : vector<16x32xf32> to vector<16x32xbf16>
    %cst_75 = arith.constant dense<0.000000e+00> : vector<16x64xf32>
    %134 = tpu.matmul %133, %118, %cst_75 {dimension_numbers = #tpu.dot_dimension_numbers<[1], [0], [0], [1], [0, 0, 1, 1], [], []>} : vector<16x32xbf16>, vector<32x64xbf16>, vector<16x64xf32> -> vector<16x64xf32>
    %135 = vector.broadcast %120 : vector<1x64xf32> to vector<16x64xf32>
    %136 = arith.addf %134, %135 : vector<16x64xf32>
    %137 = vector.shape_cast %132 : vector<16x32xf32> to vector<2x8x4x8xf32>
    %138 = vector.extract_strided_slice %136 {offsets = [0, 0], sizes = [16, 32], strides = [1, 1]} : vector<16x64xf32> to vector<16x32xf32>
    %139 = vector.shape_cast %138 : vector<16x32xf32> to vector<2x8x4x8xf32>
    %140 = vector.extract_strided_slice %136 {offsets = [0, 32], sizes = [16, 32], strides = [1, 1]} : vector<16x64xf32> to vector<16x32xf32>
    %141 = vector.shape_cast %140 : vector<16x32xf32> to vector<2x8x4x8xf32>
    %142 = vector.extract_strided_slice %137 {offsets = [0, 0, 0, 0], sizes = [1, 8, 4, 8], strides = [1, 1, 1, 1]} : vector<2x8x4x8xf32> to vector<1x8x4x8xf32>
    %143 = vector.shape_cast %142 : vector<1x8x4x8xf32> to vector<8x4x8xf32>
    %144 = vector.extract_strided_slice %139 {offsets = [0, 0, 0, 0], sizes = [1, 8, 4, 8], strides = [1, 1, 1, 1]} : vector<2x8x4x8xf32> to vector<1x8x4x8xf32>
    %145 = vector.shape_cast %144 : vector<1x8x4x8xf32> to vector<8x4x8xf32>
    "tpu.trace_start"() <{level = 10 : i32, message = "qhd,khd->hqk"}> : () -> ()
    %cst_76 = arith.constant dense<0.000000e+00> : vector<4x8x8xf32>
    %146 = tpu.matmul %143, %145, %cst_76 {dimension_numbers = #tpu.dot_dimension_numbers<[2], [2], [0], [0], [0, 1, 0, 0, 1, 0], [1], [1]>} : vector<8x4x8xf32>, vector<8x4x8xf32>, vector<4x8x8xf32> -> vector<4x8x8xf32>
    "tpu.trace_stop"() : () -> ()
    %147 = vector.extract_strided_slice %5 {offsets = [0, 0, 0], sizes = [1, 1, 8], strides = [1, 1, 1]} : vector<2x1x8xf32> to vector<1x1x8xf32>
    %148 = vector.shape_cast %147 : vector<1x1x8xf32> to vector<1x8xf32>
    %149 = vector.shape_cast %148 : vector<1x8xf32> to vector<1x1x8xf32>
    %150 = vector.broadcast %149 : vector<1x1x8xf32> to vector<4x8x8xf32>
    %151 = arith.addf %146, %150 : vector<4x8x8xf32>
    %cst_77 = arith.constant dense<0xFF800000> : vector<4x8xf32>
    %152 = vector.multi_reduction <maximumf>, %151, %cst_77 [2] : vector<4x8x8xf32> to vector<4x8xf32>
    %153 = vector.shape_cast %152 : vector<4x8xf32> to vector<4x8x1xf32>
    %154 = vector.broadcast %153 : vector<4x8x1xf32> to vector<4x8x8xf32>
    %155 = arith.subf %151, %154 : vector<4x8x8xf32>
    %156 = math.exp %155 : vector<4x8x8xf32>
    %cst_78 = arith.constant dense<0.000000e+00> : vector<4x8xf32>
    %157 = vector.multi_reduction <add>, %156, %cst_78 [2] : vector<4x8x8xf32> to vector<4x8xf32>
    %158 = vector.shape_cast %157 : vector<4x8xf32> to vector<4x8x1xf32>
    %159 = tpu.reciprocal %158 {approx = true} : vector<4x8x1xf32> -> vector<4x8x1xf32>
    %160 = vector.broadcast %159 : vector<4x8x1xf32> to vector<4x8x8xf32>
    %161 = arith.mulf %156, %160 : vector<4x8x8xf32>
    %162 = vector.extract_strided_slice %141 {offsets = [0, 0, 0, 0], sizes = [1, 8, 4, 8], strides = [1, 1, 1, 1]} : vector<2x8x4x8xf32> to vector<1x8x4x8xf32>
    %163 = vector.shape_cast %162 : vector<1x8x4x8xf32> to vector<8x4x8xf32>
    "tpu.trace_start"() <{level = 10 : i32, message = "hqk,khv->qhv"}> : () -> ()
    %cst_79 = arith.constant dense<0.000000e+00> : vector<4x8x8xf32>
    %164 = tpu.matmul %163, %161, %cst_79 {dimension_numbers = #tpu.dot_dimension_numbers<[0], [2], [2], [1], [0, 1, 0, 2, 1, 1], [1], [0]>} : vector<8x4x8xf32>, vector<4x8x8xf32>, vector<4x8x8xf32> -> vector<4x8x8xf32>
    %165 = tpu.transpose %164, [2, 0, 1] : vector<4x8x8xf32> -> vector<8x4x8xf32>
    "tpu.trace_stop"() : () -> ()
    %166 = vector.shape_cast %165 : vector<8x4x8xf32> to vector<8x32xf32>
    %167 = vector.extract_strided_slice %137 {offsets = [1, 0, 0, 0], sizes = [1, 8, 4, 8], strides = [1, 1, 1, 1]} : vector<2x8x4x8xf32> to vector<1x8x4x8xf32>
    %168 = vector.shape_cast %167 : vector<1x8x4x8xf32> to vector<8x4x8xf32>
    %169 = vector.extract_strided_slice %139 {offsets = [1, 0, 0, 0], sizes = [1, 8, 4, 8], strides = [1, 1, 1, 1]} : vector<2x8x4x8xf32> to vector<1x8x4x8xf32>
    %170 = vector.shape_cast %169 : vector<1x8x4x8xf32> to vector<8x4x8xf32>
    "tpu.trace_start"() <{level = 10 : i32, message = "qhd,khd->hqk"}> : () -> ()
    %cst_80 = arith.constant dense<0.000000e+00> : vector<4x8x8xf32>
    %171 = tpu.matmul %168, %170, %cst_80 {dimension_numbers = #tpu.dot_dimension_numbers<[2], [2], [0], [0], [0, 1, 0, 0, 1, 0], [1], [1]>} : vector<8x4x8xf32>, vector<8x4x8xf32>, vector<4x8x8xf32> -> vector<4x8x8xf32>
    "tpu.trace_stop"() : () -> ()
    %172 = vector.extract_strided_slice %5 {offsets = [1, 0, 0], sizes = [1, 1, 8], strides = [1, 1, 1]} : vector<2x1x8xf32> to vector<1x1x8xf32>
    %173 = vector.shape_cast %172 : vector<1x1x8xf32> to vector<1x8xf32>
    %174 = vector.shape_cast %173 : vector<1x8xf32> to vector<1x1x8xf32>
    %175 = vector.broadcast %174 : vector<1x1x8xf32> to vector<4x8x8xf32>
    %176 = arith.addf %171, %175 : vector<4x8x8xf32>
    %cst_81 = arith.constant dense<0xFF800000> : vector<4x8xf32>
    %177 = vector.multi_reduction <maximumf>, %176, %cst_81 [2] : vector<4x8x8xf32> to vector<4x8xf32>
    %178 = vector.shape_cast %177 : vector<4x8xf32> to vector<4x8x1xf32>
    %179 = vector.broadcast %178 : vector<4x8x1xf32> to vector<4x8x8xf32>
    %180 = arith.subf %176, %179 : vector<4x8x8xf32>
    %181 = math.exp %180 : vector<4x8x8xf32>
    %cst_82 = arith.constant dense<0.000000e+00> : vector<4x8xf32>
    %182 = vector.multi_reduction <add>, %181, %cst_82 [2] : vector<4x8x8xf32> to vector<4x8xf32>
    %183 = vector.shape_cast %182 : vector<4x8xf32> to vector<4x8x1xf32>
    %184 = tpu.reciprocal %183 {approx = true} : vector<4x8x1xf32> -> vector<4x8x1xf32>
    %185 = vector.broadcast %184 : vector<4x8x1xf32> to vector<4x8x8xf32>
    %186 = arith.mulf %181, %185 : vector<4x8x8xf32>
    %187 = vector.extract_strided_slice %141 {offsets = [1, 0, 0, 0], sizes = [1, 8, 4, 8], strides = [1, 1, 1, 1]} : vector<2x8x4x8xf32> to vector<1x8x4x8xf32>
    %188 = vector.shape_cast %187 : vector<1x8x4x8xf32> to vector<8x4x8xf32>
    "tpu.trace_start"() <{level = 10 : i32, message = "hqk,khv->qhv"}> : () -> ()
    %cst_83 = arith.constant dense<0.000000e+00> : vector<4x8x8xf32>
    %189 = tpu.matmul %188, %186, %cst_83 {dimension_numbers = #tpu.dot_dimension_numbers<[0], [2], [2], [1], [0, 1, 0, 2, 1, 1], [1], [0]>} : vector<8x4x8xf32>, vector<4x8x8xf32>, vector<4x8x8xf32> -> vector<4x8x8xf32>
    %190 = tpu.transpose %189, [2, 0, 1] : vector<4x8x8xf32> -> vector<8x4x8xf32>
    "tpu.trace_stop"() : () -> ()
    %191 = vector.shape_cast %190 : vector<8x4x8xf32> to vector<8x32xf32>
    %192 = tpu.concatenate %166, %191 in 0 : vector<8x32xf32>, vector<8x32xf32> -> vector<16x32xf32>
    %193 = arith.truncf %192 : vector<16x32xf32> to vector<16x32xbf16>
    %cst_84 = arith.constant dense<0.000000e+00> : vector<16x32xf32>
    %194 = tpu.matmul %193, %122, %cst_84 {dimension_numbers = #tpu.dot_dimension_numbers<[1], [0], [0], [1], [0, 0, 1, 1], [], []>} : vector<16x32xbf16>, vector<32x32xbf16>, vector<16x32xf32> -> vector<16x32xf32>
    %195 = vector.broadcast %124 : vector<1x32xf32> to vector<16x32xf32>
    %196 = arith.addf %194, %195 : vector<16x32xf32>
    %197 = arith.addf %196, %112 : vector<16x32xf32>
    %cst_85 = arith.constant dense<0.000000e+00> : vector<16xf32>
    %198 = vector.multi_reduction <add>, %197, %cst_85 [1] : vector<16x32xf32> to vector<16xf32>
    %199 = vector.shape_cast %198 : vector<16xf32> to vector<16x1xf32>
    %cst_86 = arith.constant 3.200000e+01 : f32
    %200 = vector.broadcast %cst_86 : f32 to vector<16x1xf32>
    %201 = arith.divf %199, %200 : vector<16x1xf32>
    %202 = vector.broadcast %201 : vector<16x1xf32> to vector<16x32xf32>
    %203 = arith.subf %197, %202 : vector<16x32xf32>
    %204 = arith.mulf %203, %203 : vector<16x32xf32>
    %cst_87 = arith.constant dense<0.000000e+00> : vector<16xf32>
    %205 = vector.multi_reduction <add>, %204, %cst_87 [1] : vector<16x32xf32> to vector<16xf32>
    %206 = vector.shape_cast %205 : vector<16xf32> to vector<16x1xf32>
    %cst_88 = arith.constant 3.200000e+01 : f32
    %207 = vector.broadcast %cst_88 : f32 to vector<16x1xf32>
    %208 = arith.divf %206, %207 : vector<16x1xf32>
    %209 = vector.broadcast %201 : vector<16x1xf32> to vector<16x32xf32>
    %210 = arith.subf %197, %209 : vector<16x32xf32>
    %cst_89 = arith.constant 9.99999974E-6 : f32
    %211 = vector.broadcast %cst_89 : f32 to vector<16x1xf32>
    %212 = arith.addf %208, %211 : vector<16x1xf32>
    %213 = math.rsqrt %212 : vector<16x1xf32>
    %214 = vector.broadcast %213 : vector<16x1xf32> to vector<16x32xf32>
    %215 = arith.mulf %210, %214 : vector<16x32xf32>
    %216 = vector.broadcast %126 : vector<1x32xf32> to vector<16x32xf32>
    %217 = arith.mulf %215, %216 : vector<16x32xf32>
    %218 = vector.broadcast %128 : vector<1x32xf32> to vector<16x32xf32>
    %219 = arith.addf %217, %218 : vector<16x32xf32>
    %c0_90 = arith.constant 0 : index
    %c0_91 = arith.constant 0 : index
    %c0_92 = arith.constant 0 : index
    %220 = vector.load %arg23[%c0_90, %c0_91, %c0_92] : memref<2x32x64xbf16, #tpu.memory_space<vmem>>, vector<1x32x64xbf16>
    %221 = vector.shape_cast %220 : vector<1x32x64xbf16> to vector<32x64xbf16>
    %c0_93 = arith.constant 0 : index
    %c0_94 = arith.constant 0 : index
    %c0_95 = arith.constant 0 : index
    %222 = vector.load %arg24[%c0_93, %c0_94, %c0_95] : memref<2x1x64xf32, #tpu.memory_space<vmem>>, vector<1x1x64xf32>
    %223 = vector.shape_cast %222 : vector<1x1x64xf32> to vector<1x64xf32>
    %224 = arith.truncf %219 : vector<16x32xf32> to vector<16x32xbf16>
    %cst_96 = arith.constant dense<0.000000e+00> : vector<16x64xf32>
    %225 = tpu.matmul %224, %221, %cst_96 {dimension_numbers = #tpu.dot_dimension_numbers<[1], [0], [0], [1], [0, 0, 1, 1], [], []>} : vector<16x32xbf16>, vector<32x64xbf16>, vector<16x64xf32> -> vector<16x64xf32>
    %226 = vector.broadcast %223 : vector<1x64xf32> to vector<16x64xf32>
    %227 = arith.addf %225, %226 : vector<16x64xf32>
    %cst_97 = arith.constant 0.000000e+00 : f32
    %228 = vector.broadcast %cst_97 : f32 to vector<16x64xf32>
    %229 = arith.maximumf %227, %228 : vector<16x64xf32>
    %c0_98 = arith.constant 0 : index
    %c0_99 = arith.constant 0 : index
    %c0_100 = arith.constant 0 : index
    %230 = vector.load %arg25[%c0_98, %c0_99, %c0_100] : memref<2x64x32xbf16, #tpu.memory_space<vmem>>, vector<1x64x32xbf16>
    %231 = vector.shape_cast %230 : vector<1x64x32xbf16> to vector<64x32xbf16>
    %c0_101 = arith.constant 0 : index
    %c0_102 = arith.constant 0 : index
    %c0_103 = arith.constant 0 : index
    %232 = vector.load %arg26[%c0_101, %c0_102, %c0_103] : memref<2x1x32xf32, #tpu.memory_space<vmem>>, vector<1x1x32xf32>
    %233 = vector.shape_cast %232 : vector<1x1x32xf32> to vector<1x32xf32>
    %234 = arith.truncf %229 : vector<16x64xf32> to vector<16x64xbf16>
    %cst_104 = arith.constant dense<0.000000e+00> : vector<16x32xf32>
    %235 = tpu.matmul %234, %231, %cst_104 {dimension_numbers = #tpu.dot_dimension_numbers<[1], [0], [0], [1], [0, 0, 1, 1], [], []>} : vector<16x64xbf16>, vector<64x32xbf16>, vector<16x32xf32> -> vector<16x32xf32>
    %236 = vector.broadcast %233 : vector<1x32xf32> to vector<16x32xf32>
    %237 = arith.addf %235, %236 : vector<16x32xf32>
    %238 = arith.addf %237, %219 : vector<16x32xf32>
    %c0_105 = arith.constant 0 : index
    %c0_106 = arith.constant 0 : index
    %c0_107 = arith.constant 0 : index
    %239 = vector.load %arg27[%c0_105, %c0_106, %c0_107] : memref<2x1x32xf32, #tpu.memory_space<vmem>>, vector<1x1x32xf32>
    %240 = vector.shape_cast %239 : vector<1x1x32xf32> to vector<1x32xf32>
    %c0_108 = arith.constant 0 : index
    %c0_109 = arith.constant 0 : index
    %c0_110 = arith.constant 0 : index
    %241 = vector.load %arg28[%c0_108, %c0_109, %c0_110] : memref<2x1x32xf32, #tpu.memory_space<vmem>>, vector<1x1x32xf32>
    %242 = vector.shape_cast %241 : vector<1x1x32xf32> to vector<1x32xf32>
    %cst_111 = arith.constant dense<0.000000e+00> : vector<16xf32>
    %243 = vector.multi_reduction <add>, %238, %cst_111 [1] : vector<16x32xf32> to vector<16xf32>
    %244 = vector.shape_cast %243 : vector<16xf32> to vector<16x1xf32>
    %cst_112 = arith.constant 3.200000e+01 : f32
    %245 = vector.broadcast %cst_112 : f32 to vector<16x1xf32>
    %246 = arith.divf %244, %245 : vector<16x1xf32>
    %247 = vector.broadcast %246 : vector<16x1xf32> to vector<16x32xf32>
    %248 = arith.subf %238, %247 : vector<16x32xf32>
    %249 = arith.mulf %248, %248 : vector<16x32xf32>
    %cst_113 = arith.constant dense<0.000000e+00> : vector<16xf32>
    %250 = vector.multi_reduction <add>, %249, %cst_113 [1] : vector<16x32xf32> to vector<16xf32>
    %251 = vector.shape_cast %250 : vector<16xf32> to vector<16x1xf32>
    %cst_114 = arith.constant 3.200000e+01 : f32
    %252 = vector.broadcast %cst_114 : f32 to vector<16x1xf32>
    %253 = arith.divf %251, %252 : vector<16x1xf32>
    %254 = vector.broadcast %246 : vector<16x1xf32> to vector<16x32xf32>
    %255 = arith.subf %238, %254 : vector<16x32xf32>
    %cst_115 = arith.constant 9.99999974E-6 : f32
    %256 = vector.broadcast %cst_115 : f32 to vector<16x1xf32>
    %257 = arith.addf %253, %256 : vector<16x1xf32>
    %258 = math.rsqrt %257 : vector<16x1xf32>
    %259 = vector.broadcast %258 : vector<16x1xf32> to vector<16x32xf32>
    %260 = arith.mulf %255, %259 : vector<16x32xf32>
    %261 = vector.broadcast %240 : vector<1x32xf32> to vector<16x32xf32>
    %262 = arith.mulf %260, %261 : vector<16x32xf32>
    %263 = vector.broadcast %242 : vector<1x32xf32> to vector<16x32xf32>
    %264 = arith.addf %262, %263 : vector<16x32xf32>
    %c1 = arith.constant 1 : index
    %c0_116 = arith.constant 0 : index
    %c0_117 = arith.constant 0 : index
    %265 = vector.load %arg5[%c1, %c0_116, %c0_117] : memref<2x32x32xbf16, #tpu.memory_space<vmem>>, vector<1x32x32xbf16>
    %266 = vector.shape_cast %265 : vector<1x32x32xbf16> to vector<32x32xbf16>
    %c1_118 = arith.constant 1 : index
    %c0_119 = arith.constant 0 : index
    %c0_120 = arith.constant 0 : index
    %267 = vector.load %arg6[%c1_118, %c0_119, %c0_120] : memref<2x1x32xf32, #tpu.memory_space<vmem>>, vector<1x1x32xf32>
    %268 = vector.shape_cast %267 : vector<1x1x32xf32> to vector<1x32xf32>
    %c1_121 = arith.constant 1 : index
    %c0_122 = arith.constant 0 : index
    %c0_123 = arith.constant 0 : index
    %269 = vector.load %arg7[%c1_121, %c0_122, %c0_123] : memref<2x32x64xbf16, #tpu.memory_space<vmem>>, vector<1x32x64xbf16>
    %270 = vector.shape_cast %269 : vector<1x32x64xbf16> to vector<32x64xbf16>
    %c1_124 = arith.constant 1 : index
    %c0_125 = arith.constant 0 : index
    %c0_126 = arith.constant 0 : index
    %271 = vector.load %arg8[%c1_124, %c0_125, %c0_126] : memref<2x1x64xf32, #tpu.memory_space<vmem>>, vector<1x1x64xf32>
    %272 = vector.shape_cast %271 : vector<1x1x64xf32> to vector<1x64xf32>
    %c1_127 = arith.constant 1 : index
    %c0_128 = arith.constant 0 : index
    %c0_129 = arith.constant 0 : index
    %273 = vector.load %arg9[%c1_127, %c0_128, %c0_129] : memref<2x32x32xbf16, #tpu.memory_space<vmem>>, vector<1x32x32xbf16>
    %274 = vector.shape_cast %273 : vector<1x32x32xbf16> to vector<32x32xbf16>
    %c1_130 = arith.constant 1 : index
    %c0_131 = arith.constant 0 : index
    %c0_132 = arith.constant 0 : index
    %275 = vector.load %arg10[%c1_130, %c0_131, %c0_132] : memref<2x1x32xf32, #tpu.memory_space<vmem>>, vector<1x1x32xf32>
    %276 = vector.shape_cast %275 : vector<1x1x32xf32> to vector<1x32xf32>
    %c1_133 = arith.constant 1 : index
    %c0_134 = arith.constant 0 : index
    %c0_135 = arith.constant 0 : index
    %277 = vector.load %arg11[%c1_133, %c0_134, %c0_135] : memref<2x1x32xf32, #tpu.memory_space<vmem>>, vector<1x1x32xf32>
    %278 = vector.shape_cast %277 : vector<1x1x32xf32> to vector<1x32xf32>
    %c1_136 = arith.constant 1 : index
    %c0_137 = arith.constant 0 : index
    %c0_138 = arith.constant 0 : index
    %279 = vector.load %arg12[%c1_136, %c0_137, %c0_138] : memref<2x1x32xf32, #tpu.memory_space<vmem>>, vector<1x1x32xf32>
    %280 = vector.shape_cast %279 : vector<1x1x32xf32> to vector<1x32xf32>
    %281 = arith.truncf %264 : vector<16x32xf32> to vector<16x32xbf16>
    %cst_139 = arith.constant dense<0.000000e+00> : vector<16x32xf32>
    %282 = tpu.matmul %281, %266, %cst_139 {dimension_numbers = #tpu.dot_dimension_numbers<[1], [0], [0], [1], [0, 0, 1, 1], [], []>} : vector<16x32xbf16>, vector<32x32xbf16>, vector<16x32xf32> -> vector<16x32xf32>
    %283 = vector.broadcast %268 : vector<1x32xf32> to vector<16x32xf32>
    %284 = arith.addf %282, %283 : vector<16x32xf32>
    %285 = arith.truncf %264 : vector<16x32xf32> to vector<16x32xbf16>
    %cst_140 = arith.constant dense<0.000000e+00> : vector<16x64xf32>
    %286 = tpu.matmul %285, %270, %cst_140 {dimension_numbers = #tpu.dot_dimension_numbers<[1], [0], [0], [1], [0, 0, 1, 1], [], []>} : vector<16x32xbf16>, vector<32x64xbf16>, vector<16x64xf32> -> vector<16x64xf32>
    %287 = vector.broadcast %272 : vector<1x64xf32> to vector<16x64xf32>
    %288 = arith.addf %286, %287 : vector<16x64xf32>
    %289 = vector.shape_cast %284 : vector<16x32xf32> to vector<2x8x4x8xf32>
    %290 = vector.extract_strided_slice %288 {offsets = [0, 0], sizes = [16, 32], strides = [1, 1]} : vector<16x64xf32> to vector<16x32xf32>
    %291 = vector.shape_cast %290 : vector<16x32xf32> to vector<2x8x4x8xf32>
    %292 = vector.extract_strided_slice %288 {offsets = [0, 32], sizes = [16, 32], strides = [1, 1]} : vector<16x64xf32> to vector<16x32xf32>
    %293 = vector.shape_cast %292 : vector<16x32xf32> to vector<2x8x4x8xf32>
    %294 = vector.extract_strided_slice %289 {offsets = [0, 0, 0, 0], sizes = [1, 8, 4, 8], strides = [1, 1, 1, 1]} : vector<2x8x4x8xf32> to vector<1x8x4x8xf32>
    %295 = vector.shape_cast %294 : vector<1x8x4x8xf32> to vector<8x4x8xf32>
    %296 = vector.extract_strided_slice %291 {offsets = [0, 0, 0, 0], sizes = [1, 8, 4, 8], strides = [1, 1, 1, 1]} : vector<2x8x4x8xf32> to vector<1x8x4x8xf32>
    %297 = vector.shape_cast %296 : vector<1x8x4x8xf32> to vector<8x4x8xf32>
    "tpu.trace_start"() <{level = 10 : i32, message = "qhd,khd->hqk"}> : () -> ()
    %cst_141 = arith.constant dense<0.000000e+00> : vector<4x8x8xf32>
    %298 = tpu.matmul %295, %297, %cst_141 {dimension_numbers = #tpu.dot_dimension_numbers<[2], [2], [0], [0], [0, 1, 0, 0, 1, 0], [1], [1]>} : vector<8x4x8xf32>, vector<8x4x8xf32>, vector<4x8x8xf32> -> vector<4x8x8xf32>
    "tpu.trace_stop"() : () -> ()
    %299 = vector.extract_strided_slice %4 {offsets = [0, 0, 0], sizes = [1, 8, 8], strides = [1, 1, 1]} : vector<2x8x8xf32> to vector<1x8x8xf32>
    %300 = vector.shape_cast %299 : vector<1x8x8xf32> to vector<8x8xf32>
    %301 = vector.shape_cast %300 : vector<8x8xf32> to vector<1x8x8xf32>
    %302 = vector.broadcast %301 : vector<1x8x8xf32> to vector<4x8x8xf32>
    %303 = arith.addf %298, %302 : vector<4x8x8xf32>
    %cst_142 = arith.constant dense<0xFF800000> : vector<4x8xf32>
    %304 = vector.multi_reduction <maximumf>, %303, %cst_142 [2] : vector<4x8x8xf32> to vector<4x8xf32>
    %305 = vector.shape_cast %304 : vector<4x8xf32> to vector<4x8x1xf32>
    %306 = vector.broadcast %305 : vector<4x8x1xf32> to vector<4x8x8xf32>
    %307 = arith.subf %303, %306 : vector<4x8x8xf32>
    %308 = math.exp %307 : vector<4x8x8xf32>
    %cst_143 = arith.constant dense<0.000000e+00> : vector<4x8xf32>
    %309 = vector.multi_reduction <add>, %308, %cst_143 [2] : vector<4x8x8xf32> to vector<4x8xf32>
    %310 = vector.shape_cast %309 : vector<4x8xf32> to vector<4x8x1xf32>
    %311 = tpu.reciprocal %310 {approx = true} : vector<4x8x1xf32> -> vector<4x8x1xf32>
    %312 = vector.broadcast %311 : vector<4x8x1xf32> to vector<4x8x8xf32>
    %313 = arith.mulf %308, %312 : vector<4x8x8xf32>
    %314 = vector.extract_strided_slice %293 {offsets = [0, 0, 0, 0], sizes = [1, 8, 4, 8], strides = [1, 1, 1, 1]} : vector<2x8x4x8xf32> to vector<1x8x4x8xf32>
    %315 = vector.shape_cast %314 : vector<1x8x4x8xf32> to vector<8x4x8xf32>
    "tpu.trace_start"() <{level = 10 : i32, message = "hqk,khv->qhv"}> : () -> ()
    %cst_144 = arith.constant dense<0.000000e+00> : vector<4x8x8xf32>
    %316 = tpu.matmul %315, %313, %cst_144 {dimension_numbers = #tpu.dot_dimension_numbers<[0], [2], [2], [1], [0, 1, 0, 2, 1, 1], [1], [0]>} : vector<8x4x8xf32>, vector<4x8x8xf32>, vector<4x8x8xf32> -> vector<4x8x8xf32>
    %317 = tpu.transpose %316, [2, 0, 1] : vector<4x8x8xf32> -> vector<8x4x8xf32>
    "tpu.trace_stop"() : () -> ()
    %318 = vector.shape_cast %317 : vector<8x4x8xf32> to vector<8x32xf32>
    %319 = vector.extract_strided_slice %289 {offsets = [1, 0, 0, 0], sizes = [1, 8, 4, 8], strides = [1, 1, 1, 1]} : vector<2x8x4x8xf32> to vector<1x8x4x8xf32>
    %320 = vector.shape_cast %319 : vector<1x8x4x8xf32> to vector<8x4x8xf32>
    %321 = vector.extract_strided_slice %291 {offsets = [1, 0, 0, 0], sizes = [1, 8, 4, 8], strides = [1, 1, 1, 1]} : vector<2x8x4x8xf32> to vector<1x8x4x8xf32>
    %322 = vector.shape_cast %321 : vector<1x8x4x8xf32> to vector<8x4x8xf32>
    "tpu.trace_start"() <{level = 10 : i32, message = "qhd,khd->hqk"}> : () -> ()
    %cst_145 = arith.constant dense<0.000000e+00> : vector<4x8x8xf32>
    %323 = tpu.matmul %320, %322, %cst_145 {dimension_numbers = #tpu.dot_dimension_numbers<[2], [2], [0], [0], [0, 1, 0, 0, 1, 0], [1], [1]>} : vector<8x4x8xf32>, vector<8x4x8xf32>, vector<4x8x8xf32> -> vector<4x8x8xf32>
    "tpu.trace_stop"() : () -> ()
    %324 = vector.extract_strided_slice %4 {offsets = [1, 0, 0], sizes = [1, 8, 8], strides = [1, 1, 1]} : vector<2x8x8xf32> to vector<1x8x8xf32>
    %325 = vector.shape_cast %324 : vector<1x8x8xf32> to vector<8x8xf32>
    %326 = vector.shape_cast %325 : vector<8x8xf32> to vector<1x8x8xf32>
    %327 = vector.broadcast %326 : vector<1x8x8xf32> to vector<4x8x8xf32>
    %328 = arith.addf %323, %327 : vector<4x8x8xf32>
    %cst_146 = arith.constant dense<0xFF800000> : vector<4x8xf32>
    %329 = vector.multi_reduction <maximumf>, %328, %cst_146 [2] : vector<4x8x8xf32> to vector<4x8xf32>
    %330 = vector.shape_cast %329 : vector<4x8xf32> to vector<4x8x1xf32>
    %331 = vector.broadcast %330 : vector<4x8x1xf32> to vector<4x8x8xf32>
    %332 = arith.subf %328, %331 : vector<4x8x8xf32>
    %333 = math.exp %332 : vector<4x8x8xf32>
    %cst_147 = arith.constant dense<0.000000e+00> : vector<4x8xf32>
    %334 = vector.multi_reduction <add>, %333, %cst_147 [2] : vector<4x8x8xf32> to vector<4x8xf32>
    %335 = vector.shape_cast %334 : vector<4x8xf32> to vector<4x8x1xf32>
    %336 = tpu.reciprocal %335 {approx = true} : vector<4x8x1xf32> -> vector<4x8x1xf32>
    %337 = vector.broadcast %336 : vector<4x8x1xf32> to vector<4x8x8xf32>
    %338 = arith.mulf %333, %337 : vector<4x8x8xf32>
    %339 = vector.extract_strided_slice %293 {offsets = [1, 0, 0, 0], sizes = [1, 8, 4, 8], strides = [1, 1, 1, 1]} : vector<2x8x4x8xf32> to vector<1x8x4x8xf32>
    %340 = vector.shape_cast %339 : vector<1x8x4x8xf32> to vector<8x4x8xf32>
    "tpu.trace_start"() <{level = 10 : i32, message = "hqk,khv->qhv"}> : () -> ()
    %cst_148 = arith.constant dense<0.000000e+00> : vector<4x8x8xf32>
    %341 = tpu.matmul %340, %338, %cst_148 {dimension_numbers = #tpu.dot_dimension_numbers<[0], [2], [2], [1], [0, 1, 0, 2, 1, 1], [1], [0]>} : vector<8x4x8xf32>, vector<4x8x8xf32>, vector<4x8x8xf32> -> vector<4x8x8xf32>
    %342 = tpu.transpose %341, [2, 0, 1] : vector<4x8x8xf32> -> vector<8x4x8xf32>
    "tpu.trace_stop"() : () -> ()
    %343 = vector.shape_cast %342 : vector<8x4x8xf32> to vector<8x32xf32>
    %344 = tpu.concatenate %318, %343 in 0 : vector<8x32xf32>, vector<8x32xf32> -> vector<16x32xf32>
    %345 = arith.truncf %344 : vector<16x32xf32> to vector<16x32xbf16>
    %cst_149 = arith.constant dense<0.000000e+00> : vector<16x32xf32>
    %346 = tpu.matmul %345, %274, %cst_149 {dimension_numbers = #tpu.dot_dimension_numbers<[1], [0], [0], [1], [0, 0, 1, 1], [], []>} : vector<16x32xbf16>, vector<32x32xbf16>, vector<16x32xf32> -> vector<16x32xf32>
    %347 = vector.broadcast %276 : vector<1x32xf32> to vector<16x32xf32>
    %348 = arith.addf %346, %347 : vector<16x32xf32>
    %349 = arith.addf %348, %264 : vector<16x32xf32>
    %cst_150 = arith.constant dense<0.000000e+00> : vector<16xf32>
    %350 = vector.multi_reduction <add>, %349, %cst_150 [1] : vector<16x32xf32> to vector<16xf32>
    %351 = vector.shape_cast %350 : vector<16xf32> to vector<16x1xf32>
    %cst_151 = arith.constant 3.200000e+01 : f32
    %352 = vector.broadcast %cst_151 : f32 to vector<16x1xf32>
    %353 = arith.divf %351, %352 : vector<16x1xf32>
    %354 = vector.broadcast %353 : vector<16x1xf32> to vector<16x32xf32>
    %355 = arith.subf %349, %354 : vector<16x32xf32>
    %356 = arith.mulf %355, %355 : vector<16x32xf32>
    %cst_152 = arith.constant dense<0.000000e+00> : vector<16xf32>
    %357 = vector.multi_reduction <add>, %356, %cst_152 [1] : vector<16x32xf32> to vector<16xf32>
    %358 = vector.shape_cast %357 : vector<16xf32> to vector<16x1xf32>
    %cst_153 = arith.constant 3.200000e+01 : f32
    %359 = vector.broadcast %cst_153 : f32 to vector<16x1xf32>
    %360 = arith.divf %358, %359 : vector<16x1xf32>
    %361 = vector.broadcast %353 : vector<16x1xf32> to vector<16x32xf32>
    %362 = arith.subf %349, %361 : vector<16x32xf32>
    %cst_154 = arith.constant 9.99999974E-6 : f32
    %363 = vector.broadcast %cst_154 : f32 to vector<16x1xf32>
    %364 = arith.addf %360, %363 : vector<16x1xf32>
    %365 = math.rsqrt %364 : vector<16x1xf32>
    %366 = vector.broadcast %365 : vector<16x1xf32> to vector<16x32xf32>
    %367 = arith.mulf %362, %366 : vector<16x32xf32>
    %368 = vector.broadcast %278 : vector<1x32xf32> to vector<16x32xf32>
    %369 = arith.mulf %367, %368 : vector<16x32xf32>
    %370 = vector.broadcast %280 : vector<1x32xf32> to vector<16x32xf32>
    %371 = arith.addf %369, %370 : vector<16x32xf32>
    %c1_155 = arith.constant 1 : index
    %c0_156 = arith.constant 0 : index
    %c0_157 = arith.constant 0 : index
    %372 = vector.load %arg13[%c1_155, %c0_156, %c0_157] : memref<2x32x32xbf16, #tpu.memory_space<vmem>>, vector<1x32x32xbf16>
    %373 = vector.shape_cast %372 : vector<1x32x32xbf16> to vector<32x32xbf16>
    %c1_158 = arith.constant 1 : index
    %c0_159 = arith.constant 0 : index
    %c0_160 = arith.constant 0 : index
    %374 = vector.load %arg14[%c1_158, %c0_159, %c0_160] : memref<2x1x32xf32, #tpu.memory_space<vmem>>, vector<1x1x32xf32>
    %375 = vector.shape_cast %374 : vector<1x1x32xf32> to vector<1x32xf32>
    %c1_161 = arith.constant 1 : index
    %c0_162 = arith.constant 0 : index
    %c0_163 = arith.constant 0 : index
    %376 = vector.load %arg15[%c1_161, %c0_162, %c0_163] : memref<2x32x64xbf16, #tpu.memory_space<vmem>>, vector<1x32x64xbf16>
    %377 = vector.shape_cast %376 : vector<1x32x64xbf16> to vector<32x64xbf16>
    %c1_164 = arith.constant 1 : index
    %c0_165 = arith.constant 0 : index
    %c0_166 = arith.constant 0 : index
    %378 = vector.load %arg16[%c1_164, %c0_165, %c0_166] : memref<2x1x64xf32, #tpu.memory_space<vmem>>, vector<1x1x64xf32>
    %379 = vector.shape_cast %378 : vector<1x1x64xf32> to vector<1x64xf32>
    %c1_167 = arith.constant 1 : index
    %c0_168 = arith.constant 0 : index
    %c0_169 = arith.constant 0 : index
    %380 = vector.load %arg17[%c1_167, %c0_168, %c0_169] : memref<2x32x32xbf16, #tpu.memory_space<vmem>>, vector<1x32x32xbf16>
    %381 = vector.shape_cast %380 : vector<1x32x32xbf16> to vector<32x32xbf16>
    %c1_170 = arith.constant 1 : index
    %c0_171 = arith.constant 0 : index
    %c0_172 = arith.constant 0 : index
    %382 = vector.load %arg18[%c1_170, %c0_171, %c0_172] : memref<2x1x32xf32, #tpu.memory_space<vmem>>, vector<1x1x32xf32>
    %383 = vector.shape_cast %382 : vector<1x1x32xf32> to vector<1x32xf32>
    %c1_173 = arith.constant 1 : index
    %c0_174 = arith.constant 0 : index
    %c0_175 = arith.constant 0 : index
    %384 = vector.load %arg19[%c1_173, %c0_174, %c0_175] : memref<2x1x32xf32, #tpu.memory_space<vmem>>, vector<1x1x32xf32>
    %385 = vector.shape_cast %384 : vector<1x1x32xf32> to vector<1x32xf32>
    %c1_176 = arith.constant 1 : index
    %c0_177 = arith.constant 0 : index
    %c0_178 = arith.constant 0 : index
    %386 = vector.load %arg20[%c1_176, %c0_177, %c0_178] : memref<2x1x32xf32, #tpu.memory_space<vmem>>, vector<1x1x32xf32>
    %387 = vector.shape_cast %386 : vector<1x1x32xf32> to vector<1x32xf32>
    %c0_179 = arith.constant 0 : index
    %c0_180 = arith.constant 0 : index
    %388 = vector.load %arg21[%c0_179, %c0_180] : memref<32x32xbf16, #tpu.memory_space<vmem>>, vector<32x32xbf16>
    %c0_181 = arith.constant 0 : index
    %c0_182 = arith.constant 0 : index
    %389 = vector.load %arg22[%c0_181, %c0_182] : memref<1x32xf32, #tpu.memory_space<vmem>>, vector<1x32xf32>
    %390 = arith.truncf %371 : vector<16x32xf32> to vector<16x32xbf16>
    %cst_183 = arith.constant dense<0.000000e+00> : vector<16x32xf32>
    %391 = tpu.matmul %390, %373, %cst_183 {dimension_numbers = #tpu.dot_dimension_numbers<[1], [0], [0], [1], [0, 0, 1, 1], [], []>} : vector<16x32xbf16>, vector<32x32xbf16>, vector<16x32xf32> -> vector<16x32xf32>
    %392 = vector.broadcast %375 : vector<1x32xf32> to vector<16x32xf32>
    %393 = arith.addf %391, %392 : vector<16x32xf32>
    %394 = arith.truncf %3 : vector<16x32xf32> to vector<16x32xbf16>
    %cst_184 = arith.constant dense<0.000000e+00> : vector<16x64xf32>
    %395 = tpu.matmul %394, %377, %cst_184 {dimension_numbers = #tpu.dot_dimension_numbers<[1], [0], [0], [1], [0, 0, 1, 1], [], []>} : vector<16x32xbf16>, vector<32x64xbf16>, vector<16x64xf32> -> vector<16x64xf32>
    %396 = vector.broadcast %379 : vector<1x64xf32> to vector<16x64xf32>
    %397 = arith.addf %395, %396 : vector<16x64xf32>
    %398 = vector.shape_cast %393 : vector<16x32xf32> to vector<2x8x4x8xf32>
    %399 = vector.extract_strided_slice %397 {offsets = [0, 0], sizes = [16, 32], strides = [1, 1]} : vector<16x64xf32> to vector<16x32xf32>
    %400 = vector.shape_cast %399 : vector<16x32xf32> to vector<2x8x4x8xf32>
    %401 = vector.extract_strided_slice %397 {offsets = [0, 32], sizes = [16, 32], strides = [1, 1]} : vector<16x64xf32> to vector<16x32xf32>
    %402 = vector.shape_cast %401 : vector<16x32xf32> to vector<2x8x4x8xf32>
    %403 = vector.extract_strided_slice %398 {offsets = [0, 0, 0, 0], sizes = [1, 8, 4, 8], strides = [1, 1, 1, 1]} : vector<2x8x4x8xf32> to vector<1x8x4x8xf32>
    %404 = vector.shape_cast %403 : vector<1x8x4x8xf32> to vector<8x4x8xf32>
    %405 = vector.extract_strided_slice %400 {offsets = [0, 0, 0, 0], sizes = [1, 8, 4, 8], strides = [1, 1, 1, 1]} : vector<2x8x4x8xf32> to vector<1x8x4x8xf32>
    %406 = vector.shape_cast %405 : vector<1x8x4x8xf32> to vector<8x4x8xf32>
    "tpu.trace_start"() <{level = 10 : i32, message = "qhd,khd->hqk"}> : () -> ()
    %cst_185 = arith.constant dense<0.000000e+00> : vector<4x8x8xf32>
    %407 = tpu.matmul %404, %406, %cst_185 {dimension_numbers = #tpu.dot_dimension_numbers<[2], [2], [0], [0], [0, 1, 0, 0, 1, 0], [1], [1]>} : vector<8x4x8xf32>, vector<8x4x8xf32>, vector<4x8x8xf32> -> vector<4x8x8xf32>
    "tpu.trace_stop"() : () -> ()
    %408 = vector.extract_strided_slice %5 {offsets = [0, 0, 0], sizes = [1, 1, 8], strides = [1, 1, 1]} : vector<2x1x8xf32> to vector<1x1x8xf32>
    %409 = vector.shape_cast %408 : vector<1x1x8xf32> to vector<1x8xf32>
    %410 = vector.shape_cast %409 : vector<1x8xf32> to vector<1x1x8xf32>
    %411 = vector.broadcast %410 : vector<1x1x8xf32> to vector<4x8x8xf32>
    %412 = arith.addf %407, %411 : vector<4x8x8xf32>
    %cst_186 = arith.constant dense<0xFF800000> : vector<4x8xf32>
    %413 = vector.multi_reduction <maximumf>, %412, %cst_186 [2] : vector<4x8x8xf32> to vector<4x8xf32>
    %414 = vector.shape_cast %413 : vector<4x8xf32> to vector<4x8x1xf32>
    %415 = vector.broadcast %414 : vector<4x8x1xf32> to vector<4x8x8xf32>
    %416 = arith.subf %412, %415 : vector<4x8x8xf32>
    %417 = math.exp %416 : vector<4x8x8xf32>
    %cst_187 = arith.constant dense<0.000000e+00> : vector<4x8xf32>
    %418 = vector.multi_reduction <add>, %417, %cst_187 [2] : vector<4x8x8xf32> to vector<4x8xf32>
    %419 = vector.shape_cast %418 : vector<4x8xf32> to vector<4x8x1xf32>
    %420 = tpu.reciprocal %419 {approx = true} : vector<4x8x1xf32> -> vector<4x8x1xf32>
    %421 = vector.broadcast %420 : vector<4x8x1xf32> to vector<4x8x8xf32>
    %422 = arith.mulf %417, %421 : vector<4x8x8xf32>
    %423 = vector.extract_strided_slice %402 {offsets = [0, 0, 0, 0], sizes = [1, 8, 4, 8], strides = [1, 1, 1, 1]} : vector<2x8x4x8xf32> to vector<1x8x4x8xf32>
    %424 = vector.shape_cast %423 : vector<1x8x4x8xf32> to vector<8x4x8xf32>
    "tpu.trace_start"() <{level = 10 : i32, message = "hqk,khv->qhv"}> : () -> ()
    %cst_188 = arith.constant dense<0.000000e+00> : vector<4x8x8xf32>
    %425 = tpu.matmul %424, %422, %cst_188 {dimension_numbers = #tpu.dot_dimension_numbers<[0], [2], [2], [1], [0, 1, 0, 2, 1, 1], [1], [0]>} : vector<8x4x8xf32>, vector<4x8x8xf32>, vector<4x8x8xf32> -> vector<4x8x8xf32>
    %426 = tpu.transpose %425, [2, 0, 1] : vector<4x8x8xf32> -> vector<8x4x8xf32>
    "tpu.trace_stop"() : () -> ()
    %427 = vector.shape_cast %426 : vector<8x4x8xf32> to vector<8x32xf32>
    %cst_189 = arith.constant dense<0.000000e+00> : vector<8x8xf32>
    %428 = vector.multi_reduction <add>, %422, %cst_189 [0] : vector<4x8x8xf32> to vector<8x8xf32>
    %cst_190 = arith.constant 4.000000e+00 : f32
    %429 = vector.broadcast %cst_190 : f32 to vector<8x8xf32>
    %430 = arith.divf %428, %429 : vector<8x8xf32>
    %431 = vector.extract_strided_slice %398 {offsets = [1, 0, 0, 0], sizes = [1, 8, 4, 8], strides = [1, 1, 1, 1]} : vector<2x8x4x8xf32> to vector<1x8x4x8xf32>
    %432 = vector.shape_cast %431 : vector<1x8x4x8xf32> to vector<8x4x8xf32>
    %433 = vector.extract_strided_slice %400 {offsets = [1, 0, 0, 0], sizes = [1, 8, 4, 8], strides = [1, 1, 1, 1]} : vector<2x8x4x8xf32> to vector<1x8x4x8xf32>
    %434 = vector.shape_cast %433 : vector<1x8x4x8xf32> to vector<8x4x8xf32>
    "tpu.trace_start"() <{level = 10 : i32, message = "qhd,khd->hqk"}> : () -> ()
    %cst_191 = arith.constant dense<0.000000e+00> : vector<4x8x8xf32>
    %435 = tpu.matmul %432, %434, %cst_191 {dimension_numbers = #tpu.dot_dimension_numbers<[2], [2], [0], [0], [0, 1, 0, 0, 1, 0], [1], [1]>} : vector<8x4x8xf32>, vector<8x4x8xf32>, vector<4x8x8xf32> -> vector<4x8x8xf32>
    "tpu.trace_stop"() : () -> ()
    %436 = vector.extract_strided_slice %5 {offsets = [1, 0, 0], sizes = [1, 1, 8], strides = [1, 1, 1]} : vector<2x1x8xf32> to vector<1x1x8xf32>
    %437 = vector.shape_cast %436 : vector<1x1x8xf32> to vector<1x8xf32>
    %438 = vector.shape_cast %437 : vector<1x8xf32> to vector<1x1x8xf32>
    %439 = vector.broadcast %438 : vector<1x1x8xf32> to vector<4x8x8xf32>
    %440 = arith.addf %435, %439 : vector<4x8x8xf32>
    %cst_192 = arith.constant dense<0xFF800000> : vector<4x8xf32>
    %441 = vector.multi_reduction <maximumf>, %440, %cst_192 [2] : vector<4x8x8xf32> to vector<4x8xf32>
    %442 = vector.shape_cast %441 : vector<4x8xf32> to vector<4x8x1xf32>
    %443 = vector.broadcast %442 : vector<4x8x1xf32> to vector<4x8x8xf32>
    %444 = arith.subf %440, %443 : vector<4x8x8xf32>
    %445 = math.exp %444 : vector<4x8x8xf32>
    %cst_193 = arith.constant dense<0.000000e+00> : vector<4x8xf32>
    %446 = vector.multi_reduction <add>, %445, %cst_193 [2] : vector<4x8x8xf32> to vector<4x8xf32>
    %447 = vector.shape_cast %446 : vector<4x8xf32> to vector<4x8x1xf32>
    %448 = tpu.reciprocal %447 {approx = true} : vector<4x8x1xf32> -> vector<4x8x1xf32>
    %449 = vector.broadcast %448 : vector<4x8x1xf32> to vector<4x8x8xf32>
    %450 = arith.mulf %445, %449 : vector<4x8x8xf32>
    %451 = vector.extract_strided_slice %402 {offsets = [1, 0, 0, 0], sizes = [1, 8, 4, 8], strides = [1, 1, 1, 1]} : vector<2x8x4x8xf32> to vector<1x8x4x8xf32>
    %452 = vector.shape_cast %451 : vector<1x8x4x8xf32> to vector<8x4x8xf32>
    "tpu.trace_start"() <{level = 10 : i32, message = "hqk,khv->qhv"}> : () -> ()
    %cst_194 = arith.constant dense<0.000000e+00> : vector<4x8x8xf32>
    %453 = tpu.matmul %452, %450, %cst_194 {dimension_numbers = #tpu.dot_dimension_numbers<[0], [2], [2], [1], [0, 1, 0, 2, 1, 1], [1], [0]>} : vector<8x4x8xf32>, vector<4x8x8xf32>, vector<4x8x8xf32> -> vector<4x8x8xf32>
    %454 = tpu.transpose %453, [2, 0, 1] : vector<4x8x8xf32> -> vector<8x4x8xf32>
    "tpu.trace_stop"() : () -> ()
    %455 = vector.shape_cast %454 : vector<8x4x8xf32> to vector<8x32xf32>
    %cst_195 = arith.constant dense<0.000000e+00> : vector<8x8xf32>
    %456 = vector.multi_reduction <add>, %450, %cst_195 [0] : vector<4x8x8xf32> to vector<8x8xf32>
    %cst_196 = arith.constant 4.000000e+00 : f32
    %457 = vector.broadcast %cst_196 : f32 to vector<8x8xf32>
    %458 = arith.divf %456, %457 : vector<8x8xf32>
    %459 = tpu.concatenate %427, %455 in 0 : vector<8x32xf32>, vector<8x32xf32> -> vector<16x32xf32>
    %460 = arith.truncf %459 : vector<16x32xf32> to vector<16x32xbf16>
    %cst_197 = arith.constant dense<0.000000e+00> : vector<16x32xf32>
    %461 = tpu.matmul %460, %381, %cst_197 {dimension_numbers = #tpu.dot_dimension_numbers<[1], [0], [0], [1], [0, 0, 1, 1], [], []>} : vector<16x32xbf16>, vector<32x32xbf16>, vector<16x32xf32> -> vector<16x32xf32>
    %462 = vector.broadcast %383 : vector<1x32xf32> to vector<16x32xf32>
    %463 = arith.addf %461, %462 : vector<16x32xf32>
    %464 = arith.addf %463, %371 : vector<16x32xf32>
    %cst_198 = arith.constant dense<0.000000e+00> : vector<16xf32>
    %465 = vector.multi_reduction <add>, %464, %cst_198 [1] : vector<16x32xf32> to vector<16xf32>
    %466 = vector.shape_cast %465 : vector<16xf32> to vector<16x1xf32>
    %cst_199 = arith.constant 3.200000e+01 : f32
    %467 = vector.broadcast %cst_199 : f32 to vector<16x1xf32>
    %468 = arith.divf %466, %467 : vector<16x1xf32>
    %469 = vector.broadcast %468 : vector<16x1xf32> to vector<16x32xf32>
    %470 = arith.subf %464, %469 : vector<16x32xf32>
    %471 = arith.mulf %470, %470 : vector<16x32xf32>
    %cst_200 = arith.constant dense<0.000000e+00> : vector<16xf32>
    %472 = vector.multi_reduction <add>, %471, %cst_200 [1] : vector<16x32xf32> to vector<16xf32>
    %473 = vector.shape_cast %472 : vector<16xf32> to vector<16x1xf32>
    %cst_201 = arith.constant 3.200000e+01 : f32
    %474 = vector.broadcast %cst_201 : f32 to vector<16x1xf32>
    %475 = arith.divf %473, %474 : vector<16x1xf32>
    %476 = vector.broadcast %468 : vector<16x1xf32> to vector<16x32xf32>
    %477 = arith.subf %464, %476 : vector<16x32xf32>
    %cst_202 = arith.constant 9.99999974E-6 : f32
    %478 = vector.broadcast %cst_202 : f32 to vector<16x1xf32>
    %479 = arith.addf %475, %478 : vector<16x1xf32>
    %480 = math.rsqrt %479 : vector<16x1xf32>
    %481 = vector.broadcast %480 : vector<16x1xf32> to vector<16x32xf32>
    %482 = arith.mulf %477, %481 : vector<16x32xf32>
    %483 = vector.broadcast %385 : vector<1x32xf32> to vector<16x32xf32>
    %484 = arith.mulf %482, %483 : vector<16x32xf32>
    %485 = vector.broadcast %387 : vector<1x32xf32> to vector<16x32xf32>
    %486 = arith.addf %484, %485 : vector<16x32xf32>
    %487 = arith.truncf %459 : vector<16x32xf32> to vector<16x32xbf16>
    %cst_203 = arith.constant dense<0.000000e+00> : vector<16x32xf32>
    %488 = tpu.matmul %487, %388, %cst_203 {dimension_numbers = #tpu.dot_dimension_numbers<[1], [0], [0], [1], [0, 0, 1, 1], [], []>} : vector<16x32xbf16>, vector<32x32xbf16>, vector<16x32xf32> -> vector<16x32xf32>
    %489 = vector.broadcast %389 : vector<1x32xf32> to vector<16x32xf32>
    %490 = arith.addf %488, %489 : vector<16x32xf32>
    %c1_204 = arith.constant 1 : index
    %c0_205 = arith.constant 0 : index
    %c0_206 = arith.constant 0 : index
    %491 = vector.load %arg23[%c1_204, %c0_205, %c0_206] : memref<2x32x64xbf16, #tpu.memory_space<vmem>>, vector<1x32x64xbf16>
    %492 = vector.shape_cast %491 : vector<1x32x64xbf16> to vector<32x64xbf16>
    %c1_207 = arith.constant 1 : index
    %c0_208 = arith.constant 0 : index
    %c0_209 = arith.constant 0 : index
    %493 = vector.load %arg24[%c1_207, %c0_208, %c0_209] : memref<2x1x64xf32, #tpu.memory_space<vmem>>, vector<1x1x64xf32>
    %494 = vector.shape_cast %493 : vector<1x1x64xf32> to vector<1x64xf32>
    %495 = arith.truncf %486 : vector<16x32xf32> to vector<16x32xbf16>
    %cst_210 = arith.constant dense<0.000000e+00> : vector<16x64xf32>
    %496 = tpu.matmul %495, %492, %cst_210 {dimension_numbers = #tpu.dot_dimension_numbers<[1], [0], [0], [1], [0, 0, 1, 1], [], []>} : vector<16x32xbf16>, vector<32x64xbf16>, vector<16x64xf32> -> vector<16x64xf32>
    %497 = vector.broadcast %494 : vector<1x64xf32> to vector<16x64xf32>
    %498 = arith.addf %496, %497 : vector<16x64xf32>
    %cst_211 = arith.constant 0.000000e+00 : f32
    %499 = vector.broadcast %cst_211 : f32 to vector<16x64xf32>
    %500 = arith.maximumf %498, %499 : vector<16x64xf32>
    %c1_212 = arith.constant 1 : index
    %c0_213 = arith.constant 0 : index
    %c0_214 = arith.constant 0 : index
    %501 = vector.load %arg25[%c1_212, %c0_213, %c0_214] : memref<2x64x32xbf16, #tpu.memory_space<vmem>>, vector<1x64x32xbf16>
    %502 = vector.shape_cast %501 : vector<1x64x32xbf16> to vector<64x32xbf16>
    %c1_215 = arith.constant 1 : index
    %c0_216 = arith.constant 0 : index
    %c0_217 = arith.constant 0 : index
    %503 = vector.load %arg26[%c1_215, %c0_216, %c0_217] : memref<2x1x32xf32, #tpu.memory_space<vmem>>, vector<1x1x32xf32>
    %504 = vector.shape_cast %503 : vector<1x1x32xf32> to vector<1x32xf32>
    %505 = arith.truncf %500 : vector<16x64xf32> to vector<16x64xbf16>
    %cst_218 = arith.constant dense<0.000000e+00> : vector<16x32xf32>
    %506 = tpu.matmul %505, %502, %cst_218 {dimension_numbers = #tpu.dot_dimension_numbers<[1], [0], [0], [1], [0, 0, 1, 1], [], []>} : vector<16x64xbf16>, vector<64x32xbf16>, vector<16x32xf32> -> vector<16x32xf32>
    %507 = vector.broadcast %504 : vector<1x32xf32> to vector<16x32xf32>
    %508 = arith.addf %506, %507 : vector<16x32xf32>
    %509 = arith.addf %508, %486 : vector<16x32xf32>
    %c1_219 = arith.constant 1 : index
    %c0_220 = arith.constant 0 : index
    %c0_221 = arith.constant 0 : index
    %510 = vector.load %arg27[%c1_219, %c0_220, %c0_221] : memref<2x1x32xf32, #tpu.memory_space<vmem>>, vector<1x1x32xf32>
    %511 = vector.shape_cast %510 : vector<1x1x32xf32> to vector<1x32xf32>
    %c1_222 = arith.constant 1 : index
    %c0_223 = arith.constant 0 : index
    %c0_224 = arith.constant 0 : index
    %512 = vector.load %arg28[%c1_222, %c0_223, %c0_224] : memref<2x1x32xf32, #tpu.memory_space<vmem>>, vector<1x1x32xf32>
    %513 = vector.shape_cast %512 : vector<1x1x32xf32> to vector<1x32xf32>
    %cst_225 = arith.constant dense<0.000000e+00> : vector<16xf32>
    %514 = vector.multi_reduction <add>, %509, %cst_225 [1] : vector<16x32xf32> to vector<16xf32>
    %515 = vector.shape_cast %514 : vector<16xf32> to vector<16x1xf32>
    %cst_226 = arith.constant 3.200000e+01 : f32
    %516 = vector.broadcast %cst_226 : f32 to vector<16x1xf32>
    %517 = arith.divf %515, %516 : vector<16x1xf32>
    %518 = vector.broadcast %517 : vector<16x1xf32> to vector<16x32xf32>
    %519 = arith.subf %509, %518 : vector<16x32xf32>
    %520 = arith.mulf %519, %519 : vector<16x32xf32>
    %cst_227 = arith.constant dense<0.000000e+00> : vector<16xf32>
    %521 = vector.multi_reduction <add>, %520, %cst_227 [1] : vector<16x32xf32> to vector<16xf32>
    %522 = vector.shape_cast %521 : vector<16xf32> to vector<16x1xf32>
    %cst_228 = arith.constant 3.200000e+01 : f32
    %523 = vector.broadcast %cst_228 : f32 to vector<16x1xf32>
    %524 = arith.divf %522, %523 : vector<16x1xf32>
    %525 = vector.broadcast %517 : vector<16x1xf32> to vector<16x32xf32>
    %526 = arith.subf %509, %525 : vector<16x32xf32>
    %cst_229 = arith.constant 9.99999974E-6 : f32
    %527 = vector.broadcast %cst_229 : f32 to vector<16x1xf32>
    %528 = arith.addf %524, %527 : vector<16x1xf32>
    %529 = math.rsqrt %528 : vector<16x1xf32>
    %530 = vector.broadcast %529 : vector<16x1xf32> to vector<16x32xf32>
    %531 = arith.mulf %526, %530 : vector<16x32xf32>
    %532 = vector.broadcast %511 : vector<1x32xf32> to vector<16x32xf32>
    %533 = arith.mulf %531, %532 : vector<16x32xf32>
    %534 = vector.broadcast %513 : vector<1x32xf32> to vector<16x32xf32>
    %535 = arith.addf %533, %534 : vector<16x32xf32>
    %c0_230 = arith.constant 0 : index
    %c0_231 = arith.constant 0 : index
    %536 = vector.load %arg31[%c0_230, %c0_231] : memref<1x32xf32, #tpu.memory_space<vmem>>, vector<1x32xf32>
    %537 = vector.broadcast %536 : vector<1x32xf32> to vector<16x32xf32>
    %538 = arith.mulf %535, %537 : vector<16x32xf32>
    %cst_232 = arith.constant dense<0.000000e+00> : vector<16xf32>
    %539 = vector.multi_reduction <add>, %538, %cst_232 [1] : vector<16x32xf32> to vector<16xf32>
    %540 = vector.shape_cast %539 : vector<16xf32> to vector<16x1xf32>
    %c0_233 = arith.constant 0 : index
    %c0_234 = arith.constant 0 : index
    %541 = vector.load %arg32[%c0_233, %c0_234] : memref<1x32xf32, #tpu.memory_space<vmem>>, vector<1x32xf32>
    %542 = vector.broadcast %541 : vector<1x32xf32> to vector<16x32xf32>
    %543 = arith.mulf %490, %542 : vector<16x32xf32>
    %cst_235 = arith.constant dense<0.000000e+00> : vector<16xf32>
    %544 = vector.multi_reduction <add>, %543, %cst_235 [1] : vector<16x32xf32> to vector<16xf32>
    %545 = vector.shape_cast %544 : vector<16xf32> to vector<16x1xf32>
    %546 = arith.addf %540, %545 : vector<16x1xf32>
    %c0_236 = arith.constant 0 : index
    %c0_237 = arith.constant 0 : index
    %547 = vector.load %arg33[%c0_236, %c0_237] : memref<1x1xf32, #tpu.memory_space<vmem>>, vector<1x1xf32>
    %548 = vector.broadcast %547 : vector<1x1xf32> to vector<16x1xf32>
    %549 = arith.addf %546, %548 : vector<16x1xf32>
    %cst_238 = arith.constant 0.000000e+00 : f32
    %550 = vector.broadcast %cst_238 : f32 to vector<16x1xf32>
    %551 = arith.subf %550, %549 : vector<16x1xf32>
    %552 = math.exp %551 : vector<16x1xf32>
    %cst_239 = arith.constant 1.000000e+00 : f32
    %553 = vector.broadcast %cst_239 : f32 to vector<16x1xf32>
    %554 = arith.addf %553, %552 : vector<16x1xf32>
    %555 = tpu.reciprocal %554 {approx = true} : vector<16x1xf32> -> vector<16x1xf32>
    %556 = arith.truncf %535 : vector<16x32xf32> to vector<16x32xbf16>
    %c0_240 = arith.constant 0 : index
    %c0_241 = arith.constant 0 : index
    %557 = vector.load %arg29[%c0_240, %c0_241] : memref<32x128xbf16, #tpu.memory_space<vmem>>, vector<32x128xbf16>
    %cst_242 = arith.constant dense<0.000000e+00> : vector<16x128xf32>
    %558 = tpu.matmul %556, %557, %cst_242 {dimension_numbers = #tpu.dot_dimension_numbers<[1], [0], [0], [1], [0, 0, 1, 1], [], []>} : vector<16x32xbf16>, vector<32x128xbf16>, vector<16x128xf32> -> vector<16x128xf32>
    %c0_243 = arith.constant 0 : index
    %c0_244 = arith.constant 0 : index
    %559 = vector.load %arg30[%c0_243, %c0_244] : memref<1x128xf32, #tpu.memory_space<vmem>>, vector<1x128xf32>
    %560 = vector.broadcast %559 : vector<1x128xf32> to vector<16x128xf32>
    %561 = arith.addf %558, %560 : vector<16x128xf32>
    %cst_245 = arith.constant dense<0xFF800000> : vector<16xf32>
    %562 = vector.multi_reduction <maximumf>, %561, %cst_245 [1] : vector<16x128xf32> to vector<16xf32>
    %563 = vector.shape_cast %562 : vector<16xf32> to vector<16x1xf32>
    %564 = vector.broadcast %563 : vector<16x1xf32> to vector<16x128xf32>
    %565 = arith.subf %561, %564 : vector<16x128xf32>
    %566 = math.exp %565 : vector<16x128xf32>
    %cst_246 = arith.constant dense<0.000000e+00> : vector<16xf32>
    %567 = vector.multi_reduction <add>, %566, %cst_246 [1] : vector<16x128xf32> to vector<16xf32>
    %568 = vector.shape_cast %567 : vector<16xf32> to vector<16x1xf32>
    %569 = tpu.reciprocal %568 {approx = true} : vector<16x1xf32> -> vector<16x1xf32>
    %570 = vector.broadcast %569 : vector<16x1xf32> to vector<16x128xf32>
    %571 = arith.mulf %566, %570 : vector<16x128xf32>
    %572 = vector.shape_cast %571 : vector<16x128xf32> to vector<2x8x128xf32>
    %c0_247 = arith.constant 0 : index
    %c0_248 = arith.constant 0 : index
    %c0_249 = arith.constant 0 : index
    %573 = vector.load %arg34[%c0_247, %c0_248, %c0_249] : memref<2x8x128xf32, #tpu.memory_space<vmem>>, vector<2x8x128xf32>
    tpu.vector_store %arg34[%c0_247, %c0_248, %c0_249], %572 {strides = array<i32>} : memref<2x8x128xf32, #tpu.memory_space<vmem>>, vector<2x8x128xf32>,
    %574 = tpu.concatenate %430, %458 in 0 : vector<8x8xf32>, vector<8x8xf32> -> vector<16x8xf32>
    %cst_250 = arith.constant 0.000000e+00 : f32
    %575 = vector.broadcast %cst_250 : f32 to vector<16x119xf32>
    %576 = tpu.concatenate %574, %555, %575 in 1 : vector<16x8xf32>, vector<16x1xf32>, vector<16x119xf32> -> vector<16x128xf32>
    %577 = vector.shape_cast %576 : vector<16x128xf32> to vector<2x8x128xf32>
    %c0_251 = arith.constant 0 : index
    %c0_252 = arith.constant 0 : index
    %c0_253 = arith.constant 0 : index
    %578 = vector.load %arg35[%c0_251, %c0_252, %c0_253] : memref<2x8x128xf32, #tpu.memory_space<vmem>>, vector<2x8x128xf32>
    tpu.vector_store %arg35[%c0_251, %c0_252, %c0_253], %577 {strides = array<i32>} : memref<2x8x128xf32, #tpu.memory_space<vmem>>, vector<2x8x128xf32>,
    return
  }
  func.func @transform_0(%arg0: i32) -> (i32, i32, i32) {
    %c0_i32 = arith.constant 0 : i32
    %c0_i32_0 = arith.constant 0 : i32
    %c0_i32_1 = arith.constant 0 : i32
    return %arg0, %c0_i32, %c0_i32_0 : i32, i32, i32
  }
  func.func @transform_1(%arg0: i32) -> (i32, i32, i32) {
    %c0_i32 = arith.constant 0 : i32
    %c0_i32_0 = arith.constant 0 : i32
    %c0_i32_1 = arith.constant 0 : i32
    return %arg0, %c0_i32, %c0_i32_0 : i32, i32, i32
  }
  func.func @transform_2(%arg0: i32) -> (i32, i32, i32) {
    %c0_i32 = arith.constant 0 : i32
    %c0_i32_0 = arith.constant 0 : i32
    %c0_i32_1 = arith.constant 0 : i32
    return %arg0, %c0_i32, %c0_i32_0 : i32, i32, i32
  }
  func.func @transform_3(%arg0: i32) -> (i32, i32, i32) {
    %c0_i32 = arith.constant 0 : i32
    %c0_i32_0 = arith.constant 0 : i32
    %c0_i32_1 = arith.constant 0 : i32
    return %arg0, %c0_i32, %c0_i32_0 : i32, i32, i32
  }
  func.func @transform_4(%arg0: i32) -> (i32, i32, i32) {
    %c0_i32 = arith.constant 0 : i32
    %c0_i32_0 = arith.constant 0 : i32
    %c0_i32_1 = arith.constant 0 : i32
    %c0_i32_2 = arith.constant 0 : i32
    return %c0_i32, %c0_i32_0, %c0_i32_1 : i32, i32, i32
  }
  func.func @transform_5(%arg0: i32) -> (i32, i32, i32) {
    %c0_i32 = arith.constant 0 : i32
    %c0_i32_0 = arith.constant 0 : i32
    %c0_i32_1 = arith.constant 0 : i32
    %c0_i32_2 = arith.constant 0 : i32
    return %c0_i32, %c0_i32_0, %c0_i32_1 : i32, i32, i32
  }
  func.func @transform_6(%arg0: i32) -> (i32, i32, i32) {
    %c0_i32 = arith.constant 0 : i32
    %c0_i32_0 = arith.constant 0 : i32
    %c0_i32_1 = arith.constant 0 : i32
    %c0_i32_2 = arith.constant 0 : i32
    return %c0_i32, %c0_i32_0, %c0_i32_1 : i32, i32, i32
  }
  func.func @transform_7(%arg0: i32) -> (i32, i32, i32) {
    %c0_i32 = arith.constant 0 : i32
    %c0_i32_0 = arith.constant 0 : i32
    %c0_i32_1 = arith.constant 0 : i32
    %c0_i32_2 = arith.constant 0 : i32
    return %c0_i32, %c0_i32_0, %c0_i32_1 : i32, i32, i32
  }
  func.func @transform_8(%arg0: i32) -> (i32, i32, i32) {
    %c0_i32 = arith.constant 0 : i32
    %c0_i32_0 = arith.constant 0 : i32
    %c0_i32_1 = arith.constant 0 : i32
    %c0_i32_2 = arith.constant 0 : i32
    return %c0_i32, %c0_i32_0, %c0_i32_1 : i32, i32, i32
  }
  func.func @transform_9(%arg0: i32) -> (i32, i32, i32) {
    %c0_i32 = arith.constant 0 : i32
    %c0_i32_0 = arith.constant 0 : i32
    %c0_i32_1 = arith.constant 0 : i32
    %c0_i32_2 = arith.constant 0 : i32
    return %c0_i32, %c0_i32_0, %c0_i32_1 : i32, i32, i32
  }
  func.func @transform_10(%arg0: i32) -> (i32, i32, i32) {
    %c0_i32 = arith.constant 0 : i32
    %c0_i32_0 = arith.constant 0 : i32
    %c0_i32_1 = arith.constant 0 : i32
    %c0_i32_2 = arith.constant 0 : i32
    return %c0_i32, %c0_i32_0, %c0_i32_1 : i32, i32, i32
  }
  func.func @transform_11(%arg0: i32) -> (i32, i32, i32) {
    %c0_i32 = arith.constant 0 : i32
    %c0_i32_0 = arith.constant 0 : i32
    %c0_i32_1 = arith.constant 0 : i32
    %c0_i32_2 = arith.constant 0 : i32
    return %c0_i32, %c0_i32_0, %c0_i32_1 : i32, i32, i32
  }
  func.func @transform_12(%arg0: i32) -> (i32, i32, i32) {
    %c0_i32 = arith.constant 0 : i32
    %c0_i32_0 = arith.constant 0 : i32
    %c0_i32_1 = arith.constant 0 : i32
    %c0_i32_2 = arith.constant 0 : i32
    return %c0_i32, %c0_i32_0, %c0_i32_1 : i32, i32, i32
  }
  func.func @transform_13(%arg0: i32) -> (i32, i32, i32) {
    %c0_i32 = arith.constant 0 : i32
    %c0_i32_0 = arith.constant 0 : i32
    %c0_i32_1 = arith.constant 0 : i32
    %c0_i32_2 = arith.constant 0 : i32
    return %c0_i32, %c0_i32_0, %c0_i32_1 : i32, i32, i32
  }
  func.func @transform_14(%arg0: i32) -> (i32, i32, i32) {
    %c0_i32 = arith.constant 0 : i32
    %c0_i32_0 = arith.constant 0 : i32
    %c0_i32_1 = arith.constant 0 : i32
    %c0_i32_2 = arith.constant 0 : i32
    return %c0_i32, %c0_i32_0, %c0_i32_1 : i32, i32, i32
  }
  func.func @transform_15(%arg0: i32) -> (i32, i32, i32) {
    %c0_i32 = arith.constant 0 : i32
    %c0_i32_0 = arith.constant 0 : i32
    %c0_i32_1 = arith.constant 0 : i32
    %c0_i32_2 = arith.constant 0 : i32
    return %c0_i32, %c0_i32_0, %c0_i32_1 : i32, i32, i32
  }
  func.func @transform_16(%arg0: i32) -> (i32, i32, i32) {
    %c0_i32 = arith.constant 0 : i32
    %c0_i32_0 = arith.constant 0 : i32
    %c0_i32_1 = arith.constant 0 : i32
    %c0_i32_2 = arith.constant 0 : i32
    return %c0_i32, %c0_i32_0, %c0_i32_1 : i32, i32, i32
  }
  func.func @transform_17(%arg0: i32) -> (i32, i32, i32) {
    %c0_i32 = arith.constant 0 : i32
    %c0_i32_0 = arith.constant 0 : i32
    %c0_i32_1 = arith.constant 0 : i32
    %c0_i32_2 = arith.constant 0 : i32
    return %c0_i32, %c0_i32_0, %c0_i32_1 : i32, i32, i32
  }
  func.func @transform_18(%arg0: i32) -> (i32, i32, i32) {
    %c0_i32 = arith.constant 0 : i32
    %c0_i32_0 = arith.constant 0 : i32
    %c0_i32_1 = arith.constant 0 : i32
    %c0_i32_2 = arith.constant 0 : i32
    return %c0_i32, %c0_i32_0, %c0_i32_1 : i32, i32, i32
  }
  func.func @transform_19(%arg0: i32) -> (i32, i32, i32) {
    %c0_i32 = arith.constant 0 : i32
    %c0_i32_0 = arith.constant 0 : i32
    %c0_i32_1 = arith.constant 0 : i32
    %c0_i32_2 = arith.constant 0 : i32
    return %c0_i32, %c0_i32_0, %c0_i32_1 : i32, i32, i32
  }
  func.func @transform_20(%arg0: i32) -> (i32, i32) {
    %c0_i32 = arith.constant 0 : i32
    %c0_i32_0 = arith.constant 0 : i32
    %c0_i32_1 = arith.constant 0 : i32
    return %c0_i32, %c0_i32_0 : i32, i32
  }
  func.func @transform_21(%arg0: i32) -> (i32, i32) {
    %c0_i32 = arith.constant 0 : i32
    %c0_i32_0 = arith.constant 0 : i32
    %c0_i32_1 = arith.constant 0 : i32
    return %c0_i32, %c0_i32_0 : i32, i32
  }
  func.func @transform_22(%arg0: i32) -> (i32, i32, i32) {
    %c0_i32 = arith.constant 0 : i32
    %c0_i32_0 = arith.constant 0 : i32
    %c0_i32_1 = arith.constant 0 : i32
    %c0_i32_2 = arith.constant 0 : i32
    return %c0_i32, %c0_i32_0, %c0_i32_1 : i32, i32, i32
  }
  func.func @transform_23(%arg0: i32) -> (i32, i32, i32) {
    %c0_i32 = arith.constant 0 : i32
    %c0_i32_0 = arith.constant 0 : i32
    %c0_i32_1 = arith.constant 0 : i32
    %c0_i32_2 = arith.constant 0 : i32
    return %c0_i32, %c0_i32_0, %c0_i32_1 : i32, i32, i32
  }
  func.func @transform_24(%arg0: i32) -> (i32, i32, i32) {
    %c0_i32 = arith.constant 0 : i32
    %c0_i32_0 = arith.constant 0 : i32
    %c0_i32_1 = arith.constant 0 : i32
    %c0_i32_2 = arith.constant 0 : i32
    return %c0_i32, %c0_i32_0, %c0_i32_1 : i32, i32, i32
  }
  func.func @transform_25(%arg0: i32) -> (i32, i32, i32) {
    %c0_i32 = arith.constant 0 : i32
    %c0_i32_0 = arith.constant 0 : i32
    %c0_i32_1 = arith.constant 0 : i32
    %c0_i32_2 = arith.constant 0 : i32
    return %c0_i32, %c0_i32_0, %c0_i32_1 : i32, i32, i32
  }
  func.func @transform_26(%arg0: i32) -> (i32, i32, i32) {
    %c0_i32 = arith.constant 0 : i32
    %c0_i32_0 = arith.constant 0 : i32
    %c0_i32_1 = arith.constant 0 : i32
    %c0_i32_2 = arith.constant 0 : i32
    return %c0_i32, %c0_i32_0, %c0_i32_1 : i32, i32, i32
  }
  func.func @transform_27(%arg0: i32) -> (i32, i32, i32) {
    %c0_i32 = arith.constant 0 : i32
    %c0_i32_0 = arith.constant 0 : i32
    %c0_i32_1 = arith.constant 0 : i32
    %c0_i32_2 = arith.constant 0 : i32
    return %c0_i32, %c0_i32_0, %c0_i32_1 : i32, i32, i32
  }
  func.func @transform_28(%arg0: i32) -> (i32, i32) {
    %c0_i32 = arith.constant 0 : i32
    %c0_i32_0 = arith.constant 0 : i32
    %c0_i32_1 = arith.constant 0 : i32
    return %c0_i32, %c0_i32_0 : i32, i32
  }
  func.func @transform_29(%arg0: i32) -> (i32, i32) {
    %c0_i32 = arith.constant 0 : i32
    %c0_i32_0 = arith.constant 0 : i32
    %c0_i32_1 = arith.constant 0 : i32
    return %c0_i32, %c0_i32_0 : i32, i32
  }
  func.func @transform_30(%arg0: i32) -> (i32, i32) {
    %c0_i32 = arith.constant 0 : i32
    %c0_i32_0 = arith.constant 0 : i32
    %c0_i32_1 = arith.constant 0 : i32
    return %c0_i32, %c0_i32_0 : i32, i32
  }
  func.func @transform_31(%arg0: i32) -> (i32, i32) {
    %c0_i32 = arith.constant 0 : i32
    %c0_i32_0 = arith.constant 0 : i32
    %c0_i32_1 = arith.constant 0 : i32
    return %c0_i32, %c0_i32_0 : i32, i32
  }
  func.func @transform_32(%arg0: i32) -> (i32, i32) {
    %c0_i32 = arith.constant 0 : i32
    %c0_i32_0 = arith.constant 0 : i32
    %c0_i32_1 = arith.constant 0 : i32
    return %c0_i32, %c0_i32_0 : i32, i32
  }
  func.func @transform_33(%arg0: i32) -> (i32, i32, i32) {
    %c0_i32 = arith.constant 0 : i32
    %c0_i32_0 = arith.constant 0 : i32
    %c0_i32_1 = arith.constant 0 : i32
    return %arg0, %c0_i32, %c0_i32_0 : i32, i32, i32
  }
  func.func @transform_34(%arg0: i32) -> (i32, i32, i32) {
    %c0_i32 = arith.constant 0 : i32
    %c0_i32_0 = arith.constant 0 : i32
    %c0_i32_1 = arith.constant 0 : i32
    return %arg0, %c0_i32, %c0_i32_0 : i32, i32, i32
  }
}

</mosaic_0001>

<bundles_post_ra>
// kernel: decoder_forward.1
= control target key start
LH: loop header
LB: loop body
LE: loop exit
PB: predicated region body
PF: predicated region fallthrough
CT: control target
= control target key end

     0   :  { %s19483_s3 = smov 4   ;;  %s19484_s7 = smov 6   ;;  %vm185_vm0 = vcmask 261120   ;;  %v19491_v18 = vmov 1983009808   ;;  %vm253_vm1 = vcmask 1047556   ;;  %s23070_s0 = inlined_call_operand.smem [shape: u32[35], index: -1, kind: input, shape index: {}] }
   0x1   :  { %s19533_s6 = sld [smem:[%s23070_s0 + %s19483_s3]]   ;;  %s19485_s14 = smov 5   ;;  %v258_v19 = vunpack.c.l.s4 %v19491_v18  ;;  %v19492_v31 = vmov 1934713408   ;;  %vm1367_vm2 = vcmask 64512   ;;  %vm2539_vm3 = vcmask 130048  }
   0x2   :  { %s19538_s10 = sld [smem:[%s23070_s0 + %s19484_s7]]   ;;  %s19486_s18 = smov 7   ;;  %v282_v32 = vunpack.c.l.s4 %v19492_v31  ;;  %vm2541_vm4 = vcmask 195584  }
   0x3   :  { %s19543_s13 = sld [smem:[%s23070_s0]]   ;;  %s23079_s22 = smov 112   ;;  %v19590_v23 = vunpack.c.0.s8 %v258_v19 }
   0x4   :  { %s19548_s17 = sld [smem:[%s23070_s0 + %s19485_s14]]   ;;  %s23081_s23 = smov 104   ;;  %v19600_v38 = vunpack.c.0.s8 %v282_v32 }
   0x5   :  { %s19554_s21 = sld [smem:[%s23070_s0 + %s19486_s18]]   ;;  %s23077_s24 = smov 120  }
   0x6   :  { %s23075_s25 = smov 96   ;;  %s19493_s26 = smov 2  }
   0x7   :  { %v18568_v0 = vld [vmem:[%s19533_s6 + $0x8] sm:$0xff]  ;;  %v18567_v2 = vld [vmem:[%s19533_s6] sm:$0xff]  ;;  %s19919_s29 = sld [smem:[%s23070_s0 + %s19493_s26]]   ;;  %s19494_s30 = smov 14  }
   0x8   :  { %v18570_v1 = vld [vmem:[%s19538_s10 + $0x8] sm:$0xff]  ;;  %195 = vmatpush.bf16.msra.mxu0 %v18568_v0  ;;  %v18569_v5 = vld [vmem:[%s19538_s10] sm:$0xff]  ;;  %s20280_s3 = sld [smem:[%s23070_s0 + %s19494_s30]]   ;;  %s19495_s4 = smov 1  }
   0x9   :  { %v144_v3 = vld [vmem:[%s19543_s13] sm:$0xff]  ;;  %v145_v4 = vld [vmem:[%s19543_s13 + $0x8] sm:$0xff]  ;;  %224 = vmatpush.bf16.msra.mxu1 %v18570_v1  ;;  %s18209_s8 = sld [smem:[%s23070_s0 + %s19495_s4]]   ;;  %s19496_s9 = smov 15  }
   0xa   :  { %v169_v6 = vpack.c.bf16 %v145_v4, %v144_v3  ;;  %v19564_v7 = vld [vmem:[%s19548_s17] ss:$0 sm:$0xff]  ;;  %s20296_s14 = sld [smem:[%s23070_s0 + %s19496_s9]]   ;;  %s19497_s15 = smov 24  }
   0xb   :  { %v19271_v8 = vld [vmem:[%s19554_s21] ss:$0 sm:$0xff]  ;;  %s23071_s16 = smov 8   ;;  %s19499_s18 = smov 9  }
   0xc   :  { %196 = vmatpush.bf16.msra.mxu0 %v18567_v2  ;;  %s20492_s26 = sld [smem:[%s23070_s0 + %s19499_s18]]   ;;  %s23073_s27 = smov 16  }
   0xd   :  { %225 = vmatpush.bf16.msra.mxu1 %v18569_v5  ;;  %s20508_s1 = sld [smem:[%s23070_s0 + %s23071_s16]]   ;;  %s19501_s2 = smov 10  }
   0xe   :  { %s20537_s7 = sld [smem:[%s23070_s0 + %s19501_s2]]   ;;  %s19504_s12 = smov 12  }
   0xf   :  { %18251 = vmatmul.msk.bf16.vlgmr.msra.gmra.mxu0 %vm185_vm0, %v169_v6  ;;  %s20574_s20 = sld [smem:[%s23070_s0 + %s19504_s12]]   ;;  %s19505_s28 = smov 13  }
  0x10   :  { %18260 = vmatmul.msk.bf16.vlgmr.msra.gmra.mxu1 %vm185_vm0, %v169_v6  ;;  %s20585_s4 = sld [smem:[%s23070_s0 + %s19505_s28]]   ;;  %s19506_s5 = smov 3  }
  0x11   :  { %s20789_s9 = sld [smem:[%s23070_s0 + %s19506_s5]]   ;;  %s19507_s12 = smov 17  }
  0x12   :  { %s21255_s28 = sld [smem:[%s23070_s0 + %s19507_s12]]   ;;  %s19509_s19 = smov 19  }
  0x13   :  { %s21267_s5 = sld [smem:[%s23070_s0 + %s23073_s27]]   ;;  %s23085_s12 = smov 120  }
  0x14   :  { %s21323_s2 = sld [smem:[%s23070_s0 + %s19497_s15]]  }
  0x8c   :  { %v198_v9 = vpop.f32.mrf.mxu0 }
  0x8d   :  { %v19568_v10 = vadd.f32 %v19564_v7, %v198_v9  ;;  %v227_v11 = vpop.f32.mrf.mxu1 }
  0x8e   :  { %v228_v12 = vadd.f32 %v19271_v8, %v227_v11 }
  0x8f   :  { %240 = vrot.lane.b32.xlu2 %v19568_v10, %s23079_s22 }
  0x90   :  { %373 = vrot.lane.b32.xlu1 %v228_v12, %s23079_s22  ;;  %379 = vrot.lane.b32.xlu0 %v228_v12, %s23081_s23  ;;  %v387_v20 = vrot.slane %v228_v12, 4 }
  0x95   :  { %v229_v13 = vpop.f32.mrf.mxu1 }
  0x96   :  { %v19579_v14 = vadd.f32 %v19271_v8, %v229_v13 }
  0x97   :  { %246 = vrot.lane.b32.xlu2 %v19568_v10, %s23081_s23 }
  0x98   :  { %367 = vrot.lane.b32.xlu0 %v228_v12, %s23077_s24  ;;  %234 = vrot.lane.b32.xlu1 %v19568_v10, %s23077_s24 }
  0x9f   :  { %381 = vrot.lane.b32.xlu2 %v19579_v14, %s23081_s23 }
  0xa0   :  { %497 = vrot.lane.b32.xlu1 %v228_v12, %s23075_s25 }
  0xe9   :  { %v19615_v60 = vpop.permute.xlu2 %240 }
  0xf1   :  { %v19617_v61 = vpop.permute.xlu2 %246 }
  0xf9   :  { %v19619_v62 = vpop.permute.xlu2 %381 }
 0x102   :  { %v374_v15 = vpop.permute.xlu1 %373  ;;  %v380_v16 = vpop.permute.xlu0 %379 }
 0x103   :  { %505 = vrot.lane.b32.xlu0 %v374_v15, %s23075_s25  ;;  %509 = vrot.lane.b32.xlu1 %v380_v16, %s23075_s25  ;;  %v388_v22 = vsel %vm253_vm1, %v374_v15, %v387_v20  ;;  %v385_v24 = vrot.slane %v374_v15, 4  ;;  %v397_v27 = vrot.slane %v380_v16, 4 }
 0x104   :  { %v396_v26 = vperm.slane %v388_v22, %v19590_v23 }
 0x105   :  { %v386_v29 = vsel %vm253_vm1, %v385_v24, %v228_v12 }
 0x106   :  { %v423_v33 = vrot.slane %v396_v26, 4  ;;  %v392_v34 = vperm.slane %v386_v29, %v19590_v23 }
 0x108   :  { %v411_v41 = vrot.slane %v392_v34, 4 }
 0x10a   :  { %v368_v17 = vpop.permute.xlu0 %367  ;;  %v19621_v0 = vpop.permute.xlu1 %234 }
 0x10b   :  { %375 = vrot.lane.b32.xlu0 %v19579_v14, %s23079_s22  ;;  %501 = vrot.lane.b32.xlu2 %v368_v17, %s23075_s25  ;;  %v399_v21 = vrot.slane %v368_v17, 4  ;;  %v398_v30 = vsel %vm253_vm1, %v397_v27, %v368_v17 }
 0x10c   :  { %v404_v35 = vperm.slane %v398_v30, %v19590_v23 }
 0x10d   :  { %v400_v25 = vsel %vm253_vm1, %v380_v16, %v399_v21 }
 0x10e   :  { %v408_v28 = vperm.slane %v400_v25, %v19590_v23  ;;  %v409_v40 = vrot.slane %v404_v35, 4  ;;  %v412_v43 = vsel %vm253_vm1, %v404_v35, %v411_v41  ;;  %v443_v25 = vrot.slane %v19579_v14, 4 }
 0x10f   :  { %v420_v47 = vperm.slane %v412_v43, %v19600_v38 }
 0x110   :  { %v421_v36 = vrot.slane %v408_v28, 4  ;;  %v424_v37 = vsel %vm253_vm1, %v408_v28, %v423_v33  ;;  %v410_v46 = vsel %vm253_vm1, %v409_v40, %v392_v34  ;;  %v453_v40 = vrot.slane %v19619_v62, 4 }
 0x111   :  { %v432_v39 = vperm.slane %v424_v37, %v19600_v38  ;;  %v416_v50 = vperm.slane %v410_v46, %v19600_v38  ;;  %v435_v51 = vrot.slane %v420_v47, 4 }
 0x112   :  { %v422_v42 = vsel %vm253_vm1, %v421_v36, %v396_v26  ;;  %v498_v4 = vpop.permute.xlu1 %497 }
 0x113   :  { %v439_v44 = vrot.slane %v432_v39, 4  ;;  %v428_v45 = vperm.slane %v422_v42, %v19600_v38  ;;  %v433_v54 = vrot.slane %v416_v50, 4  ;;  %v436_v55 = vsel %vm253_vm1, 0.0, %v435_v51 }
 0x114   :  { %v523_v17 = vrot.slane %v498_v4, 4 }
 0x115   :  { %v440_v48 = vsel %vm253_vm1, 0.0, %v439_v44  ;;  %v437_v49 = vrot.slane %v428_v45, 4  ;;  %v434_v57 = vsel %vm253_vm1, 0.0, %v433_v54  ;;  %v18650_v59 = vpack.i.bf16 %v428_v45, %v420_v47 }
 0x116   :  { %v18657_v52 = vpack.i.bf16 %v440_v48, %v432_v39  ;;  %v18664_v58 = vpack.i.bf16 %v434_v57, %v416_v50 }
 0x117   :  { %v438_v53 = vsel %vm253_vm1, 0.0, %v437_v49 }
 0x118   :  { %v18671_v56 = vpack.i.bf16 %v438_v53, %v436_v55 }
 0x12d   :  { %18658 = vxpose.xlu0.b32.start.end [1/1] (short) (narrow) %v18657_v52, 8 }
 0x131   :  { %18672 = vxpose.xlu2.b32.start.end [1/1] (short) (narrow) %v18671_v56, 8 }
 0x135   :  { %18665 = vxpose.xlu0.b32.start.end [1/1] (short) (narrow) %v18664_v58, 8 }
 0x138   :  { %18651 = vxpose.xlu1.b32.start.end [1/1] (short) (narrow) %v18650_v59, 8 }
 0x165   :  { %v502_v1 = vpop.permute.xlu2 %501 }
 0x166   :  { %v535_v22 = vrot.slane %v502_v1, 4 }
 0x175   :  { %v506_v63 = vpop.permute.xlu0 %505  ;;  %v510_v6 = vpop.permute.xlu1 %509 }
 0x176   :  { %v521_v24 = vrot.slane %v506_v63, 4  ;;  %v524_v27 = vsel %vm253_vm1, %v506_v63, %v523_v17  ;;  %v533_v31 = vrot.slane %v510_v6, 4  ;;  %v536_v32 = vsel %vm253_vm1, %v510_v6, %v535_v22 }
 0x177   :  { %v19648_v44 = vperm.slane %v524_v27, %v19590_v23  ;;  %v19651_v45 = vperm.slane %v536_v32, %v19590_v23 }
 0x178   :  { %v19655_v48 = vsel %vm253_vm1, %v521_v24, %v498_v4  ;;  %v534_v49 = vsel %vm253_vm1, %v533_v31, %v502_v1 }
 0x179   :  { %v559_v1 = vrot.slane %v19648_v44, 4 }
 0x17d   :  { %v19623_v2 = vpop.permute.xlu0 %375 }
 0x17e   :  { %v441_v18 = vrot.slane %v19623_v2, 4  ;;  %v444_v33 = vsel %vm253_vm1, %v19623_v2, %v443_v25 }
 0x17f   :  { %v452_v46 = vperm.slane %v444_v33, %v19590_v23 }
 0x180   :  { %v442_v35 = vsel %vm253_vm1, %v441_v18, %v19579_v14 }
 0x181   :  { %v448_v51 = vperm.slane %v442_v35, %v19590_v23 }
 0x192   :  { %369 = vrot.lane.b32.xlu1 %v19579_v14, %s23077_s24 }
 0x1ca   :  { %v18673_v3 = vpop.trf.xlu2 }
 0x1cb   :  { %v18674_v19 = vunpack.i.l.bf16 %v18673_v3  ;;  %v18677_v34 = vunpack.i.h.bf16 %v18673_v3  ;;  %v479_v3 = vrot.slane %v452_v46, 4 }
 0x1cd   :  { %v955_v36 = vrot.slane %v18674_v19, 4  ;;  %v981_v50 = vrot.slane %v18677_v34, 4 }
 0x1d1   :  { %v19625_v5 = vpop.trf.xlu0 }
 0x1d2   :  { %v18660_v13 = vunpack.i.l.bf16 %v19625_v5  ;;  %v18663_v28 = vunpack.i.h.bf16 %v19625_v5 }
 0x1d4   :  { %v967_v26 = vrot.slane %v18660_v13, 4  ;;  %v979_v47 = vrot.slane %v18663_v28, 4 }
 0x1d6   :  { %v980_v4 = vsel %vm253_vm1, %v979_v47, %v18677_v34 }
 0x1d7   :  { %v986_v17 = vperm.slane %v980_v4, %v19590_v23 }
 0x1d9   :  { %v18666_v8 = vpop.trf.xlu0 }
 0x1da   :  { %v18667_v11 = vunpack.i.l.bf16 %v18666_v8  ;;  %v18670_v20 = vunpack.i.h.bf16 %v18666_v8 }
 0x1dc   :  { %v18652_v9 = vpop.trf.xlu1  ;;  %v945_v15 = vrot.slane %v18667_v11, 4  ;;  %v957_v37 = vrot.slane %v18670_v20, 4  ;;  %v956_v52 = vsel %vm253_vm1, %v955_v36, %v18670_v20 }
 0x1dd   :  { %v18653_v12 = vunpack.i.l.bf16 %v18652_v9  ;;  %v18656_v21 = vunpack.i.h.bf16 %v18652_v9  ;;  %v962_v6 = vperm.slane %v956_v52, %v19590_v23 }
 0x1de   :  { %v958_v53 = vsel %vm253_vm1, %v18674_v19, %v957_v37 }
 0x1df   :  { %v943_v16 = vrot.slane %v18653_v12, 4  ;;  %v946_v30 = vsel %vm253_vm1, %v18653_v12, %v945_v15  ;;  %v969_v39 = vrot.slane %v18656_v21, 4  ;;  %v968_v41 = vsel %vm253_vm1, %v967_v26, %v18656_v21 }
 0x1e0   :  { %v19645_v43 = vperm.slane %v946_v30, %v19590_v23  ;;  %v19663_v55 = vperm.slane %v968_v41, %v19590_v23  ;;  %v966_v9 = vperm.slane %v958_v53, %v19590_v23  ;;  %v467_v15 = vrot.slane %v448_v51, 4 }
 0x1e1   :  { %v944_v29 = vsel %vm253_vm1, %v943_v16, %v18667_v11  ;;  %v970_v54 = vsel %vm253_vm1, %v18660_v13, %v969_v39  ;;  %v982_v16 = vsel %vm253_vm1, %v18663_v28, %v981_v50  ;;  %v991_v33 = vrot.slane %v962_v6, 4 }
 0x1e2   :  { %v19642_v42 = vperm.slane %v944_v29, %v19590_v23  ;;  %v1005_v63 = vrot.slane %v19645_v43, 4  ;;  %v19680_v11 = vperm.slane %v970_v54, %v19590_v23  ;;  %v1017_v20 = vrot.slane %v19663_v55, 4 }
 0x1e3   :  { %v990_v28 = vperm.slane %v982_v16, %v19590_v23  ;;  %v19701_v39 = vperm.slane %v534_v49, %v19590_v23  ;;  %v560_v41 = vsel %vm253_vm1, %v19651_v45, %v559_v1 }
 0x1e4   :  { %v993_v59 = vrot.slane %v19642_v42, 4  ;;  %v1006_v19 = vsel %vm253_vm1, %v966_v9, %v1005_v63  ;;  %v1029_v29 = vrot.slane %v19680_v11, 4  ;;  %v568_v49 = vperm.slane %v560_v41, %v19600_v38 }
 0x1e5   :  { %v1014_v32 = vperm.slane %v1006_v19, %v19600_v38  ;;  %v992_v63 = vsel %vm253_vm1, %v991_v33, %v19642_v42  ;;  %v545_v4 = vrot.slane %v19701_v39, 4 }
 0x1e6   :  { %v994_v18 = vsel %vm253_vm1, %v962_v6, %v993_v59  ;;  %v1030_v52 = vsel %vm253_vm1, %v990_v28, %v1029_v29  ;;  %v528_v6 = vperm.slane %v19655_v48, %v19590_v23  ;;  %v575_v16 = vrot.slane %v568_v49, 4 }
 0x1e7   :  { %v1002_v31 = vperm.slane %v994_v18, %v19600_v38 }
 0x204   :  { %v19665_v56 = vpop.permute.xlu1 %369 }
 0x205   :  { %v454_v57 = vsel %vm253_vm1, %v453_v40, %v19665_v56  ;;  %v455_v58 = vrot.slane %v19665_v56, 4  ;;  %v1018_v40 = vsel %vm253_vm1, %v986_v17, %v1017_v20  ;;  %v546_v20 = vsel %vm253_vm1, %v545_v4, %v528_v6 }
 0x206   :  { %v460_v5 = vperm.slane %v454_v57, %v19590_v23  ;;  %v1045_v57 = vrot.slane %v1002_v31, 4  ;;  %v1026_v1 = vperm.slane %v1018_v40, %v19600_v38 }
 0x207   :  { %v456_v8 = vsel %vm253_vm1, %v19619_v62, %v455_v58  ;;  %v1053_v58 = vrot.slane %v1014_v32, 4 }
 0x208   :  { %v465_v12 = vrot.slane %v460_v5, 4  ;;  %v464_v13 = vperm.slane %v456_v8, %v19590_v23  ;;  %v468_v21 = vsel %vm253_vm1, %v460_v5, %v467_v15  ;;  %v1027_v15 = vrot.slane %v990_v28, 4 }
 0x209   :  { %v476_v34 = vperm.slane %v468_v21, %v19600_v38 }
 0x20a   :  { %v477_v22 = vrot.slane %v464_v13, 4  ;;  %v480_v24 = vsel %vm253_vm1, %v464_v13, %v479_v3  ;;  %v466_v25 = vsel %vm253_vm1, %v465_v12, %v448_v51  ;;  %v1038_v3 = vperm.slane %v1030_v52, %v19600_v38 }
 0x20b   :  { %v488_v26 = vperm.slane %v480_v24, %v19600_v38  ;;  %v472_v27 = vperm.slane %v466_v25, %v19600_v38  ;;  %v491_v8 = vrot.slane %v476_v34, 4  ;;  %v1046_v12 = vsel %vm253_vm1, %v1026_v1, %v1045_v57 }
 0x20c   :  { %v478_v30 = vsel %vm253_vm1, %v477_v22, %v452_v46  ;;  %v1003_v46 = vrot.slane %v966_v9, 4  ;;  %v1015_v9 = vrot.slane %v986_v17, 4  ;;  %v1054_v42 = vsel %vm253_vm1, %v1038_v3, %v1053_v58 }
 0x20d   :  { %v484_v35 = vperm.slane %v478_v30, %v19600_v38  ;;  %v495_v36 = vrot.slane %v488_v26, 4  ;;  %v489_v37 = vrot.slane %v472_v27, 4  ;;  %v998_v13 = vperm.slane %v992_v63, %v19600_v38 }
 0x20e   :  { %v1004_v5 = vsel %vm253_vm1, %v1003_v46, %v19645_v43  ;;  %v18706_v43 = vpack.i.bf16 %v1046_v12, %v1054_v42  ;;  %v492_v21 = vsel %vm253_vm1, 0.0, %v491_v8  ;;  %v1016_v48 = vsel %vm253_vm1, %v1015_v9, %v19663_v55 }
 0x20f   :  { %v18678_v47 = vpack.i.bf16 %v484_v35, %v476_v34  ;;  %v496_v50 = vsel %vm253_vm1, 0.0, %v495_v36  ;;  %v490_v51 = vsel %vm253_vm1, 0.0, %v489_v37  ;;  %v493_v59 = vrot.slane %v484_v35, 4 }
 0x210   :  { %v18685_v53 = vpack.i.bf16 %v496_v50, %v488_v26  ;;  %v18692_v54 = vpack.i.bf16 %v490_v51, %v472_v27  ;;  %v1010_v19 = vperm.slane %v1004_v5, %v19600_v38  ;;  %v1041_v22 = vrot.slane %v998_v13, 4 }
 0x211   :  { %18679 = vxpose.xlu2.b32.start.end [1/1] (short) (narrow) %v18678_v47, 8  ;;  %v494_v18 = vsel %vm253_vm1, 0.0, %v493_v59  ;;  %v1043_v24 = vrot.slane %v1026_v1, 4  ;;  %v1028_v25 = vsel %vm253_vm1, %v1027_v15, %v19680_v11  ;;  %v576_v26 = vsel %vm253_vm1, 0.0, %v575_v16 }
 0x212   :  { %18686 = vxpose.xlu1.b32.start.end [1/1] (short) (narrow) %v18685_v53, 8  ;;  %18693 = vxpose.xlu0.b32.start.end [1/1] (short) (narrow) %v18692_v54, 8  ;;  %v18699_v17 = vpack.i.bf16 %v494_v18, %v492_v21  ;;  %v552_v27 = vperm.slane %v546_v20, %v19600_v38  ;;  %v1049_v28 = vrot.slane %v1010_v19, 4  ;;  %v1051_v29 = vrot.slane %v1038_v3, 4 }
 0x213   :  { %v1022_v30 = vperm.slane %v1016_v48, %v19600_v38  ;;  %v1034_v33 = vperm.slane %v1028_v25, %v19600_v38  ;;  %v1044_v34 = vsel %vm253_vm1, %v1043_v24, %v1002_v31  ;;  %v557_v31 = vrot.slane %v19651_v45, 4  ;;  %v200_v45 = vpop.f32.mrf.mxu0 }
 0x214   :  { %v569_v35 = vrot.slane %v552_v27, 4  ;;  %v1052_v36 = vsel %vm253_vm1, %v1051_v29, %v1014_v32  ;;  %v547_v54 = vrot.slane %v528_v6, 4  ;;  %v19755_v59 = vadd.f32 %v19564_v7, %v200_v45 }
 0x215   :  { %v1042_v55 = vsel %vm253_vm1, %v1022_v30, %v1041_v22  ;;  %v1050_v11 = vsel %vm253_vm1, %v1034_v33, %v1049_v28  ;;  %v1039_v46 = vrot.slane %v1022_v30, 4  ;;  %v1047_v47 = vrot.slane %v1034_v33, 4 }
 0x216   :  { %v18720_v37 = vpack.i.bf16 %v1044_v34, %v1042_v55  ;;  %v18713_v40 = vpack.i.bf16 %v1052_v36, %v1050_v11  ;;  %v570_v41 = vsel %vm253_vm1, 0.0, %v569_v35  ;;  %v558_v32 = vsel %vm253_vm1, %v557_v31, %v19648_v44 }
 0x217   :  { %v1040_v50 = vsel %vm253_vm1, %v1039_v46, %v998_v13  ;;  %v1048_v51 = vsel %vm253_vm1, %v1047_v47, %v1010_v19  ;;  %v19745_v53 = vperm.slane %v558_v32, %v19600_v38  ;;  %v548_v57 = vsel %vm253_vm1, %v19701_v39, %v547_v54 }
 0x218   :  { %v18727_v52 = vpack.i.bf16 %v1040_v50, %v1048_v51  ;;  %v19751_v58 = vperm.slane %v548_v57, %v19600_v38  ;;  %v252_v44 = vrot.slane %v19615_v60, 4  ;;  %v265_v39 = vrot.slane %v19617_v61, 4 }
 0x219   :  { %18707 = vxpose.xlu2.b32.start.end [1/1] (short) (narrow) %v18706_v43, 8  ;;  %v255_v63 = vrot.slane %v19568_v10, 4  ;;  %v267_v3 = vrot.slane %v19621_v0, 4 }
 0x21a   :  { %1728 = vxpose.xlu1.b32.start.end [1/1] (short) (narrow) %v576_v26, 8  ;;  %18700 = vxpose.xlu0.b32.start.end [1/1] (short) (narrow) %v18699_v17, 8  ;;  %v266_v7 = vsel %vm253_vm1, %v265_v39, %v19621_v0 }
 0x21b   :  { %v272_v4 = vperm.slane %v266_v7, %v19590_v23  ;;  %v256_v5 = vsel %vm253_vm1, %v19615_v60, %v255_v63  ;;  %v268_v8 = vsel %vm253_vm1, %v19617_v61, %v267_v3 }
 0x21c   :  { %v264_v9 = vperm.slane %v256_v5, %v19590_v23  ;;  %v276_v42 = vperm.slane %v268_v8, %v19590_v23 }
 0x21d   :  { %v277_v12 = vrot.slane %v272_v4, 4 }
 0x21e   :  { %v291_v15 = vrot.slane %v264_v9, 4  ;;  %v289_v16 = vrot.slane %v276_v42, 4 }
 0x220   :  { %v292_v18 = vsel %vm253_vm1, %v276_v42, %v291_v15  ;;  %v290_v20 = vsel %vm253_vm1, %v289_v16, %v264_v9 }
 0x221   :  { %18721 = vxpose.xlu2.b32.start.end [1/1] (short) (narrow) %v18720_v37, 8  ;;  %v300_v61 = vperm.slane %v292_v18, %v19600_v38  ;;  %v296_v48 = vperm.slane %v290_v20, %v19600_v38 }
 0x222   :  { %1536 = vxpose.xlu1.b32.start.end [1/1] (short) (narrow) %v570_v41, 8  ;;  %18714 = vxpose.xlu0.b32.start.end [1/1] (short) (narrow) %v18713_v40, 8 }
 0x223   :  { %v307_v17 = vrot.slane %v300_v61, 4  ;;  %v305_v26 = vrot.slane %v296_v48, 4 }
 0x225   :  { %v306_v33 = vsel %vm253_vm1, 0.0, %v305_v26  ;;  %v644_v36 = vsel %vm253_vm1, %v307_v17, %v296_v48 }
 0x226   :  { %v19803_v51 = vperm.slane %v644_v36, %v19590_v23 }
 0x229   :  { %1504 = vxpose.xlu2.b32.start.end [1/1] (short) (narrow) %v552_v27, 8  ;;  %v308_v27 = vsel %vm253_vm1, 0.0, %v307_v17 }
 0x22a   :  { %18728 = vxpose.xlu0.b32.start.end [1/1] (short) (narrow) %v18727_v52, 8  ;;  %v649_v29 = vrot.slane %v308_v27, 4 }
 0x22c   :  { %v650_v37 = vsel %vm253_vm1, %v649_v29, %v306_v33 }
 0x22d   :  { %v19806_v31 = vperm.slane %v650_v37, %v19590_v23 }
 0x22f   :  { %v667_v8 = vrot.slane %v19806_v31, 4 }
 0x231   :  { %1632 = vxpose.xlu2.b32.start.end [1/1] (short) (narrow) %v19745_v53, 8 }
 0x232   :  { %1696 = vxpose.xlu0.b32.start.end [1/1] (short) (narrow) %v568_v49, 8  ;;  %v254_v49 = vsel %vm253_vm1, %v252_v44, %v19568_v10 }
 0x233   :  { %v260_v1 = vperm.slane %v254_v49, %v19590_v23 }
 0x235   :  { %v279_v6 = vrot.slane %v260_v1, 4  ;;  %v278_v0 = vsel %vm253_vm1, %v277_v12, %v260_v1 }
 0x236   :  { %v284_v60 = vperm.slane %v278_v0, %v19600_v38 }
 0x237   :  { %v280_v10 = vsel %vm253_vm1, %v272_v4, %v279_v6  ;;  %v669_v4 = vrot.slane %v19803_v51, 4 }
 0x238   :  { %v288_v13 = vperm.slane %v280_v10, %v19600_v38  ;;  %v301_v43 = vrot.slane %v284_v60, 4 }
 0x23a   :  { %1568 = vxpose.xlu0.b32.start.end [1/1] (short) (narrow) %v19751_v58, 8  ;;  %v303_v19 = vrot.slane %v288_v13, 4  ;;  %v302_v24 = vsel %vm253_vm1, 0.0, %v301_v43 }
 0x23c   :  { %v304_v21 = vsel %vm253_vm1, 0.0, %v303_v19  ;;  %v633_v30 = vsel %vm253_vm1, %v303_v19, %v284_v60 }
 0x23d   :  { %v638_v22 = vrot.slane %v304_v21, 4  ;;  %v19797_v11 = vperm.slane %v633_v30, %v19590_v23 }
 0x23f   :  { %v639_v28 = vsel %vm253_vm1, %v638_v22, %v302_v24  ;;  %v657_v32 = vrot.slane %v19797_v11, 4  ;;  %v19826_v22 = vsel %vm253_vm1, %v667_v8, %v19803_v51 }
 0x240   :  { %v19794_v55 = vperm.slane %v639_v28, %v19590_v23 }
 0x242   :  { %v655_v40 = vrot.slane %v19794_v55, 4 }
 0x244   :  { %v656_v57 = vsel %vm253_vm1, %v655_v40, %v19797_v11 }
 0x245   :  { %v19815_v6 = vperm.slane %v656_v57, %v19600_v38 }
 0x27c   :  { %236 = vrot.lane.b32.xlu1 %v19755_v59, %s23077_s24 }
 0x284   :  { %242 = vrot.lane.b32.xlu1 %v19755_v59, %s23079_s22 }
 0x28c   :  { %248 = vrot.lane.b32.xlu1 %v19755_v59, %s23081_s23 }
 0x2aa   :  { %v18680_v25 = vpop.trf.xlu2 }
 0x2ab   :  { %v18684_v34 = vunpack.i.h.bf16 %v18680_v25  ;;  %v18681_v41 = vunpack.i.l.bf16 %v18680_v25 }
 0x2ad   :  { %v2879_v46 = vrot.slane %v18684_v34, 4  ;;  %v2853_v45 = vrot.slane %v18681_v41, 4 }
 0x2b2   :  { %v18708_v35 = vpop.trf.xlu2 }
 0x2b3   :  { %v18712_v49 = vunpack.i.h.bf16 %v18708_v35  ;;  %v18709_v10 = vunpack.i.l.bf16 %v18708_v35 }
 0x2b5   :  { %v1317_v15 = vrot.slane %v18712_v49, 4  ;;  %v1329_v35 = vrot.slane %v18709_v10, 4 }
 0x2b6   :  { %v18694_v47 = vpop.trf.xlu0  ;;  %v18687_v50 = vpop.trf.xlu1 }
 0x2b7   :  { %v18695_v52 = vunpack.i.l.bf16 %v18694_v47  ;;  %v18688_v54 = vunpack.i.l.bf16 %v18687_v50  ;;  %v18691_v39 = vunpack.i.h.bf16 %v18687_v50  ;;  %v18698_v63 = vunpack.i.h.bf16 %v18694_v47 }
 0x2b9   :  { %v2855_v44 = vrot.slane %v18695_v52, 4  ;;  %v2877_v7 = vrot.slane %v18688_v54, 4  ;;  %v2880_v1 = vsel %vm253_vm1, %v18688_v54, %v2879_v46  ;;  %v2854_v42 = vsel %vm253_vm1, %v2853_v45, %v18695_v52 }
 0x2ba   :  { %v18722_v3 = vpop.trf.xlu2  ;;  %v2888_v12 = vperm.slane %v2880_v1, %v19590_v23  ;;  %v2889_v13 = vrot.slane %v18691_v39, 4  ;;  %v2867_v16 = vrot.slane %v18698_v63, 4  ;;  %v2860_v21 = vperm.slane %v2854_v42, %v19590_v23 }
 0x2bb   :  { %v2856_v5 = vsel %vm253_vm1, %v18681_v41, %v2855_v44  ;;  %v2878_v9 = vsel %vm253_vm1, %v2877_v7, %v18684_v34  ;;  %v18726_v19 = vunpack.i.h.bf16 %v18722_v3  ;;  %v18723_v61 = vunpack.i.l.bf16 %v18722_v3 }
 0x2bc   :  { %v2884_v0 = vperm.slane %v2878_v9, %v19590_v23  ;;  %v2864_v18 = vperm.slane %v2856_v5, %v19590_v23  ;;  %v2939_v17 = vrot.slane %v2888_v12, 4  ;;  %v2903_v46 = vrot.slane %v2860_v21, 4 }
 0x2bd   :  { %v1318_v33 = vsel %vm253_vm1, %v1317_v15, %v18723_v61  ;;  %v1311_v36 = vrot.slane %v18726_v19, 4 }
 0x2be   :  { %v18701_v60 = vpop.trf.xlu0  ;;  %v2927_v48 = vrot.slane %v2884_v0, 4  ;;  %v2915_v30 = vrot.slane %v2864_v18, 4  ;;  %v19841_v57 = vperm.slane %v1318_v33, %v19590_v23 }
 0x2bf   :  { %v18705_v20 = vunpack.i.h.bf16 %v18701_v60  ;;  %v18702_v43 = vunpack.i.l.bf16 %v18701_v60 }
 0x2c1   :  { %v2890_v24 = vsel %vm253_vm1, %v2889_v13, %v18705_v20  ;;  %v2891_v25 = vrot.slane %v18705_v20, 4  ;;  %v2865_v26 = vrot.slane %v18702_v43, 4  ;;  %v2868_v27 = vsel %vm253_vm1, %v18702_v43, %v2867_v16 }
 0x2c2   :  { %v2876_v28 = vperm.slane %v2868_v27, %v19590_v23  ;;  %v2896_v29 = vperm.slane %v2890_v24, %v19590_v23 }
 0x2c3   :  { %v2866_v34 = vsel %vm253_vm1, %v2865_v26, %v18698_v63  ;;  %v2892_v37 = vsel %vm253_vm1, %v18691_v39, %v2891_v25 }
 0x2c4   :  { %v2872_v40 = vperm.slane %v2866_v34, %v19590_v23  ;;  %v2900_v41 = vperm.slane %v2892_v37, %v19590_v23  ;;  %v2916_v47 = vsel %vm253_vm1, %v2876_v28, %v2915_v30  ;;  %v2928_v52 = vsel %vm253_vm1, %v2896_v29, %v2927_v48 }
 0x2c5   :  { %v2924_v50 = vperm.slane %v2916_v47, %v19600_v38  ;;  %v2913_v54 = vrot.slane %v2876_v28, 4  ;;  %v2925_v63 = vrot.slane %v2896_v29, 4  ;;  %v2936_v42 = vperm.slane %v2928_v52, %v19600_v38 }
 0x2c6   :  { %v18715_v45 = vpop.trf.xlu0  ;;  %v2904_v44 = vsel %vm253_vm1, %v2872_v40, %v2903_v46  ;;  %v2940_v39 = vsel %vm253_vm1, %v2900_v41, %v2939_v17  ;;  %v2937_v49 = vrot.slane %v2900_v41, 4  ;;  %v2901_v1 = vrot.slane %v2872_v40, 4 }
 0x2c7   :  { %v18716_v7 = vunpack.i.l.bf16 %v18715_v45  ;;  %v2912_v3 = vperm.slane %v2904_v44, %v19600_v38  ;;  %v2948_v5 = vperm.slane %v2940_v39, %v19600_v38  ;;  %v2963_v8 = vrot.slane %v2924_v50, 4 }
 0x2c8   :  { %v2914_v9 = vsel %vm253_vm1, %v2913_v54, %v2864_v18  ;;  %v18719_v10 = vunpack.i.h.bf16 %v18715_v45  ;;  %v2938_v15 = vsel %vm253_vm1, %v2937_v49, %v2888_v12  ;;  %v2902_v48 = vsel %vm253_vm1, %v2901_v1, %v2860_v21 }
 0x2c9   :  { %v2920_v13 = vperm.slane %v2914_v9, %v19600_v38  ;;  %v1330_v16 = vsel %vm253_vm1, %v1329_v35, %v18716_v7  ;;  %v2955_v60 = vrot.slane %v2912_v3, 4  ;;  %v2944_v19 = vperm.slane %v2938_v15, %v19600_v38 }
 0x2ca   :  { %v2961_v61 = vrot.slane %v2948_v5, 4  ;;  %v2964_v20 = vsel %vm253_vm1, %v2948_v5, %v2963_v8  ;;  %v2926_v18 = vsel %vm253_vm1, %v2925_v63, %v2884_v0  ;;  %v2908_v12 = vperm.slane %v2902_v48, %v19600_v38 }
 0x2cb   :  { %v2959_v43 = vrot.slane %v2920_v13, 4  ;;  %v2956_v17 = vsel %vm253_vm1, %v2936_v42, %v2955_v60  ;;  %v2957_v24 = vrot.slane %v2944_v19, 4  ;;  %v1323_v26 = vrot.slane %v18719_v10, 4 }
 0x2cc   :  { %v2962_v25 = vsel %vm253_vm1, %v2961_v61, %v2924_v50  ;;  %v18734_v27 = vpack.i.bf16 %v2956_v17, %v2964_v20  ;;  %v2932_v29 = vperm.slane %v2926_v18, %v19600_v38  ;;  %v2951_v34 = vrot.slane %v2908_v12, 4 }
 0x2cd   :  { %v2960_v28 = vsel %vm253_vm1, %v2944_v19, %v2959_v43  ;;  %v2953_v35 = vrot.slane %v2936_v42, 4  ;;  %v1334_v21 = vperm.slane %v1330_v16, %v19590_v23  ;;  %v1335_v41 = vrot.slane %v19841_v57, 4 }
 0x2ce   :  { %v18741_v30 = vpack.i.bf16 %v2962_v25, %v2960_v28  ;;  %v18729_v33 = vpop.trf.xlu0  ;;  %18735 = vxpose.xlu2.b32.start.end [1/1] (short) (narrow) %v18734_v27, 8  ;;  %v2949_v40 = vrot.slane %v2932_v29, 4  ;;  %v19864_v47 = vsel %vm253_vm1, %v2957_v24, %v2920_v13  ;;  %v571_v50 = vrot.slane %v19751_v58, 4  ;;  %v1520_v28 = vpop.trf.xlu2 }
 0x2cf   :  { %v18733_v0 = vunpack.i.h.bf16 %v18729_v33  ;;  %v18730_v37 = vunpack.i.l.bf16 %v18729_v33  ;;  %v1347_v46 = vrot.slane %v1334_v21, 4  ;;  %v674_v45 = vperm.slane %v19826_v22, %v19600_v38 }
 0x2d0   :  { %18742 = vxpose.xlu0.b32.start.end [1/1] (short) (narrow) %v18741_v30, 8  ;;  %v2952_v44 = vsel %vm253_vm1, %v2932_v29, %v2951_v34  ;;  %v19875_v63 = vsel %vm253_vm1, %v2949_v40, %v2908_v12  ;;  %v2954_v7 = vsel %vm253_vm1, %v2953_v35, %v2912_v3  ;;  %v658_v58 = vsel %vm253_vm1, %v19794_v55, %v657_v32  ;;  %v19922_v29 = vld [vmem:[%s19919_s29] sm:$0xff] }
 0x2d1   :  { %v1312_v52 = vsel %vm253_vm1, %v1311_v36, %v18733_v0  ;;  %v1324_v54 = vsel %vm253_vm1, %v1323_v26, %v18730_v37  ;;  %v670_v22 = vsel %vm253_vm1, %v19806_v31, %v669_v4  ;;  %v18755_v36 = vpack.i.bf16 %v19875_v63, %v19864_v47 }
 0x2d2   :  { %v1316_v39 = vperm.slane %v1312_v52, %v19590_v23  ;;  %v1328_v49 = vperm.slane %v1324_v54, %v19590_v23  ;;  %v18748_v3 = vpack.i.bf16 %v2954_v7, %v2952_v44  ;;  %v681_v55 = vrot.slane %v19815_v6, 4  ;;  %v1744_v52 = vpop.trf.xlu1 }
 0x2d3   :  { %v572_v51 = vsel %vm253_vm1, 0.0, %v571_v50  ;;  %v679_v32 = vrot.slane %v674_v45, 4  ;;  %v666_v60 = vperm.slane %v658_v58, %v19600_v38  ;;  %v573_v18 = vrot.slane %v19745_v53, 4 }
 0x2d4   :  { %v1336_v1 = vsel %vm253_vm1, %v1335_v41, %v1316_v39  ;;  %v1348_v5 = vsel %vm253_vm1, %v1347_v46, %v1328_v49  ;;  %v1337_v8 = vrot.slane %v1316_v39, 4  ;;  %v1349_v9 = vrot.slane %v1328_v49, 4 }
 0x2d5   :  { %v1342_v11 = vperm.slane %v1336_v1, %v19600_v38  ;;  %v1354_v10 = vperm.slane %v1348_v5, %v19600_v38  ;;  %v682_v48 = vsel %vm253_vm1, %v674_v45, %v681_v55  ;;  %v678_v17 = vperm.slane %v670_v22, %v19600_v38 }
 0x2d6   :  { %v1338_v31 = vsel %vm253_vm1, %v19841_v57, %v1337_v8  ;;  %v1350_v4 = vsel %vm253_vm1, %v1334_v21, %v1349_v9  ;;  %18749 = vxpose.xlu2.b32.start.end [1/1] (short) (narrow) %v18748_v3, 8  ;;  %v680_v57 = vsel %vm253_vm1, %v679_v32, %v19815_v6  ;;  %v574_v12 = vsel %vm253_vm1, 0.0, %v573_v18  ;;  %v1648_v30 = vpop.trf.xlu2  ;;  %v1712_v0 = vpop.trf.xlu0 }
 0x2d7   :  { %v1359_v42 = vrot.slane %v1354_v10, 4  ;;  %v1361_v13 = vrot.slane %v1342_v11, 4  ;;  %v1346_v15 = vperm.slane %v1338_v31, %v19600_v38  ;;  %v1358_v16 = vperm.slane %v1350_v4, %v19600_v38 }
 0x2d8   :  { %1600 = vxpose.xlu0.b32.start.end [1/1] (short) (narrow) %v572_v51, 8  ;;  %v683_v26 = vrot.slane %v678_v17, 4  ;;  %v685_v6 = vrot.slane %v666_v60, 4  ;;  %v1784_v54 = vrot.slane %v1712_v0, 4  ;;  %v1762_v44 = vrot.slane %v1520_v28, 4 }
 0x2d9   :  { %v1360_v19 = vsel %vm253_vm1, %v1359_v42, %v1342_v11  ;;  %v1362_v61 = vsel %vm253_vm1, %v1354_v10, %v1361_v13  ;;  %v1363_v20 = vrot.slane %v1358_v16, 4  ;;  %v1365_v43 = vrot.slane %v1346_v15, 4 }
 0x2da   :  { %1386 = vmatpush.msra.mxu2 %v1360_v19  ;;  %1409 = vmatpush.msra.mxu3 %v1362_v61  ;;  %v684_v27 = vsel %vm253_vm1, %v683_v26, %v666_v60  ;;  %v686_v53 = vsel %vm253_vm1, %v678_v17, %v685_v6  ;;  %v1785_v39 = vsel %vm253_vm1, %v1784_v54, %v1648_v30  ;;  %v1786_v49 = vrot.slane %v1648_v30, 4  ;;  %v1552_v9 = vpop.trf.xlu1 }
 0x2db   :  { %18261 = vmatmul.msk.f32.vlgmr.msra.gmra.mxu2 %vm1367_vm2, %v680_v57  ;;  %18262 = vmatmul.msk.f32.vlgmr.msra.gmra.mxu3 %vm1367_vm2, %v682_v48  ;;  %v1364_v24 = vsel %vm253_vm1, %v1363_v20, %v1346_v15  ;;  %v1366_v25 = vsel %vm253_vm1, %v1358_v16, %v1365_v43  ;;  %v1796_v22 = vrot.slane %v1744_v52, 4  ;;  %v1791_v1 = vperm.slane %v1785_v39, %v19590_v23 }
 0x2dc   :  { %1432 = vmatpush.msrb.mxu2 %v1364_v24  ;;  %1455 = vmatpush.msrb.mxu3 %v1366_v25  ;;  %v1787_v8 = vsel %vm253_vm1, %v1712_v0, %v1786_v49  ;;  %v1774_v10 = vrot.slane %v1552_v9, 4 }
 0x2dd   :  { %v1795_v31 = vperm.slane %v1787_v8, %v19590_v23  ;;  %v1834_v4 = vrot.slane %v1791_v1, 4 }
 0x2de   :  { %1664 = vxpose.xlu2.b32.start.end [1/1] (short) (narrow) %v574_v12, 8  ;;  %v1584_v50 = vpop.trf.xlu0 }
 0x2df   :  { %v1760_v7 = vrot.slane %v1584_v50, 4  ;;  %v1763_v5 = vsel %vm253_vm1, %v1584_v50, %v1762_v44  ;;  %v1846_v48 = vrot.slane %v1795_v31, 4 }
 0x2e0   :  { %v1771_v32 = vperm.slane %v1763_v5, %v19590_v23 }
 0x2e1   :  { %v1761_v3 = vsel %vm253_vm1, %v1760_v7, %v1520_v28 }
 0x2e2   :  { %v1767_v13 = vperm.slane %v1761_v3, %v19590_v23  ;;  %v1822_v43 = vrot.slane %v1771_v32, 4 }
 0x2e3   :  { %18263 = vmatmul.msk.f32.vlgmr.msrb.gmra.mxu2 %vm1367_vm2, %v684_v27  ;;  %18264 = vmatmul.msk.f32.vlgmr.msrb.gmra.mxu3 %vm1367_vm2, %v686_v53 }
 0x2e4   :  { %v1810_v17 = vrot.slane %v1767_v13, 4 }
 0x35e   :  { %v1388_v33 = vpop.f32.mrf.mxu2  ;;  %v19924_v34 = vpop.f32.mrf.mxu3 }
 0x35f   :  { %v19927_v35 = vadd.f32 %v1388_v33, %v19922_v29 }
 0x361   :  { %v1460_v21 = vsel %vm1367_vm2, %v19927_v35, -inf }
 0x362   :  { %1461 = vmax.xlane.f32.xlu1 %v1460_v21 }
 0x366   :  { %v1457_v37 = vpop.f32.mrf.mxu3 }
 0x367   :  { %v19932_v40 = vadd.f32 %v1457_v37, %v19922_v29  ;;  %v19934_v41 = vpop.trf.xlu2 }
 0x369   :  { %v1469_v46 = vsel %vm1367_vm2, %v19932_v40, -inf }
 0x36a   :  { %1470 = vmax.xlane.f32.xlu1 %v1469_v46 }
 0x36f   :  { %v19938_v45 = vpop.trf.xlu2 }
 0x374   :  { %v19941_v58 = vpop.trf.xlu0 }
 0x377   :  { %v1680_v11 = vpop.trf.xlu2 }
 0x378   :  { %v1797_v55 = vsel %vm253_vm1, %v1796_v22, %v1680_v11  ;;  %v1798_v51 = vrot.slane %v1680_v11, 4 }
 0x379   :  { %v1803_v42 = vperm.slane %v1797_v55, %v19590_v23 }
 0x37a   :  { %v1799_v15 = vsel %vm253_vm1, %v1744_v52, %v1798_v51 }
 0x37b   :  { %v1807_v16 = vperm.slane %v1799_v15, %v19590_v23  ;;  %v1835_v19 = vsel %vm253_vm1, %v1803_v42, %v1834_v4  ;;  %v1832_v5 = vrot.slane %v1803_v42, 4  ;;  %v19984_v15 = vpop.permute.xlu1 %236 }
 0x37c   :  { %v1616_v60 = vpop.trf.xlu0  ;;  %v1843_v24 = vperm.slane %v1835_v19, %v19600_v38 }
 0x37d   :  { %v1772_v61 = vrot.slane %v1616_v60, 4  ;;  %v1775_v20 = vsel %vm253_vm1, %v1616_v60, %v1774_v10  ;;  %v1847_v6 = vsel %vm253_vm1, %v1807_v16, %v1846_v48  ;;  %v1844_v37 = vrot.slane %v1807_v16, 4  ;;  %v1434_v48 = vpop.f32.mrf.mxu2 }
 0x37e   :  { %v1783_v57 = vperm.slane %v1775_v20, %v19590_v23  ;;  %v1855_v30 = vperm.slane %v1847_v6, %v19600_v38  ;;  %v1860_v0 = vrot.slane %v1843_v24, 4  ;;  %v1833_v3 = vsel %vm253_vm1, %v1832_v5, %v1791_v1 }
 0x37f   :  { %v1773_v18 = vsel %vm253_vm1, %v1772_v61, %v1552_v9  ;;  %v1845_v44 = vsel %vm253_vm1, %v1844_v37, %v1795_v31  ;;  %v1839_v55 = vperm.slane %v1833_v3, %v19600_v38 }
 0x380   :  { %v1779_v25 = vperm.slane %v1773_v18, %v19590_v23  ;;  %v1820_v12 = vrot.slane %v1783_v57, 4  ;;  %v1823_v26 = vsel %vm253_vm1, %v1783_v57, %v1822_v43  ;;  %v1851_v22 = vperm.slane %v1845_v44, %v19600_v38 }
 0x381   :  { %v1831_v27 = vperm.slane %v1823_v26, %v19600_v38  ;;  %v1868_v11 = vrot.slane %v1855_v30, 4  ;;  %v1856_v4 = vrot.slane %v1839_v55, 4  ;;  %v1412_v18 = vadd.f32 %v19924_v34, %v19922_v29 }
 0x382   :  { %v1811_v53 = vsel %vm253_vm1, %v1779_v25, %v1810_v17  ;;  %v1821_v28 = vsel %vm253_vm1, %v1820_v12, %v1771_v32  ;;  %v1808_v54 = vrot.slane %v1779_v25, 4  ;;  %v1864_v31 = vrot.slane %v1851_v22, 4 }
 0x383   :  { %v1870_v33 = vrot.slane %v1831_v27, 4  ;;  %v1819_v21 = vperm.slane %v1811_v53, %v19600_v38  ;;  %507 = vrot.lane.b32.xlu1 %v19623_v2, %s23075_s25  ;;  %v1827_v52 = vperm.slane %v1821_v28, %v19600_v38  ;;  %v1869_v51 = vsel %vm253_vm1, %v1868_v11, %v1831_v27  ;;  %v19986_v1 = vpop.permute.xlu1 %242 }
 0x384   :  { %v1809_v7 = vsel %vm253_vm1, %v1808_v54, %v1767_v13  ;;  %v1435_v17 = vadd.f32 %v1434_v48, %v19922_v29 }
 0x385   :  { %v1871_v46 = vsel %vm253_vm1, %v1855_v30, %v1870_v33  ;;  %v1861_v50 = vsel %vm253_vm1, %v1860_v0, %v1819_v21  ;;  %v1866_v39 = vrot.slane %v1827_v52, 4  ;;  %v1862_v49 = vrot.slane %v1819_v21, 4 }
 0x386   :  { %2096 = vxpose.xlu2.b32.start.end [1/1] (short) (narrow) %v1871_v46, 8  ;;  %1936 = vxpose.xlu0.b32.start.end [1/1] (short) (narrow) %v1861_v50, 8  ;;  %v1815_v9 = vperm.slane %v1809_v7, %v19600_v38  ;;  %v1865_v42 = vsel %vm253_vm1, %v1864_v31, %v1827_v52 }
 0x387   :  { %v1867_v2 = vsel %vm253_vm1, %v1851_v22, %v1866_v39  ;;  %v1863_v8 = vsel %vm253_vm1, %v1843_v24, %v1862_v49  ;;  %v1463_v24 = vsel %vm1367_vm2, %v1412_v18, -inf }
 0x388   :  { %v1858_v10 = vrot.slane %v1815_v9, 4  ;;  %v1857_v13 = vsel %vm253_vm1, %v1856_v4, %v1815_v9 }
 0x38a   :  { %v1859_v32 = vsel %vm253_vm1, %v1839_v55, %v1858_v10 }
 0x38b   :  { %v19988_v16 = vpop.permute.xlu1 %248 }
 0x38e   :  { %2032 = vxpose.xlu2.b32.start.end [1/1] (short) (narrow) %v1867_v2, 8  ;;  %1968 = vxpose.xlu0.b32.start.end [1/1] (short) (narrow) %v1863_v8, 8 }
 0x396   :  { %2064 = vxpose.xlu0.b32.start.end [1/1] (short) (narrow) %v1869_v51, 8  ;;  %1904 = vxpose.xlu2.b32.start.end [1/1] (short) (narrow) %v1859_v32, 8 }
 0x39e   :  { %2000 = vxpose.xlu2.b32.start.end [1/1] (short) (narrow) %v1865_v42, 8  ;;  %1872 = vxpose.xlu0.b32.start.end [1/1] (short) (narrow) %v1857_v13, 8 }
 0x3d5   :  { %v1462_v60 = vpop.xlane.xlu1 %1461 }
 0x3dd   :  { %v1471_v19 = vpop.xlane.xlu1 %1470 }
 0x3de   :  { %v1475_v61 = vsub.f32 %v19932_v40, %v1471_v19  ;;  %v1466_v40 = vsel %vm1367_vm2, %v1435_v17, -inf }
 0x3e0   :  { %v1482_v20 = vmul.f32 1.442695, %v1475_v61 }
 0x3e2   :  { %19305 = vpow2.f32 %v1482_v20 }
 0x3e8   :  { %v19991_v43 = vpop.eup %19305 }
 0x3e9   :  { %v1493_v57 = vsel %vm1367_vm2, %v19991_v43, 0.0 }
 0x3ea   :  { %1494 = vadd.xlane.f32.xlu1 %v1493_v57 }
 0x403   :  { %499 = vrot.lane.b32.xlu1 %v19579_v14, %s23075_s25  ;;  %v1472_v14 = vsub.f32 %v19927_v35, %v1462_v60 }
 0x405   :  { %v1476_v25 = vmul.f32 1.442695, %v1472_v14  ;;  %v311_v14 = vrot.slane %v19755_v59, 4 }
 0x407   :  { %19307 = vpow2.f32 %v1476_v25  ;;  %v321_v25 = vrot.slane %v19988_v16, 4 }
 0x40d   :  { %v20008_v34 = vpop.eup %19307 }
 0x40e   :  { %v1484_v29 = vsel %vm1367_vm2, %v20008_v34, 0.0 }
 0x40f   :  { %1464 = vmax.xlane.f32.xlu2 %v1463_v24  ;;  %1467 = vmax.xlane.f32.xlu0 %v1466_v40  ;;  %v309_v40 = vrot.slane %v19986_v1, 4 }
 0x41f   :  { %v2112_v6 = vpop.trf.xlu2 }
 0x420   :  { %v2146_v0 = vrot.slane %v2112_v6, 4  ;;  %v312_v6 = vsel %vm253_vm1, %v19986_v1, %v311_v14  ;;  %v18751_v14 = vunpack.i.l.bf16 %v19938_v45 }
 0x427   :  { %511 = vrot.lane.b32.xlu2 %v19619_v62, %s23075_s25  ;;  %v2048_v53 = vpop.trf.xlu2 }
 0x428   :  { %v2147_v54 = vsel %vm253_vm1, %v2146_v0, %v2048_v53 }
 0x429   :  { %v2151_v22 = vperm.slane %v2147_v54, %v19590_v23 }
 0x42a   :  { %v1952_v12 = vpop.trf.xlu0 }
 0x42b   :  { %v2128_v46 = vrot.slane %v1952_v12, 4  ;;  %v2164_v3 = vrot.slane %v2151_v22, 4  ;;  %v323_v12 = vrot.slane %v19984_v15, 4 }
 0x42d   :  { %v324_v53 = vsel %vm253_vm1, %v19988_v16, %v323_v12 }
 0x42f   :  { %v1920_v28 = vpop.trf.xlu2 }
 0x432   :  { %v1984_v26 = vpop.trf.xlu0 }
 0x433   :  { %v2134_v35 = vrot.slane %v1984_v26, 4  ;;  %v310_v26 = vsel %vm253_vm1, %v309_v40, %v19755_v59  ;;  %v332_v59 = vperm.slane %v324_v53, %v19590_v23 }
 0x435   :  { %v2135_v50 = vsel %vm253_vm1, %v2134_v35, %v1920_v28  ;;  %v320_v28 = vperm.slane %v312_v6, %v19590_v23  ;;  %v345_v35 = vrot.slane %v332_v59, 4 }
 0x436   :  { %v2139_v44 = vperm.slane %v2135_v50, %v19590_v23 }
 0x438   :  { %18756 = vxpose.xlu0.b32.start.end [1/1] (short) (narrow) %v18755_v36, 8  ;;  %v2016_v36 = vpop.trf.xlu2  ;;  %v2152_v5 = vrot.slane %v2139_v44, 4 }
 0x43a   :  { %v2080_v27 = vpop.trf.xlu0 }
 0x43b   :  { %v2140_v33 = vrot.slane %v2080_v27, 4  ;;  %v322_v27 = vsel %vm253_vm1, %v321_v25, %v19984_v15  ;;  %v18744_v25 = vunpack.i.l.bf16 %v19941_v58 }
 0x43d   :  { %v2141_v52 = vsel %vm253_vm1, %v2140_v33, %v2016_v36 }
 0x43e   :  { %v2145_v39 = vperm.slane %v2141_v52, %v19590_v23 }
 0x440   :  { %v2166_v2 = vrot.slane %v2145_v39, 4  ;;  %v2165_v4 = vsel %vm253_vm1, %v2164_v3, %v2145_v39 }
 0x441   :  { %v2171_v13 = vperm.slane %v2165_v4, %v19600_v38 }
 0x442   :  { %v1888_v62 = vpop.trf.xlu0  ;;  %v2167_v11 = vsel %vm253_vm1, %v2151_v22, %v2166_v2 }
 0x443   :  { %v2129_v49 = vsel %vm253_vm1, %v2128_v46, %v1888_v62  ;;  %v2175_v32 = vperm.slane %v2167_v11, %v19600_v38  ;;  %v316_v62 = vperm.slane %v310_v26, %v19590_v23  ;;  %v2176_v52 = vrot.slane %v2171_v13, 4 }
 0x444   :  { %v2133_v8 = vperm.slane %v2129_v49, %v19590_v23 }
 0x445   :  { %v2180_v19 = vrot.slane %v2175_v32, 4 }
 0x446   :  { %v2153_v10 = vsel %vm253_vm1, %v2152_v5, %v2133_v8  ;;  %v2154_v55 = vrot.slane %v2133_v8, 4 }
 0x447   :  { %v2159_v31 = vperm.slane %v2153_v10, %v19600_v38 }
 0x448   :  { %v2155_v42 = vsel %vm253_vm1, %v2139_v44, %v2154_v55 }
 0x449   :  { %v2163_v60 = vperm.slane %v2155_v42, %v19600_v38  ;;  %v2178_v61 = vrot.slane %v2159_v31, 4  ;;  %v18740_v42 = vunpack.i.h.bf16 %v19934_v41 }
 0x44b   :  { %v20033_v20 = vsel %vm253_vm1, %v2180_v19, %v2163_v60  ;;  %v20036_v57 = vsel %vm253_vm1, %v2171_v13, %v2178_v61  ;;  %v2182_v48 = vrot.slane %v2163_v60, 4  ;;  %v18737_v13 = vunpack.i.l.bf16 %v19934_v41 }
 0x44c   :  { %v18754_v60 = vunpack.i.h.bf16 %v19938_v45  ;;  %v18747_v19 = vunpack.i.h.bf16 %v19941_v58  ;;  %v3227_v12 = vrot.slane %v18740_v42, 4 }
 0x44d   :  { %v3239_v26 = vrot.slane %v18737_v13, 4 }
 0x44e   :  { %v3221_v41 = vrot.slane %v18754_v60, 4  ;;  %v3233_v6 = vrot.slane %v18747_v19, 4  ;;  %v3228_v58 = vsel %vm253_vm1, %v3227_v12, %v18751_v14 }
 0x450   :  { %1485 = vadd.xlane.f32.xlu2 %v1484_v29 }
 0x482   :  { %v1468_v30 = vpop.xlane.xlu0 %1467  ;;  %v1465_v7 = vpop.xlane.xlu2 %1464 }
 0x483   :  { %v1474_v47 = vsub.f32 %v1435_v17, %v1468_v30  ;;  %v1473_v9 = vsub.f32 %v1412_v18, %v1465_v7  ;;  %v20041_v17 = vsel %vm253_vm1, %v2175_v32, %v2182_v48  ;;  %v328_v30 = vperm.slane %v322_v27, %v19590_v23 }
 0x484   :  { %v2177_v7 = vsel %vm253_vm1, %v2176_v52, %v2159_v31 }
 0x485   :  { %v1480_v63 = vmul.f32 1.442695, %v1474_v47  ;;  %v1478_v51 = vmul.f32 1.442695, %v1473_v9  ;;  %v335_v47 = vrot.slane %v316_v62, 4  ;;  %v333_v36 = vrot.slane %v328_v30, 4 }
 0x487   :  { %19309 = vpow2.f32 %v1480_v63  ;;  %v347_v63 = vrot.slane %v320_v28, 4  ;;  %v334_v0 = vsel %vm253_vm1, %v333_v36, %v316_v62 }
 0x488   :  { %19311 = vpow2.f32 %v1478_v51  ;;  %v340_v54 = vperm.slane %v334_v0, %v19600_v38 }
 0x489   :  { %v348_v15 = vsel %vm253_vm1, %v332_v59, %v347_v63  ;;  %v3240_v59 = vsel %vm253_vm1, %v3239_v26, %v18744_v25 }
 0x48a   :  { %v20048_v29 = vpop.permute.xlu2 %511  ;;  %v356_v33 = vperm.slane %v348_v15, %v19600_v38  ;;  %v357_v22 = vrot.slane %v340_v54, 4  ;;  %v3244_v15 = vperm.slane %v3240_v59, %v19590_v23 }
 0x48c   :  { %v363_v49 = vrot.slane %v356_v33, 4  ;;  %v358_v55 = vsel %vm253_vm1, 0.0, %v357_v22 }
 0x48d   :  { %v20012_v21 = vpop.eup %19309 }
 0x48e   :  { %v1490_v37 = vsel %vm1367_vm2, %v20012_v21, 0.0  ;;  %v20038_v18 = vpop.eup %19311  ;;  %v364_v8 = vsel %vm253_vm1, 0.0, %v363_v49 }
 0x48f   :  { %1491 = vadd.xlane.f32.xlu2 %v1490_v37  ;;  %v1487_v24 = vsel %vm1367_vm2, %v20038_v18, 0.0  ;;  %v346_v37 = vsel %vm253_vm1, %v345_v35, %v320_v28  ;;  %v2559_v3 = vrot.slane %v364_v8, 4  ;;  %v3232_v35 = vperm.slane %v3228_v58, %v19590_v23 }
 0x490   :  { %v352_v44 = vperm.slane %v346_v37, %v19600_v38 }
 0x492   :  { %v361_v2 = vrot.slane %v352_v44, 4  ;;  %v2554_v9 = vsel %vm253_vm1, %v363_v49, %v352_v44 }
 0x493   :  { %v20084_v51 = vperm.slane %v2554_v9, %v19590_v23 }
 0x494   :  { %v362_v10 = vsel %vm253_vm1, 0.0, %v361_v2  ;;  %v3257_v2 = vrot.slane %v3244_v15, 4 }
 0x495   :  { %v2560_v4 = vsel %vm253_vm1, %v2559_v3, %v362_v10  ;;  %v2579_v40 = vrot.slane %v20084_v51, 4  ;;  %v3245_v3 = vrot.slane %v3232_v35, 4 }
 0x496   :  { %v2564_v48 = vperm.slane %v2560_v4, %v19590_v23 }
 0x4a9   :  { %1488 = vadd.xlane.f32.xlu0 %v1487_v24 }
 0x4bd   :  { %503 = vrot.lane.b32.xlu0 %v19665_v56, %s23075_s25  ;;  %v336_v56 = vsel %vm253_vm1, %v328_v30, %v335_v47  ;;  %v2580_v30 = vsel %vm253_vm1, %v2564_v48, %v2579_v40 }
 0x4be   :  { %v344_v16 = vperm.slane %v336_v56, %v19600_v38  ;;  %v2588_v56 = vperm.slane %v2580_v30, %v19600_v38 }
 0x4c0   :  { %v359_v39 = vrot.slane %v344_v16, 4  ;;  %v2593_v52 = vrot.slane %v2588_v56, 4 }
 0x4c2   :  { %v360_v5 = vsel %vm253_vm1, 0.0, %v359_v39  ;;  %v2543_v11 = vsel %vm253_vm1, %v359_v39, %v340_v54 }
 0x4c3   :  { %v1486_v1 = vpop.xlane.xlu2 %1485  ;;  %v20087_v32 = vperm.slane %v2543_v11, %v19590_v23  ;;  %v2577_v11 = vrot.slane %v2564_v48, 4 }
 0x4c4   :  { %19313 = vrcp.f32 %v1486_v1 }
 0x4c5   :  { %v2567_v24 = vrot.slane %v20087_v32, 4  ;;  %v2578_v60 = vsel %vm253_vm1, %v2577_v11, %v20084_v51 }
 0x4c6   :  { %v2584_v48 = vperm.slane %v2578_v60, %v19600_v38 }
 0x4ca   :  { %v19314_v46 = vpop.eup %19313 }
 0x4cb   :  { %v1500_v50 = vmul.f32 %v19314_v46, %v20008_v34  ;;  %v2548_v34 = vrot.slane %v360_v5, 4 }
 0x4cd   :  { %18265 = vmatpush.xpose.msk.msra.mxu2 %vm1367_vm2, %v1500_v50  ;;  %v2549_v31 = vsel %vm253_vm1, %v2548_v34, %v358_v55 }
 0x4ce   :  { %v20096_v61 = vperm.slane %v2549_v31, %v19590_v23 }
 0x4d0   :  { %18266 = vmatmul.msk.f32.vlgmr.msra.gmra.mxu2 %vm1367_vm2, %v2177_v7  ;;  %v2568_v28 = vsel %vm253_vm1, %v20096_v61, %v2567_v24  ;;  %v2565_v13 = vrot.slane %v20096_v61, 4  ;;  %v508_v24 = vpop.permute.xlu1 %507  ;;  %v2589_v61 = vrot.slane %v2584_v48, 4 }
 0x4d1   :  { %v2576_v36 = vperm.slane %v2568_v28, %v19600_v38 }
 0x4d3   :  { %v2595_v54 = vrot.slane %v2576_v36, 4  ;;  %v2594_v22 = vsel %vm253_vm1, %v2593_v52, %v2576_v36  ;;  %v20172_v52 = vld [vmem:[%s19919_s29 + $0x8] sm:$0xff] }
 0x4d5   :  { %v2596_v5 = vsel %vm253_vm1, %v2588_v56, %v2595_v54 }
 0x4d8   :  { %v1495_v51 = vpop.xlane.xlu1 %1494 }
 0x4dc   :  { %v18757_v27 = vpop.trf.xlu0 }
 0x4dd   :  { %v18761_v53 = vunpack.i.h.bf16 %v18757_v27  ;;  %v18758_v62 = vunpack.i.l.bf16 %v18757_v27 }
 0x4df   :  { %v3222_v47 = vsel %vm253_vm1, %v3221_v41, %v18761_v53  ;;  %v3234_v45 = vsel %vm253_vm1, %v3233_v6, %v18758_v62  ;;  %v577_v53 = vrot.slane %v508_v24, 4  ;;  %v589_v62 = vrot.slane %v20048_v29, 4 }
 0x4e0   :  { %v3238_v63 = vperm.slane %v3234_v45, %v19590_v23  ;;  %v3226_v1 = vperm.slane %v3222_v47, %v19590_v23  ;;  %v500_v27 = vpop.permute.xlu1 %499 }
 0x4e1   :  { %v579_v47 = vrot.slane %v500_v27, 4 }
 0x4e2   :  { %v3247_v16 = vrot.slane %v3226_v1, 4  ;;  %v3259_v33 = vrot.slane %v3238_v63, 4  ;;  %v3258_v8 = vsel %vm253_vm1, %v3257_v2, %v3238_v63  ;;  %v3246_v10 = vsel %vm253_vm1, %v3245_v3, %v3226_v1 }
 0x4e3   :  { %v3264_v9 = vperm.slane %v3258_v8, %v19600_v38  ;;  %v3252_v42 = vperm.slane %v3246_v10, %v19600_v38 }
 0x4e4   :  { %v3248_v0 = vsel %vm253_vm1, %v3232_v35, %v3247_v16  ;;  %v3260_v37 = vsel %vm253_vm1, %v3244_v15, %v3259_v33  ;;  %v580_v35 = vsel %vm253_vm1, %v508_v24, %v579_v47 }
 0x4e5   :  { %v3256_v46 = vperm.slane %v3248_v0, %v19600_v38  ;;  %v3268_v50 = vperm.slane %v3260_v37, %v19600_v38  ;;  %v3269_v55 = vrot.slane %v3264_v9, 4  ;;  %v3271_v6 = vrot.slane %v3252_v42, 4 }
 0x4e7   :  { %v3273_v44 = vrot.slane %v3268_v50, 4  ;;  %v3275_v39 = vrot.slane %v3256_v46, 4  ;;  %v3270_v19 = vsel %vm253_vm1, %v3269_v55, %v3252_v42 }
 0x4e9   :  { %v3274_v49 = vsel %vm253_vm1, %v3273_v44, %v3256_v46  ;;  %v3276_v7 = vsel %vm253_vm1, %v3268_v50, %v3275_v39 }
 0x4ea   :  { %3341 = vmatpush.msrb.mxu0 %v3274_v49  ;;  %3364 = vmatpush.msrb.mxu1 %v3276_v7 }
 0x4eb   :  { %18275 = vmatmul.msk.f32.vlgmr.msrb.gmra.mxu0 %vm1367_vm2, %v2594_v22  ;;  %18276 = vmatmul.msk.f32.vlgmr.msrb.gmra.mxu1 %vm1367_vm2, %v2596_v5 }
 0x502   :  { %v1492_v34 = vpop.xlane.xlu2 %1491 }
 0x503   :  { %19315 = vrcp.f32 %v1492_v34 }
 0x504   :  { %19317 = vrcp.f32 %v1495_v51 }
 0x509   :  { %v19316_v31 = vpop.eup %19315 }
 0x50a   :  { %v1502_v4 = vmul.f32 %v19316_v31, %v20012_v21  ;;  %v2566_v21 = vsel %vm253_vm1, %v2565_v13, %v20087_v32  ;;  %v19318_v12 = vpop.eup %19317  ;;  %v3272_v32 = vsel %vm253_vm1, %v3264_v9, %v3271_v6 }
 0x50b   :  { %v2572_v40 = vperm.slane %v2566_v21, %v19600_v38 }
 0x50c   :  { %18269 = vmatpush.xpose.msk.msrb.mxu2 %vm1367_vm2, %v1502_v4 }
 0x50d   :  { %v2590_v14 = vsel %vm253_vm1, %v2589_v61, %v2572_v40  ;;  %v2591_v1 = vrot.slane %v2572_v40, 4 }
 0x50f   :  { %18270 = vmatmul.msk.f32.vlgmr.msrb.gmra.mxu2 %vm1367_vm2, %v20033_v20  ;;  %v1503_v20 = vmul.f32 %v19318_v12, %v19991_v43 }
 0x510   :  { %3295 = vmatpush.msra.mxu2 %v3270_v19 }
 0x517   :  { %18273 = vmatmul.msk.f32.vlgmr.msra.gmra.mxu2 %vm1367_vm2, %v2590_v14 }
 0x51c   :  { %v1489_v25 = vpop.xlane.xlu0 %1488 }
 0x51d   :  { %19319 = vrcp.f32 %v1489_v25 }
 0x523   :  { %v19320_v26 = vpop.eup %19319 }
 0x524   :  { %v1501_v41 = vmul.f32 %v19320_v26, %v20038_v18  ;;  %v578_v18 = vsel %vm253_vm1, %v577_v53, %v500_v27 }
 0x525   :  { %v584_v45 = vperm.slane %v578_v18, %v19590_v23 }
 0x526   :  { %18267 = vmatpush.xpose.msk.msra.mxu3 %vm1367_vm2, %v1501_v41 }
 0x527   :  { %v603_v49 = vrot.slane %v584_v45, 4 }
 0x529   :  { %18268 = vmatmul.msk.f32.vlgmr.msra.gmra.mxu3 %vm1367_vm2, %v20036_v57 }
 0x52a   :  { %18271 = vmatpush.xpose.msk.msrb.mxu3 %vm1367_vm2, %v1503_v20 }
 0x52e   :  { %3318 = vmatpush.msra.mxu3 %v3272_v32 }
 0x52f   :  { %v504_v28 = vpop.permute.xlu0 %503 }
 0x530   :  { %v590_v43 = vsel %vm253_vm1, %v589_v62, %v504_v28  ;;  %v591_v30 = vrot.slane %v504_v28, 4 }
 0x531   :  { %v596_v59 = vperm.slane %v590_v43, %v19590_v23  ;;  %18272 = vmatmul.msk.f32.vlgmr.msrb.gmra.mxu3 %vm1367_vm2, %v20041_v17  ;;  %v2592_v17 = vsel %vm253_vm1, %v2584_v48, %v2591_v1 }
 0x532   :  { %v592_v57 = vsel %vm253_vm1, %v20048_v29, %v591_v30  ;;  %v588_v29 = vperm.slane %v580_v35, %v19590_v23 }
 0x533   :  { %v601_v58 = vrot.slane %v596_v59, 4  ;;  %v600_v63 = vperm.slane %v592_v57, %v19590_v23  ;;  %v604_v7 = vsel %vm253_vm1, %v596_v59, %v603_v49 }
 0x534   :  { %v612_v22 = vperm.slane %v604_v7, %v19600_v38  ;;  %v615_v8 = vrot.slane %v588_v29, 4 }
 0x535   :  { %v602_v36 = vsel %vm253_vm1, %v601_v58, %v584_v45  ;;  %v613_v15 = vrot.slane %v600_v63, 4 }
 0x536   :  { %v608_v56 = vperm.slane %v602_v36, %v19600_v38  ;;  %v627_v5 = vrot.slane %v612_v22, 4  ;;  %v616_v34 = vsel %vm253_vm1, %v600_v63, %v615_v8 }
 0x537   :  { %v614_v0 = vsel %vm253_vm1, %v613_v15, %v588_v29  ;;  %v624_v9 = vperm.slane %v616_v34, %v19600_v38 }
 0x538   :  { %3413 = vxpose.xlu2.b32.start.end [1/1] (short) (narrow) %v608_v56, 8  ;;  %v625_v16 = vrot.slane %v608_v56, 4  ;;  %v620_v37 = vperm.slane %v614_v0, %v19600_v38  ;;  %v628_v2 = vsel %vm253_vm1, 0.0, %v627_v5 }
 0x539   :  { %18274 = vmatmul.msk.f32.vlgmr.msra.gmra.mxu3 %vm1367_vm2, %v2592_v17  ;;  %v631_v3 = vrot.slane %v624_v9, 4 }
 0x53a   :  { %v626_v33 = vsel %vm253_vm1, 0.0, %v625_v16  ;;  %v629_v46 = vrot.slane %v620_v37, 4 }
 0x53b   :  { %3445 = vxpose.xlu1.b32.start.end [1/1] (short) (narrow) %v626_v33, 8  ;;  %v632_v10 = vsel %vm253_vm1, 0.0, %v631_v3 }
 0x53c   :  { %v630_v50 = vsel %vm253_vm1, 0.0, %v629_v46 }
 0x540   :  { %3541 = vxpose.xlu2.b32.start.end [1/1] (short) (narrow) %v620_v37, 8 }
 0x548   :  { %3573 = vxpose.xlu2.b32.start.end [1/1] (short) (narrow) %v630_v50, 8 }
 0x553   :  { %v20184_v55 = vpop.f32.mrf.mxu2 }
 0x568   :  { %v3343_v54 = vpop.f32.mrf.mxu0 }
 0x569   :  { %v3344_v44 = vadd.f32 %v3343_v54, %v20172_v52 }
 0x56b   :  { %v3375_v39 = vsel %vm1367_vm2, %v3344_v44, -inf }
 0x56c   :  { %3376 = vmax.xlane.f32.xlu0 %v3375_v39 }
 0x595   :  { %3477 = vxpose.xlu0.b32.start.end [1/1] (short) (narrow) %v612_v22, 8 }
 0x59d   :  { %3509 = vxpose.xlu0.b32.start.end [1/1] (short) (narrow) %v628_v2, 8 }
 0x5a5   :  { %3605 = vxpose.xlu0.b32.start.end [1/1] (short) (narrow) %v624_v9, 8 }
 0x5ac   :  { %v20181_v11 = vpop.f32.mrf.mxu3 }
 0x5ad   :  { %3637 = vxpose.xlu0.b32.start.end [1/1] (short) (narrow) %v632_v10, 8 }
 0x5b4   :  { %v20186_v31 = vpop.f32.mrf.mxu3 }
 0x5b5   :  { %v18769_v4 = vpack.i.bf16 %v20186_v31, %v20184_v55 }
 0x5d1   :  { %v3429_v21 = vpop.trf.xlu2 }
 0x5d2   :  { %v3671_v25 = vrot.slane %v3429_v21, 4 }
 0x5d9   :  { %v3557_v51 = vpop.trf.xlu2 }
 0x5da   :  { %v3695_v27 = vrot.slane %v3557_v51, 4 }
 0x5df   :  { %v3377_v42 = vpop.xlane.xlu0 %3376  ;;  %v3461_v40 = vpop.trf.xlu1 }
 0x5e0   :  { %v3383_v13 = vsub.f32 %v3344_v44, %v3377_v42  ;;  %v3683_v61 = vrot.slane %v3461_v40, 4 }
 0x5e1   :  { %v3589_v30 = vpop.trf.xlu2 }
 0x5e2   :  { %v3389_v60 = vmul.f32 1.442695, %v3383_v13  ;;  %v3707_v63 = vrot.slane %v3589_v30, 4 }
 0x5e4   :  { %19321 = vpow2.f32 %v3389_v60 }
 0x5ea   :  { %v20190_v19 = vpop.eup %19321 }
 0x5eb   :  { %v3399_v48 = vsel %vm1367_vm2, %v20190_v19, 0.0 }
 0x61e   :  { %3400 = vadd.xlane.f32.xlu0 %v3399_v48 }
 0x639   :  { %v3493_v24 = vpop.trf.xlu0 }
 0x63a   :  { %v3669_v12 = vrot.slane %v3493_v24, 4  ;;  %v3672_v41 = vsel %vm253_vm1, %v3493_v24, %v3671_v25 }
 0x63b   :  { %v3680_v53 = vperm.slane %v3672_v41, %v19590_v23 }
 0x63c   :  { %v3670_v6 = vsel %vm253_vm1, %v3669_v12, %v3429_v21 }
 0x63d   :  { %v3676_v43 = vperm.slane %v3670_v6, %v19590_v23  ;;  %v3731_v57 = vrot.slane %v3680_v53, 4 }
 0x63f   :  { %v3719_v1 = vrot.slane %v3676_v43, 4 }
 0x641   :  { %v3525_v14 = vpop.trf.xlu0 }
 0x642   :  { %v3684_v26 = vsel %vm253_vm1, %v3525_v14, %v3683_v61  ;;  %v3681_v20 = vrot.slane %v3525_v14, 4 }
 0x643   :  { %v3692_v32 = vperm.slane %v3684_v26, %v19590_v23 }
 0x644   :  { %v3682_v28 = vsel %vm253_vm1, %v3681_v20, %v3461_v40 }
 0x645   :  { %v3729_v59 = vrot.slane %v3692_v32, 4  ;;  %v3688_v45 = vperm.slane %v3682_v28, %v19590_v23  ;;  %v3732_v56 = vsel %vm253_vm1, %v3692_v32, %v3731_v57 }
 0x646   :  { %v3740_v0 = vperm.slane %v3732_v56, %v19600_v38 }
 0x647   :  { %v3730_v35 = vsel %vm253_vm1, %v3729_v59, %v3680_v53  ;;  %v3720_v16 = vsel %vm253_vm1, %v3688_v45, %v3719_v1  ;;  %v3717_v5 = vrot.slane %v3688_v45, 4  ;;  %v3366_v45 = vpop.f32.mrf.mxu1  ;;  %v3320_v1 = vpop.f32.mrf.mxu3 }
 0x648   :  { %v3736_v50 = vperm.slane %v3730_v35, %v19600_v38  ;;  %v3728_v44 = vperm.slane %v3720_v16, %v19600_v38  ;;  %v3779_v8 = vrot.slane %v3740_v0, 4 }
 0x649   :  { %v3621_v62 = vpop.trf.xlu0  ;;  %v3718_v61 = vsel %vm253_vm1, %v3717_v5, %v3676_v43 }
 0x64a   :  { %v3693_v18 = vrot.slane %v3621_v62, 4  ;;  %v3696_v47 = vsel %vm253_vm1, %v3621_v62, %v3695_v27  ;;  %v3775_v9 = vrot.slane %v3736_v50, 4  ;;  %v3771_v48 = vrot.slane %v3728_v44, 4 }
 0x64b   :  { %v3704_v36 = vperm.slane %v3696_v47, %v19590_v23  ;;  %v3724_v25 = vperm.slane %v3718_v61, %v19600_v38 }
 0x64c   :  { %v3694_v58 = vsel %vm253_vm1, %v3693_v18, %v3557_v51 }
 0x64d   :  { %v3700_v15 = vperm.slane %v3694_v58, %v19590_v23  ;;  %v3755_v37 = vrot.slane %v3704_v36, 4  ;;  %v3767_v53 = vrot.slane %v3724_v25, 4  ;;  %v3367_v58 = vadd.f32 %v3366_v45, %v20172_v52 }
 0x64f   :  { %v3743_v22 = vrot.slane %v3700_v15, 4 }
 0x651   :  { %v3653_v17 = vpop.trf.xlu0 }
 0x652   :  { %v3705_v29 = vrot.slane %v3653_v17, 4  ;;  %v3708_v33 = vsel %vm253_vm1, %v3653_v17, %v3707_v63  ;;  %v3378_v63 = vsel %vm1367_vm2, %v3367_v58, -inf }
 0x653   :  { %v3716_v46 = vperm.slane %v3708_v33, %v19590_v23 }
 0x654   :  { %v3706_v54 = vsel %vm253_vm1, %v3705_v29, %v3589_v30  ;;  %v20236_v30 = vpop.f32.mrf.mxu2 }
 0x655   :  { %v3712_v39 = vperm.slane %v3706_v54, %v19590_v23  ;;  %v3753_v49 = vrot.slane %v3716_v46, 4  ;;  %v3756_v7 = vsel %vm253_vm1, %v3716_v46, %v3755_v37 }
 0x656   :  { %v3764_v2 = vperm.slane %v3756_v7, %v19600_v38 }
 0x657   :  { %v3754_v34 = vsel %vm253_vm1, %v3753_v49, %v3704_v36  ;;  %v3744_v3 = vsel %vm253_vm1, %v3712_v39, %v3743_v22  ;;  %v3741_v10 = vrot.slane %v3712_v39, 4  ;;  %v3321_v36 = vadd.f32 %v3320_v1, %v20172_v52 }
 0x658   :  { %v3780_v42 = vsel %vm253_vm1, %v3764_v2, %v3779_v8  ;;  %v3760_v13 = vperm.slane %v3754_v34, %v19600_v38  ;;  %v3752_v60 = vperm.slane %v3744_v3, %v19600_v38  ;;  %v3777_v41 = vrot.slane %v3764_v2, 4 }
 0x659   :  { %4005 = vxpose.xlu1.b32.start.end [1/1] (short) (narrow) %v3780_v42, 8  ;;  %v3742_v21 = vsel %vm253_vm1, %v3741_v10, %v3700_v15 }
 0x65a   :  { %v3776_v24 = vsel %vm253_vm1, %v3760_v13, %v3775_v9  ;;  %v3772_v40 = vsel %vm253_vm1, %v3752_v60, %v3771_v48  ;;  %v3748_v14 = vperm.slane %v3742_v21, %v19600_v38  ;;  %v3773_v51 = vrot.slane %v3760_v13, 4 }
 0x65b   :  { %3941 = vxpose.xlu0.b32.start.end [1/1] (short) (narrow) %v3776_v24, 8  ;;  %3877 = vxpose.xlu2.b32.start.end [1/1] (short) (narrow) %v3772_v40, 8  ;;  %v3769_v20 = vrot.slane %v3752_v60, 4  ;;  %v3778_v32 = vsel %vm253_vm1, %v3777_v41, %v3740_v0 }
 0x65c   :  { %v3765_v12 = vrot.slane %v3748_v14, 4  ;;  %v3774_v26 = vsel %vm253_vm1, %v3773_v51, %v3736_v50  ;;  %v3768_v62 = vsel %vm253_vm1, %v3748_v14, %v3767_v53  ;;  %v3297_v59 = vpop.f32.mrf.mxu2 }
 0x65d   :  { %v3770_v27 = vsel %vm253_vm1, %v3769_v20, %v3728_v44  ;;  %v3298_v47 = vadd.f32 %v3297_v59, %v20172_v52 }
 0x65e   :  { %v3766_v6 = vsel %vm253_vm1, %v3765_v12, %v3724_v25 }
 0x65f   :  { %v3369_v57 = vsel %vm1367_vm2, %v3298_v47, -inf }
 0x663   :  { %3973 = vxpose.xlu2.b32.start.end [1/1] (short) (narrow) %v3778_v32, 8  ;;  %3845 = vxpose.xlu0.b32.start.end [1/1] (short) (narrow) %v3770_v27, 8 }
 0x66b   :  { %3813 = vxpose.xlu2.b32.start.end [1/1] (short) (narrow) %v3768_v62, 8 }
 0x691   :  { %v3401_v28 = vpop.xlane.xlu0 %3400 }
 0x692   :  { %19323 = vrcp.f32 %v3401_v28 }
 0x698   :  { %v19324_v18 = vpop.eup %19323 }
 0x699   :  { %v3411_v43 = vmul.f32 %v19324_v18, %v20190_v19  ;;  %v3372_v19 = vsel %vm1367_vm2, %v3321_v36, -inf }
 0x69b   :  { %18281 = vmatpush.xpose.msk.msra.mxu0 %vm1367_vm2, %v3411_v43 }
 0x6b9   :  { %3370 = vmax.xlane.f32.xlu1 %v3369_v57 }
 0x6c1   :  { %3379 = vmax.xlane.f32.xlu1 %v3378_v63 }
 0x6dc   :  { %3373 = vmax.xlane.f32.xlu2 %v3372_v19 }
 0x6f4   :  { %v3893_v16 = vpop.trf.xlu2 }
 0x6fc   :  { %v3989_v50 = vpop.trf.xlu2 }
 0x6fd   :  { %v4021_v56 = vpop.trf.xlu1 }
 0x6fe   :  { %v4055_v61 = vrot.slane %v4021_v56, 4 }
 0x6ff   :  { %v3957_v55 = vpop.trf.xlu0 }
 0x700   :  { %v4056_v25 = vsel %vm253_vm1, %v4055_v61, %v3957_v55 }
 0x701   :  { %v4060_v41 = vperm.slane %v4056_v25, %v19590_v23 }
 0x703   :  { %v4073_v28 = vrot.slane %v4060_v41, 4 }
 0x704   :  { %v3829_v44 = vpop.trf.xlu2 }
 0x707   :  { %v3861_v31 = vpop.trf.xlu0 }
 0x708   :  { %v4037_v48 = vrot.slane %v3861_v31, 4 }
 0x72c   :  { %v3371_v35 = vpop.xlane.xlu1 %3370 }
 0x72d   :  { %v3381_v15 = vsub.f32 %v3298_v47, %v3371_v35 }
 0x72f   :  { %v3385_v17 = vmul.f32 1.442695, %v3381_v15 }
 0x731   :  { %19325 = vpow2.f32 %v3385_v17 }
 0x734   :  { %v3380_v29 = vpop.xlane.xlu1 %3379 }
 0x735   :  { %v3384_v33 = vsub.f32 %v3367_v58, %v3380_v29 }
 0x737   :  { %v19326_v0 = vpop.eup %19325  ;;  %v3391_v37 = vmul.f32 1.442695, %v3384_v33  ;;  %v18575_v33 = vld [vmem:[%s20280_s3] sm:$0xff] }
 0x738   :  { %v3393_v46 = vsel %vm1367_vm2, %v19326_v0, 0.0 }
 0x739   :  { %19327 = vpow2.f32 %v3391_v37  ;;  %3394 = vadd.xlane.f32.xlu2 %v3393_v46  ;;  %v147_v37 = vld [vmem:[%s18209_s8 + $0x8] sm:$0xff] }
 0x73f   :  { %v19328_v54 = vpop.eup %19327 }
 0x740   :  { %v3402_v52 = vsel %vm1367_vm2, %v19328_v54, 0.0 }
 0x741   :  { %3403 = vadd.xlane.f32.xlu1 %v3402_v52 }
 0x74f   :  { %v3374_v39 = vpop.xlane.xlu2 %3373 }
 0x750   :  { %v3382_v49 = vsub.f32 %v3321_v36, %v3374_v39 }
 0x752   :  { %v3387_v7 = vmul.f32 1.442695, %v3382_v49 }
 0x754   :  { %19329 = vpow2.f32 %v3387_v7 }
 0x75a   :  { %v19330_v22 = vpop.eup %19329 }
 0x75b   :  { %v3396_v5 = vsel %vm1367_vm2, %v19330_v22, 0.0 }
 0x75c   :  { %3397 = vadd.xlane.f32.xlu1 %v3396_v5 }
 0x762   :  { %3781 = vxpose.xlu2.b32.start.end [1/1] (short) (narrow) %v3766_v6, 8  ;;  %v4049_v6 = vrot.slane %v3989_v50, 4 }
 0x796   :  { %3909 = vxpose.xlu1.b32.start.end [1/1] (short) (narrow) %v3774_v26, 8 }
 0x79e   :  { %18770 = vxpose.xlu1.b32.start.end [1/1] (short) (narrow) %v18769_v4, 8  ;;  %v4043_v4 = vrot.slane %v3893_v16, 4  ;;  %v18576_v16 = vld [vmem:[%s20280_s3 + $0x8] sm:$0xff] }
 0x79f   :  { %4621 = vmatpush.bf16.msrb.mxu0 %v18576_v16 }
 0x7a0   :  { %v4044_v24 = vsel %vm253_vm1, %v4043_v4, %v3829_v44 }
 0x7a1   :  { %v4048_v14 = vperm.slane %v4044_v24, %v19590_v23 }
 0x7a3   :  { %v4061_v12 = vrot.slane %v4048_v14, 4  ;;  %4622 = vmatpush.bf16.msrb.mxu0 %v18575_v33 }
 0x7ac   :  { %v3395_v2 = vpop.xlane.xlu2 %3394 }
 0x7ad   :  { %19331 = vrcp.f32 %v3395_v2 }
 0x7b3   :  { %v19332_v8 = vpop.eup %19331 }
 0x7b4   :  { %v3409_v34 = vmul.f32 %v19332_v8, %v19326_v0  ;;  %v3404_v9 = vpop.xlane.xlu1 %3403  ;;  %v146_v0 = vld [vmem:[%s18209_s8] sm:$0xff]  ;;  %s19510_s8 = smov 23  }
 0x7b5   :  { %19333 = vrcp.f32 %v3404_v9  ;;  %v20287_v46 = vpack.c.bf16 %v147_v37, %v146_v0 }
 0x7b6   :  { %18277 = vmatpush.xpose.msk.msrb.mxu2 %vm1367_vm2, %v3409_v34 }
 0x7bb   :  { %v19334_v3 = vpop.eup %19333 }
 0x7bc   :  { %v3412_v10 = vmul.f32 %v19334_v3, %v19328_v54 }
 0x7be   :  { %18283 = vmatpush.xpose.msk.msra.mxu1 %vm1367_vm2, %v3412_v10 }
 0x7cf   :  { %v3398_v42 = vpop.xlane.xlu1 %3397 }
 0x7d0   :  { %19335 = vrcp.f32 %v3398_v42 }
 0x7d6   :  { %v19336_v13 = vpop.eup %19335 }
 0x7d7   :  { %v3410_v60 = vmul.f32 %v19336_v13, %v19330_v22  ;;  %v20299_v22 = vld [vmem:[%s20296_s14] ss:$0 sm:$0xff] }
 0x7d9   :  { %18279 = vmatpush.xpose.msk.msrb.mxu3 %vm1367_vm2, %v3410_v60 }
 0x7fb   :  { %v3797_v21 = vpop.trf.xlu2 }
 0x7fc   :  { %v4038_v40 = vsel %vm253_vm1, %v4037_v48, %v3797_v21 }
 0x7fd   :  { %v4042_v51 = vperm.slane %v4038_v40, %v19590_v23 }
 0x7ff   :  { %v4063_v26 = vrot.slane %v4042_v51, 4  ;;  %v4062_v20 = vsel %vm253_vm1, %v4061_v12, %v4042_v51 }
 0x800   :  { %v4068_v53 = vperm.slane %v4062_v20, %v19600_v38 }
 0x801   :  { %v4064_v32 = vsel %vm253_vm1, %v4048_v14, %v4063_v26 }
 0x802   :  { %v4072_v43 = vperm.slane %v4064_v32, %v19600_v38  ;;  %v4087_v45 = vrot.slane %v4068_v53, 4 }
 0x804   :  { %v4091_v19 = vrot.slane %v4072_v43, 4 }
 0x83a   :  { %v3925_v27 = vpop.trf.xlu1 }
 0x83b   :  { %v4050_v62 = vsel %vm253_vm1, %v4049_v6, %v3925_v27 }
 0x83c   :  { %v4054_v18 = vperm.slane %v4050_v62, %v19590_v23 }
 0x83e   :  { %v4074_v59 = vsel %vm253_vm1, %v4073_v28, %v4054_v18  ;;  %v4075_v47 = vrot.slane %v4054_v18, 4 }
 0x83f   :  { %v4080_v57 = vperm.slane %v4074_v59, %v19600_v38 }
 0x840   :  { %v4076_v58 = vsel %vm253_vm1, %v4060_v41, %v4075_v47 }
 0x841   :  { %v4088_v63 = vsel %vm253_vm1, %v4080_v57, %v4087_v45  ;;  %v4085_v1 = vrot.slane %v4080_v57, 4  ;;  %v4084_v36 = vperm.slane %v4076_v58, %v19600_v38 }
 0x842   :  { %18280 = vmatmul.msk.f32.vlgmr.msrb.gmra.mxu3 %vm1367_vm2, %v4088_v63  ;;  %v18771_v29 = vpop.trf.xlu1 }
 0x843   :  { %v4086_v56 = vsel %vm253_vm1, %v4085_v1, %v4068_v53  ;;  %v4092_v35 = vsel %vm253_vm1, %v4084_v36, %v4091_v19  ;;  %v4089_v15 = vrot.slane %v4084_v36, 4  ;;  %v18772_v2 = vunpack.i.l.bf16 %v18771_v29 }
 0x844   :  { %18278 = vmatmul.msk.f32.vlgmr.msrb.gmra.mxu2 %vm1367_vm2, %v4086_v56  ;;  %18284 = vmatmul.msk.f32.vlgmr.msra.gmra.mxu1 %vm1367_vm2, %v4092_v35  ;;  %v18775_v42 = vunpack.i.h.bf16 %v18771_v29 }
 0x845   :  { %v4090_v17 = vsel %vm253_vm1, %v4089_v15, %v4072_v43  ;;  %v2418_v34 = vrot.slane %v18772_v2, 4 }
 0x846   :  { %18282 = vmatmul.msk.f32.vlgmr.msra.gmra.mxu0 %vm1367_vm2, %v4090_v17  ;;  %v2428_v24 = vrot.slane %v18775_v42, 4 }
 0x84e   :  { %18311 = vmatmul.msk.bf16.vlgmr.msrb.gmra.mxu0 %vm185_vm0, %v20287_v46 }
 0x8c1   :  { %v4194_v52 = vpop.f32.mrf.mxu1 }
 0x8c3   :  { %v4168_v50 = vpop.f32.mrf.mxu0 }
 0x8c4   :  { %v18762_v54 = vpack.i.bf16 %v4168_v50, %v20236_v30 }
 0x8c5   :  { %v4142_v49 = vpop.f32.mrf.mxu3 }
 0x8c6   :  { %18763 = vxpose.xlu0.b32.start.end [1/1] (short) (narrow) %v18762_v54, 8  ;;  %v18783_v7 = vpack.i.bf16 %v4142_v49, %v20181_v11 }
 0x8c7   :  { %v4116_v44 = vpop.f32.mrf.mxu2 }
 0x8c8   :  { %v18776_v39 = vpack.i.bf16 %v4194_v52, %v4116_v44 }
 0x8ca   :  { %18777 = vxpose.xlu2.b32.start.end [1/1] (short) (narrow) %v18776_v39, 8 }
 0x8cb   :  { %v4624_v5 = vpop.f32.mrf.mxu0 }
 0x8cc   :  { %v20302_v30 = vadd.f32 %v20299_v22, %v4624_v5 }
 0x8ce   :  { %18784 = vxpose.xlu0.b32.start.end [1/1] (short) (narrow) %v18783_v7, 8  ;;  %4763 = vrot.lane.b32.xlu1 %v20302_v30, %s23077_s24 }
 0x933   :  { %4775 = vrot.lane.b32.xlu2 %v20302_v30, %s23081_s23 }
 0x963   :  { %v18778_v11 = vpop.trf.xlu2 }
 0x964   :  { %v18779_v8 = vunpack.i.l.bf16 %v18778_v11  ;;  %v18782_v13 = vunpack.i.h.bf16 %v18778_v11 }
 0x966   :  { %v4327_v60 = vrot.slane %v18779_v8, 4  ;;  %v4337_v40 = vrot.slane %v18782_v13, 4 }
 0x96a   :  { %v18764_v9 = vpop.trf.xlu0 }
 0x96b   :  { %v18768_v3 = vunpack.i.h.bf16 %v18764_v9  ;;  %v18765_v10 = vunpack.i.l.bf16 %v18764_v9 }
 0x96d   :  { %v4325_v55 = vrot.slane %v18768_v3, 4  ;;  %v2416_v31 = vrot.slane %v18765_v10, 4  ;;  %v2419_v48 = vsel %vm253_vm1, %v18765_v10, %v2418_v34  ;;  %v4328_v61 = vsel %vm253_vm1, %v18768_v3, %v4327_v60 }
 0x96e   :  { %v2427_v51 = vperm.slane %v2419_v48, %v19590_v23  ;;  %v4336_v20 = vperm.slane %v4328_v61, %v19590_v23 }
 0x96f   :  { %v2417_v4 = vsel %vm253_vm1, %v2416_v31, %v18772_v2  ;;  %v4326_v21 = vsel %vm253_vm1, %v4325_v55, %v18779_v8 }
 0x970   :  { %v2423_v14 = vperm.slane %v2417_v4, %v19590_v23  ;;  %v4332_v25 = vperm.slane %v4326_v21, %v19590_v23  ;;  %v2454_v43 = vrot.slane %v2427_v51, 4  ;;  %v4363_v36 = vrot.slane %v4336_v20, 4 }
 0x972   :  { %v18785_v12 = vpop.trf.xlu0  ;;  %v2442_v62 = vrot.slane %v2423_v14, 4  ;;  %v4351_v59 = vrot.slane %v4332_v25, 4 }
 0x973   :  { %v18789_v26 = vunpack.i.h.bf16 %v18785_v12  ;;  %v18786_v41 = vunpack.i.l.bf16 %v18785_v12 }
 0x975   :  { %v4339_v6 = vrot.slane %v18789_v26, 4  ;;  %v2429_v32 = vsel %vm253_vm1, %v2428_v24, %v18786_v41  ;;  %v2430_v27 = vrot.slane %v18786_v41, 4  ;;  %v4338_v53 = vsel %vm253_vm1, %v4337_v40, %v18789_v26 }
 0x976   :  { %v2435_v28 = vperm.slane %v2429_v32, %v19590_v23  ;;  %v4344_v18 = vperm.slane %v4338_v53, %v19590_v23 }
 0x977   :  { %v2431_v47 = vsel %vm253_vm1, %v18775_v42, %v2430_v27  ;;  %v4340_v57 = vsel %vm253_vm1, %v18782_v13, %v4339_v6 }
 0x978   :  { %v2439_v45 = vperm.slane %v2431_v47, %v19590_v23  ;;  %v2440_v58 = vrot.slane %v2435_v28, 4  ;;  %v2443_v63 = vsel %vm253_vm1, %v2435_v28, %v2442_v62  ;;  %v4348_v1 = vperm.slane %v4340_v57, %v19590_v23 }
 0x979   :  { %v2451_v19 = vperm.slane %v2443_v63, %v19600_v38  ;;  %v4349_v56 = vrot.slane %v4344_v18, 4  ;;  %v4352_v35 = vsel %vm253_vm1, %v4344_v18, %v4351_v59 }
 0x97a   :  { %v2441_v15 = vsel %vm253_vm1, %v2440_v58, %v2423_v14  ;;  %v2452_v17 = vrot.slane %v2439_v45, 4  ;;  %v2455_v16 = vsel %vm253_vm1, %v2439_v45, %v2454_v43  ;;  %v4360_v29 = vperm.slane %v4352_v35, %v19600_v38 }
 0x97b   :  { %v2447_v33 = vperm.slane %v2441_v15, %v19600_v38  ;;  %v2463_v0 = vperm.slane %v2455_v16, %v19600_v38  ;;  %v2466_v37 = vrot.slane %v2451_v19, 4  ;;  %v4350_v50 = vsel %vm253_vm1, %v4349_v56, %v4332_v25 }
 0x97c   :  { %v2453_v54 = vsel %vm253_vm1, %v2452_v17, %v2427_v51  ;;  %v4356_v52 = vperm.slane %v4350_v50, %v19600_v38  ;;  %v4361_v44 = vrot.slane %v4348_v1, 4  ;;  %v4364_v39 = vsel %vm253_vm1, %v4348_v1, %v4363_v36 }
 0x97d   :  { %v2467_v49 = vsel %vm253_vm1, 0.0, %v2466_v37  ;;  %v2470_v7 = vrot.slane %v2463_v0, 4  ;;  %v4372_v5 = vperm.slane %v4364_v39, %v19600_v38  ;;  %v4375_v11 = vrot.slane %v4360_v29, 4 }
 0x97e   :  { %v2477_v2 = vrot.slane %v2467_v49, 4  ;;  %v4362_v8 = vsel %vm253_vm1, %v4361_v44, %v4336_v20  ;;  %v2459_v34 = vperm.slane %v2453_v54, %v19600_v38  ;;  %v2464_v9 = vrot.slane %v2447_v33, 4 }
 0x97f   :  { %v4376_v3 = vsel %vm253_vm1, 0.0, %v4375_v11  ;;  %v4379_v10 = vrot.slane %v4372_v5, 4  ;;  %v2471_v42 = vsel %vm253_vm1, 0.0, %v2470_v7  ;;  %v2472_v13 = vsel %vm253_vm1, %v2466_v37, %v2447_v33 }
 0x980   :  { %v4386_v60 = vrot.slane %v4376_v3, 4  ;;  %v2465_v55 = vsel %vm253_vm1, 0.0, %v2464_v9  ;;  %v2468_v31 = vrot.slane %v2459_v34, 4  ;;  %v2476_v4 = vperm.slane %v2472_v13, %v19590_v23 }
 0x981   :  { %v2478_v48 = vsel %vm253_vm1, %v2477_v2, %v2465_v55  ;;  %v2483_v21 = vsel %vm253_vm1, %v2470_v7, %v2459_v34  ;;  %v2488_v24 = vrot.slane %v2471_v42, 4  ;;  %v4368_v40 = vperm.slane %v4362_v8, %v19600_v38 }
 0x982   :  { %v2469_v61 = vsel %vm253_vm1, 0.0, %v2468_v31  ;;  %v2482_v14 = vperm.slane %v2478_v48, %v19590_v23  ;;  %v2487_v51 = vperm.slane %v2483_v21, %v19590_v23  ;;  %v2496_v25 = vrot.slane %v2476_v4, 4 }
 0x983   :  { %v2489_v12 = vsel %vm253_vm1, %v2488_v24, %v2469_v61  ;;  %v4373_v26 = vrot.slane %v4356_v52, 4  ;;  %v4377_v41 = vrot.slane %v4368_v40, 4  ;;  %v4380_v20 = vsel %vm253_vm1, 0.0, %v4379_v10 }
 0x984   :  { %v2493_v6 = vperm.slane %v2489_v12, %v19590_v23  ;;  %v2497_v32 = vsel %vm253_vm1, %v2482_v14, %v2496_v25  ;;  %v2508_v27 = vrot.slane %v2487_v51, 4  ;;  %v4381_v53 = vsel %vm253_vm1, %v4375_v11, %v4356_v52  ;;  %v20402_v25 = vpop.permute.xlu1 %4763 }
 0x985   :  { %v2505_v62 = vperm.slane %v2497_v32, %v19600_v38  ;;  %v4374_v28 = vsel %vm253_vm1, 0.0, %v4373_v26  ;;  %v4378_v18 = vsel %vm253_vm1, 0.0, %v4377_v41  ;;  %v4385_v43 = vperm.slane %v4381_v53, %v19590_v23 }
 0x986   :  { %v2509_v59 = vsel %vm253_vm1, %v2493_v6, %v2508_v27  ;;  %v4387_v47 = vsel %vm253_vm1, %v4386_v60, %v4374_v28  ;;  %v4392_v57 = vsel %vm253_vm1, %v4379_v10, %v4368_v40  ;;  %v4397_v45 = vrot.slane %v4380_v20, 4 }
 0x987   :  { %v2517_v58 = vperm.slane %v2509_v59, %v19600_v38  ;;  %v2524_v63 = vrot.slane %v2505_v62, 4  ;;  %v4391_v1 = vperm.slane %v4387_v47, %v19590_v23  ;;  %v4396_v36 = vperm.slane %v4392_v57, %v19590_v23 }
 0x988   :  { %v4398_v19 = vsel %vm253_vm1, %v4397_v45, %v4378_v18  ;;  %v4405_v56 = vrot.slane %v4385_v43, 4  ;;  %v2494_v35 = vrot.slane %v2482_v14, 4  ;;  %v2506_v15 = vrot.slane %v2493_v6, 4 }
 0x989   :  { %v2525_v17 = vsel %vm253_vm1, %v2517_v58, %v2524_v63  ;;  %v4402_v16 = vperm.slane %v4398_v19, %v19590_v23  ;;  %v4417_v29 = vrot.slane %v4396_v36, 4  ;;  %v4403_v33 = vrot.slane %v4391_v1, 4 }
 0x98a   :  { %v4406_v0 = vsel %vm253_vm1, %v4391_v1, %v4405_v56  ;;  %v2495_v37 = vsel %vm253_vm1, %v2494_v35, %v2476_v4  ;;  %v2507_v50 = vsel %vm253_vm1, %v2506_v15, %v2487_v51  ;;  %v2522_v54 = vrot.slane %v2517_v58, 4 }
 0x98b   :  { %v4414_v52 = vperm.slane %v4406_v0, %v19600_v38  ;;  %v4418_v44 = vsel %vm253_vm1, %v4402_v16, %v4417_v29  ;;  %v2501_v39 = vperm.slane %v2495_v37, %v19600_v38  ;;  %v2513_v49 = vperm.slane %v2507_v50, %v19600_v38 }
 0x98c   :  { %v4426_v7 = vperm.slane %v4418_v44, %v19600_v38  ;;  %v4404_v5 = vsel %vm253_vm1, %v4403_v33, %v4385_v43  ;;  %v4415_v11 = vrot.slane %v4402_v16, 4  ;;  %v20379_v2 = vsel %vm253_vm1, %v2522_v54, %v2505_v62 }
 0x98d   :  { %v4433_v8 = vrot.slane %v4414_v52, 4  ;;  %v2518_v34 = vrot.slane %v2513_v49, 4  ;;  %v2520_v9 = vrot.slane %v2501_v39, 4  ;;  %v4410_v3 = vperm.slane %v4404_v5, %v19600_v38  ;;  %v4776_v12 = vpop.permute.xlu2 %4775 }
 0x98e   :  { %v4416_v10 = vsel %vm253_vm1, %v4415_v11, %v4396_v36  ;;  %v4431_v42 = vrot.slane %v4426_v7, 4  ;;  %v4795_v26 = vrot.slane %v20402_v25, 4  ;;  %v4793_v20 = vrot.slane %v4776_v12, 4 }
 0x98f   :  { %v4434_v13 = vsel %vm253_vm1, %v4426_v7, %v4433_v8  ;;  %v2521_v60 = vsel %vm253_vm1, %v2513_v49, %v2520_v9  ;;  %v4422_v55 = vperm.slane %v4416_v10, %v19600_v38  ;;  %v4429_v31 = vrot.slane %v4410_v3, 4 }
 0x990   :  { %v18790_v4 = vpack.i.bf16 %v4434_v13, %v2525_v17  ;;  %v20387_v48 = vsel %vm253_vm1, %v2518_v34, %v2501_v39  ;;  %v20390_v21 = vsel %vm253_vm1, %v4431_v42, %v4414_v52  ;;  %v4796_v6 = vsel %vm253_vm1, %v4776_v12, %v4795_v26 }
 0x991   :  { %v4427_v24 = vrot.slane %v4422_v55, 4  ;;  %v4430_v40 = vsel %vm253_vm1, %v4422_v55, %v4429_v31  ;;  %v18842_v61 = vpack.i.bf16 %v20390_v21, %v20379_v2  ;;  %v4794_v32 = vsel %vm253_vm1, %v4793_v20, %v20402_v25 }
 0x992   :  { %18791 = vrot.lane.b32.xlu0 %v18790_v4, %s19497_s15  ;;  %v18809_v14 = vpack.i.bf16 %v4430_v40, %v2521_v60  ;;  %v4804_v27 = vperm.slane %v4796_v6, %v19590_v23  ;;  %v4783_v53 = vrot.slane %v20302_v30, 4  ;;  %v4800_v62 = vperm.slane %v4794_v32, %v19590_v23 }
 0x993   :  { %v20397_v51 = vsel %vm253_vm1, %v4427_v24, %v4410_v3 }
 0x994   :  { %18810 = vrot.lane.b32.xlu1 %v18809_v14, %s23071_s16  ;;  %v4817_v59 = vrot.slane %v4804_v27, 4  ;;  %v4805_v63 = vrot.slane %v4800_v62, 4 }
 0x99a   :  { %4769 = vrot.lane.b32.xlu0 %v20302_v30, %s23079_s22 }
 0xa04   :  { %v20405_v41 = vpop.permute.xlu0 %18791 }
 0xa06   :  { %v20435_v34 = vpop.permute.xlu1 %18810 }
 0xa07   :  { %v18813_v2 = vunpack.i.h.bf16 %v20435_v34  ;;  %v18812_v21 = vunpack.i.l.bf16 %v20435_v34 }
 0xa0c   :  { %v20413_v28 = vpop.permute.xlu0 %4769 }
 0xa0d   :  { %v4781_v18 = vrot.slane %v20413_v28, 4  ;;  %v4784_v43 = vsel %vm253_vm1, %v20413_v28, %v4783_v53 }
 0xa0e   :  { %v4792_v47 = vperm.slane %v4784_v43, %v19590_v23 }
 0xa0f   :  { %v4782_v57 = vsel %vm253_vm1, %v4781_v18, %v20302_v30 }
 0xa10   :  { %v4788_v45 = vperm.slane %v4782_v57, %v19590_v23  ;;  %v4819_v58 = vrot.slane %v4792_v47, 4  ;;  %v4818_v1 = vsel %vm253_vm1, %v4817_v59, %v4792_v47 }
 0xa11   :  { %v4824_v36 = vperm.slane %v4818_v1, %v19600_v38 }
 0xa12   :  { %v4806_v19 = vsel %vm253_vm1, %v4805_v63, %v4788_v45  ;;  %v4820_v56 = vsel %vm253_vm1, %v4804_v27, %v4819_v58  ;;  %v4807_v35 = vrot.slane %v4788_v45, 4 }
 0xa13   :  { %v4812_v15 = vperm.slane %v4806_v19, %v19600_v38  ;;  %v4828_v17 = vperm.slane %v4820_v56, %v19600_v38  ;;  %v4833_v16 = vrot.slane %v4824_v36, 4 }
 0xa14   :  { %v4808_v29 = vsel %vm253_vm1, %v4800_v62, %v4807_v35 }
 0xa15   :  { %v18795_v33 = vpack.i.bf16 %v4812_v15, %v4824_v36  ;;  %v4834_v0 = vsel %vm253_vm1, 0.0, %v4833_v16  ;;  %v4816_v37 = vperm.slane %v4808_v29, %v19600_v38  ;;  %v4829_v50 = vrot.slane %v4812_v15, 4 }
 0xa16   :  { %v18802_v54 = vpack.i.bf16 %v4828_v17, %v4834_v0  ;;  %v4835_v49 = vrot.slane %v4828_v17, 4 }
 0xa17   :  { %18796 = vxpose.xlu2.b32.start.end [1/1] (short) (narrow) %v18795_v33, 8  ;;  %v4830_v52 = vsel %vm253_vm1, 0.0, %v4829_v50  ;;  %v4831_v44 = vrot.slane %v4816_v37, 4 }
 0xa18   :  { %18803 = vxpose.xlu0.b32.start.end [1/1] (short) (narrow) %v18802_v54, 8  ;;  %v18814_v39 = vpack.i.bf16 %v4816_v37, %v4830_v52  ;;  %v4836_v5 = vsel %vm253_vm1, 0.0, %v4835_v49 }
 0xa19   :  { %v4832_v7 = vsel %vm253_vm1, 0.0, %v4831_v44 }
 0xa1a   :  { %18815 = vxpose.xlu1.b32.start.end [1/1] (short) (narrow) %v18814_v39, 8  ;;  %v18821_v11 = vpack.i.bf16 %v4832_v7, %v4836_v5 }
 0xa20   :  { %18822 = vxpose.xlu0.b32.start.end [1/1] (short) (narrow) %v18821_v11, 8 }
 0xa8e   :  { %4905 = vrot.lane.b32.xlu0 %v4776_v12, %s23075_s25 }
 0xab0   :  { %v18797_v8 = vpop.trf.xlu2 }
 0xab1   :  { %v18801_v9 = vunpack.i.h.bf16 %v18797_v8  ;;  %v18798_v3 = vunpack.i.l.bf16 %v18797_v8 }
 0xab3   :  { %v5344_v10 = vrot.slane %v18801_v9, 4  ;;  %v5368_v13 = vrot.slane %v18798_v3, 4 }
 0xabc   :  { %v18804_v42 = vpop.trf.xlu0 }
 0xabd   :  { %v18808_v60 = vunpack.i.h.bf16 %v18804_v42  ;;  %v18805_v24 = vunpack.i.l.bf16 %v18804_v42 }
 0xabe   :  { %v18816_v55 = vpop.trf.xlu1 }
 0xabf   :  { %v5366_v31 = vrot.slane %v18808_v60, 4  ;;  %v18820_v4 = vunpack.i.h.bf16 %v18816_v55  ;;  %v18817_v40 = vunpack.i.l.bf16 %v18816_v55  ;;  %v5369_v26 = vsel %vm253_vm1, %v18808_v60, %v5368_v13 }
 0xac0   :  { %v5377_v62 = vperm.slane %v5369_v26, %v19590_v23  ;;  %v5380_v18 = vrot.slane %v18805_v24, 4 }
 0xac1   :  { %v5367_v14 = vsel %vm253_vm1, %v5366_v31, %v18798_v3  ;;  %v5342_v20 = vrot.slane %v18820_v4, 4  ;;  %v5345_v12 = vsel %vm253_vm1, %v18820_v4, %v5344_v10  ;;  %v5356_v27 = vrot.slane %v18817_v40, 4 }
 0xac2   :  { %v5353_v6 = vperm.slane %v5345_v12, %v19590_v23  ;;  %v5373_v53 = vperm.slane %v5367_v14, %v19590_v23  ;;  %v5428_v35 = vrot.slane %v5377_v62, 4 }
 0xac3   :  { %v5343_v32 = vsel %vm253_vm1, %v5342_v20, %v18801_v9 }
 0xac4   :  { %v18823_v43 = vpop.trf.xlu0  ;;  %v5349_v59 = vperm.slane %v5343_v32, %v19590_v23  ;;  %v5404_v45 = vrot.slane %v5353_v6, 4  ;;  %v5416_v29 = vrot.slane %v5373_v53, 4 }
 0xac5   :  { %v18827_v47 = vunpack.i.h.bf16 %v18823_v43  ;;  %v18824_v57 = vunpack.i.l.bf16 %v18823_v43 }
 0xac6   :  { %v5392_v16 = vrot.slane %v5349_v59, 4 }
 0xac7   :  { %v5354_v58 = vrot.slane %v18827_v47, 4  ;;  %v5357_v63 = vsel %vm253_vm1, %v18827_v47, %v5356_v27  ;;  %v5378_v1 = vrot.slane %v18824_v57, 4  ;;  %v5381_v36 = vsel %vm253_vm1, %v18824_v57, %v5380_v18 }
 0xac8   :  { %v5389_v19 = vperm.slane %v5381_v36, %v19590_v23  ;;  %v5365_v56 = vperm.slane %v5357_v63, %v19590_v23 }
 0xac9   :  { %v5379_v15 = vsel %vm253_vm1, %v5378_v1, %v18805_v24  ;;  %v5355_v17 = vsel %vm253_vm1, %v5354_v58, %v18817_v40 }
 0xaca   :  { %v5426_v33 = vrot.slane %v5389_v19, 4  ;;  %v5361_v0 = vperm.slane %v5355_v17, %v19590_v23  ;;  %v5385_v37 = vperm.slane %v5379_v15, %v19590_v23  ;;  %v5402_v50 = vrot.slane %v5365_v56, 4 }
 0xacb   :  { %v5405_v54 = vsel %vm253_vm1, %v5365_v56, %v5404_v45  ;;  %v5429_v52 = vsel %vm253_vm1, %v5389_v19, %v5428_v35  ;;  %v18572_v56 = vld [vmem:[%s20508_s1 + $0x8] sm:$0xff] }
 0xacc   :  { %v5393_v44 = vsel %vm253_vm1, %v5361_v0, %v5392_v16  ;;  %v5413_v39 = vperm.slane %v5405_v54, %v19600_v38  ;;  %v5417_v49 = vsel %vm253_vm1, %v5385_v37, %v5416_v29  ;;  %v5437_v7 = vperm.slane %v5429_v52, %v19600_v38  ;;  %4475 = vmatpush.bf16.msra.mxu2 %v18572_v56 }
 0xacd   :  { %v5425_v5 = vperm.slane %v5417_v49, %v19600_v38  ;;  %v5390_v11 = vrot.slane %v5361_v0, 4  ;;  %v5414_v8 = vrot.slane %v5385_v37, 4  ;;  %v5403_v10 = vsel %vm253_vm1, %v5402_v50, %v5353_v6  ;;  %v19477_v49 = vld [vmem:[%s19543_s13] sm:$0xff] }
 0xace   :  { %v5450_v9 = vrot.slane %v5437_v7, 4  ;;  %v5452_v3 = vrot.slane %v5413_v39, 4  ;;  %v5427_v42 = vsel %vm253_vm1, %v5426_v33, %v5377_v62  ;;  %v5401_v13 = vperm.slane %v5393_v44, %v19600_v38  ;;  %v19273_v44 = vld [vmem:[%s20492_s26] ss:$0 sm:$0xff] }
 0xacf   :  { %v5442_v60 = vrot.slane %v5425_v5, 4  ;;  %v5391_v55 = vsel %vm253_vm1, %v5390_v11, %v5349_v59  ;;  %v5415_v31 = vsel %vm253_vm1, %v5414_v8, %v5373_v53  ;;  %v5409_v40 = vperm.slane %v5403_v10, %v19600_v38  ;;  %v19478_v11 = vld [vmem:[%s19543_s13 + $0x8] sm:$0xff]  ;;  %s19503_s13 = smov 11  }
 0xad0   :  { %v5397_v4 = vperm.slane %v5391_v55, %v19600_v38  ;;  %v5421_v24 = vperm.slane %v5415_v31, %v19600_v38  ;;  %v5451_v26 = vsel %vm253_vm1, %v5450_v9, %v5413_v39  ;;  %v5433_v20 = vperm.slane %v5427_v42, %v19600_v38  ;;  %s20552_s11 = sld [smem:[%s23070_s0 + %s19503_s13]]   ;;  %s19508_s13 = smov 18  }
 0xad1   :  { %v5443_v14 = vsel %vm253_vm1, %v5442_v60, %v5401_v13  ;;  %v20472_v12 = vsel %vm253_vm1, %v5437_v7, %v5452_v3  ;;  %v5448_v27 = vrot.slane %v5409_v40, 4  ;;  %v5444_v59 = vrot.slane %v5401_v13, 4  ;;  %s21284_s18 = sld [smem:[%s23070_s0 + %s19508_s13]]  }
 0xad2   :  { %v18828_v6 = vpack.i.bf16 %v5443_v14, %v5451_v26  ;;  %v5440_v32 = vrot.slane %v5397_v4, 4  ;;  %v5438_v62 = vrot.slane %v5421_v24, 4  ;;  %v5446_v53 = vrot.slane %v5433_v20, 4  ;;  %s21295_s13 = sld [smem:[%s23070_s0 + %s19509_s19]]   ;;  %s19520_s19 = smov 32  }
 0xad3   :  { %v20478_v43 = vsel %vm253_vm1, %v5433_v20, %v5448_v27  ;;  %v5445_v63 = vsel %vm253_vm1, %v5425_v5, %v5444_v59  ;;  %v18794_v16 = vunpack.i.h.bf16 %v20405_v41  ;;  %v18793_v29 = vunpack.i.l.bf16 %v20405_v41 }
 0xad4   :  { %18829 = vxpose.xlu2.b32.start.end [1/1] (short) (narrow) %v18828_v6, 8  ;;  %v20475_v18 = vsel %vm253_vm1, %v5421_v24, %v5440_v32  ;;  %v20481_v47 = vsel %vm253_vm1, %v5446_v53, %v5409_v40  ;;  %v5439_v58 = vsel %vm253_vm1, %v5438_v62, %v5397_v4  ;;  %v2538_v33 = vsel %vm1367_vm2, %v20387_v48, %v18812_v21  ;;  %v4626_v62 = vpop.f32.mrf.mxu0 }
 0xad5   :  { %v18854_v57 = vpack.i.bf16 %v20475_v18, %v20478_v43  ;;  %v18847_v45 = vpack.i.bf16 %v20472_v12, %v20481_v47  ;;  %v18835_v1 = vpack.i.bf16 %v5445_v63, %v5439_v58  ;;  %v4447_v0 = vsel %vm1367_vm2, %v20397_v51, %v18813_v2  ;;  %v18574_v12 = vld [vmem:[%s20574_s20 + $0x8] sm:$0xff]  ;;  %v18573_v18 = vld [vmem:[%s20574_s20] sm:$0xff] }
 0xad6   :  { %v19502_v3 = vmov 32.0   ;;  %v20555_v53 = vadd.f32 %v20299_v22, %v4626_v62  ;;  %4588 = vmatpush.bf16.msra.mxu3 %v18574_v12 }
 0xad7   :  { %19337 = vrcp.f32 %v19502_v3  ;;  %v19275_v3 = vld [vmem:[%s20552_s11] ss:$0 sm:$0xff] }
 0xada   :  { %4589 = vmatpush.bf16.msra.mxu3 %v18573_v18 }
 0xadc   :  { %18836 = vxpose.xlu2.b32.start.end [1/1] (short) (narrow) %v18835_v1, 8 }
 0xadd   :  { %v19338_v10 = vpop.eup %19337 }
 0xade   :  { %v4492_v42 = vmul.f32 32.0, %v19338_v10  ;;  %vm4496_vm5 = vweird.f32 %v19338_v10 }
 0xae0   :  { %v4493_v13 = vsub.f32 1.0, %v4492_v42 }
 0xae2   :  { %v4494_v60 = vmul.f32 %v19338_v10, %v4493_v13 }
 0xae4   :  { %v4495_v55 = vadd.f32 %v19338_v10, %v4494_v60 }
 0xae6   :  { %v20539_v31 = vsel %vm4496_vm5, %v19338_v10, %v4495_v55 }
 0xb00   :  { %v4906_v22 = vpop.permute.xlu0 %4905 }
 0xb45   :  { %4897 = vrot.lane.b32.xlu2 %v20402_v25, %s23075_s25  ;;  %v18571_v25 = vld [vmem:[%s20508_s1] sm:$0xff] }
 0xb46   :  { %4476 = vmatpush.bf16.msra.mxu2 %v18571_v25 }
 0xb4d   :  { %18843 = vrot.lane.b32.xlu2 %v18842_v61, %s23073_s27 }
 0xb6d   :  { %v20500_v36 = vpop.trf.xlu2 }
 0xb75   :  { %v20502_v19 = vpop.trf.xlu2 }
 0xb9f   :  { %v20512_v35 = vpop.permute.xlu2 %4897 }
 0xba7   :  { %v18844_v61 = vpop.permute.xlu2 %18843 }
 0xba8   :  { %v18846_v15 = vunpack.i.h.bf16 %v18844_v61  ;;  %v18845_v17 = vunpack.i.l.bf16 %v18844_v61 }
 0xbaa   :  { %v2540_v34 = vsel %vm2539_vm3, %v2538_v33, %v18845_v17  ;;  %v4448_v37 = vsel %vm2539_vm3, %v4447_v0, %v18846_v15 }
 0xbab   :  { %v2542_v50 = vsel %vm2541_vm4, %v2540_v34, %v18793_v29  ;;  %v4449_v54 = vsel %vm2541_vm4, %v4448_v37, %v18794_v16  ;;  %v4931_v29 = vrot.slane %v20512_v35, 4  ;;  %v4929_v34 = vrot.slane %v4906_v22, 4 }
 0xbac   :  { %v4450_v52 = vpack.c.bf16 %v4449_v54, %v2542_v50 }
 0xbad   :  { %v4930_v50 = vsel %vm253_vm1, %v4929_v34, %v20512_v35  ;;  %v4932_v54 = vsel %vm253_vm1, %v4906_v22, %v4931_v29 }
 0xbae   :  { %18293 = vmatmul.msk.bf16.vlgmr.msra.gmra.mxu2 %vm185_vm0, %v4450_v52  ;;  %v19274_v52 = vld [vmem:[%s20537_s7] ss:$0 sm:$0xff] }
 0xc31   :  { %v4478_v41 = vpop.f32.mrf.mxu2 }
 0xc32   :  { %v4479_v39 = vadd.f32 %v19273_v44, %v4478_v41 }
 0xc34   :  { %v4483_v48 = vadd.f32 %v19477_v49, %v4479_v39 }
 0xc36   :  { %v4485_v7 = vsel %vm185_vm0, %v4483_v48, 0.0 }
 0xc37   :  { %4486 = vadd.xlane.f32.xlu1 %v4485_v7  ;;  %v4940_v7 = vperm.slane %v4932_v54, %v19590_v23 }
 0xc39   :  { %v4480_v51 = vpop.f32.mrf.mxu2 }
 0xc3a   :  { %v4481_v5 = vadd.f32 %v19273_v44, %v4480_v51 }
 0xc3c   :  { %v4484_v8 = vadd.f32 %v19478_v11, %v4481_v5 }
 0xc3e   :  { %v4488_v9 = vsel %vm185_vm0, %v4484_v8, 0.0 }
 0xc3f   :  { %4489 = vadd.xlane.f32.xlu2 %v4488_v9 }
 0xc50   :  { %4893 = vrot.lane.b32.xlu1 %v20302_v30, %s23075_s25 }
 0xcaa   :  { %v4487_v4 = vpop.xlane.xlu1 %4486 }
 0xcab   :  { %v4498_v24 = vmul.f32 %v20539_v31, %v4487_v4 }
 0xcad   :  { %v4500_v30 = vsub.f32 %v4483_v48, %v4498_v24  ;;  %v4936_v48 = vperm.slane %v4930_v50, %v19590_v23 }
 0xcaf   :  { %v4502_v40 = vmul.f32 %v4500_v30, %v4500_v30  ;;  %v4941_v4 = vrot.slane %v4936_v48, 4 }
 0xcb1   :  { %v4504_v14 = vsel %vm185_vm0, %v4502_v40, 0.0  ;;  %v4953_v40 = vrot.slane %v4940_v7, 4 }
 0xcb2   :  { %v4490_v26 = vpop.xlane.xlu2 %4489  ;;  %4505 = vadd.xlane.f32.xlu0 %v4504_v14 }
 0xcb3   :  { %v4499_v20 = vmul.f32 %v20539_v31, %v4490_v26 }
 0xcb5   :  { %v20544_v6 = vsub.f32 %v4484_v8, %v4499_v20 }
 0xcb7   :  { %v4503_v32 = vmul.f32 %v20544_v6, %v20544_v6 }
 0xcb9   :  { %v4507_v27 = vsel %vm185_vm0, %v4503_v32, 0.0 }
 0xcba   :  { %4508 = vadd.xlane.f32.xlu1 %v4507_v27 }
 0xcc6   :  { %4765 = vrot.lane.b32.xlu0 %v20555_v53, %s23077_s24 }
 0xcce   :  { %4777 = vrot.lane.b32.xlu0 %v20555_v53, %s23081_s23 }
 0xcd3   :  { %4901 = vrot.lane.b32.xlu1 %v20413_v28, %s23075_s25  ;;  %v20576_v28 = vpop.permute.xlu1 %4893 }
 0xcd4   :  { %v4919_v5 = vrot.slane %v20576_v28, 4 }
 0xcd6   :  { %4771 = vrot.lane.b32.xlu0 %v20555_v53, %s23079_s22 }
 0xcf8   :  { %18848 = vxpose.xlu0.b32.start.end [1/1] (short) (narrow) %v18847_v45, 8 }
 0xd00   :  { %18855 = vxpose.xlu0.b32.start.end [1/1] (short) (narrow) %v18854_v57, 8 }
 0xd25   :  { %v4506_v59 = vpop.xlane.xlu0 %4505 }
 0xd26   :  { %v4510_v58 = vmul.f32 %v4506_v59, %v20539_v31 }
 0xd28   :  { %v4512_v47 = vadd.f32 1e-05, %v4510_v58 }
 0xd2a   :  { %19339 = vrsqrt.f32 %v4512_v47  ;;  %vm4520_vm7 = vweird.f32 %v4512_v47 }
 0xd2d   :  { %v4509_v43 = vpop.xlane.xlu1 %4508 }
 0xd2e   :  { %v4511_v57 = vmul.f32 %v4509_v43, %v20539_v31 }
 0xd30   :  { %v19340_v45 = vpop.eup %19339  ;;  %v4513_v63 = vadd.f32 1e-05, %v4511_v57 }
 0xd31   :  { %v4515_v1 = vmul.f32 %v19340_v45, %v4512_v47  ;;  %vm4521_vm6 = vweird.f32 %v19340_v45 }
 0xd32   :  { %19341 = vrsqrt.f32 %v4513_v63  ;;  %vm4522_vm8 = vmor %vm4520_vm7, %vm4521_vm6  ;;  %vm4530_vm10 = vweird.f32 %v4513_v63  ;;  %vm9015_vm7 = vcmask 523264  }
 0xd33   :  { %v4516_v56 = vmul.f32 %v19340_v45, %v4515_v1 }
 0xd35   :  { %v4517_v25 = vmul.f32 0.5, %v4516_v56 }
 0xd37   :  { %v4518_v2 = vsub.f32 1.5, %v4517_v25 }
 0xd38   :  { %v19342_v21 = vpop.eup %19341  ;;  %v20587_v61 = vpop.permute.xlu0 %4765 }
 0xd39   :  { %v4519_v15 = vmul.f32 %v19340_v45, %v4518_v2  ;;  %v4525_v17 = vmul.f32 %v19342_v21, %v4513_v63  ;;  %vm4531_vm9 = vweird.f32 %v19342_v21  ;;  %v4851_v49 = vrot.slane %v20587_v61, 4 }
 0xd3a   :  { %vm4532_vm11 = vmor %vm4530_vm10, %vm4531_vm9 }
 0xd3b   :  { %v4526_v16 = vmul.f32 %v19342_v21, %v4525_v17  ;;  %v4523_v33 = vsel %vm4522_vm8, %v19340_v45, %v4519_v15 }
 0xd3c   :  { %v4534_v44 = vmul.f32 %v4523_v33, %v4500_v30  ;;  %v4839_v30 = vrot.slane %v20555_v53, 4 }
 0xd3d   :  { %v4527_v0 = vmul.f32 0.5, %v4526_v16 }
 0xd3e   :  { %v4539_v11 = vmul.f32 %v19274_v52, %v4534_v44 }
 0xd3f   :  { %v4528_v37 = vsub.f32 1.5, %v4527_v0 }
 0xd40   :  { %v20594_v41 = vpop.permute.xlu0 %4777 }
 0xd41   :  { %v4529_v39 = vmul.f32 %v19342_v21, %v4528_v37  ;;  %v4852_v35 = vsel %vm253_vm1, %v20594_v41, %v4851_v49  ;;  %v4849_v9 = vrot.slane %v20594_v41, 4 }
 0xd42   :  { %v4860_v13 = vperm.slane %v4852_v35, %v19590_v23 }
 0xd43   :  { %v4533_v51 = vsel %vm4532_vm11, %v19342_v21, %v4529_v39  ;;  %v4850_v14 = vsel %vm253_vm1, %v4849_v9, %v20587_v61 }
 0xd44   :  { %v4535_v8 = vmul.f32 %v4533_v51, %v20544_v6  ;;  %v20615_v6 = vadd.f32 %v19275_v3, %v4539_v11  ;;  %v4873_v58 = vrot.slane %v4860_v13, 4  ;;  %v4856_v45 = vperm.slane %v4850_v14, %v19590_v23 }
 0xd45   :  { %v4902_v10 = vpop.permute.xlu1 %4901  ;;  %v18834_v14 = vunpack.i.h.bf16 %v20500_v36 }
 0xd46   :  { %v4540_v42 = vmul.f32 %v19274_v52, %v4535_v8  ;;  %v4917_v60 = vrot.slane %v4902_v10, 4  ;;  %v4920_v55 = vsel %vm253_vm1, %v4902_v10, %v4919_v5  ;;  %v4861_v34 = vrot.slane %v4856_v45, 4 }
 0xd47   :  { %v4928_v24 = vperm.slane %v4920_v55, %v19590_v23 }
 0xd48   :  { %v4918_v26 = vsel %vm253_vm1, %v4917_v60, %v20576_v28  ;;  %v20613_v20 = vpop.permute.xlu0 %4771  ;;  %v20617_v32 = vadd.f32 %v19275_v3, %v4540_v42 }
 0xd49   :  { %v4924_v27 = vperm.slane %v4918_v26, %v19590_v23  ;;  %v4955_v62 = vrot.slane %v4928_v24, 4  ;;  %v4837_v22 = vrot.slane %v20613_v20, 4  ;;  %v4840_v59 = vsel %vm253_vm1, %v20613_v20, %v4839_v30 }
 0xd4a   :  { %v4848_v12 = vperm.slane %v4840_v59, %v19590_v23  ;;  %v4563_v28 = vpack.c.bf16 %v20617_v32, %v20615_v6  ;;  %v4954_v47 = vsel %vm253_vm1, %v4953_v40, %v4928_v24  ;;  %v18831_v26 = vunpack.i.l.bf16 %v20500_v36 }
 0xd4b   :  { %v4960_v18 = vperm.slane %v4954_v47, %v19600_v38  ;;  %v4942_v43 = vsel %vm253_vm1, %v4941_v4, %v4924_v27  ;;  %v4956_v57 = vsel %vm253_vm1, %v4940_v7, %v4955_v62  ;;  %v4838_v15 = vsel %vm253_vm1, %v4837_v22, %v20555_v53 }
 0xd4c   :  { %v4875_v63 = vrot.slane %v4848_v12, 4  ;;  %18302 = vmatmul.msk.bf16.vlgmr.msra.gmra.mxu3 %vm185_vm0, %v4563_v28  ;;  %v4948_v1 = vperm.slane %v4942_v43, %v19600_v38  ;;  %v4874_v56 = vsel %vm253_vm1, %v4873_v58, %v4848_v12  ;;  %v4964_v2 = vperm.slane %v4956_v57, %v19600_v38 }
 0xd4d   :  { %6030 = vxpose.xlu2.b32.start.end [1/1] (short) (narrow) %v4960_v18, 8  ;;  %v4969_v25 = vrot.slane %v4960_v18, 4  ;;  %v4880_v21 = vperm.slane %v4874_v56, %v19600_v38  ;;  %v4943_v16 = vrot.slane %v4924_v27, 4  ;;  %v4844_v0 = vperm.slane %v4838_v15, %v19590_v23 }
 0xd4e   :  { %5902 = vxpose.xlu1.b32.start.end [1/1] (short) (narrow) %v4948_v1, 8  ;;  %v4876_v17 = vsel %vm253_vm1, %v4860_v13, %v4875_v63  ;;  %v4971_v50 = vrot.slane %v4964_v2, 4  ;;  %v4965_v42 = vrot.slane %v4948_v1, 4  ;;  %v5710_v27 = vrot.slane %v18834_v14, 4 }
 0xd4f   :  { %v4970_v29 = vsel %vm253_vm1, 0.0, %v4969_v25  ;;  %v4889_v33 = vrot.slane %v4880_v21, 4  ;;  %v4884_v37 = vperm.slane %v4876_v17, %v19600_v38  ;;  %v4862_v54 = vsel %vm253_vm1, %v4861_v34, %v4844_v0 }
 0xd50   :  { %6062 = vxpose.xlu0.b32.start.end [1/1] (short) (narrow) %v4970_v29, 8  ;;  %v4863_v52 = vrot.slane %v4844_v0, 4  ;;  %v4944_v44 = vsel %vm253_vm1, %v4936_v48, %v4943_v16  ;;  %v4868_v39 = vperm.slane %v4862_v54, %v19600_v38  ;;  %v4972_v11 = vsel %vm253_vm1, 0.0, %v4971_v50 }
 0xd51   :  { %v4890_v49 = vsel %vm253_vm1, 0.0, %v4889_v33  ;;  %v4891_v51 = vrot.slane %v4884_v37, 4  ;;  %v4952_v8 = vperm.slane %v4944_v44, %v19600_v38  ;;  %v4966_v24 = vsel %vm253_vm1, 0.0, %v4965_v42 }
 0xd52   :  { %v4864_v7 = vsel %vm253_vm1, %v4856_v45, %v4863_v52  ;;  %v4885_v35 = vrot.slane %v4868_v39, 4  ;;  %v18868_v9 = vpack.i.bf16 %v4884_v37, %v4890_v49  ;;  %v18861_v40 = vpack.i.bf16 %v4868_v39, %v4880_v21 }
 0xd53   :  { %v20648_v5 = vperm.slane %v4864_v7, %v19600_v38  ;;  %v20662_v60 = vsel %vm253_vm1, 0.0, %v4891_v51  ;;  %v4967_v55 = vrot.slane %v4952_v8, 4  ;;  %v18838_v22 = vunpack.i.l.bf16 %v20502_v19 }
 0xd54   :  { %v20654_v3 = vsel %vm253_vm1, 0.0, %v4885_v35  ;;  %v5722_v58 = vrot.slane %v18831_v26, 4  ;;  %v18841_v28 = vunpack.i.h.bf16 %v20502_v19 }
 0xd55   :  { %6094 = vxpose.xlu2.b32.start.end [1/1] (short) (narrow) %v4964_v2, 8  ;;  %v4887_v48 = vrot.slane %v20648_v5, 4  ;;  %v18875_v10 = vpack.i.bf16 %v20648_v5, %v20654_v3  ;;  %v4968_v30 = vsel %vm253_vm1, 0.0, %v4967_v55  ;;  %v5711_v47 = vsel %vm253_vm1, %v5710_v27, %v18838_v22 }
 0xd56   :  { %6126 = vxpose.xlu1.b32.start.end [1/1] (short) (narrow) %v4972_v11, 8  ;;  %v5716_v57 = vrot.slane %v18841_v28, 4  ;;  %v5715_v45 = vperm.slane %v5711_v47, %v19590_v23 }
 0xd57   :  { %v20659_v13 = vsel %vm253_vm1, 0.0, %v4887_v48  ;;  %v20693_v48 = vld [vmem:[%s20585_s4] ss:$0 sm:$0xff] }
 0xd58   :  { %18869 = vxpose.xlu0.b32.start.end [1/1] (short) (narrow) %v18868_v9, 8  ;;  %v18882_v4 = vpack.i.bf16 %v20659_v13, %v20662_v60  ;;  %v5736_v15 = vrot.slane %v5715_v45, 4 }
 0xd5d   :  { %5934 = vxpose.xlu2.b32.start.end [1/1] (short) (narrow) %v4966_v24, 8 }
 0xd5e   :  { %5998 = vxpose.xlu1.b32.start.end [1/1] (short) (narrow) %v4968_v30, 8 }
 0xd65   :  { %5966 = vxpose.xlu2.b32.start.end [1/1] (short) (narrow) %v4952_v8, 8 }
 0xd6d   :  { %18862 = vxpose.xlu2.b32.start.end [1/1] (short) (narrow) %v18861_v40, 8 }
 0xd9c   :  { %v18849_v62 = vpop.trf.xlu0 }
 0xd9d   :  { %v18850_v59 = vunpack.i.l.bf16 %v18849_v62  ;;  %v18853_v12 = vunpack.i.h.bf16 %v18849_v62 }
 0xd9f   :  { %v5723_v18 = vsel %vm253_vm1, %v5722_v58, %v18850_v59  ;;  %v5728_v43 = vrot.slane %v18853_v12, 4 }
 0xda0   :  { %v5727_v63 = vperm.slane %v5723_v18, %v19590_v23 }
 0xda2   :  { %v5748_v17 = vrot.slane %v5727_v63, 4 }
 0xda4   :  { %v18856_v36 = vpop.trf.xlu0 }
 0xda5   :  { %v18860_v1 = vunpack.i.h.bf16 %v18856_v36  ;;  %v18857_v56 = vunpack.i.l.bf16 %v18856_v36 }
 0xda7   :  { %v5717_v25 = vsel %vm253_vm1, %v5716_v57, %v18860_v1  ;;  %v5729_v2 = vsel %vm253_vm1, %v5728_v43, %v18857_v56 }
 0xda8   :  { %v5733_v21 = vperm.slane %v5729_v2, %v19590_v23  ;;  %v5721_v19 = vperm.slane %v5717_v25, %v19590_v23 }
 0xdaa   :  { %v5737_v16 = vsel %vm253_vm1, %v5721_v19, %v5736_v15  ;;  %v5749_v29 = vsel %vm253_vm1, %v5733_v21, %v5748_v17  ;;  %v5734_v33 = vrot.slane %v5721_v19, 4  ;;  %v5746_v0 = vrot.slane %v5733_v21, 4 }
 0xdab   :  { %v5745_v34 = vperm.slane %v5737_v16, %v19600_v38  ;;  %v5757_v37 = vperm.slane %v5749_v29, %v19600_v38 }
 0xdac   :  { %v5735_v50 = vsel %vm253_vm1, %v5734_v33, %v5715_v45  ;;  %v5747_v54 = vsel %vm253_vm1, %v5746_v0, %v5727_v63 }
 0xdad   :  { %v5762_v52 = vrot.slane %v5757_v37, 4  ;;  %v5764_v44 = vrot.slane %v5745_v34, 4  ;;  %v5741_v39 = vperm.slane %v5735_v50, %v19600_v38  ;;  %v5753_v49 = vperm.slane %v5747_v54, %v19600_v38 }
 0xdaf   :  { %v5763_v7 = vsel %vm253_vm1, %v5762_v52, %v5745_v34  ;;  %v5765_v51 = vsel %vm253_vm1, %v5757_v37, %v5764_v44  ;;  %v5758_v35 = vrot.slane %v5753_v49, 4  ;;  %v5760_v11 = vrot.slane %v5741_v39, 4 }
 0xdb0   :  { %5830 = vmatpush.msrb.mxu2 %v5763_v7  ;;  %5853 = vmatpush.msrb.mxu3 %v5765_v51 }
 0xdb1   :  { %v5759_v8 = vsel %vm253_vm1, %v5758_v35, %v5741_v39  ;;  %v5761_v9 = vsel %vm253_vm1, %v5753_v49, %v5760_v11 }
 0xdb2   :  { %5784 = vmatpush.msrb.mxu1 %v5759_v8 }
 0xdb4   :  { %5807 = vmatpush.msra.mxu1 %v5761_v9 }
 0xdcf   :  { %v4591_v42 = vpop.f32.mrf.mxu3 }
 0xdd0   :  { %v20696_v55 = vadd.f32 %v20693_v48, %v4591_v42 }
 0xdd2   :  { %4631 = vrot.lane.b32.xlu1 %v20696_v55, %s23077_s24 }
 0xdd6   :  { %4637 = vrot.lane.b32.xlu2 %v20696_v55, %s23079_s22 }
 0xdda   :  { %4643 = vrot.lane.b32.xlu1 %v20696_v55, %s23081_s23 }
 0xde6   :  { %v6046_v24 = vpop.trf.xlu2 }
 0xde7   :  { %v6184_v62 = vrot.slane %v6046_v24, 4 }
 0xdee   :  { %v6110_v30 = vpop.trf.xlu2 }
 0xdef   :  { %v6185_v58 = vsel %vm253_vm1, %v6110_v30, %v6184_v62  ;;  %v6182_v28 = vrot.slane %v6110_v30, 4 }
 0xdf0   :  { %v6193_v57 = vperm.slane %v6185_v58, %v19590_v23 }
 0xdf2   :  { %v5918_v40 = vpop.trf.xlu1  ;;  %v6244_v36 = vrot.slane %v6193_v57, 4 }
 0xdf3   :  { %v6160_v59 = vrot.slane %v5918_v40, 4 }
 0xdf4   :  { %v6078_v22 = vpop.trf.xlu0 }
 0xdf5   :  { %v6196_v12 = vrot.slane %v6078_v22, 4 }
 0xdf6   :  { %v5950_v14 = vpop.trf.xlu2 }
 0xdf7   :  { %v6172_v47 = vrot.slane %v5950_v14, 4 }
 0xdfa   :  { %v6142_v26 = vpop.trf.xlu1 }
 0xdfb   :  { %v6197_v13 = vsel %vm253_vm1, %v6142_v26, %v6196_v12  ;;  %v6194_v56 = vrot.slane %v6142_v26, 4 }
 0xdfc   :  { %18883 = vxpose.xlu2.b32.start.end [1/1] (short) (narrow) %v18882_v4, 8  ;;  %v6183_v4 = vsel %vm253_vm1, %v6182_v28, %v6046_v24  ;;  %v6205_v25 = vperm.slane %v6197_v13, %v19590_v23 }
 0xdfd   :  { %v6189_v2 = vperm.slane %v6183_v4, %v19590_v23  ;;  %v6195_v16 = vsel %vm253_vm1, %v6194_v56, %v6078_v22 }
 0xdfe   :  { %v5982_v27 = vpop.trf.xlu2  ;;  %v6245_v29 = vsel %vm253_vm1, %v6205_v25, %v6244_v36  ;;  %v6201_v54 = vperm.slane %v6195_v16, %v19590_v23 }
 0xdff   :  { %v6161_v18 = vsel %vm253_vm1, %v5982_v27, %v6160_v59  ;;  %v6158_v1 = vrot.slane %v5982_v27, 4  ;;  %v6253_v33 = vperm.slane %v6245_v29, %v19600_v38  ;;  %v6232_v0 = vrot.slane %v6189_v2, 4 }
 0xe00   :  { %v6169_v60 = vperm.slane %v6161_v18, %v19590_v23  ;;  %v6230_v22 = vrot.slane %v6201_v54, 4 }
 0xe01   :  { %v6159_v17 = vsel %vm253_vm1, %v6158_v1, %v5918_v40  ;;  %v6266_v3 = vrot.slane %v6253_v33, 4  ;;  %v6233_v49 = vsel %vm253_vm1, %v6201_v54, %v6232_v0  ;;  %v4651_v1 = vrot.slane %v20696_v55, 4 }
 0xe02   :  { %v6014_v45 = vpop.trf.xlu1  ;;  %v6220_v21 = vrot.slane %v6169_v60, 4  ;;  %v6165_v50 = vperm.slane %v6159_v17, %v19590_v23  ;;  %v6241_v51 = vperm.slane %v6233_v49, %v19600_v38  ;;  %v6231_v58 = vsel %vm253_vm1, %v6230_v22, %v6189_v2 }
 0xe03   :  { %v6173_v63 = vsel %vm253_vm1, %v6014_v45, %v6172_v47  ;;  %v6170_v19 = vrot.slane %v6014_v45, 4  ;;  %v6237_v12 = vperm.slane %v6231_v58, %v19600_v38 }
 0xe04   :  { %v6181_v15 = vperm.slane %v6173_v63, %v19590_v23  ;;  %v6208_v39 = vrot.slane %v6165_v50, 4  ;;  %v6258_v9 = vrot.slane %v6241_v51, 4 }
 0xe05   :  { %v6171_v34 = vsel %vm253_vm1, %v6170_v19, %v5950_v14  ;;  %v6254_v18 = vrot.slane %v6237_v12, 4 }
 0xe06   :  { %v20709_v43 = vpop.trf.xlu2  ;;  %v6221_v37 = vsel %vm253_vm1, %v6181_v15, %v6220_v21  ;;  %v6177_v52 = vperm.slane %v6171_v34, %v19590_v23  ;;  %v6218_v7 = vrot.slane %v6181_v15, 4 }
 0xe07   :  { %v6229_v5 = vperm.slane %v6221_v37, %v19600_v38 }
 0xe08   :  { %v6209_v11 = vsel %vm253_vm1, %v6177_v52, %v6208_v39  ;;  %v6219_v30 = vsel %vm253_vm1, %v6218_v7, %v6169_v60  ;;  %v6206_v59 = vrot.slane %v6177_v52, 4 }
 0xe09   :  { %v6267_v44 = vsel %vm253_vm1, %v6266_v3, %v6229_v5  ;;  %v6217_v8 = vperm.slane %v6209_v11, %v19600_v38  ;;  %v6225_v40 = vperm.slane %v6219_v30, %v19600_v38  ;;  %v6268_v27 = vrot.slane %v6229_v5, 4 }
 0xe0a   :  { %6462 = vxpose.xlu0.b32.start.end [1/1] (short) (narrow) %v6267_v44, 8  ;;  %v6207_v28 = vsel %vm253_vm1, %v6206_v59, %v6165_v50 }
 0xe0b   :  { %v6259_v24 = vsel %vm253_vm1, %v6258_v9, %v6217_v8  ;;  %v6269_v62 = vsel %vm253_vm1, %v6253_v33, %v6268_v27  ;;  %v6213_v47 = vperm.slane %v6207_v28, %v19600_v38  ;;  %v6260_v45 = vrot.slane %v6217_v8, 4 }
 0xe0c   :  { %v6264_v60 = vrot.slane %v6225_v40, 4 }
 0xe0d   :  { %v6261_v13 = vsel %vm253_vm1, %v6241_v51, %v6260_v45  ;;  %v6256_v21 = vrot.slane %v6213_v47, 4 }
 0xe0f   :  { %18876 = vxpose.xlu1.b32.start.end [1/1] (short) (narrow) %v18875_v10, 8  ;;  %v6242_v10 = vrot.slane %v6205_v25, 4  ;;  %v6257_v17 = vsel %vm253_vm1, %v6237_v12, %v6256_v21 }
 0xe11   :  { %v6243_v35 = vsel %vm253_vm1, %v6242_v10, %v6193_v57  ;;  %v6255_v57 = vsel %vm253_vm1, %v6254_v18, %v6213_v47 }
 0xe12   :  { %v6249_v42 = vperm.slane %v6243_v35, %v19600_v38  ;;  %6334 = vxpose.xlu0.b32.start.end [1/1] (short) (narrow) %v6259_v24, 8 }
 0xe14   :  { %v6262_v14 = vrot.slane %v6249_v42, 4  ;;  %v6265_v63 = vsel %vm253_vm1, %v6249_v42, %v6264_v60 }
 0xe16   :  { %v6263_v26 = vsel %vm253_vm1, %v6262_v14, %v6225_v40 }
 0xe1a   :  { %6398 = vxpose.xlu0.b32.start.end [1/1] (short) (narrow) %v6263_v26, 8 }
 0xe22   :  { %6494 = vxpose.xlu0.b32.start.end [1/1] (short) (narrow) %v6269_v62, 8 }
 0xe2a   :  { %6270 = vxpose.xlu0.b32.start.end [1/1] (short) (narrow) %v6255_v57, 8 }
 0xe30   :  { %v4638_v4 = vpop.permute.xlu2 %4637 }
 0xe31   :  { %v4649_v56 = vrot.slane %v4638_v4, 4  ;;  %v4652_v25 = vsel %vm253_vm1, %v4638_v4, %v4651_v1 }
 0xe32   :  { %6366 = vxpose.xlu0.b32.start.end [1/1] (short) (narrow) %v6261_v13, 8  ;;  %v4660_v19 = vperm.slane %v4652_v25, %v19590_v23 }
 0xe33   :  { %v4650_v2 = vsel %vm253_vm1, %v4649_v56, %v20696_v55 }
 0xe34   :  { %v4656_v16 = vperm.slane %v4650_v2, %v19590_v23  ;;  %v4687_v34 = vrot.slane %v4660_v19, 4 }
 0xe36   :  { %v4675_v54 = vrot.slane %v4656_v16, 4 }
 0xe3a   :  { %6430 = vxpose.xlu0.b32.start.end [1/1] (short) (narrow) %v6265_v63, 8 }
 0xe42   :  { %6302 = vxpose.xlu0.b32.start.end [1/1] (short) (narrow) %v6257_v17, 8 }
 0xe44   :  { %v4632_v36 = vpop.permute.xlu1 %4631 }
 0xe45   :  { %v4663_v15 = vrot.slane %v4632_v36, 4 }
 0xe4c   :  { %v4644_v29 = vpop.permute.xlu1 %4643 }
 0xe4d   :  { %v4661_v33 = vrot.slane %v4644_v29, 4  ;;  %v4664_v0 = vsel %vm253_vm1, %v4644_v29, %v4663_v15 }
 0xe4e   :  { %v4672_v37 = vperm.slane %v4664_v0, %v19590_v23 }
 0xe4f   :  { %v4662_v50 = vsel %vm253_vm1, %v4661_v33, %v4632_v36 }
 0xe50   :  { %v4668_v55 = vperm.slane %v4662_v50, %v19590_v23  ;;  %v4685_v5 = vrot.slane %v4672_v37, 4  ;;  %v4688_v3 = vsel %vm253_vm1, %v4672_v37, %v4687_v34 }
 0xe51   :  { %v4696_v10 = vperm.slane %v4688_v3, %v19600_v38 }
 0xe52   :  { %v4673_v52 = vrot.slane %v4668_v55, 4  ;;  %v4676_v44 = vsel %vm253_vm1, %v4668_v55, %v4675_v54  ;;  %v4686_v39 = vsel %vm253_vm1, %v4685_v5, %v4660_v19  ;;  %v4593_v19 = vpop.f32.mrf.mxu3  ;;  %v18864_v55 = vunpack.i.l.bf16 %v20709_v43 }
 0xe53   :  { %v4684_v49 = vperm.slane %v4676_v44, %v19600_v38  ;;  %v4692_v7 = vperm.slane %v4686_v39, %v19600_v38  ;;  %v4703_v51 = vrot.slane %v4696_v10, 4  ;;  %v20800_v34 = vadd.f32 %v20693_v48, %v4593_v19  ;;  %v18870_v48 = vpop.trf.xlu0 }
 0xe54   :  { %v4674_v35 = vsel %vm253_vm1, %v4673_v52, %v4656_v16  ;;  %v18874_v54 = vunpack.i.h.bf16 %v18870_v48  ;;  %v18871_v52 = vunpack.i.l.bf16 %v18870_v48 }
 0xe55   :  { %v4680_v11 = vperm.slane %v4674_v35, %v19600_v38  ;;  %v4699_v8 = vrot.slane %v4684_v49, 4  ;;  %v4701_v9 = vrot.slane %v4692_v7, 4  ;;  %v4704_v42 = vsel %vm253_vm1, 0.0, %v4703_v51 }
 0xe56   :  { %v5043_v24 = vsel %vm253_vm1, %v4703_v51, %v4692_v7  ;;  %v5048_v30 = vrot.slane %v4704_v42, 4  ;;  %v7276_v5 = vrot.slane %v18874_v54, 4  ;;  %v7290_v42 = vrot.slane %v18871_v52, 4 }
 0xe57   :  { %v4697_v40 = vrot.slane %v4680_v11, 4  ;;  %v4700_v14 = vsel %vm253_vm1, 0.0, %v4699_v8  ;;  %v4702_v26 = vsel %vm253_vm1, 0.0, %v4701_v9  ;;  %v5047_v27 = vperm.slane %v5043_v24, %v19590_v23 }
 0xe58   :  { %v5037_v62 = vrot.slane %v4700_v14, 4  ;;  %v5049_v22 = vsel %vm253_vm1, %v5048_v30, %v4702_v26  ;;  %v5032_v59 = vsel %vm253_vm1, %v4699_v8, %v4680_v11  ;;  %v7277_v39 = vsel %vm253_vm1, %v7276_v5, %v18864_v55 }
 0xe59   :  { %v4698_v58 = vsel %vm253_vm1, 0.0, %v4697_v40  ;;  %v5036_v12 = vperm.slane %v5032_v59, %v19590_v23  ;;  %v5053_v28 = vperm.slane %v5049_v22, %v19590_v23  ;;  %v5068_v47 = vrot.slane %v5047_v27, 4 }
 0xe5a   :  { %v5038_v18 = vsel %vm253_vm1, %v5037_v62, %v4698_v58  ;;  %v7283_v7 = vperm.slane %v7277_v39, %v19590_v23  ;;  %v7278_v8 = vrot.slane %v18864_v55, 4  ;;  %v18867_v30 = vunpack.i.h.bf16 %v20709_v43 }
 0xe5b   :  { %v5042_v57 = vperm.slane %v5038_v18, %v19590_v23  ;;  %v5056_v45 = vrot.slane %v5036_v12, 4  ;;  %v5069_v13 = vsel %vm253_vm1, %v5053_v28, %v5068_v47  ;;  %v5066_v60 = vrot.slane %v5053_v28, 4 }
 0xe5c   :  { %v5077_v4 = vperm.slane %v5069_v13, %v19600_v38  ;;  %v7279_v9 = vsel %vm253_vm1, %v18874_v54, %v7278_v8  ;;  %v7326_v58 = vrot.slane %v7283_v7, 4 }
 0xe5d   :  { %v5057_v63 = vsel %vm253_vm1, %v5042_v57, %v5056_v45  ;;  %v5054_v36 = vrot.slane %v5042_v57, 4  ;;  %v5067_v1 = vsel %vm253_vm1, %v5066_v60, %v5047_v27  ;;  %v7287_v40 = vperm.slane %v7279_v9, %v19590_v23 }
 0xe5e   :  { %v5065_v56 = vperm.slane %v5057_v63, %v19600_v38  ;;  %v5082_v25 = vrot.slane %v5077_v4, 4  ;;  %v5073_v2 = vperm.slane %v5067_v1, %v19600_v38  ;;  %v7254_v27 = vrot.slane %v18867_v30, 4 }
 0xe5f   :  { %v5055_v21 = vsel %vm253_vm1, %v5054_v36, %v5036_v12  ;;  %v7338_v22 = vrot.slane %v7287_v40, 4 }
 0xe60   :  { %v5083_v15 = vsel %vm253_vm1, %v5082_v25, %v5065_v56  ;;  %v5061_v17 = vperm.slane %v5055_v21, %v19600_v38  ;;  %v5078_v16 = vrot.slane %v5073_v2, 4  ;;  %v5084_v29 = vrot.slane %v5065_v56, 4 }
 0xe61   :  { %18314 = vmatmul.msk.f32.vlgmr.msrb.gmra.mxu2 %vm1367_vm2, %v5083_v15 }
 0xe62   :  { %v5079_v33 = vsel %vm253_vm1, %v5078_v16, %v5061_v17  ;;  %v5085_v0 = vsel %vm253_vm1, %v5077_v4, %v5084_v29  ;;  %v5080_v37 = vrot.slane %v5061_v17, 4 }
 0xe63   :  { %18312 = vmatmul.msk.f32.vlgmr.msrb.gmra.mxu1 %vm1367_vm2, %v5079_v33  ;;  %18315 = vmatmul.msk.f32.vlgmr.msrb.gmra.mxu3 %vm1367_vm2, %v5085_v0 }
 0xe64   :  { %v5081_v50 = vsel %vm253_vm1, %v5073_v2, %v5080_v37 }
 0xe65   :  { %4633 = vrot.lane.b32.xlu2 %v20800_v34, %s23077_s24 }
 0xe69   :  { %4639 = vrot.lane.b32.xlu1 %v20800_v34, %s23079_s22  ;;  %s19512_s22 = smov 25  }
 0xe6b   :  { %18313 = vmatmul.msk.f32.vlgmr.msra.gmra.mxu1 %vm1367_vm2, %v5081_v50 }
 0xe6d   :  { %4645 = vrot.lane.b32.xlu2 %v20800_v34, %s23081_s23 }
 0xe95   :  { %v18884_v3 = vpop.trf.xlu2 }
 0xe96   :  { %v18885_v10 = vunpack.i.l.bf16 %v18884_v3  ;;  %v18888_v24 = vunpack.i.h.bf16 %v18884_v3 }
 0xe98   :  { %v7288_v44 = vrot.slane %v18885_v10, 4  ;;  %v7291_v14 = vsel %vm253_vm1, %v18885_v10, %v7290_v42  ;;  %v7264_v26 = vrot.slane %v18888_v24, 4 }
 0xe99   :  { %v7299_v62 = vperm.slane %v7291_v14, %v19590_v23 }
 0xe9a   :  { %v7289_v49 = vsel %vm253_vm1, %v7288_v44, %v18871_v52 }
 0xe9b   :  { %v7295_v51 = vperm.slane %v7289_v49, %v19590_v23  ;;  %v7339_v4 = vsel %vm253_vm1, %v7299_v62, %v7338_v22  ;;  %v7336_v1 = vrot.slane %v7299_v62, 4 }
 0xe9c   :  { %v7347_v17 = vperm.slane %v7339_v4, %v19600_v38 }
 0xe9d   :  { %v7324_v35 = vrot.slane %v7295_v51, 4  ;;  %v7327_v60 = vsel %vm253_vm1, %v7295_v51, %v7326_v58  ;;  %v7337_v55 = vsel %vm253_vm1, %v7336_v1, %v7287_v40 }
 0xe9e   :  { %v7335_v15 = vperm.slane %v7327_v60, %v19600_v38  ;;  %v7360_v52 = vrot.slane %v7347_v17, 4 }
 0xe9f   :  { %v7325_v11 = vsel %vm253_vm1, %v7324_v35, %v7283_v7  ;;  %v7343_v35 = vperm.slane %v7337_v55, %v19600_v38 }
 0xea0   :  { %v7331_v56 = vperm.slane %v7325_v11, %v19600_v38  ;;  %v7352_v10 = vrot.slane %v7335_v15, 4 }
 0xea2   :  { %v7348_v5 = vrot.slane %v7331_v56, 4 }
 0xeb3   :  { %v18877_v59 = vpop.trf.xlu1 }
 0xeb4   :  { %v18881_v12 = vunpack.i.h.bf16 %v18877_v59  ;;  %v18878_v28 = vunpack.i.l.bf16 %v18877_v59 }
 0xeb6   :  { %v7252_v47 = vrot.slane %v18881_v12, 4  ;;  %v7255_v18 = vsel %vm253_vm1, %v18881_v12, %v7254_v27  ;;  %v7265_v57 = vsel %vm253_vm1, %v7264_v26, %v18878_v28  ;;  %v7266_v45 = vrot.slane %v18878_v28, 4 }
 0xeb7   :  { %v7263_v43 = vperm.slane %v7255_v18, %v19590_v23  ;;  %v7271_v13 = vperm.slane %v7265_v57, %v19590_v23  ;;  %v7356_v26 = vrot.slane %v7343_v35, 4 }
 0xeb8   :  { %v7253_v63 = vsel %vm253_vm1, %v7252_v47, %v18867_v30  ;;  %v7267_v36 = vsel %vm253_vm1, %v18888_v24, %v7266_v45 }
 0xeb9   :  { %v7259_v25 = vperm.slane %v7253_v63, %v19590_v23  ;;  %v7300_v2 = vrot.slane %v7271_v13, 4  ;;  %v7275_v21 = vperm.slane %v7267_v36, %v19590_v23  ;;  %v7314_v19 = vrot.slane %v7263_v43, 4 }
 0xebb   :  { %v7302_v16 = vrot.slane %v7259_v25, 4  ;;  %v7315_v29 = vsel %vm253_vm1, %v7275_v21, %v7314_v19  ;;  %v7312_v33 = vrot.slane %v7275_v21, 4  ;;  %v7301_v0 = vsel %vm253_vm1, %v7300_v2, %v7259_v25 }
 0xebc   :  { %v7323_v37 = vperm.slane %v7315_v29, %v19600_v38  ;;  %v7307_v50 = vperm.slane %v7301_v0, %v19600_v38 }
 0xebd   :  { %v7303_v48 = vsel %vm253_vm1, %v7271_v13, %v7302_v16  ;;  %v7313_v54 = vsel %vm253_vm1, %v7312_v33, %v7263_v43  ;;  %v4707_v43 = vrot.slane %v20800_v34, 4 }
 0xebe   :  { %v7311_v3 = vperm.slane %v7303_v48, %v19600_v38  ;;  %v7319_v44 = vperm.slane %v7313_v54, %v19600_v38  ;;  %v7350_v39 = vrot.slane %v7307_v50, 4  ;;  %v20846_v49 = vsel %vm253_vm1, %v7348_v5, %v7307_v50  ;;  %v19277_v50 = vld [vmem:[%s20789_s9] ss:$0 sm:$0xff] }
 0xebf   :  { %v7361_v51 = vsel %vm253_vm1, %v7360_v52, %v7323_v37  ;;  %v7362_v24 = vrot.slane %v7323_v37, 4  ;;  %v4634_v59 = vpop.permute.xlu2 %4633 }
 0xec0   :  { %v7353_v7 = vsel %vm253_vm1, %v7352_v10, %v7311_v3  ;;  %v7358_v11 = vrot.slane %v7319_v44, 4  ;;  %v20852_v9 = vsel %vm253_vm1, %v7331_v56, %v7350_v39  ;;  %v7354_v42 = vrot.slane %v7311_v3, 4 }
 0xec1   :  { %v18889_v8 = vpack.i.bf16 %v7353_v7, %v7361_v51  ;;  %v7357_v62 = vsel %vm253_vm1, %v7356_v26, %v7319_v44  ;;  %v7363_v22 = vsel %vm253_vm1, %v7347_v17, %v7362_v24  ;;  %v4719_v28 = vrot.slane %v4634_v59, 4 }
 0xec2   :  { %v20855_v30 = vsel %vm253_vm1, %v7343_v35, %v7358_v11  ;;  %v20860_v14 = vsel %vm253_vm1, %v7335_v15, %v7354_v42  ;;  %v18896_v58 = vpack.i.bf16 %v7363_v22, %v7357_v62 }
 0xec3   :  { %18890 = vxpose.xlu0.b32.start.end [1/1] (short) (narrow) %v18889_v8, 8  ;;  %v18910_v40 = vpack.i.bf16 %v20852_v9, %v20855_v30  ;;  %v18903_v27 = vpack.i.bf16 %v20860_v14, %v20846_v49 }
 0xec7   :  { %v4646_v12 = vpop.permute.xlu2 %4645 }
 0xec8   :  { %v4717_v47 = vrot.slane %v4646_v12, 4  ;;  %v4720_v18 = vsel %vm253_vm1, %v4646_v12, %v4719_v28 }
 0xec9   :  { %v4728_v45 = vperm.slane %v4720_v18, %v19590_v23 }
 0xeca   :  { %v4718_v57 = vsel %vm253_vm1, %v4717_v47, %v4634_v59 }
 0xecb   :  { %18897 = vxpose.xlu0.b32.start.end [1/1] (short) (narrow) %v18896_v58, 8  ;;  %v4724_v13 = vperm.slane %v4718_v57, %v19590_v23  ;;  %v4741_v36 = vrot.slane %v4728_v45, 4 }
 0xecd   :  { %v4729_v25 = vrot.slane %v4724_v13, 4 }
 0xedb   :  { %v4640_v60 = vpop.permute.xlu1 %4639 }
 0xedc   :  { %v4705_v4 = vrot.slane %v4640_v60, 4  ;;  %v4708_v63 = vsel %vm253_vm1, %v4640_v60, %v4707_v43 }
 0xedd   :  { %v4716_v1 = vperm.slane %v4708_v63, %v19590_v23 }
 0xede   :  { %v4706_v56 = vsel %vm253_vm1, %v4705_v4, %v20800_v34 }
 0xedf   :  { %v4712_v2 = vperm.slane %v4706_v56, %v19590_v23  ;;  %v4742_v21 = vsel %vm253_vm1, %v4741_v36, %v4716_v1  ;;  %v4743_v19 = vrot.slane %v4716_v1, 4 }
 0xee0   :  { %v4748_v15 = vperm.slane %v4742_v21, %v19600_v38  ;;  %v5786_v17 = vpop.f32.mrf.mxu1 }
 0xee1   :  { %v4730_v16 = vsel %vm253_vm1, %v4729_v25, %v4712_v2  ;;  %v4731_v29 = vrot.slane %v4712_v2, 4  ;;  %v4744_v33 = vsel %vm253_vm1, %v4728_v45, %v4743_v19  ;;  %v6478_v2 = vpop.trf.xlu0 }
 0xee2   :  { %v4736_v0 = vperm.slane %v4730_v16, %v19600_v38  ;;  %v4752_v37 = vperm.slane %v4744_v33, %v19600_v38  ;;  %v4757_v54 = vrot.slane %v4748_v15, 4 }
 0xee3   :  { %v4732_v34 = vsel %vm253_vm1, %v4724_v13, %v4731_v29 }
 0xee4   :  { %v4740_v48 = vperm.slane %v4732_v34, %v19600_v38  ;;  %v4759_v55 = vrot.slane %v4752_v37, 4  ;;  %v5832_v5 = vpop.f32.mrf.mxu2  ;;  %v4753_v10 = vrot.slane %v4736_v0, 4  ;;  %v4758_v8 = vsel %vm253_vm1, 0.0, %v4757_v54 }
 0xee5   :  { %v20885_v3 = vadd.f32 %v19277_v50, %v5832_v5  ;;  %v5787_v37 = vadd.f32 %v19277_v50, %v5786_v17  ;;  %v6538_v34 = vrot.slane %v6478_v2, 4 }
 0xee6   :  { %v4755_v52 = vrot.slane %v4740_v48, 4  ;;  %v4760_v44 = vsel %vm253_vm1, 0.0, %v4759_v55  ;;  %v5855_v39 = vpop.f32.mrf.mxu3  ;;  %v4754_v62 = vsel %vm253_vm1, 0.0, %v4753_v10  ;;  %v6953_v58 = vsel %vm253_vm1, %v4759_v55, %v4748_v15 }
 0xee7   :  { %v6958_v7 = vrot.slane %v4760_v44, 4  ;;  %v20888_v51 = vadd.f32 %v19277_v50, %v5855_v39  ;;  %v5864_v35 = vsel %vm1367_vm2, %v20885_v3, -inf  ;;  %v20911_v45 = vperm.slane %v6953_v58, %v19590_v23 }
 0xee8   :  { %v4756_v11 = vsel %vm253_vm1, 0.0, %v4755_v52  ;;  %5865 = vmax.xlane.f32.xlu1 %v5864_v35  ;;  %v5809_v42 = vpop.f32.mrf.mxu1  ;;  %v6942_v28 = vsel %vm253_vm1, %v4755_v52, %v4736_v0 }
 0xee9   :  { %v6947_v24 = vrot.slane %v4756_v11, 4  ;;  %v6959_v26 = vsel %vm253_vm1, %v6958_v7, %v4758_v8  ;;  %v5867_v59 = vsel %vm1367_vm2, %v20888_v51, -inf  ;;  %v20902_v12 = vadd.f32 %v19277_v50, %v5809_v42  ;;  %v6350_v21 = vpop.trf.xlu0 }
 0xeea   :  { %v20897_v22 = vperm.slane %v6959_v26, %v19590_v23  ;;  %5868 = vmax.xlane.f32.xlu2 %v5867_v59  ;;  %v20914_v43 = vperm.slane %v6942_v28, %v19590_v23  ;;  %v6526_v54 = vrot.slane %v6350_v21, 4 }
 0xeeb   :  { %v6948_v47 = vsel %vm253_vm1, %v6947_v24, %v4754_v62  ;;  %v5861_v60 = vsel %vm1367_vm2, %v20902_v12, -inf }
 0xeec   :  { %v20907_v18 = vperm.slane %v6948_v47, %v19590_v23  ;;  %v6976_v57 = vrot.slane %v20897_v22, 4 }
 0xeee   :  { %v6964_v13 = vrot.slane %v20907_v18, 4  ;;  %v6977_v63 = vsel %vm253_vm1, %v6976_v57, %v20911_v45 }
 0xeef   :  { %v20927_v1 = vperm.slane %v6977_v63, %v19600_v38 }
 0xef0   :  { %5862 = vmax.xlane.f32.xlu1 %v5861_v60  ;;  %v6965_v4 = vsel %vm253_vm1, %v6964_v13, %v20914_v43 }
 0xef1   :  { %v20924_v36 = vperm.slane %v6965_v4, %v19600_v38  ;;  %v6414_v19 = vpop.trf.xlu0 }
 0xef2   :  { %v6539_v5 = vsel %vm253_vm1, %v6538_v34, %v6414_v19 }
 0xef3   :  { %v6990_v56 = vrot.slane %v20924_v36, 4  ;;  %v6543_v52 = vperm.slane %v6539_v5, %v19590_v23 }
 0xef5   :  { %v20932_v25 = vsel %vm253_vm1, %v20927_v1, %v6990_v56 }
 0xef9   :  { %v6510_v15 = vpop.trf.xlu0 }
 0xefa   :  { %v6544_v33 = vrot.slane %v6510_v15, 4 }
 0xf01   :  { %v6286_v16 = vpop.trf.xlu0 }
 0xf02   :  { %4895 = vrot.lane.b32.xlu2 %v20555_v53, %s23075_s25  ;;  %v5858_v53 = vsel %vm1367_vm2, %v5787_v37, -inf }
 0xf09   :  { %v6382_v29 = vpop.trf.xlu0 }
 0xf0a   :  { %4907 = vrot.lane.b32.xlu2 %v20594_v41, %s23075_s25  ;;  %v6532_v55 = vrot.slane %v6382_v29, 4 }
 0xf11   :  { %v6446_v0 = vpop.trf.xlu0 }
 0xf12   :  { %4903 = vrot.lane.b32.xlu2 %v20613_v20, %s23075_s25  ;;  %v6545_v48 = vsel %vm253_vm1, %v6544_v33, %v6446_v0  ;;  %v6527_v20 = vsel %vm253_vm1, %v6526_v54, %v6286_v16 }
 0xf13   :  { %v6549_v41 = vperm.slane %v6545_v48, %v19590_v23  ;;  %v6531_v50 = vperm.slane %v6527_v20, %v19590_v23 }
 0xf15   :  { %v6562_v44 = vrot.slane %v6549_v41, 4 }
 0xf17   :  { %v6563_v35 = vsel %vm253_vm1, %v6562_v44, %v6543_v52 }
 0xf18   :  { %v6569_v8 = vperm.slane %v6563_v35, %v19600_v38 }
 0xf19   :  { %v6318_v10 = vpop.trf.xlu0 }
 0xf1a   :  { %v6533_v17 = vsel %vm253_vm1, %v6532_v55, %v6318_v10  ;;  %v6574_v33 = vrot.slane %v6569_v8, 4 }
 0xf1b   :  { %v6537_v39 = vperm.slane %v6533_v17, %v19590_v23 }
 0xf1d   :  { %v6550_v7 = vrot.slane %v6537_v39, 4 }
 0xf1f   :  { %v6551_v11 = vsel %vm253_vm1, %v6550_v7, %v6531_v50 }
 0xf20   :  { %v6557_v42 = vperm.slane %v6551_v11, %v19600_v38 }
 0xf22   :  { %v6576_v24 = vrot.slane %v6557_v42, 4  ;;  %v6575_v0 = vsel %vm253_vm1, %v6574_v33, %v6557_v42 }
 0xf24   :  { %v20954_v26 = vsel %vm253_vm1, %v6569_v8, %v6576_v24 }
 0xf3c   :  { %5859 = vmax.xlane.f32.xlu0 %v5858_v53 }
 0xf5b   :  { %v5866_v60 = vpop.xlane.xlu1 %5865 }
 0xf5c   :  { %v5872_v4 = vsub.f32 %v20885_v3, %v5866_v60 }
 0xf5d   :  { %v5869_v56 = vpop.xlane.xlu2 %5868 }
 0xf5e   :  { %v5878_v63 = vmul.f32 1.442695, %v5872_v4  ;;  %v5873_v9 = vsub.f32 %v20888_v51, %v5869_v56 }
 0xf60   :  { %v5880_v30 = vmul.f32 1.442695, %v5873_v9 }
 0xf63   :  { %v20975_v51 = vpop.xlane.xlu1 %5862 }
 0xf65   :  { %18911 = vxpose.xlu0.b32.start.end [1/1] (short) (narrow) %v18910_v40, 8  ;;  %v4896_v14 = vpop.permute.xlu2 %4895 }
 0xf66   :  { %v4975_v8 = vrot.slane %v4896_v14, 4 }
 0xf67   :  { %v20959_v62 = vpop.trf.xlu0 }
 0xf68   :  { %v18892_v33 = vunpack.i.l.bf16 %v20959_v62 }
 0xf6d   :  { %v4908_v10 = vpop.permute.xlu2 %4907 }
 0xf6e   :  { %v4985_v35 = vrot.slane %v4908_v10, 4 }
 0xf6f   :  { %v20961_v59 = vpop.trf.xlu0 }
 0xfaf   :  { %v5860_v58 = vpop.xlane.xlu0 %5859 }
 0xfb0   :  { %v5870_v28 = vsub.f32 %v5787_v37, %v5860_v58 }
 0xfb2   :  { %v5874_v47 = vmul.f32 1.442695, %v5870_v28 }
 0xfb4   :  { %19343 = vpow2.f32 %v5874_v47 }
 0xfb5   :  { %19345 = vpow2.f32 %v5878_v63 }
 0xfb6   :  { %19347 = vpow2.f32 %v5880_v30 }
 0xfba   :  { %v19344_v57 = vpop.eup %19343 }
 0xfbb   :  { %v5882_v13 = vsel %vm1367_vm2, %v19344_v57, 0.0  ;;  %v19346_v40 = vpop.eup %19345 }
 0xfbc   :  { %5883 = vadd.xlane.f32.xlu1 %v5882_v13  ;;  %v5888_v2 = vsel %vm1367_vm2, %v19346_v40, 0.0  ;;  %v19348_v21 = vpop.eup %19347 }
 0xfbd   :  { %v5891_v19 = vsel %vm1367_vm2, %v19348_v21, 0.0 }
 0xfd6   :  { %5889 = vadd.xlane.f32.xlu0 %v5888_v2 }
 0xfde   :  { %5892 = vadd.xlane.f32.xlu0 %v5891_v19 }
 0xff2   :  { %4899 = vrot.lane.b32.xlu0 %v20587_v61, %s23075_s25  ;;  %v6564_v61 = vrot.slane %v6543_v52, 4  ;;  %s19511_s25 = smov 22  }
 0xff3   :  { %s21305_s23 = sld [smem:[%s23070_s0 + %s19511_s25]]   ;;  %s19514_s25 = smov 27  }
 0xff4   :  { %v6565_v49 = vsel %vm253_vm1, %v6549_v41, %v6564_v61  ;;  %v7632_v61 = vrot.slane %v18892_v33, 4 }
 0xff5   :  { %v6573_v34 = vperm.slane %v6565_v49, %v19600_v38 }
 0xff6   :  { %18904 = vxpose.xlu1.b32.start.end [1/1] (short) (narrow) %v18903_v27, 8  ;;  %v6552_v27 = vrot.slane %v6531_v50, 4 }
 0xff7   :  { %v6578_v5 = vrot.slane %v6573_v34, 4 }
 0xff8   :  { %v6553_v54 = vsel %vm253_vm1, %v6537_v39, %v6552_v27  ;;  %v4904_v39 = vpop.permute.xlu2 %4903 }
 0xff9   :  { %v6561_v20 = vperm.slane %v6553_v54, %v19600_v38  ;;  %v4973_v7 = vrot.slane %v4904_v39, 4  ;;  %v4976_v47 = vsel %vm253_vm1, %v4904_v39, %v4975_v8  ;;  %v18895_v54 = vunpack.i.h.bf16 %v20959_v62 }
 0xffa   :  { %v21000_v63 = vperm.slane %v4976_v47, %v19590_v23 }
 0xffb   :  { %v6579_v52 = vsel %vm253_vm1, %v6578_v5, %v6561_v20  ;;  %v6580_v17 = vrot.slane %v6561_v20, 4  ;;  %v4974_v42 = vsel %vm253_vm1, %v4973_v7, %v4896_v14  ;;  %v6966_v5 = vrot.slane %v20914_v43, 4 }
 0xffc   :  { %v4980_v13 = vperm.slane %v4974_v42, %v19590_v23  ;;  %v7620_v20 = vrot.slane %v18895_v54, 4 }
 0xffd   :  { %v6581_v50 = vsel %vm253_vm1, %v6573_v34, %v6580_v17  ;;  %v6967_v7 = vsel %vm253_vm1, %v20907_v18, %v6966_v5 }
0x1009   :  { %v20973_v3 = vpop.trf.xlu0 }
0x100a   :  { %v18913_v49 = vunpack.i.l.bf16 %v20973_v3 }
0x102f   :  { %v5884_v15 = vpop.xlane.xlu1 %5883 }
0x1030   :  { %19349 = vrcp.f32 %v5884_v15  ;;  %v4999_v15 = vrot.slane %v4980_v13, 4 }
0x1036   :  { %v19350_v16 = vpop.eup %19349 }
0x1037   :  { %v5898_v29 = vmul.f32 %v19350_v16, %v19344_v57 }
0x1039   :  { %18316 = vmatpush.xpose.msk.msra.mxu0 %vm1367_vm2, %v5898_v29 }
0x103c   :  { %18317 = vmatmul.msk.f32.vlgmr.msra.gmra.mxu0 %vm1367_vm2, %v6575_v0  ;;  %v18902_v0 = vunpack.i.h.bf16 %v20961_v59 }
0x103e   :  { %v7638_v14 = vrot.slane %v18902_v0, 4 }
0x1040   :  { %v7639_v34 = vsel %vm253_vm1, %v7638_v14, %v18913_v49 }
0x1049   :  { %v5890_v37 = vpop.xlane.xlu0 %5889 }
0x104a   :  { %19351 = vrcp.f32 %v5890_v37  ;;  %v18899_v37 = vunpack.i.l.bf16 %v20961_v59 }
0x104c   :  { %v7633_v27 = vsel %vm253_vm1, %v7632_v61, %v18899_v37  ;;  %v5871_v61 = vsub.f32 %v20902_v12, %v20975_v51 }
0x104e   :  { %v5876_v37 = vmul.f32 1.442695, %v5871_v61 }
0x1050   :  { %v19352_v48 = vpop.eup %19351 }
0x1051   :  { %v5900_v53 = vmul.f32 %v19352_v48, %v19346_v40  ;;  %v5893_v55 = vpop.xlane.xlu0 %5892  ;;  %v6978_v48 = vrot.slane %v20911_v45, 4  ;;  %v18916_v45 = vunpack.i.h.bf16 %v20973_v3  ;;  %v6975_v3 = vperm.slane %v6967_v7, %v19600_v38 }
0x1052   :  { %19353 = vrcp.f32 %v5893_v55  ;;  %v7643_v55 = vperm.slane %v7639_v34, %v19590_v23 }
0x1053   :  { %18320 = vmatpush.xpose.msk.msra.mxu2 %vm1367_vm2, %v5900_v53  ;;  %v7637_v53 = vperm.slane %v7633_v27, %v19590_v23  ;;  %19355 = vpow2.f32 %v5876_v37  ;;  %v5011_v27 = vrot.slane %v21000_v63, 4 }
0x1055   :  { %v7658_v59 = vrot.slane %v7637_v53, 4 }
0x1056   :  { %18321 = vmatmul.msk.f32.vlgmr.msra.gmra.mxu2 %vm1367_vm2, %v6579_v52  ;;  %v6979_v52 = vsel %vm253_vm1, %v20897_v22, %v6978_v48 }
0x1058   :  { %v19354_v41 = vpop.eup %19353 }
0x1059   :  { %v5901_v44 = vmul.f32 %v19354_v41, %v19348_v21  ;;  %v7656_v41 = vrot.slane %v7643_v55, 4  ;;  %v19356_v49 = vpop.eup %19355 }
0x105a   :  { %v5885_v14 = vsel %vm1367_vm2, %v19356_v49, 0.0 }
0x105b   :  { %18322 = vmatpush.xpose.msk.msra.mxu3 %vm1367_vm2, %v5901_v44 }
0x105e   :  { %18323 = vmatmul.msk.f32.vlgmr.msra.gmra.mxu3 %vm1367_vm2, %v6581_v50  ;;  %v7659_v50 = vsel %vm253_vm1, %v7643_v55, %v7658_v59 }
0x105f   :  { %v7667_v8 = vperm.slane %v7659_v50, %v19600_v38 }
0x1064   :  { %v4900_v11 = vpop.permute.xlu0 %4899 }
0x1065   :  { %v4986_v24 = vsel %vm253_vm1, %v4985_v35, %v4900_v11  ;;  %v4987_v58 = vrot.slane %v4900_v11, 4  ;;  %v6987_v35 = vperm.slane %v6979_v52, %v19600_v38  ;;  %v7657_v11 = vsel %vm253_vm1, %v7656_v41, %v7637_v53 }
0x1066   :  { %v4992_v28 = vperm.slane %v4986_v24, %v19590_v23 }
0x1067   :  { %v4988_v57 = vsel %vm253_vm1, %v4908_v10, %v4987_v58  ;;  %v7663_v58 = vperm.slane %v7657_v11, %v19600_v38  ;;  %v6992_v18 = vrot.slane %v6987_v35, 4 }
0x1068   :  { %v20997_v60 = vperm.slane %v4988_v57, %v19590_v23  ;;  %v4997_v4 = vrot.slane %v4992_v28, 4  ;;  %v5000_v16 = vsel %vm253_vm1, %v4992_v28, %v4999_v15 }
0x1069   :  { %v21014_v29 = vperm.slane %v5000_v16, %v19600_v38  ;;  %v6993_v15 = vsel %vm253_vm1, %v6992_v18, %v6975_v3 }
0x106a   :  { %v5009_v56 = vrot.slane %v20997_v60, 4  ;;  %v4998_v9 = vsel %vm253_vm1, %v4997_v4, %v4980_v13  ;;  %v7672_v13 = vrot.slane %v7667_v8, 4  ;;  %v5012_v34 = vsel %vm253_vm1, %v20997_v60, %v5011_v27 }
0x106b   :  { %v21005_v30 = vperm.slane %v4998_v9, %v19600_v38  ;;  %v6994_v9 = vrot.slane %v6975_v3, 4  ;;  %v5020_v54 = vperm.slane %v5012_v34, %v19600_v38  ;;  %v5023_v53 = vrot.slane %v21014_v29, 4 }
0x106c   :  { %v5010_v40 = vsel %vm253_vm1, %v5009_v56, %v21000_v63  ;;  %v6988_v56 = vrot.slane %v20927_v1, 4 }
0x106d   :  { %7812 = vxpose.xlu0.b32.start.end [1/1] (short) (narrow) %v21005_v30, 8  ;;  %v5016_v2 = vperm.slane %v5010_v40, %v19600_v38  ;;  %v6995_v0 = vsel %vm253_vm1, %v6987_v35, %v6994_v9  ;;  %v5027_v12 = vrot.slane %v5020_v54, 4  ;;  %v5024_v55 = vsel %vm253_vm1, 0.0, %v5023_v53 }
0x106e   :  { %v6989_v1 = vsel %vm253_vm1, %v6988_v56, %v20924_v36  ;;  %v5021_v36 = vrot.slane %v21005_v30, 4  ;;  %v21073_v30 = vld [vmem:[%s20789_s9 + $0x1] ss:$0 sm:$0xff] }
0x106f   :  { %7940 = vxpose.xlu2.b32.start.end [1/1] (short) (narrow) %v5016_v2, 8  ;;  %v5025_v21 = vrot.slane %v5016_v2, 4  ;;  %v5028_v51 = vsel %vm253_vm1, 0.0, %v5027_v12 }
0x1070   :  { %v5022_v48 = vsel %vm253_vm1, 0.0, %v5021_v36 }
0x1071   :  { %v5026_v19 = vsel %vm253_vm1, 0.0, %v5025_v21  ;;  %v7668_v21 = vrot.slane %v7663_v58, 4 }
0x1075   :  { %7972 = vxpose.xlu0.b32.start.end [1/1] (short) (narrow) %v5026_v19, 8 }
0x107d   :  { %7876 = vxpose.xlu0.b32.start.end [1/1] (short) (narrow) %v21014_v29, 8 }
0x109a   :  { %v18905_v10 = vpop.trf.xlu1 }
0x109b   :  { %v18909_v44 = vunpack.i.h.bf16 %v18905_v10  ;;  %v18906_v17 = vunpack.i.l.bf16 %v18905_v10 }
0x109d   :  { %v7626_v62 = vrot.slane %v18909_v44, 4  ;;  %v7621_v39 = vsel %vm253_vm1, %v7620_v20, %v18906_v17 }
0x109e   :  { %v7625_v43 = vperm.slane %v7621_v39, %v19590_v23 }
0x109f   :  { %v7627_v22 = vsel %vm253_vm1, %v7626_v62, %v18916_v45 }
0x10a0   :  { %v7631_v42 = vperm.slane %v7627_v22, %v19590_v23  ;;  %v7646_v24 = vrot.slane %v7625_v43, 4 }
0x10a2   :  { %v7647_v28 = vsel %vm253_vm1, %v7631_v42, %v7646_v24  ;;  %v7644_v47 = vrot.slane %v7631_v42, 4 }
0x10a3   :  { %v7655_v57 = vperm.slane %v7647_v28, %v19600_v38 }
0x10a4   :  { %v7645_v4 = vsel %vm253_vm1, %v7644_v47, %v7625_v43 }
0x10a5   :  { %v7673_v40 = vsel %vm253_vm1, %v7672_v13, %v7655_v57  ;;  %v7651_v2 = vperm.slane %v7645_v4, %v19600_v38  ;;  %v7674_v19 = vrot.slane %v7655_v57, 4 }
0x10a6   :  { %7740 = vmatpush.msrb.mxu2 %v7673_v40 }
0x10a7   :  { %18326 = vmatmul.msk.f32.vlgmr.msrb.gmra.mxu2 %vm1367_vm2, %v6993_v15  ;;  %v7669_v16 = vsel %vm253_vm1, %v7668_v21, %v7651_v2  ;;  %v7675_v33 = vsel %vm253_vm1, %v7667_v8, %v7674_v19  ;;  %v7670_v52 = vrot.slane %v7651_v2, 4 }
0x10a8   :  { %7694 = vmatpush.msrb.mxu0 %v7669_v16  ;;  %7763 = vmatpush.msrb.mxu3 %v7675_v33 }
0x10a9   :  { %18324 = vmatmul.msk.f32.vlgmr.msrb.gmra.mxu0 %vm1367_vm2, %v6989_v1  ;;  %18327 = vmatmul.msk.f32.vlgmr.msrb.gmra.mxu3 %vm1367_vm2, %v6995_v0  ;;  %v7671_v44 = vsel %vm253_vm1, %v7663_v58, %v7670_v52 }
0x10d9   :  { %v21070_v63 = vpop.f32.mrf.mxu2 }
0x10e0   :  { %5886 = vadd.xlane.f32.xlu2 %v5885_v14 }
0x1108   :  { %v7956_v10 = vpop.trf.xlu2 }
0x1109   :  { %7844 = vxpose.xlu2.b32.start.end [1/1] (short) (narrow) %v5022_v48, 8  ;;  %v8094_v19 = vrot.slane %v7956_v10, 4 }
0x1111   :  { %8036 = vxpose.xlu2.b32.start.end [1/1] (short) (narrow) %v5028_v51, 8  ;;  %v7828_v50 = vpop.trf.xlu0 }
0x1112   :  { %v8070_v8 = vrot.slane %v7828_v50, 4 }
0x1119   :  { %7908 = vxpose.xlu2.b32.start.end [1/1] (short) (narrow) %v5024_v55, 8  ;;  %v7988_v62 = vpop.trf.xlu0 }
0x111a   :  { %v8106_v4 = vrot.slane %v7988_v62, 4 }
0x1121   :  { %v7892_v43 = vpop.trf.xlu0 }
0x1122   :  { %v8068_v22 = vrot.slane %v7892_v43, 4  ;;  %v8071_v3 = vsel %vm253_vm1, %v7892_v43, %v8070_v8 }
0x1123   :  { %v8079_v47 = vperm.slane %v8071_v3, %v19590_v23 }
0x1124   :  { %v8069_v24 = vsel %vm253_vm1, %v8068_v22, %v7828_v50 }
0x1125   :  { %v8075_v28 = vperm.slane %v8069_v24, %v19590_v23  ;;  %v8130_v37 = vrot.slane %v8079_v47, 4 }
0x1127   :  { %v8118_v27 = vrot.slane %v8075_v28, 4 }
0x112a   :  { %v7742_v5 = vpop.f32.mrf.mxu2 }
0x112b   :  { %v21076_v60 = vadd.f32 %v21073_v30, %v7742_v5 }
0x112d   :  { %v7774_v20 = vsel %vm1367_vm2, %v21076_v60, -inf }
0x112e   :  { %7775 = vmax.xlane.f32.xlu1 %v7774_v20 }
0x1153   :  { %v5887_v59 = vpop.xlane.xlu2 %5886 }
0x1154   :  { %19357 = vrcp.f32 %v5887_v59 }
0x115a   :  { %v19358_v29 = vpop.eup %19357 }
0x115b   :  { %v5899_v41 = vmul.f32 %v19358_v29, %v19356_v49 }
0x115d   :  { %18318 = vmatpush.xpose.msk.msrb.mxu1 %vm1367_vm2, %v5899_v41 }
0x1160   :  { %18319 = vmatmul.msk.f32.vlgmr.msrb.gmra.mxu1 %vm1367_vm2, %v20954_v26 }
0x1161   :  { %7717 = vmatpush.msra.mxu1 %v7671_v44 }
0x1168   :  { %8004 = vxpose.xlu1.b32.start.end [1/1] (short) (narrow) %v5020_v54, 8  ;;  %18325 = vmatmul.msk.f32.vlgmr.msra.gmra.mxu1 %vm1367_vm2, %v20932_v25 }
0x11a1   :  { %v21096_v56 = vpop.xlane.xlu1 %7775 }
0x11a2   :  { %v7860_v17 = vpop.trf.xlu2 }
0x11a3   :  { %v8082_v35 = vrot.slane %v7860_v17, 4 }
0x11aa   :  { %v8052_v45 = vpop.trf.xlu2 }
0x11ab   :  { %v8104_v9 = vrot.slane %v8052_v45, 4  ;;  %v8107_v40 = vsel %vm253_vm1, %v8052_v45, %v8106_v4  ;;  %v6683_v4 = vpop.f32.mrf.mxu3 }
0x11ac   :  { %v8115_v21 = vperm.slane %v8107_v40, %v19590_v23 }
0x11ad   :  { %v8105_v2 = vsel %vm253_vm1, %v8104_v9, %v7988_v62 }
0x11ae   :  { %v8111_v15 = vperm.slane %v8105_v2, %v19590_v23  ;;  %v8152_v61 = vrot.slane %v8115_v21, 4 }
0x11b0   :  { %v8140_v14 = vrot.slane %v8111_v15, 4 }
0x11b2   :  { %v7924_v39 = vpop.trf.xlu2 }
0x11b3   :  { %v8080_v7 = vrot.slane %v7924_v39, 4  ;;  %v8083_v42 = vsel %vm253_vm1, %v7924_v39, %v8082_v35 }
0x11b4   :  { %v8091_v25 = vperm.slane %v8083_v42, %v19590_v23 }
0x11b5   :  { %v8081_v11 = vsel %vm253_vm1, %v8080_v7, %v7860_v17 }
0x11b6   :  { %v8087_v26 = vperm.slane %v8081_v11, %v19590_v23  ;;  %v8128_v18 = vrot.slane %v8091_v25, 4  ;;  %v8131_v5 = vsel %vm253_vm1, %v8091_v25, %v8130_v37 }
0x11b7   :  { %v8139_v45 = vperm.slane %v8131_v5, %v19600_v38 }
0x11b8   :  { %v8116_v58 = vrot.slane %v8087_v26, 4  ;;  %v8129_v13 = vsel %vm253_vm1, %v8128_v18, %v8079_v47  ;;  %v8119_v44 = vsel %vm253_vm1, %v8087_v26, %v8118_v27 }
0x11b9   :  { %v8135_v0 = vperm.slane %v8129_v13, %v19600_v38  ;;  %v8127_v22 = vperm.slane %v8119_v44, %v19600_v38  ;;  %v8178_v24 = vrot.slane %v8139_v45, 4 }
0x11ba   :  { %v8117_v57 = vsel %vm253_vm1, %v8116_v58, %v8075_v28  ;;  %v6605_v28 = vpop.f32.mrf.mxu0 }
0x11bb   :  { %v8123_v12 = vperm.slane %v8117_v57, %v19600_v38  ;;  %v8174_v53 = vrot.slane %v8135_v0, 4  ;;  %v8170_v3 = vrot.slane %v8127_v22, 4  ;;  %v18917_v5 = vpack.i.bf16 %v6683_v4, %v6605_v28 }
0x11bd   :  { %v8166_v50 = vrot.slane %v8123_v12, 4 }
0x11c2   :  { %v7696_v47 = vpop.f32.mrf.mxu0 }
0x11c3   :  { %v7697_v57 = vadd.f32 %v21073_v30, %v7696_v47 }
0x11c5   :  { %v7768_v13 = vsel %vm1367_vm2, %v7697_v57, -inf }
0x11dd   :  { %v21130_v18 = vpop.f32.mrf.mxu1 }
0x11e5   :  { %v7719_v9 = vpop.f32.mrf.mxu1 }
0x11e6   :  { %v7720_v40 = vadd.f32 %v21073_v30, %v7719_v9 }
0x11e8   :  { %v7771_v2 = vsel %vm1367_vm2, %v7720_v40, -inf }
0x120c   :  { %v8020_v16 = vpop.trf.xlu1 }
0x120d   :  { %v8092_v33 = vrot.slane %v8020_v16, 4  ;;  %v8095_v1 = vsel %vm253_vm1, %v8020_v16, %v8094_v19 }
0x120e   :  { %v8103_v49 = vperm.slane %v8095_v1, %v19590_v23 }
0x120f   :  { %v8093_v36 = vsel %vm253_vm1, %v8092_v33, %v7956_v10 }
0x1210   :  { %v8099_v34 = vperm.slane %v8093_v36, %v19590_v23  ;;  %v8153_v48 = vsel %vm253_vm1, %v8152_v61, %v8103_v49  ;;  %v8154_v54 = vrot.slane %v8103_v49, 4 }
0x1211   :  { %v8159_v51 = vperm.slane %v8153_v48, %v19600_v38 }
0x1212   :  { %v8142_v55 = vrot.slane %v8099_v34, 4  ;;  %v8155_v20 = vsel %vm253_vm1, %v8115_v21, %v8154_v54  ;;  %v8141_v59 = vsel %vm253_vm1, %v8140_v14, %v8099_v34  ;;  %v7765_v21 = vpop.f32.mrf.mxu3  ;;  %v7782_v14 = vsub.f32 %v21076_v60, %v21096_v56 }
0x1213   :  { %v8163_v52 = vperm.slane %v8155_v20, %v19600_v38  ;;  %v8147_v10 = vperm.slane %v8141_v59, %v19600_v38  ;;  %v8172_v29 = vrot.slane %v8159_v51, 4  ;;  %v21116_v41 = vsel %vm253_vm1, %v8159_v51, %v8174_v53 }
0x1214   :  { %v8143_v17 = vsel %vm253_vm1, %v8111_v15, %v8142_v55  ;;  %v7766_v19 = vadd.f32 %v21073_v30, %v7765_v21  ;;  %v7788_v30 = vmul.f32 1.442695, %v7782_v14 }
0x1215   :  { %v8176_v62 = vrot.slane %v8163_v52, 4  ;;  %v8151_v39 = vperm.slane %v8143_v17, %v19600_v38  ;;  %v8164_v7 = vrot.slane %v8147_v10, 4  ;;  %v8167_v43 = vsel %vm253_vm1, %v8147_v10, %v8166_v50 }
0x1216   :  { %v8173_v35 = vsel %vm253_vm1, %v8172_v29, %v8135_v0  ;;  %v8179_v25 = vsel %vm253_vm1, %v8163_v52, %v8178_v24  ;;  %v7777_v15 = vsel %vm1367_vm2, %v7766_v19, -inf }
0x1217   :  { %v8177_v11 = vsel %vm253_vm1, %v8176_v62, %v8139_v45  ;;  %v8168_v8 = vrot.slane %v8151_v39, 4  ;;  %v8165_v42 = vsel %vm253_vm1, %v8164_v7, %v8123_v12  ;;  %v8171_v58 = vsel %vm253_vm1, %v8151_v39, %v8170_v3 }
0x1218   :  { %8372 = vxpose.xlu0.b32.start.end [1/1] (short) (narrow) %v8177_v11, 8 }
0x1219   :  { %v8169_v26 = vsel %vm253_vm1, %v8168_v8, %v8127_v22 }
0x121a   :  { %8244 = vxpose.xlu2.b32.start.end [1/1] (short) (narrow) %v8169_v26, 8 }
0x1220   :  { %8404 = vxpose.xlu0.b32.start.end [1/1] (short) (narrow) %v8179_v25, 8 }
0x1228   :  { %8276 = vxpose.xlu0.b32.start.end [1/1] (short) (narrow) %v8171_v58, 8 }
0x128b   :  { %7769 = vmax.xlane.f32.xlu2 %v7768_v13 }
0x1293   :  { %7772 = vmax.xlane.f32.xlu2 %v7771_v2 }
0x129b   :  { %7778 = vmax.xlane.f32.xlu2 %v7777_v15 }
0x12b3   :  { %v8260_v16 = vpop.trf.xlu2 }
0x12b4   :  { %v8436_v8 = vrot.slane %v8260_v16, 4 }
0x12bc   :  { %v8388_v20 = vpop.trf.xlu0 }
0x12bd   :  { %v8448_v28 = vrot.slane %v8388_v20, 4 }
0x12c4   :  { %8180 = vxpose.xlu2.b32.start.end [1/1] (short) (narrow) %v8165_v42, 8  ;;  %v8420_v59 = vpop.trf.xlu0 }
0x12cc   :  { %v8292_v52 = vpop.trf.xlu0 }
0x12cd   :  { %v8442_v42 = vrot.slane %v8292_v52, 4 }
0x12fe   :  { %v7770_v33 = vpop.xlane.xlu2 %7769 }
0x12ff   :  { %v7780_v1 = vsub.f32 %v7697_v57, %v7770_v33 }
0x1301   :  { %v7784_v0 = vmul.f32 1.442695, %v7780_v1 }
0x1303   :  { %19359 = vpow2.f32 %v7784_v0 }
0x1306   :  { %v7773_v61 = vpop.xlane.xlu2 %7772 }
0x1307   :  { %v7781_v37 = vsub.f32 %v7720_v40, %v7773_v61  ;;  %v8454_v40 = vrot.slane %v8420_v59, 4 }
0x1309   :  { %v19360_v49 = vpop.eup %19359  ;;  %v7786_v27 = vmul.f32 1.442695, %v7781_v37 }
0x130a   :  { %v7792_v36 = vsel %vm1367_vm2, %v19360_v49, 0.0 }
0x130b   :  { %19361 = vpow2.f32 %v7786_v27  ;;  %7793 = vadd.xlane.f32.xlu1 %v7792_v36 }
0x130c   :  { %19363 = vpow2.f32 %v7788_v30 }
0x130e   :  { %v7779_v51 = vpop.xlane.xlu2 %7778 }
0x130f   :  { %v7783_v53 = vsub.f32 %v7766_v19, %v7779_v51 }
0x1311   :  { %v19362_v34 = vpop.eup %19361  ;;  %v7790_v55 = vmul.f32 1.442695, %v7783_v53 }
0x1312   :  { %v7795_v48 = vsel %vm1367_vm2, %v19362_v34, 0.0  ;;  %v19364_v54 = vpop.eup %19363 }
0x1313   :  { %7796 = vadd.xlane.f32.xlu0 %v7795_v48  ;;  %v7798_v12 = vsel %vm1367_vm2, %v19364_v54, 0.0  ;;  %19365 = vpow2.f32 %v7790_v55 }
0x1319   :  { %v19366_v60 = vpop.eup %19365 }
0x131a   :  { %v7801_v56 = vsel %vm1367_vm2, %v19366_v60, 0.0 }
0x131b   :  { %7799 = vadd.xlane.f32.xlu0 %v7798_v12 }
0x1335   :  { %7802 = vadd.xlane.f32.xlu2 %v7801_v56 }
0x1344   :  { %8212 = vxpose.xlu0.b32.start.end [1/1] (short) (narrow) %v8167_v43, 8 }
0x1345   :  { %8308 = vxpose.xlu1.b32.start.end [1/1] (short) (narrow) %v8173_v35, 8 }
0x134c   :  { %18918 = vxpose.xlu0.b32.start.end [1/1] (short) (narrow) %v18917_v5, 8 }
0x135e   :  { %8340 = vxpose.xlu2.b32.start.end [1/1] (short) (narrow) %v21116_v41, 8  ;;  %v8196_v41 = vpop.trf.xlu2 }
0x135f   :  { %v8437_v26 = vsel %vm253_vm1, %v8436_v8, %v8196_v41 }
0x1360   :  { %v8441_v25 = vperm.slane %v8437_v26, %v19590_v23 }
0x1362   :  { %v8462_v57 = vrot.slane %v8441_v25, 4 }
0x137e   :  { %v7794_v10 = vpop.xlane.xlu1 %7793 }
0x137f   :  { %19367 = vrcp.f32 %v7794_v10 }
0x1385   :  { %v19368_v29 = vpop.eup %19367 }
0x1386   :  { %v7808_v44 = vmul.f32 %v19368_v29, %v19360_v49  ;;  %v7797_v17 = vpop.xlane.xlu0 %7796 }
0x1387   :  { %19369 = vrcp.f32 %v7797_v17 }
0x1388   :  { %18328 = vmatpush.xpose.msk.msra.mxu0 %vm1367_vm2, %v7808_v44 }
0x138d   :  { %v19370_v50 = vpop.eup %19369 }
0x138e   :  { %v7809_v45 = vmul.f32 %v19370_v50, %v19362_v34  ;;  %v7800_v62 = vpop.xlane.xlu0 %7799 }
0x138f   :  { %19371 = vrcp.f32 %v7800_v62 }
0x1390   :  { %18330 = vmatpush.xpose.msk.msrb.mxu1 %vm1367_vm2, %v7809_v45 }
0x1395   :  { %v19372_v39 = vpop.eup %19371 }
0x1396   :  { %v7810_v7 = vmul.f32 %v19372_v39, %v19364_v54 }
0x1398   :  { %18332 = vmatpush.xpose.msk.msra.mxu2 %vm1367_vm2, %v7810_v7 }
0x13a8   :  { %v7803_v43 = vpop.xlane.xlu2 %7802 }
0x13a9   :  { %19373 = vrcp.f32 %v7803_v43 }
0x13af   :  { %v19374_v35 = vpop.eup %19373 }
0x13b0   :  { %v7811_v11 = vmul.f32 %v19374_v35, %v19366_v60 }
0x13b2   :  { %18334 = vmatpush.xpose.msk.msra.mxu3 %vm1367_vm2, %v7811_v11 }
0x13e8   :  { %v8228_v22 = vpop.trf.xlu0 }
0x13e9   :  { %v8443_v24 = vsel %vm253_vm1, %v8442_v42, %v8228_v22  ;;  %v8324_v58 = vpop.trf.xlu1 }
0x13ea   :  { %v8447_v3 = vperm.slane %v8443_v24, %v19590_v23  ;;  %v8449_v47 = vsel %vm253_vm1, %v8448_v28, %v8324_v58 }
0x13eb   :  { %v8453_v9 = vperm.slane %v8449_v47, %v19590_v23 }
0x13ec   :  { %v8460_v13 = vrot.slane %v8447_v3, 4  ;;  %v8463_v4 = vsel %vm253_vm1, %v8447_v3, %v8462_v57 }
0x13ed   :  { %v8471_v19 = vperm.slane %v8463_v4, %v19600_v38  ;;  %v8474_v16 = vrot.slane %v8453_v9, 4 }
0x13ee   :  { %v8461_v2 = vsel %vm253_vm1, %v8460_v13, %v8441_v25 }
0x13ef   :  { %v8467_v1 = vperm.slane %v8461_v2, %v19600_v38  ;;  %v8490_v49 = vrot.slane %v8471_v19, 4 }
0x13f0   :  { %v18919_v53 = vpop.trf.xlu0 }
0x13f1   :  { %v8486_v30 = vrot.slane %v8467_v1, 4  ;;  %v18920_v10 = vunpack.i.l.bf16 %v18919_v53  ;;  %v18923_v17 = vunpack.i.h.bf16 %v18919_v53 }
0x13f3   :  { %v6816_v29 = vrot.slane %v18920_v10, 4  ;;  %v6826_v39 = vrot.slane %v18923_v17, 4 }
0x13f7   :  { %v8356_v21 = vpop.trf.xlu2 }
0x13f8   :  { %v8455_v15 = vsel %vm253_vm1, %v8454_v40, %v8356_v21 }
0x13f9   :  { %v8459_v33 = vperm.slane %v8455_v15, %v19590_v23 }
0x13fb   :  { %v8472_v0 = vrot.slane %v8459_v33, 4  ;;  %v8475_v61 = vsel %vm253_vm1, %v8459_v33, %v8474_v16 }
0x13fc   :  { %v8483_v37 = vperm.slane %v8475_v61, %v19600_v38 }
0x13fd   :  { %v8473_v14 = vsel %vm253_vm1, %v8472_v0, %v8453_v9 }
0x13fe   :  { %v8491_v27 = vsel %vm253_vm1, %v8483_v37, %v8490_v49  ;;  %v8479_v36 = vperm.slane %v8473_v14, %v19600_v38  ;;  %v8488_v34 = vrot.slane %v8483_v37, 4 }
0x13ff   :  { %18335 = vmatmul.msk.f32.vlgmr.msra.gmra.mxu3 %vm1367_vm2, %v8491_v27 }
0x1400   :  { %v8487_v48 = vsel %vm253_vm1, %v8479_v36, %v8486_v30  ;;  %v8489_v54 = vsel %vm253_vm1, %v8488_v34, %v8471_v19  ;;  %v8484_v12 = vrot.slane %v8479_v36, 4 }
0x1401   :  { %18331 = vmatmul.msk.f32.vlgmr.msrb.gmra.mxu1 %vm1367_vm2, %v8487_v48  ;;  %18333 = vmatmul.msk.f32.vlgmr.msra.gmra.mxu2 %vm1367_vm2, %v8489_v54 }
0x1402   :  { %v8485_v51 = vsel %vm253_vm1, %v8484_v12, %v8467_v1 }
0x1403   :  { %18329 = vmatmul.msk.f32.vlgmr.msra.gmra.mxu0 %vm1367_vm2, %v8485_v51 }
0x147e   :  { %v8541_v55 = vpop.f32.mrf.mxu1 }
0x147f   :  { %v18924_v60 = vpack.i.bf16 %v8541_v55, %v21130_v18 }
0x1480   :  { %v8515_v59 = vpop.f32.mrf.mxu0 }
0x1481   :  { %18925 = vxpose.xlu0.b32.start.end [1/1] (short) (narrow) %v18924_v60, 8 }
0x1482   :  { %v8593_v20 = vpop.f32.mrf.mxu3 }
0x1483   :  { %v18938_v52 = vpack.i.bf16 %v8593_v20, %v8515_v59 }
0x1484   :  { %v8567_v56 = vpop.f32.mrf.mxu2 }
0x1485   :  { %v18931_v5 = vpack.i.bf16 %v8567_v56, %v21070_v63 }
0x1487   :  { %18932 = vxpose.xlu2.b32.start.end [1/1] (short) (narrow) %v18931_v5, 8 }
0x148f   :  { %18939 = vxpose.xlu2.b32.start.end [1/1] (short) (narrow) %v18938_v52, 8 }
0x1520   :  { %v18933_v44 = vpop.trf.xlu2 }
0x1521   :  { %v18934_v50 = vunpack.i.l.bf16 %v18933_v44  ;;  %v18937_v41 = vunpack.i.h.bf16 %v18933_v44 }
0x1523   :  { %v6814_v45 = vrot.slane %v18934_v50, 4  ;;  %v6817_v62 = vsel %vm253_vm1, %v18934_v50, %v6816_v29  ;;  %v8724_v3 = vrot.slane %v18937_v41, 4 }
0x1524   :  { %v6825_v35 = vperm.slane %v6817_v62, %v19590_v23 }
0x1525   :  { %v6815_v18 = vsel %vm253_vm1, %v6814_v45, %v18920_v10  ;;  %v18926_v7 = vpop.trf.xlu0 }
0x1526   :  { %v6821_v63 = vperm.slane %v6815_v18, %v19590_v23  ;;  %v18930_v43 = vunpack.i.h.bf16 %v18926_v7  ;;  %v18927_v11 = vunpack.i.l.bf16 %v18926_v7  ;;  %v6852_v47 = vrot.slane %v6825_v35, 4 }
0x1528   :  { %v6840_v22 = vrot.slane %v6821_v63, 4  ;;  %v8738_v8 = vrot.slane %v18930_v43, 4  ;;  %v18940_v42 = vpop.trf.xlu2  ;;  %v6827_v26 = vsel %vm253_vm1, %v6826_v39, %v18927_v11  ;;  %v6828_v24 = vrot.slane %v18927_v11, 4 }
0x1529   :  { %v18944_v25 = vunpack.i.h.bf16 %v18940_v42  ;;  %v6833_v58 = vperm.slane %v6827_v26, %v19590_v23  ;;  %v18941_v28 = vunpack.i.l.bf16 %v18940_v42 }
0x152a   :  { %v6829_v57 = vsel %vm253_vm1, %v18923_v17, %v6828_v24 }
0x152b   :  { %v8736_v13 = vrot.slane %v18944_v25, 4  ;;  %v8739_v4 = vsel %vm253_vm1, %v18944_v25, %v8738_v8  ;;  %v6837_v9 = vperm.slane %v6829_v57, %v19590_v23  ;;  %v6838_v40 = vrot.slane %v6833_v58, 4 }
0x152c   :  { %v6841_v2 = vsel %vm253_vm1, %v6833_v58, %v6840_v22  ;;  %v8747_v21 = vperm.slane %v8739_v4, %v19590_v23  ;;  %v8725_v16 = vsel %vm253_vm1, %v8724_v3, %v18941_v28  ;;  %v8726_v33 = vrot.slane %v18941_v28, 4 }
0x152d   :  { %v6849_v19 = vperm.slane %v6841_v2, %v19600_v38  ;;  %v8737_v15 = vsel %vm253_vm1, %v8736_v13, %v18930_v43  ;;  %v6839_v1 = vsel %vm253_vm1, %v6838_v40, %v6821_v63  ;;  %v6850_v0 = vrot.slane %v6837_v9, 4 }
0x152e   :  { %v6853_v61 = vsel %vm253_vm1, %v6837_v9, %v6852_v47  ;;  %v8743_v37 = vperm.slane %v8737_v15, %v19590_v23  ;;  %v6845_v49 = vperm.slane %v6839_v1, %v19600_v38  ;;  %v8760_v36 = vrot.slane %v8747_v21, 4 }
0x152f   :  { %v6861_v14 = vperm.slane %v6853_v61, %v19600_v38  ;;  %v6864_v27 = vrot.slane %v6849_v19, 4  ;;  %v6851_v30 = vsel %vm253_vm1, %v6850_v0, %v6825_v35  ;;  %v8727_v48 = vsel %vm253_vm1, %v18937_v41, %v8726_v33 }
0x1530   :  { %v8748_v34 = vrot.slane %v8743_v37, 4  ;;  %v8731_v54 = vperm.slane %v8725_v16, %v19590_v23  ;;  %v6857_v12 = vperm.slane %v6851_v30, %v19600_v38  ;;  %v6862_v51 = vrot.slane %v6845_v49, 4 }
0x1531   :  { %v6865_v53 = vsel %vm253_vm1, 0.0, %v6864_v27  ;;  %v6868_v55 = vrot.slane %v6861_v14, 4  ;;  %v8735_v56 = vperm.slane %v8727_v48, %v19590_v23  ;;  %v6870_v50 = vsel %vm253_vm1, %v6864_v27, %v6845_v49 }
0x1532   :  { %v6875_v60 = vrot.slane %v6865_v53, 4  ;;  %v8749_v5 = vsel %vm253_vm1, %v8748_v34, %v8731_v54  ;;  %v8750_v20 = vrot.slane %v8731_v54, 4  ;;  %v6863_v52 = vsel %vm253_vm1, 0.0, %v6862_v51 }
0x1533   :  { %v8755_v59 = vperm.slane %v8749_v5, %v19600_v38  ;;  %v6866_v10 = vrot.slane %v6857_v12, 4  ;;  %v8761_v44 = vsel %vm253_vm1, %v8760_v36, %v8735_v56  ;;  %v8762_v17 = vrot.slane %v8735_v56, 4 }
0x1534   :  { %v8751_v29 = vsel %vm253_vm1, %v8743_v37, %v8750_v20  ;;  %v6869_v45 = vsel %vm253_vm1, 0.0, %v6868_v55  ;;  %v8767_v39 = vperm.slane %v8761_v44, %v19600_v38  ;;  %v6874_v41 = vperm.slane %v6870_v50, %v19590_v23 }
0x1535   :  { %v8759_v62 = vperm.slane %v8751_v29, %v19600_v38  ;;  %v8772_v18 = vrot.slane %v8755_v59, 4  ;;  %v8763_v7 = vsel %vm253_vm1, %v8747_v21, %v8762_v17  ;;  %v6876_v63 = vsel %vm253_vm1, %v6875_v60, %v6863_v52 }
0x1536   :  { %v6881_v43 = vsel %vm253_vm1, %v6868_v55, %v6857_v12  ;;  %v8771_v35 = vperm.slane %v8763_v7, %v19600_v38  ;;  %v6867_v8 = vsel %vm253_vm1, 0.0, %v6866_v10  ;;  %v6880_v42 = vperm.slane %v6876_v63, %v19590_v23 }
0x1537   :  { %v8773_v11 = vsel %vm253_vm1, 0.0, %v8772_v18  ;;  %v8774_v22 = vrot.slane %v8759_v62, 4  ;;  %v6885_v26 = vperm.slane %v6881_v43, %v19590_v23  ;;  %v6886_v24 = vrot.slane %v6869_v45, 4 }
0x1538   :  { %v6894_v25 = vrot.slane %v6874_v41, 4  ;;  %v8776_v58 = vrot.slane %v8767_v39, 4  ;;  %v8778_v28 = vrot.slane %v8771_v35, 4  ;;  %v6892_v1 = vrot.slane %v6880_v42, 4 }
0x1539   :  { %v8775_v3 = vsel %vm253_vm1, 0.0, %v8774_v22  ;;  %v8780_v47 = vsel %vm253_vm1, %v8774_v22, %v8755_v59  ;;  %v6887_v13 = vsel %vm253_vm1, %v6886_v24, %v6867_v8  ;;  %v6906_v9 = vrot.slane %v6885_v26, 4 }
0x153a   :  { %v8785_v57 = vrot.slane %v8775_v3, 4  ;;  %v6895_v4 = vsel %vm253_vm1, %v6880_v42, %v6894_v25  ;;  %v8779_v40 = vsel %vm253_vm1, 0.0, %v8778_v28  ;;  %v6891_v2 = vperm.slane %v6887_v13, %v19590_v23 }
0x153b   :  { %v6903_v21 = vperm.slane %v6895_v4, %v19600_v38  ;;  %v8784_v19 = vperm.slane %v8780_v47, %v19590_v23  ;;  %v8796_v15 = vrot.slane %v8779_v40, 4  ;;  %v8791_v33 = vsel %vm253_vm1, %v8778_v28, %v8767_v39  ;;  %v18577_v28 = vld [vmem:[%s21267_s5] sm:$0xff] }
0x153c   :  { %v8786_v16 = vsel %vm253_vm1, %v8785_v57, %v8773_v11  ;;  %v6907_v0 = vsel %vm253_vm1, %v6891_v2, %v6906_v9  ;;  %v8777_v61 = vsel %vm253_vm1, 0.0, %v8776_v58  ;;  %v8795_v49 = vperm.slane %v8791_v33, %v19590_v23  ;;  %v18578_v58 = vld [vmem:[%s21267_s5 + $0x8] sm:$0xff] }
0x153d   :  { %v8790_v37 = vperm.slane %v8786_v16, %v19590_v23  ;;  %v6915_v14 = vperm.slane %v6907_v0, %v19600_v38  ;;  %v8797_v27 = vsel %vm253_vm1, %v8796_v15, %v8777_v61  ;;  %v8804_v36 = vrot.slane %v8784_v19, 4  ;;  %8874 = vmatpush.bf16.msrb.mxu0 %v18578_v58 }
0x153e   :  { %v6893_v30 = vsel %vm253_vm1, %v6892_v1, %v6874_v41  ;;  %v8801_v34 = vperm.slane %v8797_v27, %v19590_v23  ;;  %v8816_v48 = vrot.slane %v8795_v49, 4  ;;  %v6904_v54 = vrot.slane %v6891_v2, 4 }
0x153f   :  { %v6922_v12 = vrot.slane %v6903_v21, 4  ;;  %v8805_v51 = vsel %vm253_vm1, %v8790_v37, %v8804_v36  ;;  %v6899_v53 = vperm.slane %v6893_v30, %v19600_v38  ;;  %v8802_v55 = vrot.slane %v8790_v37, 4 }
0x1540   :  { %v8813_v60 = vperm.slane %v8805_v51, %v19600_v38  ;;  %v8817_v56 = vsel %vm253_vm1, %v8801_v34, %v8816_v48  ;;  %v6920_v5 = vrot.slane %v6915_v14, 4  ;;  %v6905_v20 = vsel %vm253_vm1, %v6904_v54, %v6885_v26 }
0x1541   :  { %v8825_v59 = vperm.slane %v8817_v56, %v19600_v38  ;;  %v6911_v52 = vperm.slane %v6905_v20, %v19600_v38  ;;  %v8803_v10 = vsel %vm253_vm1, %v8802_v55, %v8784_v19  ;;  %v8814_v17 = vrot.slane %v8801_v34, 4  ;;  %8875 = vmatpush.bf16.msrb.mxu0 %v18577_v28 }
0x1542   :  { %v8832_v29 = vrot.slane %v8813_v60, 4  ;;  %v8809_v44 = vperm.slane %v8803_v10, %v19600_v38  ;;  %v6923_v50 = vsel %vm253_vm1, %v6915_v14, %v6922_v12  ;;  %v6918_v39 = vrot.slane %v6899_v53, 4 }
0x1543   :  { %v8830_v45 = vrot.slane %v8825_v59, 4  ;;  %v6916_v62 = vrot.slane %v6911_v52, 4  ;;  %v6921_v7 = vsel %vm253_vm1, %v6920_v5, %v6903_v21  ;;  %v8815_v41 = vsel %vm253_vm1, %v8814_v17, %v8795_v49  ;;  %v19279_v49 = vld [vmem:[%s21255_s28] ss:$0 sm:$0xff] }
0x1544   :  { %v8833_v18 = vsel %vm253_vm1, %v8825_v59, %v8832_v29  ;;  %v8828_v63 = vrot.slane %v8809_v44, 4  ;;  %v8821_v11 = vperm.slane %v8815_v41, %v19600_v38  ;;  %v6919_v42 = vsel %vm253_vm1, %v6911_v52, %v6918_v39 }
0x1545   :  { %v18955_v43 = vpack.i.bf16 %v8833_v18, %v6923_v50  ;;  %v8831_v35 = vsel %vm253_vm1, %v8830_v45, %v8813_v60  ;;  %v6917_v22 = vsel %vm253_vm1, %v6916_v62, %v6899_v53 }
0x1546   :  { %v18950_v8 = vpack.i.bf16 %v8831_v35, %v6921_v7  ;;  %v8826_v26 = vrot.slane %v8821_v11, 4  ;;  %v8829_v24 = vsel %vm253_vm1, %v8821_v11, %v8828_v63 }
0x1547   :  { %18956 = vrot.lane.b32.xlu0 %v18955_v43, %s19497_s15  ;;  %v18945_v25 = vpack.i.bf16 %v8829_v24, %v6919_v42  ;;  %v19280_v24 = vld [vmem:[%s21284_s18] ss:$0 sm:$0xff] }
0x1548   :  { %18951 = vrot.lane.b32.xlu2 %v18950_v8, %s23073_s27  ;;  %v8827_v3 = vsel %vm253_vm1, %v8826_v26, %v8809_v44  ;;  %s21300_s27 = sld [smem:[%s23070_s0 + %s19510_s8]]   ;;  %v18579_v44 = vld [vmem:[%s21305_s23] sm:$0xff]  ;;  %s19513_s8 = smov 26  }
0x1549   :  { %18946 = vrot.lane.b32.xlu1 %v18945_v25, %s23071_s16  ;;  %s21317_s16 = sld [smem:[%s23070_s0 + %s19512_s22]]   ;;  %s23086_s22 = smov 96  }
0x154a   :  { %s21336_s24 = sld [smem:[%s23070_s0 + %s19513_s8]]  }
0x154b   :  { %s21346_s8 = sld [smem:[%s23070_s0 + %s19514_s25]]  }
0x15a2   :  { %v18952_v47 = vpop.permute.xlu2 %18951 }
0x15a3   :  { %v18954_v40 = vunpack.i.h.bf16 %v18952_v47  ;;  %v18953_v2 = vunpack.i.l.bf16 %v18952_v47 }
0x15b9   :  { %v18957_v57 = vpop.permute.xlu0 %18956 }
0x15ba   :  { %v18959_v21 = vunpack.i.h.bf16 %v18957_v57  ;;  %v18958_v19 = vunpack.i.l.bf16 %v18957_v57  ;;  %v19281_v57 = vld [vmem:[%s21295_s13] ss:$0 sm:$0xff] }
0x15bb   :  { %v18947_v13 = vpop.permute.xlu1 %18946 }
0x15bc   :  { %v18949_v4 = vunpack.i.h.bf16 %v18947_v13  ;;  %v18948_v9 = vunpack.i.l.bf16 %v18947_v13 }
0x15be   :  { %v6936_v15 = vsel %vm1367_vm2, %v6917_v22, %v18948_v9  ;;  %v8846_v16 = vsel %vm1367_vm2, %v8827_v3, %v18949_v4 }
0x15bf   :  { %v6937_v33 = vsel %vm2539_vm3, %v6936_v15, %v18953_v2  ;;  %v8847_v1 = vsel %vm2539_vm3, %v8846_v16, %v18954_v40  ;;  %v18584_v2 = vld [vmem:[%s21323_s2 + $0x18] sm:$0xff]  ;;  %v18581_v15 = vld [vmem:[%s21323_s2] sm:$0xff] }
0x15c0   :  { %v6938_v0 = vsel %vm2541_vm4, %v6937_v33, %v18958_v19  ;;  %v8848_v61 = vsel %vm2541_vm4, %v8847_v1, %v18959_v21  ;;  %9023 = vmatpush.bf16.msrb.mxu2 %v18584_v2  ;;  %v18583_v21 = vld [vmem:[%s21323_s2 + $0x10] sm:$0xff]  ;;  %v18582_v19 = vld [vmem:[%s21323_s2 + $0x8] sm:$0xff]  ;;  %v19282_v33 = vld [vmem:[%s21300_s27] ss:$0 sm:$0xff] }
0x15c1   :  { %v8849_v37 = vpack.c.bf16 %v8848_v61, %v6938_v0 }
0x15c3   :  { %18344 = vmatmul.msk.bf16.vlgmr.msrb.gmra.mxu0 %vm185_vm0, %v8849_v37 }
0x15c4   :  { %9024 = vmatpush.bf16.msrb.mxu2 %v18583_v21 }
0x15c8   :  { %9025 = vmatpush.bf16.msrb.mxu2 %v18582_v19 }
0x15cc   :  { %9026 = vmatpush.bf16.msrb.mxu2 %v18581_v15 }
0x1640   :  { %v8877_v14 = vpop.f32.mrf.mxu0 }
0x1641   :  { %v8878_v27 = vadd.f32 %v19279_v49, %v8877_v14 }
0x1643   :  { %v8882_v36 = vadd.f32 %v8878_v27, %v20615_v6  ;;  %v19283_v27 = vld [vmem:[%s21317_s16] ss:$0 sm:$0xff] }
0x1645   :  { %v8884_v30 = vsel %vm185_vm0, %v8882_v36, 0.0 }
0x1646   :  { %8885 = vadd.xlane.f32.xlu1 %v8884_v30 }
0x1648   :  { %v8879_v34 = vpop.f32.mrf.mxu0 }
0x1649   :  { %v8880_v48 = vadd.f32 %v19279_v49, %v8879_v34 }
0x164b   :  { %v8883_v54 = vadd.f32 %v8880_v48, %v20617_v32  ;;  %v18580_v32 = vld [vmem:[%s21305_s23 + $0x8] sm:$0xff] }
0x164c   :  { %8968 = vmatpush.bf16.msra.mxu1 %v18580_v32 }
0x164d   :  { %v8887_v12 = vsel %vm185_vm0, %v8883_v54, 0.0 }
0x164e   :  { %8888 = vadd.xlane.f32.xlu2 %v8887_v12 }
0x1650   :  { %8969 = vmatpush.bf16.msra.mxu1 %v18579_v44  ;;  %v18588_v44 = vld [vmem:[%s19538_s10 + $0x18] sm:$0xff] }
0x1651   :  { %9170 = vmatpush.bf16.msra.mxu0 %v18588_v44 }
0x16b9   :  { %v8886_v51 = vpop.xlane.xlu1 %8885 }
0x16ba   :  { %v8890_v53 = vmul.f32 %v8886_v51, %v20539_v31 }
0x16bc   :  { %v8892_v6 = vsub.f32 %v8882_v36, %v8890_v53 }
0x16be   :  { %v8894_v55 = vmul.f32 %v8892_v6, %v8892_v6 }
0x16c0   :  { %v8896_v60 = vsel %vm185_vm0, %v8894_v55, 0.0 }
0x16c1   :  { %v8889_v56 = vpop.xlane.xlu2 %8888  ;;  %8897 = vadd.xlane.f32.xlu0 %v8896_v60 }
0x16c2   :  { %v8891_v5 = vmul.f32 %v8889_v56, %v20539_v31 }
0x16c4   :  { %v8893_v20 = vsub.f32 %v8883_v54, %v8891_v5 }
0x16c6   :  { %v8895_v59 = vmul.f32 %v8893_v20, %v8893_v20 }
0x16c8   :  { %v8899_v52 = vsel %vm185_vm0, %v8895_v59, 0.0 }
0x16c9   :  { %8900 = vadd.xlane.f32.xlu1 %v8899_v52 }
0x1734   :  { %v8898_v10 = vpop.xlane.xlu0 %8897 }
0x1735   :  { %v8902_v29 = vmul.f32 %v8898_v10, %v20539_v31 }
0x1737   :  { %v8904_v17 = vadd.f32 1e-05, %v8902_v29  ;;  %v18586_v29 = vld [vmem:[%s19533_s6 + $0x18] sm:$0xff] }
0x1738   :  { %9141 = vmatpush.bf16.msrb.mxu3 %v18586_v29 }
0x1739   :  { %19375 = vrsqrt.f32 %v8904_v17  ;;  %vm8912_vm13 = vweird.f32 %v8904_v17 }
0x173c   :  { %v8901_v50 = vpop.xlane.xlu1 %8900 }
0x173d   :  { %v8903_v45 = vmul.f32 %v8901_v50, %v20539_v31 }
0x173f   :  { %v19376_v62 = vpop.eup %19375  ;;  %v8905_v39 = vadd.f32 1e-05, %v8903_v45  ;;  %v18585_v45 = vld [vmem:[%s19533_s6 + $0x10] sm:$0xff]  ;;  %s23083_s6 = smov 104  }
0x1740   :  { %v8907_v18 = vmul.f32 %v19376_v62, %v8904_v17  ;;  %vm8913_vm12 = vweird.f32 %v19376_v62  ;;  %9142 = vmatpush.bf16.msrb.mxu3 %v18585_v45 }
0x1741   :  { %19377 = vrsqrt.f32 %v8905_v39  ;;  %vm8914_vm14 = vmor %vm8912_vm13, %vm8913_vm12  ;;  %vm8922_vm5 = vweird.f32 %v8905_v39 }
0x1742   :  { %v8908_v7 = vmul.f32 %v19376_v62, %v8907_v18 }
0x1744   :  { %v8909_v41 = vmul.f32 0.5, %v8908_v7 }
0x1746   :  { %v8910_v63 = vsub.f32 1.5, %v8909_v41 }
0x1747   :  { %v19378_v43 = vpop.eup %19377 }
0x1748   :  { %v8911_v35 = vmul.f32 %v19376_v62, %v8910_v63  ;;  %v8917_v11 = vmul.f32 %v19378_v43, %v8905_v39  ;;  %vm8923_vm15 = vweird.f32 %v19378_v43 }
0x1749   :  { %vm8924_vm6 = vmor %vm8922_vm5, %vm8923_vm15 }
0x174a   :  { %v8918_v22 = vmul.f32 %v19378_v43, %v8917_v11  ;;  %v8915_v8 = vsel %vm8914_vm14, %v19376_v62, %v8911_v35  ;;  %v18587_v62 = vld [vmem:[%s19538_s10 + $0x10] sm:$0xff]  ;;  %s23084_s10 = smov 112  }
0x174b   :  { %v8926_v25 = vmul.f32 %v8915_v8, %v8892_v6  ;;  %9171 = vmatpush.bf16.msra.mxu0 %v18587_v62 }
0x174c   :  { %v8919_v42 = vmul.f32 0.5, %v8918_v22 }
0x174d   :  { %v8931_v28 = vmul.f32 %v19280_v24, %v8926_v25 }
0x174e   :  { %v8920_v26 = vsub.f32 1.5, %v8919_v42 }
0x174f   :  { %v8936_v4 = vadd.f32 %v19281_v57, %v8931_v28  ;;  %v19284_v28 = vld [vmem:[%s21336_s24] ss:$0 sm:$0xff] }
0x1750   :  { %v8921_v3 = vmul.f32 %v19378_v43, %v8920_v26 }
0x1752   :  { %v8925_v58 = vsel %vm8924_vm6, %v19378_v43, %v8921_v3 }
0x1753   :  { %v8927_v47 = vmul.f32 %v8925_v58, %v8893_v20 }
0x1755   :  { %v8932_v13 = vmul.f32 %v19280_v24, %v8927_v47 }
0x1757   :  { %v8937_v9 = vadd.f32 %v19281_v57, %v8932_v13 }
0x1759   :  { %v8943_v40 = vpack.c.bf16 %v8937_v9, %v8936_v4 }
0x175b   :  { %18353 = vmatmul.msk.bf16.vlgmr.msra.gmra.mxu1 %vm185_vm0, %v8943_v40  ;;  %v19285_v40 = vld [vmem:[%s21346_s8] ss:$0 sm:$0xff] }
0x17d8   :  { %v8971_v16 = vpop.f32.mrf.mxu1 }
0x17d9   :  { %v8972_v1 = vadd.f32 %v19282_v33, %v8971_v16  ;;  %v19286_v16 = vld [vmem:[%s19554_s21 + $0x1] ss:$0 sm:$0xff]  ;;  %s23088_s21 = smov 8  }
0x17db   :  { %v8976_v37 = vmax.f32 %v8972_v1, 0.0 }
0x17e0   :  { %v8973_v0 = vpop.f32.mrf.mxu1 }
0x17e1   :  { %v8974_v61 = vadd.f32 %v19282_v33, %v8973_v0  ;;  %v19287_v0 = vld [vmem:[%s19548_s17 + $0x1] ss:$0 sm:$0xff]  ;;  %s23087_s17 = smov 16  }
0x17e3   :  { %v8977_v49 = vmax.f32 %v8974_v61, 0.0 }
0x17e5   :  { %v8987_v14 = vpack.c.bf16 %v8977_v49, %v8976_v37 }
0x17e7   :  { %18370 = vmatmul.msk.bf16.vlgmr.msrb.gmra.mxu2 %vm9015_vm7, %v8987_v14 }
0x186a   :  { %v9028_v36 = vpop.f32.mrf.mxu2 }
0x186b   :  { %v9029_v30 = vadd.f32 %v19283_v27, %v9028_v36 }
0x186d   :  { %v9033_v34 = vadd.f32 %v9029_v30, %v8936_v4 }
0x186f   :  { %v9037_v48 = vsel %vm185_vm0, %v9033_v34, 0.0 }
0x1870   :  { %9038 = vadd.xlane.f32.xlu1 %v9037_v48 }
0x1872   :  { %v9030_v54 = vpop.f32.mrf.mxu2 }
0x1873   :  { %v9031_v12 = vadd.f32 %v19283_v27, %v9030_v54 }
0x1875   :  { %v9034_v51 = vadd.f32 %v9031_v12, %v8937_v9 }
0x1877   :  { %v9040_v53 = vsel %vm185_vm0, %v9034_v51, 0.0 }
0x1878   :  { %9041 = vadd.xlane.f32.xlu1 %v9040_v53 }
0x18e3   :  { %v9039_v6 = vpop.xlane.xlu1 %9038 }
0x18e4   :  { %v9043_v55 = vmul.f32 %v9039_v6, %v20539_v31 }
0x18e6   :  { %v9045_v60 = vsub.f32 %v9033_v34, %v9043_v55 }
0x18e8   :  { %v9047_v56 = vmul.f32 %v9045_v60, %v9045_v60 }
0x18ea   :  { %v9049_v5 = vsel %vm185_vm0, %v9047_v56, 0.0 }
0x18eb   :  { %9050 = vadd.xlane.f32.xlu2 %v9049_v5  ;;  %v9042_v20 = vpop.xlane.xlu1 %9041 }
0x18ec   :  { %v9044_v59 = vmul.f32 %v9042_v20, %v20539_v31 }
0x18ee   :  { %v9046_v52 = vsub.f32 %v9034_v51, %v9044_v59 }
0x18f0   :  { %v9048_v32 = vmul.f32 %v9046_v52, %v9046_v52 }
0x18f2   :  { %v9052_v10 = vsel %vm185_vm0, %v9048_v32, 0.0 }
0x18f3   :  { %9053 = vadd.xlane.f32.xlu1 %v9052_v10 }
0x195e   :  { %v9051_v17 = vpop.xlane.xlu2 %9050 }
0x195f   :  { %v9055_v50 = vmul.f32 %v9051_v17, %v20539_v31 }
0x1961   :  { %v9057_v39 = vadd.f32 1e-05, %v9055_v50 }
0x1963   :  { %19379 = vrsqrt.f32 %v9057_v39  ;;  %vm9065_vm9 = vweird.f32 %v9057_v39 }
0x1966   :  { %v9054_v18 = vpop.xlane.xlu1 %9053 }
0x1967   :  { %v9056_v7 = vmul.f32 %v9054_v18, %v20539_v31 }
0x1969   :  { %v19380_v41 = vpop.eup %19379  ;;  %v9058_v63 = vadd.f32 1e-05, %v9056_v7 }
0x196a   :  { %v9060_v43 = vmul.f32 %v19380_v41, %v9057_v39  ;;  %vm9066_vm8 = vweird.f32 %v19380_v41 }
0x196b   :  { %19381 = vrsqrt.f32 %v9058_v63  ;;  %vm9067_vm10 = vmor %vm9065_vm9, %vm9066_vm8  ;;  %vm9075_vm12 = vweird.f32 %v9058_v63 }
0x196c   :  { %v9061_v35 = vmul.f32 %v19380_v41, %v9060_v43 }
0x196e   :  { %v9062_v11 = vmul.f32 0.5, %v9061_v35 }
0x1970   :  { %v9063_v22 = vsub.f32 1.5, %v9062_v11 }
0x1971   :  { %v19382_v8 = vpop.eup %19381 }
0x1972   :  { %v9064_v42 = vmul.f32 %v19380_v41, %v9063_v22  ;;  %v9070_v26 = vmul.f32 %v19382_v8, %v9058_v63  ;;  %vm9076_vm11 = vweird.f32 %v19382_v8 }
0x1973   :  { %vm9077_vm13 = vmor %vm9075_vm12, %vm9076_vm11 }
0x1974   :  { %v9071_v24 = vmul.f32 %v19382_v8, %v9070_v26  ;;  %v9068_v25 = vsel %vm9067_vm10, %v19380_v41, %v9064_v42 }
0x1975   :  { %v9079_v47 = vmul.f32 %v9068_v25, %v9045_v60 }
0x1976   :  { %v9072_v3 = vmul.f32 0.5, %v9071_v24 }
0x1977   :  { %v9084_v4 = vmul.f32 %v19284_v28, %v9079_v47 }
0x1978   :  { %v9073_v58 = vsub.f32 1.5, %v9072_v3 }
0x1979   :  { %v21356_v21 = vadd.f32 %v19285_v40, %v9084_v4 }
0x197a   :  { %v9074_v57 = vmul.f32 %v19382_v8, %v9073_v58 }
0x197c   :  { %v9078_v13 = vsel %vm9077_vm13, %v19382_v8, %v9074_v57 }
0x197d   :  { %v9080_v9 = vmul.f32 %v9078_v13, %v9046_v52 }
0x197f   :  { %v9085_v2 = vmul.f32 %v19284_v28, %v9080_v9 }
0x1981   :  { %v21358_v19 = vadd.f32 %v19285_v40, %v9085_v2 }
0x1983   :  { %v9116_v15 = vpack.c.bf16 %v21358_v19, %v21356_v21 }
0x1985   :  { %18396 = vmatmul.msk.bf16.vlgmr.msrb.gmra.mxu3 %vm185_vm0, %v9116_v15  ;;  %18405 = vmatmul.msk.bf16.vlgmr.msra.gmra.mxu0 %vm185_vm0, %v9116_v15 }
0x1a02   :  { %v9173_v33 = vpop.f32.mrf.mxu0 }
0x1a03   :  { %v9174_v1 = vadd.f32 %v19286_v16, %v9173_v33 }
0x1a05   :  { %9324 = vrot.lane.b32.xlu1 %v9174_v1, %s23083_s6  ;;  %9318 = vrot.lane.b32.xlu0 %v9174_v1, %s23084_s10  ;;  %v9332_v48 = vrot.slane %v9174_v1, 4 }
0x1a06   :  { %9312 = vrot.lane.b32.xlu2 %v9174_v1, %s23085_s12 }
0x1a08   :  { %v9144_v61 = vpop.f32.mrf.mxu3 }
0x1a09   :  { %v21369_v37 = vadd.f32 %v19287_v0, %v9144_v61 }
0x1a0a   :  { %v9175_v27 = vpop.f32.mrf.mxu0 }
0x1a0b   :  { %v21382_v36 = vadd.f32 %v19286_v16, %v9175_v27 }
0x1a0d   :  { %9186 = vrot.lane.b32.xlu0 %v21369_v37, %s23084_s10  ;;  %v9388_v33 = vrot.slane %v21382_v36, 4 }
0x1a0e   :  { %9442 = vrot.lane.b32.xlu2 %v9174_v1, %s23086_s22 }
0x1a10   :  { %v9146_v49 = vpop.f32.mrf.mxu3 }
0x1a11   :  { %v21374_v14 = vadd.f32 %v19287_v0, %v9146_v49 }
0x1a13   :  { %9188 = vrot.lane.b32.xlu1 %v21374_v14, %s23084_s10 }
0x1a15   :  { %9180 = vrot.lane.b32.xlu0 %v21369_v37, %s23085_s12 }
0x1a16   :  { %9192 = vrot.lane.b32.xlu2 %v21369_v37, %s23083_s6 }
0x1a1d   :  { %9326 = vrot.lane.b32.xlu0 %v21382_v36, %s23083_s6 }
0x1a1e   :  { %9182 = vrot.lane.b32.xlu2 %v21374_v14, %s23085_s12 }
0x1a25   :  { %9314 = vrot.lane.b32.xlu0 %v21382_v36, %s23085_s12 }
0x1a2d   :  { %9320 = vrot.lane.b32.xlu0 %v21382_v36, %s23084_s10 }
0x1a35   :  { %9194 = vrot.lane.b32.xlu0 %v21374_v14, %s23083_s6 }
0x1a60   :  { %v9313_v30 = vpop.permute.xlu2 %9312 }
0x1a61   :  { %9446 = vrot.lane.b32.xlu1 %v9313_v30, %s23086_s22  ;;  %v9344_v34 = vrot.slane %v9313_v30, 4 }
0x1a68   :  { %v21422_v24 = vpop.permute.xlu2 %9442 }
0x1a70   :  { %v21430_v13 = vpop.permute.xlu2 %9192 }
0x1a77   :  { %v9325_v54 = vpop.permute.xlu1 %9324  ;;  %v9319_v12 = vpop.permute.xlu0 %9318 }
0x1a78   :  { %v9342_v51 = vrot.slane %v9325_v54, 4  ;;  %v9345_v53 = vsel %vm253_vm1, %v9325_v54, %v9344_v34  ;;  %v9330_v6 = vrot.slane %v9319_v12, 4  ;;  %v9333_v55 = vsel %vm253_vm1, %v9319_v12, %v9332_v48  ;;  %9450 = vrot.lane.b32.xlu1 %v9319_v12, %s23086_s22  ;;  %9454 = vrot.lane.b32.xlu0 %v9325_v54, %s23086_s22 }
0x1a79   :  { %v9353_v60 = vperm.slane %v9345_v53, %v19590_v23  ;;  %v9341_v56 = vperm.slane %v9333_v55, %v19590_v23  ;;  %v9183_v53 = vpop.permute.xlu2 %9182 }
0x1a7a   :  { %v9343_v5 = vsel %vm253_vm1, %v9342_v51, %v9313_v30  ;;  %v9331_v20 = vsel %vm253_vm1, %v9330_v6, %v9174_v1  ;;  %v9256_v1 = vrot.slane %v21374_v14, 4 }
0x1a7b   :  { %v9349_v59 = vperm.slane %v9343_v5, %v19590_v23  ;;  %v9366_v52 = vrot.slane %v9353_v60, 4  ;;  %v9337_v32 = vperm.slane %v9331_v20, %v19590_v23  ;;  %v9368_v10 = vrot.slane %v9341_v56, 4 }
0x1a7d   :  { %v9354_v29 = vrot.slane %v9349_v59, 4  ;;  %v9356_v44 = vrot.slane %v9337_v32, 4  ;;  %v9369_v17 = vsel %vm253_vm1, %v9353_v60, %v9368_v10  ;;  %v9367_v50 = vsel %vm253_vm1, %v9366_v52, %v9341_v56 }
0x1a7e   :  { %v9377_v7 = vperm.slane %v9369_v17, %v19600_v38  ;;  %v21415_v63 = vperm.slane %v9367_v50, %v19600_v38  ;;  %v9268_v10 = vrot.slane %v9183_v53, 4 }
0x1a7f   :  { %v21407_v45 = vpop.permute.xlu0 %9186  ;;  %v9357_v62 = vsel %vm253_vm1, %v9349_v59, %v9356_v44  ;;  %v9355_v39 = vsel %vm253_vm1, %v9354_v29, %v9337_v32 }
0x1a80   :  { %v9365_v18 = vperm.slane %v9357_v62, %v19600_v38  ;;  %v9361_v41 = vperm.slane %v9355_v39, %v19600_v38  ;;  %v9382_v11 = vrot.slane %v21415_v63, 4  ;;  %v9384_v30 = vrot.slane %v9377_v7, 4 }
0x1a82   :  { %v18960_v43 = vpack.i.bf16 %v9365_v18, %v9377_v7  ;;  %v9378_v35 = vrot.slane %v9361_v41, 4  ;;  %v9383_v42 = vsel %vm253_vm1, 0.0, %v9382_v11  ;;  %v9380_v3 = vrot.slane %v9365_v18, 4 }
0x1a83   :  { %v9385_v20 = vsel %vm253_vm1, 0.0, %v9384_v30 }
0x1a84   :  { %18961 = vxpose.xlu2.b32.start.end [1/1] (short) (narrow) %v18960_v43, 8  ;;  %v9379_v8 = vsel %vm253_vm1, 0.0, %v9378_v35  ;;  %v9381_v58 = vsel %vm253_vm1, 0.0, %v9380_v3  ;;  %v18967_v62 = vpack.i.bf16 %v9385_v20, %v21415_v63 }
0x1a85   :  { %v18981_v26 = vpack.i.bf16 %v9379_v8, %v9383_v42  ;;  %v18974_v57 = vpack.i.bf16 %v9381_v58, %v9361_v41  ;;  %v9189_v40 = vpop.permute.xlu1 %9188 }
0x1a86   :  { %v9254_v16 = vrot.slane %v9189_v40, 4  ;;  %v9257_v34 = vsel %vm253_vm1, %v9189_v40, %v9256_v1 }
0x1a87   :  { %v21418_v22 = vpop.permute.xlu0 %9180  ;;  %v9265_v5 = vperm.slane %v9257_v34, %v19590_v23 }
0x1a88   :  { %v9255_v12 = vsel %vm253_vm1, %v9254_v16, %v21374_v14 }
0x1a89   :  { %v9261_v29 = vperm.slane %v9255_v12, %v19590_v23  ;;  %v9292_v35 = vrot.slane %v9265_v5, 4 }
0x1a8c   :  { %18982 = vxpose.xlu2.b32.start.end [1/1] (short) (narrow) %v18981_v26, 8  ;;  %v9280_v26 = vrot.slane %v9261_v29, 4 }
0x1a8f   :  { %v21424_v25 = vpop.permute.xlu0 %9326 }
0x1a90   :  { %v9398_v4 = vrot.slane %v21424_v25, 4 }
0x1a97   :  { %v21427_v28 = vpop.permute.xlu0 %9314 }
0x1a98   :  { %v9400_v47 = vrot.slane %v21427_v28, 4  ;;  %v9399_v2 = vsel %vm253_vm1, %v9398_v4, %v21427_v28 }
0x1a99   :  { %v9405_v0 = vperm.slane %v9399_v2, %v19590_v23 }
0x1a9a   :  { %v9401_v9 = vsel %vm253_vm1, %v21424_v25, %v9400_v47  ;;  %18975 = vxpose.xlu0.b32.start.end [1/1] (short) (narrow) %v18974_v57, 8 }
0x1a9b   :  { %v9409_v15 = vperm.slane %v9401_v9, %v19590_v23  ;;  %v9410_v6 = vrot.slane %v9405_v0, 4 }
0x1a9d   :  { %v9422_v54 = vrot.slane %v9409_v15, 4 }
0x1a9f   :  { %v21441_v61 = vpop.permute.xlu0 %9320 }
0x1aa0   :  { %v9386_v49 = vrot.slane %v21441_v61, 4  ;;  %v9389_v27 = vsel %vm253_vm1, %v21441_v61, %v9388_v33 }
0x1aa1   :  { %v9397_v48 = vperm.slane %v9389_v27, %v19590_v23 }
0x1aa2   :  { %v9387_v51 = vsel %vm253_vm1, %v9386_v49, %v21382_v36 }
0x1aa3   :  { %v9393_v55 = vperm.slane %v9387_v51, %v19590_v23  ;;  %v9424_v60 = vrot.slane %v9397_v48, 4  ;;  %v9423_v56 = vsel %vm253_vm1, %v9422_v54, %v9397_v48 }
0x1aa4   :  { %v9429_v14 = vperm.slane %v9423_v56, %v19600_v38 }
0x1aa5   :  { %v9412_v59 = vrot.slane %v9393_v55, 4  ;;  %v9411_v52 = vsel %vm253_vm1, %v9410_v6, %v9393_v55  ;;  %v9425_v32 = vsel %vm253_vm1, %v9409_v15, %v9424_v60 }
0x1aa6   :  { %v9417_v44 = vperm.slane %v9411_v52, %v19600_v38  ;;  %v9433_v17 = vperm.slane %v9425_v32, %v19600_v38  ;;  %v9438_v42 = vrot.slane %v9429_v14, 4 }
0x1aa7   :  { %v9195_v50 = vpop.permute.xlu0 %9194  ;;  %v9413_v39 = vsel %vm253_vm1, %v9405_v0, %v9412_v59 }
0x1aa8   :  { %v9266_v18 = vrot.slane %v9195_v50, 4  ;;  %v9269_v7 = vsel %vm253_vm1, %v9195_v50, %v9268_v10  ;;  %v18988_v41 = vpack.i.bf16 %v9433_v17, %v9417_v44  ;;  %v9440_v43 = vrot.slane %v9433_v17, 4 }
0x1aa9   :  { %v9277_v11 = vperm.slane %v9269_v7, %v19590_v23  ;;  %v9421_v8 = vperm.slane %v9413_v39, %v19600_v38  ;;  %v9434_v63 = vrot.slane %v9417_v44, 4  ;;  %v9439_v1 = vsel %vm253_vm1, 0.0, %v9438_v42 }
0x1aaa   :  { %v9267_v3 = vsel %vm253_vm1, %v9266_v18, %v9183_v53  ;;  %18989 = vxpose.xlu0.b32.start.end [1/1] (short) (narrow) %v18988_v41, 8  ;;  %v9441_v58 = vsel %vm253_vm1, 0.0, %v9440_v43 }
0x1aab   :  { %v9273_v47 = vperm.slane %v9267_v3, %v19590_v23  ;;  %v9290_v57 = vrot.slane %v9277_v11, 4  ;;  %v9293_v4 = vsel %vm253_vm1, %v9277_v11, %v9292_v35  ;;  %v18995_v9 = vpack.i.bf16 %v9441_v58, %v9429_v14 }
0x1aac   :  { %v9301_v40 = vperm.slane %v9293_v4, %v19600_v38  ;;  %v9436_v2 = vrot.slane %v9421_v8, 4  ;;  %v9435_v54 = vsel %vm253_vm1, 0.0, %v9434_v63 }
0x1aad   :  { %v9278_v15 = vrot.slane %v9273_v47, 4  ;;  %v9281_v16 = vsel %vm253_vm1, %v9273_v47, %v9280_v26  ;;  %v9291_v33 = vsel %vm253_vm1, %v9290_v57, %v9265_v5  ;;  %18968 = vxpose.xlu1.b32.start.end [1/1] (short) (narrow) %v18967_v62, 8  ;;  %18996 = vxpose.xlu2.b32.start.end [1/1] (short) (narrow) %v18995_v9, 8  ;;  %v19002_v14 = vpack.i.bf16 %v9421_v8, %v9435_v54 }
0x1aae   :  { %v9289_v0 = vperm.slane %v9281_v16, %v19600_v38  ;;  %v9297_v49 = vperm.slane %v9291_v33, %v19600_v38  ;;  %v9308_v27 = vrot.slane %v9301_v40, 4  ;;  %v9437_v30 = vsel %vm253_vm1, 0.0, %v9436_v2 }
0x1aaf   :  { %v9279_v34 = vsel %vm253_vm1, %v9278_v15, %v9261_v29  ;;  %v19009_v48 = vpack.i.bf16 %v9439_v1, %v9437_v30 }
0x1ab0   :  { %v9285_v12 = vperm.slane %v9279_v34, %v19600_v38  ;;  %v9304_v51 = vrot.slane %v9289_v0, 4  ;;  %v9306_v53 = vrot.slane %v9297_v49, 4  ;;  %v9309_v6 = vsel %vm253_vm1, 0.0, %v9308_v27 }
0x1ab1   :  { %v11496_v55 = vsel %vm253_vm1, %v9308_v27, %v9297_v49  ;;  %v11501_v60 = vrot.slane %v9309_v6, 4 }
0x1ab2   :  { %v9302_v56 = vrot.slane %v9285_v12, 4  ;;  %v9305_v5 = vsel %vm253_vm1, 0.0, %v9304_v51  ;;  %v9307_v20 = vsel %vm253_vm1, 0.0, %v9306_v53  ;;  %v11500_v59 = vperm.slane %v11496_v55, %v19590_v23  ;;  %19010 = vxpose.xlu0.b32.start.end [1/1] (short) (narrow) %v19009_v48, 8 }
0x1ab3   :  { %v11490_v52 = vrot.slane %v9305_v5, 4  ;;  %v11502_v32 = vsel %vm253_vm1, %v11501_v60, %v9307_v20  ;;  %v11485_v10 = vsel %vm253_vm1, %v9304_v51, %v9285_v12  ;;  %v9468_v12 = vrot.slane %v21422_v24, 4 }
0x1ab4   :  { %v9303_v29 = vsel %vm253_vm1, 0.0, %v9302_v56  ;;  %v11506_v44 = vperm.slane %v11502_v32, %v19590_v23  ;;  %v11489_v17 = vperm.slane %v11485_v10, %v19590_v23  ;;  %v11521_v50 = vrot.slane %v11500_v59, 4 }
0x1ab5   :  { %19003 = vxpose.xlu1.b32.start.end [1/1] (short) (narrow) %v19002_v14, 8  ;;  %v11491_v62 = vsel %vm253_vm1, %v11490_v52, %v9303_v29 }
0x1ab6   :  { %v11495_v39 = vperm.slane %v11491_v62, %v19590_v23  ;;  %v11519_v18 = vrot.slane %v11506_v44, 4  ;;  %v11509_v7 = vrot.slane %v11489_v17, 4  ;;  %v11522_v41 = vsel %vm253_vm1, %v11506_v44, %v11521_v50 }
0x1ab7   :  { %v11530_v43 = vperm.slane %v11522_v41, %v19600_v38 }
0x1ab8   :  { %v11507_v35 = vrot.slane %v11495_v39, 4  ;;  %v11510_v11 = vsel %vm253_vm1, %v11495_v39, %v11509_v7  ;;  %v11520_v3 = vsel %vm253_vm1, %v11519_v18, %v11500_v59 }
0x1ab9   :  { %v11518_v8 = vperm.slane %v11510_v11, %v19600_v38  ;;  %v11535_v42 = vrot.slane %v11530_v43, 4  ;;  %v21506_v57 = vperm.slane %v11520_v3, %v19600_v38 }
0x1aba   :  { %v11508_v26 = vsel %vm253_vm1, %v11507_v35, %v11489_v17 }
0x1abb   :  { %v21500_v58 = vperm.slane %v11508_v26, %v19600_v38  ;;  %v11537_v63 = vrot.slane %v11518_v8, 4  ;;  %v21503_v47 = vsel %vm253_vm1, %v11535_v42, %v11518_v8 }
0x1abd   :  { %v21509_v4 = vsel %vm253_vm1, %v11530_v43, %v11537_v63  ;;  %v11533_v9 = vrot.slane %v21500_v58, 4 }
0x1abf   :  { %v21514_v40 = vsel %vm253_vm1, %v21506_v57, %v11533_v9 }
0x1ad3   :  { %v9447_v33 = vpop.permute.xlu1 %9446 }
0x1ad4   :  { %v9480_v29 = vrot.slane %v9447_v33, 4 }
0x1aea   :  { %v9455_v16 = vpop.permute.xlu0 %9454  ;;  %v9451_v54 = vpop.permute.xlu1 %9450 }
0x1aeb   :  { %v9469_v55 = vsel %vm253_vm1, %v9451_v54, %v9468_v12  ;;  %v9466_v59 = vrot.slane %v9451_v54, 4  ;;  %v9478_v44 = vrot.slane %v9455_v16, 4  ;;  %v9481_v50 = vsel %vm253_vm1, %v9455_v16, %v9480_v29 }
0x1aec   :  { %v21530_v52 = vperm.slane %v9469_v55, %v19590_v23  ;;  %v21544_v11 = vperm.slane %v9481_v50, %v19590_v23 }
0x1aed   :  { %v9467_v18 = vsel %vm253_vm1, %v9466_v59, %v21422_v24  ;;  %v9479_v35 = vsel %vm253_vm1, %v9478_v44, %v9447_v33 }
0x1aee   :  { %v9504_v7 = vrot.slane %v21530_v52, 4  ;;  %v21549_v3 = vperm.slane %v9467_v18, %v19590_v23  ;;  %v21553_v9 = vperm.slane %v9479_v35, %v19590_v23 }
0x1b1d   :  { %v21516_v2 = vpop.trf.xlu2 }
0x1b1e   :  { %v18966_v1 = vunpack.i.h.bf16 %v21516_v2  ;;  %v18963_v8 = vunpack.i.l.bf16 %v21516_v2  ;;  %v21559_v2 = vsel %vm253_vm1, %v21544_v11, %v9504_v7 }
0x1b20   :  { %v9888_v49 = vrot.slane %v18966_v1, 4 }
0x1b25   :  { %v21518_v15 = vpop.trf.xlu2 }
0x1b26   :  { %v18987_v0 = vunpack.i.h.bf16 %v21518_v15  ;;  %v18984_v42 = vunpack.i.l.bf16 %v21518_v15 }
0x1b28   :  { %v9902_v27 = vrot.slane %v18987_v0, 4 }
0x1b3e   :  { %v18976_v30 = vpop.trf.xlu0 }
0x1b3f   :  { %v18980_v34 = vunpack.i.h.bf16 %v18976_v30  ;;  %v18977_v48 = vunpack.i.l.bf16 %v18976_v30 }
0x1b41   :  { %v9900_v51 = vrot.slane %v18980_v34, 4  ;;  %v9890_v53 = vrot.slane %v18977_v48, 4  ;;  %v9903_v6 = vsel %vm253_vm1, %v18980_v34, %v9902_v27  ;;  %v9889_v60 = vsel %vm253_vm1, %v9888_v49, %v18977_v48 }
0x1b42   :  { %v9911_v20 = vperm.slane %v9903_v6, %v19590_v23  ;;  %v9895_v32 = vperm.slane %v9889_v60, %v19590_v23  ;;  %v9912_v49 = vrot.slane %v18963_v8, 4  ;;  %v9926_v27 = vrot.slane %v18984_v42, 4 }
0x1b43   :  { %v9891_v56 = vsel %vm253_vm1, %v18966_v1, %v9890_v53  ;;  %v9901_v5 = vsel %vm253_vm1, %v9900_v51, %v18987_v0 }
0x1b44   :  { %v9899_v14 = vperm.slane %v9891_v56, %v19590_v23  ;;  %v9907_v17 = vperm.slane %v9901_v5, %v19590_v23  ;;  %v9948_v62 = vrot.slane %v9911_v20, 4  ;;  %v9938_v41 = vrot.slane %v9895_v32, 4 }
0x1b46   :  { %v21534_v10 = vpop.trf.xlu2  ;;  %v9950_v43 = vrot.slane %v9899_v14, 4  ;;  %v9936_v26 = vrot.slane %v9907_v17, 4  ;;  %v9949_v24 = vsel %vm253_vm1, %v9948_v62, %v9899_v14  ;;  %v9939_v1 = vsel %vm253_vm1, %v9907_v17, %v9938_v41 }
0x1b47   :  { %v18998_v39 = vunpack.i.l.bf16 %v21534_v10  ;;  %v19001_v0 = vunpack.i.h.bf16 %v21534_v10  ;;  %v21563_v30 = vperm.slane %v9949_v24, %v19600_v38  ;;  %v21571_v53 = vperm.slane %v9939_v1, %v19600_v38 }
0x1b48   :  { %v9951_v33 = vsel %vm253_vm1, %v9911_v20, %v9950_v43  ;;  %v9937_v34 = vsel %vm253_vm1, %v9936_v26, %v9895_v32 }
0x1b49   :  { %v11821_v63 = vrot.slane %v18998_v39, 4  ;;  %v21568_v51 = vperm.slane %v9951_v33, %v19600_v38  ;;  %v11831_v56 = vrot.slane %v19001_v0, 4  ;;  %v21575_v20 = vperm.slane %v9937_v34, %v19600_v38 }
0x1b4a   :  { %v9994_v50 = vrot.slane %v21563_v30, 4  ;;  %v9990_v41 = vrot.slane %v21571_v53, 4 }
0x1b4b   :  { %v9998_v7 = vrot.slane %v21568_v51, 4 }
0x1b4e   :  { %v18990_v16 = vpop.trf.xlu0 }
0x1b4f   :  { %v18994_v15 = vunpack.i.h.bf16 %v18990_v16  ;;  %v18991_v60 = vunpack.i.l.bf16 %v18990_v16 }
0x1b51   :  { %v18969_v48 = vpop.trf.xlu1  ;;  %v11819_v54 = vrot.slane %v18994_v15, 4  ;;  %v11822_v12 = vsel %vm253_vm1, %v18994_v15, %v11821_v63  ;;  %v11797_v26 = vrot.slane %v18991_v60, 4 }
0x1b52   :  { %v18973_v6 = vunpack.i.h.bf16 %v18969_v48  ;;  %v18970_v55 = vunpack.i.l.bf16 %v18969_v48  ;;  %v21582_v17 = vperm.slane %v11822_v12, %v19590_v23 }
0x1b53   :  { %v11820_v5 = vsel %vm253_vm1, %v11819_v54, %v18998_v39 }
0x1b54   :  { %v9924_v59 = vrot.slane %v18973_v6, 4  ;;  %v9913_v32 = vsel %vm253_vm1, %v9912_v49, %v18970_v55  ;;  %v9914_v14 = vrot.slane %v18970_v55, 4  ;;  %v9927_v10 = vsel %vm253_vm1, %v18973_v6, %v9926_v27 }
0x1b55   :  { %v9919_v29 = vperm.slane %v9913_v32, %v19590_v23  ;;  %v9935_v44 = vperm.slane %v9927_v10, %v19590_v23  ;;  %v21590_v43 = vperm.slane %v11820_v5, %v19590_v23 }
0x1b56   :  { %v9915_v62 = vsel %vm253_vm1, %v18963_v8, %v9914_v14  ;;  %v9925_v39 = vsel %vm253_vm1, %v9924_v59, %v18984_v42  ;;  %v19011_v18 = vpop.trf.xlu0  ;;  %v11881_v42 = vrot.slane %v21582_v17, 4 }
0x1b57   :  { %v19015_v35 = vunpack.i.h.bf16 %v19011_v18  ;;  %v19012_v63 = vunpack.i.l.bf16 %v19011_v18  ;;  %v9923_v24 = vperm.slane %v9915_v62, %v19590_v23  ;;  %v9972_v16 = vrot.slane %v9935_v44, 4 }
0x1b58   :  { %v9931_v8 = vperm.slane %v9925_v39, %v19590_v23  ;;  %v9962_v15 = vrot.slane %v9919_v29, 4  ;;  %v11869_v34 = vrot.slane %v21590_v43, 4 }
0x1b59   :  { %v19004_v33 = vpop.trf.xlu1  ;;  %v11833_v1 = vrot.slane %v19015_v35, 4  ;;  %v11832_v48 = vsel %vm253_vm1, %v11831_v56, %v19015_v35  ;;  %v11807_v54 = vrot.slane %v19012_v63, 4  ;;  %v9973_v12 = vsel %vm253_vm1, %v9972_v16, %v9923_v24 }
0x1b5a   :  { %v19008_v49 = vunpack.i.h.bf16 %v19004_v33  ;;  %v19005_v27 = vunpack.i.l.bf16 %v19004_v33  ;;  %v9974_v59 = vrot.slane %v9923_v24, 4  ;;  %v21603_v62 = vperm.slane %v9973_v12, %v19600_v38 }
0x1b5b   :  { %v11834_v14 = vsel %vm253_vm1, %v19001_v0, %v11833_v1  ;;  %v9963_v35 = vsel %vm253_vm1, %v9931_v8, %v9962_v15  ;;  %v11838_v33 = vperm.slane %v11832_v48, %v19590_v23 }
0x1b5c   :  { %v11795_v6 = vrot.slane %v19008_v49, 4  ;;  %v11798_v55 = vsel %vm253_vm1, %v19008_v49, %v11797_v26  ;;  %v11809_v5 = vrot.slane %v19005_v27, 4  ;;  %v11808_v10 = vsel %vm253_vm1, %v11807_v54, %v19005_v27 }
0x1b5d   :  { %v11806_v32 = vperm.slane %v11798_v55, %v19590_v23  ;;  %v9975_v18 = vsel %vm253_vm1, %v9935_v44, %v9974_v59  ;;  %v9995_v1 = vsel %vm253_vm1, %v21603_v62, %v9994_v50  ;;  %v9960_v49 = vrot.slane %v9931_v8, 4 }
0x1b5e   :  { %v11796_v39 = vsel %vm253_vm1, %v11795_v6, %v18991_v60  ;;  %v11810_v56 = vsel %vm253_vm1, %v19012_v63, %v11809_v5  ;;  %v9983_v0 = vperm.slane %v9975_v18, %v19600_v38  ;;  %v9971_v60 = vperm.slane %v9963_v35, %v19600_v38 }
0x1b5f   :  { %v11802_v26 = vperm.slane %v11796_v39, %v19590_v23  ;;  %v11857_v24 = vrot.slane %v11806_v32, 4  ;;  %v11818_v16 = vperm.slane %v11810_v56, %v19590_v23  ;;  %v11814_v15 = vperm.slane %v11808_v10, %v19590_v23 }
0x1b60   :  { %v9999_v63 = vsel %vm253_vm1, %v9983_v0, %v9998_v7  ;;  %v9996_v44 = vrot.slane %v9983_v0, 4  ;;  %v11842_v27 = vperm.slane %v11834_v14, %v19590_v23  ;;  %v9991_v12 = vsel %vm253_vm1, %v9971_v60, %v9990_v41 }
0x1b61   :  { %v19037_v54 = vpack.i.bf16 %v9995_v1, %v9999_v63  ;;  %v9961_v6 = vsel %vm253_vm1, %v9960_v49, %v9919_v29  ;;  %v9988_v55 = vrot.slane %v9971_v60, 4  ;;  %v11845_v5 = vrot.slane %v11802_v26, 4 }
0x1b62   :  { %v9997_v48 = vsel %vm253_vm1, %v9996_v44, %v21568_v51  ;;  %v9967_v50 = vperm.slane %v9961_v6, %v19600_v38  ;;  %v11858_v8 = vsel %vm253_vm1, %v11818_v16, %v11857_v24  ;;  %v11867_v7 = vrot.slane %v11838_v33, 4 }
0x1b63   :  { %19038 = vxpose.xlu1.b32.start.end [1/1] (short) (narrow) %v19037_v54, 8  ;;  %v19023_v59 = vpack.i.bf16 %v9997_v48, %v9991_v12  ;;  %v11866_v10 = vperm.slane %v11858_v8, %v19600_v38  ;;  %v11870_v14 = vsel %vm253_vm1, %v11838_v33, %v11869_v34  ;;  %v11846_v41 = vsel %vm253_vm1, %v11814_v15, %v11845_v5 }
0x1b64   :  { %v9984_v39 = vrot.slane %v9967_v50, 4  ;;  %v11878_v29 = vperm.slane %v11870_v14, %v19600_v38  ;;  %v11882_v56 = vsel %vm253_vm1, %v11842_v27, %v11881_v42  ;;  %v11855_v51 = vrot.slane %v11818_v16, 4 }
0x1b65   :  { %19024 = vxpose.xlu2.b32.start.end [1/1] (short) (narrow) %v19023_v59, 8  ;;  %v11854_v18 = vperm.slane %v11846_v41, %v19600_v38  ;;  %v11890_v35 = vperm.slane %v11882_v56, %v19600_v38  ;;  %v11905_v24 = vrot.slane %v11866_v10, 4  ;;  %v9989_v34 = vsel %vm253_vm1, %v9988_v55, %v21571_v53 }
0x1b66   :  { %v9985_v0 = vsel %vm253_vm1, %v9984_v39, %v21575_v20  ;;  %v11895_v33 = vrot.slane %v11878_v29, 4  ;;  %v11843_v1 = vrot.slane %v11814_v15, 4  ;;  %v9992_v42 = vrot.slane %v21603_v62, 4 }
0x1b67   :  { %v19016_v60 = vpack.i.bf16 %v9985_v0, %v9989_v34  ;;  %v11906_v49 = vsel %vm253_vm1, %v11890_v35, %v11905_v24  ;;  %v11868_v16 = vsel %vm253_vm1, %v11867_v7, %v21590_v43  ;;  %v11897_v12 = vrot.slane %v11854_v18, 4 }
0x1b68   :  { %v11896_v63 = vsel %vm253_vm1, %v11895_v33, %v11854_v18  ;;  %v11844_v44 = vsel %vm253_vm1, %v11843_v1, %v11802_v26  ;;  %v11874_v54 = vperm.slane %v11868_v16, %v19600_v38  ;;  %v9490_v6 = vrot.slane %v21553_v9, 4 }
0x1b69   :  { %19017 = vxpose.xlu0.b32.start.end [1/1] (short) (narrow) %v19016_v60, 8  ;;  %v19044_v53 = vpack.i.bf16 %v11906_v49, %v11896_v63  ;;  %v9986_v15 = vrot.slane %v21575_v20, 4  ;;  %v11850_v55 = vperm.slane %v11844_v44, %v19600_v38  ;;  %v11856_v62 = vsel %vm253_vm1, %v11855_v51, %v11806_v32 }
0x1b6a   :  { %v11891_v48 = vrot.slane %v11874_v54, 4  ;;  %v11879_v5 = vrot.slane %v11842_v27, 4  ;;  %v9513_v43 = vperm.slane %v21559_v2, %v19600_v38  ;;  %v9492_v8 = vrot.slane %v21549_v3, 4 }
0x1b6b   :  { %19045 = vxpose.xlu1.b32.start.end [1/1] (short) (narrow) %v19044_v53, 8  ;;  %v9987_v26 = vsel %vm253_vm1, %v9967_v50, %v9986_v15  ;;  %v9993_v7 = vsel %vm253_vm1, %v9992_v42, %v21563_v30  ;;  %v11898_v20 = vsel %vm253_vm1, %v11878_v29, %v11897_v12  ;;  %v11862_v14 = vperm.slane %v11856_v62, %v19600_v38 }
0x1b6c   :  { %v11892_v59 = vsel %vm253_vm1, %v11891_v48, %v11850_v55  ;;  %v9491_v32 = vsel %vm253_vm1, %v9490_v6, %v21549_v3  ;;  %v11880_v2 = vsel %vm253_vm1, %v11879_v5, %v21582_v17  ;;  %v19030_v27 = vpack.i.bf16 %v9993_v7, %v9987_v26 }
0x1b6d   :  { %10640 = vxpose.xlu2.b32.start.end [1/1] (short) (narrow) %v9513_v43, 8  ;;  %v19051_v50 = vpack.i.bf16 %v11898_v20, %v11892_v59  ;;  %v9493_v39 = vsel %vm253_vm1, %v21553_v9, %v9492_v8  ;;  %v9497_v30 = vperm.slane %v9491_v32, %v19600_v38  ;;  %v11886_v41 = vperm.slane %v11880_v2, %v19600_v38 }
0x1b6e   :  { %v11901_v56 = vrot.slane %v11862_v14, 4  ;;  %v11903_v29 = vrot.slane %v11890_v35, 4  ;;  %v9501_v51 = vperm.slane %v9493_v39, %v19600_v38  ;;  %v9502_v3 = vrot.slane %v21544_v11, 4 }
0x1b6f   :  { %v9514_v18 = vrot.slane %v9497_v30, 4  ;;  %v9520_v60 = vrot.slane %v9513_v43, 4  ;;  %v11899_v49 = vrot.slane %v11886_v41, 4  ;;  %v9200_v12 = vrot.slane %v21369_v37, 4 }
0x1b70   :  { %v11902_v17 = vsel %vm253_vm1, %v11886_v41, %v11901_v56  ;;  %v11904_v24 = vsel %vm253_vm1, %v11903_v29, %v11866_v10  ;;  %v9503_v34 = vsel %vm253_vm1, %v9502_v3, %v21530_v52  ;;  %v9516_v33 = vrot.slane %v9501_v51, 4 }
0x1b71   :  { %19031 = vxpose.xlu0.b32.start.end [1/1] (short) (narrow) %v19030_v27, 8  ;;  %v19058_v0 = vpack.i.bf16 %v11904_v24, %v11902_v17  ;;  %v9515_v9 = vsel %vm253_vm1, 0.0, %v9514_v18  ;;  %v9509_v35 = vperm.slane %v9503_v34, %v19600_v38  ;;  %v11893_v10 = vrot.slane %v11850_v55, 4 }
0x1b72   :  { %v9517_v11 = vsel %vm253_vm1, 0.0, %v9516_v33  ;;  %v9521_v16 = vsel %vm253_vm1, 0.0, %v9520_v60  ;;  %v21679_v63 = vsel %vm253_vm1, %v11899_v49, %v11862_v14  ;;  %v9212_v6 = vrot.slane %v21418_v22, 4 }
0x1b73   :  { %19052 = vxpose.xlu1.b32.start.end [1/1] (short) (narrow) %v19051_v50, 8  ;;  %v9518_v1 = vrot.slane %v9509_v35, 4  ;;  %v21676_v52 = vsel %vm253_vm1, %v11874_v54, %v11893_v10  ;;  %v9198_v53 = vrot.slane %v21407_v45, 4  ;;  %v9201_v15 = vsel %vm253_vm1, %v21407_v45, %v9200_v12 }
0x1b74   :  { %v19065_v44 = vpack.i.bf16 %v21679_v63, %v21676_v52  ;;  %v9213_v55 = vsel %vm253_vm1, %v21430_v13, %v9212_v6  ;;  %v9210_v54 = vrot.slane %v21430_v13, 4  ;;  %v9209_v62 = vperm.slane %v9201_v15, %v19590_v23 }
0x1b75   :  { %10512 = vxpose.xlu2.b32.start.end [1/1] (short) (narrow) %v9501_v51, 8  ;;  %v9519_v42 = vsel %vm253_vm1, 0.0, %v9518_v1  ;;  %v9199_v48 = vsel %vm253_vm1, %v9198_v53, %v21369_v37  ;;  %v9221_v43 = vperm.slane %v9213_v55, %v19590_v23 }
0x1b76   :  { %v9211_v5 = vsel %vm253_vm1, %v9210_v54, %v21418_v22  ;;  %v9205_v26 = vperm.slane %v9199_v48, %v19590_v23  ;;  %v9236_v8 = vrot.slane %v9209_v62, 4 }
0x1b77   :  { %v9217_v45 = vperm.slane %v9211_v5, %v19590_v23  ;;  %v9234_v7 = vrot.slane %v9221_v43, 4 }
0x1b78   :  { %v9237_v59 = vsel %vm253_vm1, %v9221_v43, %v9236_v8  ;;  %v9224_v20 = vrot.slane %v9205_v26, 4 }
0x1b79   :  { %10480 = vxpose.xlu0.b32.start.end [1/1] (short) (narrow) %v9515_v9, 8  ;;  %v9222_v13 = vrot.slane %v9217_v45, 4  ;;  %v9245_v37 = vperm.slane %v9237_v59, %v19600_v38  ;;  %v9235_v32 = vsel %vm253_vm1, %v9234_v7, %v9209_v62 }
0x1b7a   :  { %v9225_v14 = vsel %vm253_vm1, %v9217_v45, %v9224_v20  ;;  %v9241_v27 = vperm.slane %v9235_v32, %v19600_v38 }
0x1b7b   :  { %19059 = vxpose.xlu1.b32.start.end [1/1] (short) (narrow) %v19058_v0, 8  ;;  %v9233_v22 = vperm.slane %v9225_v14, %v19600_v38  ;;  %v9223_v2 = vsel %vm253_vm1, %v9222_v13, %v9205_v26  ;;  %v9252_v50 = vrot.slane %v9245_v37, 4 }
0x1b7c   :  { %v9250_v56 = vrot.slane %v9241_v27, 4 }
0x1b7d   :  { %10576 = vxpose.xlu2.b32.start.end [1/1] (short) (narrow) %v9509_v35, 8  ;;  %v9248_v41 = vrot.slane %v9233_v22, 4  ;;  %v9253_v29 = vsel %vm253_vm1, 0.0, %v9252_v50 }
0x1b7e   :  { %v9594_v18 = vrot.slane %v9253_v29, 4  ;;  %v9251_v17 = vsel %vm253_vm1, 0.0, %v9250_v56 }
0x1b7f   :  { %v9249_v3 = vsel %vm253_vm1, 0.0, %v9248_v41 }
0x1b80   :  { %v9583_v0 = vrot.slane %v9249_v3, 4  ;;  %v9595_v35 = vsel %vm253_vm1, %v9594_v18, %v9251_v17 }
0x1b81   :  { %10544 = vxpose.xlu0.b32.start.end [1/1] (short) (narrow) %v9517_v11, 8  ;;  %v9599_v60 = vperm.slane %v9595_v35, %v19590_v23 }
0x1b83   :  { %10448 = vxpose.xlu1.b32.start.end [1/1] (short) (narrow) %v9497_v30, 8  ;;  %v9229_v30 = vperm.slane %v9223_v2, %v19600_v38  ;;  %v9612_v54 = vrot.slane %v9599_v60, 4 }
0x1b85   :  { %v9246_v51 = vrot.slane %v9229_v30, 4  ;;  %v9578_v24 = vsel %vm253_vm1, %v9248_v41, %v9229_v30 }
0x1b86   :  { %v9582_v1 = vperm.slane %v9578_v24, %v19590_v23 }
0x1b87   :  { %v9247_v34 = vsel %vm253_vm1, 0.0, %v9246_v51 }
0x1b88   :  { %v9584_v11 = vsel %vm253_vm1, %v9583_v0, %v9247_v34  ;;  %v9602_v48 = vrot.slane %v9582_v1, 4 }
0x1b89   :  { %10608 = vxpose.xlu0.b32.start.end [1/1] (short) (narrow) %v9519_v42, 8  ;;  %v9588_v6 = vperm.slane %v9584_v11, %v19590_v23 }
0x1b8b   :  { %10672 = vxpose.xlu1.b32.start.end [1/1] (short) (narrow) %v9521_v16, 8  ;;  %v9589_v16 = vsel %vm253_vm1, %v9252_v50, %v9241_v27  ;;  %v9600_v45 = vrot.slane %v9588_v6, 4  ;;  %v9603_v7 = vsel %vm253_vm1, %v9588_v6, %v9602_v48 }
0x1b8c   :  { %v9593_v26 = vperm.slane %v9589_v16, %v19590_v23  ;;  %v9611_v56 = vperm.slane %v9603_v7, %v19600_v38 }
0x1b8d   :  { %v9601_v30 = vsel %vm253_vm1, %v9600_v45, %v9582_v1 }
0x1b8e   :  { %v9613_v37 = vsel %vm253_vm1, %v9612_v54, %v9593_v26  ;;  %v9614_v2 = vrot.slane %v9593_v26, 4 }
0x1b8f   :  { %v9619_v41 = vperm.slane %v9613_v37, %v19600_v38 }
0x1b90   :  { %v9615_v0 = vsel %vm253_vm1, %v9599_v60, %v9614_v2 }
0x1b91   :  { %v9623_v16 = vperm.slane %v9615_v0, %v19600_v38 }
0x1b93   :  { %v9628_v2 = vrot.slane %v9623_v16, 4 }
0x1bfe   :  { %v19025_v39 = vpop.trf.xlu2 }
0x1bff   :  { %v19029_v15 = vunpack.i.h.bf16 %v19025_v39  ;;  %v19026_v55 = vunpack.i.l.bf16 %v19025_v39 }
0x1c01   :  { %v10268_v13 = vrot.slane %v19029_v15, 4  ;;  %v10262_v14 = vrot.slane %v19026_v55, 4 }
0x1c06   :  { %v21724_v59 = vpop.trf.xlu2 }
0x1c07   :  { %v19039_v9 = vpop.trf.xlu1 }
0x1c08   :  { %v19040_v33 = vunpack.i.l.bf16 %v19039_v9  ;;  %v19043_v10 = vunpack.i.h.bf16 %v19039_v9 }
0x1c0a   :  { %v10274_v49 = vrot.slane %v19040_v33, 4 }
0x1c0c   :  { %v10275_v43 = vsel %vm253_vm1, %v10274_v49, %v19043_v10  ;;  %v9607_v10 = vperm.slane %v9601_v30, %v19600_v38 }
0x1c0d   :  { %v19018_v42 = vpop.trf.xlu0  ;;  %v10279_v20 = vperm.slane %v10275_v43, %v19590_v23 }
0x1c0e   :  { %v19019_v12 = vunpack.i.l.bf16 %v19018_v42  ;;  %v19022_v62 = vunpack.i.h.bf16 %v19018_v42  ;;  %v9624_v42 = vrot.slane %v9619_v41, 4  ;;  %v10528_v60 = vpop.trf.xlu2  ;;  %v9626_v26 = vrot.slane %v9607_v10, 4 }
0x1c0f   :  { %v21718_v53 = vpop.trf.xlu1  ;;  %v10292_v3 = vrot.slane %v10279_v20, 4 }
0x1c10   :  { %v10256_v5 = vrot.slane %v19019_v12, 4  ;;  %v9630_v12 = vrot.slane %v9611_v56, 4  ;;  %v9625_v45 = vsel %vm253_vm1, %v9624_v42, %v9607_v10 }
0x1c12   :  { %v10257_v8 = vsel %vm253_vm1, %v10256_v5, %v19022_v62 }
0x1c13   :  { %v10261_v22 = vperm.slane %v10257_v8, %v19590_v23 }
0x1c15   :  { %v19032_v32 = vpop.trf.xlu0  ;;  %v10282_v24 = vrot.slane %v10261_v22, 4 }
0x1c16   :  { %v19036_v27 = vunpack.i.h.bf16 %v19032_v32  ;;  %v19033_v50 = vunpack.i.l.bf16 %v19032_v32  ;;  %v9627_v32 = vsel %vm253_vm1, %v9619_v41, %v9626_v26 }
0x1c17   :  { %v21729_v39 = vpop.trf.xlu1 }
0x1c18   :  { %v10269_v29 = vsel %vm253_vm1, %v10268_v13, %v19036_v27  ;;  %v10263_v51 = vsel %vm253_vm1, %v10262_v14, %v19033_v50  ;;  %v10728_v50 = vrot.slane %v21724_v59, 4 }
0x1c19   :  { %v10273_v18 = vperm.slane %v10269_v29, %v19590_v23  ;;  %v10267_v17 = vperm.slane %v10263_v51, %v19590_v23  ;;  %v10592_v29 = vpop.trf.xlu2 }
0x1c1a   :  { %v10729_v0 = vsel %vm253_vm1, %v10728_v50, %v10592_v29 }
0x1c1b   :  { %v10280_v9 = vrot.slane %v10267_v17, 4  ;;  %v10293_v34 = vsel %vm253_vm1, %v10292_v3, %v10273_v18  ;;  %v10283_v35 = vsel %vm253_vm1, %v10267_v17, %v10282_v24  ;;  %v10294_v1 = vrot.slane %v10273_v18, 4 }
0x1c1c   :  { %v10299_v33 = vperm.slane %v10293_v34, %v19600_v38  ;;  %v10291_v11 = vperm.slane %v10283_v35, %v19600_v38  ;;  %v9629_v17 = vsel %vm253_vm1, %v9628_v2, %v9611_v56 }
0x1c1d   :  { %v10281_v49 = vsel %vm253_vm1, %v10280_v9, %v10261_v22  ;;  %v10496_v6 = vpop.trf.xlu0  ;;  %v10295_v54 = vsel %vm253_vm1, %v10279_v20, %v10294_v1  ;;  %v9631_v20 = vsel %vm253_vm1, %v9623_v16, %v9630_v12  ;;  %v10704_v22 = vrot.slane %v10528_v60, 4 }
0x1c1e   :  { %v10287_v15 = vperm.slane %v10281_v49, %v19600_v38  ;;  %v10304_v55 = vrot.slane %v10299_v33, 4  ;;  %v10310_v48 = vrot.slane %v10291_v11, 4  ;;  %v10303_v62 = vperm.slane %v10295_v54, %v19600_v38 }
0x1c1f   :  { %v21749_v5 = vpop.trf.xlu1  ;;  %v10718_v24 = vrot.slane %v10496_v6, 4  ;;  %v10730_v9 = vrot.slane %v10592_v29, 4 }
0x1c20   :  { %v10305_v43 = vsel %vm253_vm1, %v10304_v55, %v10287_v15  ;;  %v10311_v8 = vsel %vm253_vm1, %v10303_v62, %v10310_v48  ;;  %v10306_v7 = vrot.slane %v10287_v15, 4  ;;  %v10308_v13 = vrot.slane %v10303_v62, 4 }
0x1c21   :  { %10330 = vmatpush.msrb.mxu1 %v10305_v43  ;;  %10399 = vmatpush.msra.mxu2 %v10311_v8  ;;  %v10731_v56 = vsel %vm253_vm1, %v21724_v59, %v10730_v9 }
0x1c22   :  { %18406 = vmatmul.msk.f32.vlgmr.msrb.gmra.mxu1 %vm1367_vm2, %v9625_v45  ;;  %18409 = vmatmul.msk.f32.vlgmr.msra.gmra.mxu2 %vm1367_vm2, %v9631_v20  ;;  %v10307_v14 = vsel %vm253_vm1, %v10299_v33, %v10306_v7  ;;  %v10309_v37 = vsel %vm253_vm1, %v10308_v13, %v10291_v11  ;;  %v10735_v11 = vperm.slane %v10729_v0, %v19590_v23 }
0x1c23   :  { %10353 = vmatpush.msra.mxu3 %v10307_v14  ;;  %10376 = vmatpush.msra.mxu1 %v10309_v37 }
0x1c24   :  { %18407 = vmatmul.msk.f32.vlgmr.msra.gmra.mxu3 %vm1367_vm2, %v9627_v32  ;;  %v10778_v54 = vrot.slane %v10735_v11, 4 }
0x1c25   :  { %v10560_v27 = vpop.trf.xlu0 }
0x1c26   :  { %v10716_v18 = vrot.slane %v10560_v27, 4  ;;  %v10719_v10 = vsel %vm253_vm1, %v10560_v27, %v10718_v24 }
0x1c27   :  { %v10464_v30 = vpop.trf.xlu1  ;;  %v10727_v55 = vperm.slane %v10719_v10, %v19590_v23 }
0x1c28   :  { %v10706_v51 = vrot.slane %v10464_v30, 4  ;;  %v10705_v3 = vsel %vm253_vm1, %v10704_v22, %v10464_v30  ;;  %v10717_v35 = vsel %vm253_vm1, %v10716_v18, %v10496_v6  ;;  %v10739_v6 = vperm.slane %v10731_v56, %v19590_v23 }
0x1c29   :  { %v10711_v34 = vperm.slane %v10705_v3, %v19590_v23  ;;  %v10723_v16 = vperm.slane %v10717_v35, %v19590_v23  ;;  %v10764_v35 = vrot.slane %v10727_v55, 4 }
0x1c2a   :  { %18408 = vmatmul.msk.f32.vlgmr.msra.gmra.mxu1 %vm1367_vm2, %v9629_v17  ;;  %v10707_v41 = vsel %vm253_vm1, %v10528_v60, %v10706_v51  ;;  %v10790_v8 = vrot.slane %v10739_v6, 4 }
0x1c2b   :  { %v10715_v33 = vperm.slane %v10707_v41, %v19590_v23  ;;  %v10754_v42 = vrot.slane %v10711_v34, 4  ;;  %v10752_v30 = vrot.slane %v10723_v16, 4 }
0x1c2d   :  { %v10624_v1 = vpop.trf.xlu0  ;;  %v10766_v15 = vrot.slane %v10715_v33, 4  ;;  %v10755_v59 = vsel %vm253_vm1, %v10723_v16, %v10754_v42  ;;  %v10753_v18 = vsel %vm253_vm1, %v10752_v30, %v10711_v34  ;;  %v10765_v10 = vsel %vm253_vm1, %v10764_v35, %v10715_v33 }
0x1c2e   :  { %v10742_v49 = vrot.slane %v10624_v1, 4  ;;  %v10763_v13 = vperm.slane %v10755_v59, %v19600_v38  ;;  %v10759_v17 = vperm.slane %v10753_v18, %v19600_v38  ;;  %v10771_v34 = vperm.slane %v10765_v10, %v19600_v38 }
0x1c2f   :  { %v10688_v12 = vpop.trf.xlu1  ;;  %v10767_v26 = vsel %vm253_vm1, %v10727_v55, %v10766_v15 }
0x1c30   :  { %v10740_v60 = vrot.slane %v10688_v12, 4  ;;  %v10743_v62 = vsel %vm253_vm1, %v10688_v12, %v10742_v49  ;;  %v10775_v37 = vperm.slane %v10767_v26, %v19600_v38  ;;  %v10806_v0 = vrot.slane %v10763_v13, 4 }
0x1c31   :  { %v10751_v45 = vperm.slane %v10743_v62, %v19590_v23  ;;  %v10810_v16 = vrot.slane %v10771_v34, 4 }
0x1c32   :  { %v10741_v48 = vsel %vm253_vm1, %v10740_v60, %v10624_v1  ;;  %v10814_v50 = vrot.slane %v10775_v37, 4  ;;  %v10802_v60 = vrot.slane %v10759_v17, 4 }
0x1c33   :  { %v10747_v43 = vperm.slane %v10741_v48, %v19590_v23  ;;  %v10791_v22 = vsel %vm253_vm1, %v10751_v45, %v10790_v8  ;;  %v19479_v48 = vld [vmem:[%s19919_s29] sm:$0xff] }
0x1c34   :  { %v10799_v27 = vperm.slane %v10791_v22, %v19600_v38 }
0x1c35   :  { %v10779_v7 = vsel %vm253_vm1, %v10747_v43, %v10778_v54  ;;  %v10776_v32 = vrot.slane %v10747_v43, 4 }
0x1c36   :  { %v10787_v20 = vperm.slane %v10779_v7, %v19600_v38  ;;  %v10815_v51 = vsel %vm253_vm1, %v10799_v27, %v10814_v50  ;;  %v10812_v1 = vrot.slane %v10799_v27, 4 }
0x1c37   :  { %v10777_v29 = vsel %vm253_vm1, %v10776_v32, %v10735_v11  ;;  %v10788_v11 = vrot.slane %v10751_v45, 4 }
0x1c38   :  { %v10804_v14 = vrot.slane %v10787_v20, 4  ;;  %v10783_v3 = vperm.slane %v10777_v29, %v19600_v38  ;;  %v10807_v9 = vsel %vm253_vm1, %v10787_v20, %v10806_v0  ;;  %v10813_v56 = vsel %vm253_vm1, %v10812_v1, %v10775_v37 }
0x1c39   :  { %v10789_v49 = vsel %vm253_vm1, %v10788_v11, %v10739_v6 }
0x1c3a   :  { %v10805_v2 = vsel %vm253_vm1, %v10804_v14, %v10763_v13  ;;  %v10800_v24 = vrot.slane %v10783_v3, 4  ;;  %v10795_v42 = vperm.slane %v10789_v49, %v19600_v38  ;;  %v10803_v15 = vsel %vm253_vm1, %v10783_v3, %v10802_v60 }
0x1c3b   :  { %10880 = vxpose.xlu1.b32.start.end [1/1] (short) (narrow) %v10805_v2, 8 }
0x1c3c   :  { %v10801_v41 = vsel %vm253_vm1, %v10800_v24, %v10759_v17  ;;  %v10811_v12 = vsel %vm253_vm1, %v10795_v42, %v10810_v16  ;;  %v10808_v55 = vrot.slane %v10795_v42, 4 }
0x1c3e   :  { %v10809_v33 = vsel %vm253_vm1, %v10808_v55, %v10771_v34 }
0x1c43   :  { %11040 = vxpose.xlu1.b32.start.end [1/1] (short) (narrow) %v10815_v51, 8 }
0x1c4b   :  { %10816 = vxpose.xlu1.b32.start.end [1/1] (short) (narrow) %v10801_v41, 8 }
0x1c53   :  { %10912 = vxpose.xlu1.b32.start.end [1/1] (short) (narrow) %v10807_v9, 8 }
0x1c5b   :  { %11008 = vxpose.xlu1.b32.start.end [1/1] (short) (narrow) %v10813_v56, 8 }
0x1c63   :  { %10976 = vxpose.xlu1.b32.start.end [1/1] (short) (narrow) %v10811_v12, 8 }
0x1c6b   :  { %10848 = vxpose.xlu1.b32.start.end [1/1] (short) (narrow) %v10803_v15, 8 }
0x1c73   :  { %10944 = vxpose.xlu1.b32.start.end [1/1] (short) (narrow) %v10809_v33, 8 }
0x1c9f   :  { %v10332_v54 = vpop.f32.mrf.mxu1 }
0x1ca0   :  { %v10333_v62 = vadd.f32 %v19479_v48, %v10332_v54 }
0x1ca2   :  { %v10404_v6 = vsel %vm1367_vm2, %v10333_v62, -inf }
0x1ca3   :  { %10405 = vmax.xlane.f32.xlu2 %v10404_v6 }
0x1ca5   :  { %v10401_v13 = vpop.f32.mrf.mxu2 }
0x1ca6   :  { %v21821_v20 = vadd.f32 %v19479_v48, %v10401_v13 }
0x1ca7   :  { %v10378_v43 = vpop.f32.mrf.mxu1  ;;  %v10355_v59 = vpop.f32.mrf.mxu3 }
0x1ca8   :  { %v21807_v26 = vadd.f32 %v19479_v48, %v10378_v43  ;;  %v21809_v8 = vadd.f32 %v19479_v48, %v10355_v59  ;;  %v10413_v14 = vsel %vm1367_vm2, %v21821_v20, -inf }
0x1caa   :  { %v10410_v45 = vsel %vm1367_vm2, %v21807_v26, -inf  ;;  %v10407_v7 = vsel %vm1367_vm2, %v21809_v8, -inf }
0x1cab   :  { %10411 = vmax.xlane.f32.xlu0 %v10410_v45  ;;  %10408 = vmax.xlane.f32.xlu2 %v10407_v7 }
0x1cbf   :  { %9444 = vrot.lane.b32.xlu0 %v21382_v36, %s23086_s22 }
0x1cc3   :  { %9448 = vrot.lane.b32.xlu2 %v21427_v28, %s23086_s22 }
0x1cc7   :  { %9452 = vrot.lane.b32.xlu0 %v21441_v61, %s23086_s22 }
0x1cd3   :  { %10414 = vmax.xlane.f32.xlu1 %v10413_v14 }
0x1cdf   :  { %v10896_v37 = vpop.trf.xlu1 }
0x1ce0   :  { %v11072_v50 = vrot.slane %v10896_v37, 4 }
0x1ce7   :  { %v11056_v32 = vpop.trf.xlu1 }
0x1ce8   :  { %v11090_v35 = vrot.slane %v11056_v32, 4 }
0x1cef   :  { %v10832_v22 = vpop.trf.xlu1 }
0x1cf0   :  { %v11073_v28 = vsel %vm253_vm1, %v11072_v50, %v10832_v22 }
0x1cf1   :  { %v11077_v61 = vperm.slane %v11073_v28, %v19590_v23  ;;  %v19057_v28 = vunpack.i.h.bf16 %v21729_v39 }
0x1cf3   :  { %v11098_v18 = vrot.slane %v11077_v61, 4 }
0x1cf7   :  { %v10928_v2 = vpop.trf.xlu1 }
0x1cf8   :  { %v11078_v3 = vrot.slane %v10928_v2, 4  ;;  %v19050_v2 = vunpack.i.h.bf16 %v21718_v53 }
0x1cff   :  { %v11024_v27 = vpop.trf.xlu1 }
0x1d00   :  { %v11084_v11 = vrot.slane %v11024_v27, 4  ;;  %v12181_v27 = vrot.slane %v19050_v2, 4 }
0x1d07   :  { %v10992_v36 = vpop.trf.xlu1 }
0x1d08   :  { %v11091_v56 = vsel %vm253_vm1, %v11090_v35, %v10992_v36  ;;  %v19054_v36 = vunpack.i.l.bf16 %v21729_v39 }
0x1d09   :  { %v11095_v42 = vperm.slane %v11091_v56, %v19590_v23 }
0x1d0b   :  { %v11108_v15 = vrot.slane %v11095_v42, 4 }
0x1d0f   :  { %v10864_v17 = vpop.trf.xlu1 }
0x1d10   :  { %v11079_v24 = vsel %vm253_vm1, %v11078_v3, %v10864_v17  ;;  %v12169_v3 = vrot.slane %v19057_v28, 4 }
0x1d11   :  { %v11083_v41 = vperm.slane %v11079_v24, %v19590_v23 }
0x1d13   :  { %v11099_v9 = vsel %vm253_vm1, %v11083_v41, %v11098_v18  ;;  %v11096_v55 = vrot.slane %v11083_v41, 4 }
0x1d14   :  { %v11107_v63 = vperm.slane %v11099_v9, %v19600_v38 }
0x1d16   :  { %v10406_v30 = vpop.xlane.xlu2 %10405  ;;  %v11126_v14 = vrot.slane %v11107_v63, 4 }
0x1d17   :  { %v10416_v29 = vsub.f32 %v10333_v62, %v10406_v30  ;;  %v10960_v10 = vpop.trf.xlu1  ;;  %v11097_v62 = vsel %vm253_vm1, %v11096_v55, %v11077_v61  ;;  %v19061_v30 = vunpack.i.l.bf16 %v21749_v5 }
0x1d18   :  { %v11085_v34 = vsel %vm253_vm1, %v11084_v11, %v10960_v10  ;;  %v11103_v6 = vperm.slane %v11097_v62, %v19600_v38 }
0x1d19   :  { %v10420_v51 = vmul.f32 1.442695, %v10416_v29  ;;  %v11089_v49 = vperm.slane %v11085_v34, %v19590_v23  ;;  %v19064_v29 = vunpack.i.h.bf16 %v21749_v5  ;;  %v12182_v61 = vsel %vm253_vm1, %v12181_v27, %v19061_v30 }
0x1d1a   :  { %v11122_v7 = vrot.slane %v11103_v6, 4  ;;  %v12186_v17 = vperm.slane %v12182_v61, %v19590_v23 }
0x1d1b   :  { %19383 = vpow2.f32 %v10420_v51  ;;  %v11110_v16 = vrot.slane %v11089_v49, 4  ;;  %v11109_v33 = vsel %vm253_vm1, %v11108_v15, %v11089_v49  ;;  %v12175_v18 = vrot.slane %v19064_v29, 4 }
0x1d1c   :  { %v11115_v48 = vperm.slane %v11109_v33, %v19600_v38  ;;  %v11531_v15 = vrot.slane %v21506_v57, 4 }
0x1d1d   :  { %v11111_v12 = vsel %vm253_vm1, %v11095_v42, %v11110_v16 }
0x1d1e   :  { %v11120_v43 = vrot.slane %v11115_v48, 4  ;;  %v21853_v37 = vsel %vm253_vm1, %v11115_v48, %v11122_v7 }
0x1d20   :  { %v11121_v52 = vsel %vm253_vm1, %v11120_v43, %v11103_v6 }
0x1d21   :  { %v19384_v0 = vpop.eup %19383 }
0x1d22   :  { %v10428_v1 = vsel %vm1367_vm2, %v19384_v0, 0.0 }
0x1d23   :  { %10429 = vadd.xlane.f32.xlu1 %v10428_v1  ;;  %v12199_v1 = vrot.slane %v12186_v17, 4 }
0x1d46   :  { %v21839_v60 = vpop.xlane.xlu1 %10414 }
0x1d5d   :  { %19066 = vxpose.xlu1.b32.start.end [1/1] (short) (narrow) %v19065_v44, 8  ;;  %v11119_v44 = vperm.slane %v11111_v12, %v19600_v38 }
0x1d5f   :  { %v11124_v13 = vrot.slane %v11119_v44, 4  ;;  %v21859_v22 = vsel %vm253_vm1, %v11119_v44, %v11126_v14  ;;  %v10412_v44 = vpop.xlane.xlu0 %10411 }
0x1d61   :  { %v21856_v32 = vsel %vm253_vm1, %v11124_v13, %v11107_v63  ;;  %v10409_v13 = vpop.xlane.xlu2 %10408 }
0x1d67   :  { %v9445_v7 = vpop.permute.xlu0 %9444 }
0x1d68   :  { %v9524_v2 = vrot.slane %v9445_v7, 4 }
0x1d69   :  { %v9449_v27 = vpop.permute.xlu2 %9448 }
0x1d6f   :  { %v9453_v14 = vpop.permute.xlu0 %9452 }
0x1d96   :  { %v10430_v54 = vpop.xlane.xlu1 %10429 }
0x1d97   :  { %19385 = vrcp.f32 %v10430_v54 }
0x1d9d   :  { %v19386_v59 = vpop.eup %19385 }
0x1d9e   :  { %v10444_v45 = vmul.f32 %v19386_v59, %v19384_v0 }
0x1da0   :  { %18410 = vmatpush.xpose.msk.msrb.mxu3 %vm1367_vm2, %v10444_v45 }
0x1da3   :  { %18411 = vmatmul.msk.f32.vlgmr.msrb.gmra.mxu3 %vm1367_vm2, %v11121_v52  ;;  %v11532_v52 = vsel %vm253_vm1, %v11531_v15, %v21500_v58  ;;  %v9536_v58 = vrot.slane %v9449_v27, 4 }
0x1db7   :  { %9456 = vrot.lane.b32.xlu1 %v21424_v25, %s23086_s22  ;;  %v19047_v25 = vunpack.i.l.bf16 %v21718_v53 }
0x1db9   :  { %v12163_v50 = vrot.slane %v19047_v25, 4  ;;  %v9525_v25 = vsel %vm253_vm1, %v9453_v14, %v9524_v2 }
0x1dbb   :  { %v12164_v51 = vsel %vm253_vm1, %v12163_v50, %v19054_v36  ;;  %v9522_v50 = vrot.slane %v9453_v14, 4  ;;  %v9533_v36 = vperm.slane %v9525_v25, %v19590_v23 }
0x1dbc   :  { %v12168_v53 = vperm.slane %v12164_v51, %v19590_v23 }
0x1dbd   :  { %v9523_v51 = vsel %vm253_vm1, %v9522_v50, %v9445_v7  ;;  %v9560_v61 = vrot.slane %v9533_v36, 4 }
0x1dbe   :  { %v12189_v11 = vrot.slane %v12168_v53, 4 }
0x1e01   :  { %v19067_v24 = vpop.trf.xlu1 }
0x1e02   :  { %v19071_v41 = vunpack.i.h.bf16 %v19067_v24  ;;  %v19068_v0 = vunpack.i.l.bf16 %v19067_v24 }
0x1e04   :  { %v12176_v9 = vsel %vm253_vm1, %v12175_v18, %v19071_v41  ;;  %v12170_v35 = vsel %vm253_vm1, %v12169_v3, %v19068_v0 }
0x1e05   :  { %v12180_v39 = vperm.slane %v12176_v9, %v19590_v23  ;;  %v12174_v5 = vperm.slane %v12170_v35, %v19590_v23 }
0x1e07   :  { %v12201_v10 = vrot.slane %v12180_v39, 4  ;;  %v12187_v56 = vrot.slane %v12174_v5, 4  ;;  %v12200_v34 = vsel %vm253_vm1, %v12199_v1, %v12180_v39  ;;  %v12190_v49 = vsel %vm253_vm1, %v12174_v5, %v12189_v11 }
0x1e08   :  { %v12206_v42 = vperm.slane %v12200_v34, %v19600_v38  ;;  %v12198_v16 = vperm.slane %v12190_v49, %v19600_v38 }
0x1e09   :  { %v12188_v12 = vsel %vm253_vm1, %v12187_v56, %v12168_v53  ;;  %v12202_v55 = vsel %vm253_vm1, %v12186_v17, %v12201_v10  ;;  %v9529_v53 = vperm.slane %v9523_v51, %v19590_v23 }
0x1e0a   :  { %v12194_v33 = vperm.slane %v12188_v12, %v19600_v38  ;;  %v12211_v54 = vrot.slane %v12206_v42, 4  ;;  %v12210_v48 = vperm.slane %v12202_v55, %v19600_v38  ;;  %v12217_v62 = vrot.slane %v12198_v16, 4 }
0x1e0b   :  { %v9548_v5 = vrot.slane %v9529_v53, 4 }
0x1e0c   :  { %v12212_v6 = vsel %vm253_vm1, %v12211_v54, %v12194_v33  ;;  %v21886_v43 = vsel %vm253_vm1, %v12210_v48, %v12217_v62  ;;  %v12213_v59 = vrot.slane %v12194_v33, 4  ;;  %v12215_v45 = vrot.slane %v12210_v48, 4 }
0x1e0d   :  { %12237 = vmatpush.msra.mxu3 %v12212_v6  ;;  %v10419_v54 = vsub.f32 %v21821_v20, %v21839_v60  ;;  %v10417_v62 = vsub.f32 %v21809_v8, %v10409_v13  ;;  %v10418_v6 = vsub.f32 %v21807_v26, %v10412_v44 }
0x1e0e   :  { %18418 = vmatmul.msk.f32.vlgmr.msra.gmra.mxu3 %vm1367_vm2, %v11532_v52  ;;  %v21892_v57 = vsel %vm253_vm1, %v12206_v42, %v12213_v59  ;;  %v21895_v63 = vsel %vm253_vm1, %v12215_v45, %v12198_v16 }
0x1e0f   :  { %v10426_v48 = vmul.f32 1.442695, %v10419_v54  ;;  %v10422_v59 = vmul.f32 1.442695, %v10417_v62  ;;  %v10424_v52 = vmul.f32 1.442695, %v10418_v6 }
0x1e11   :  { %19387 = vpow2.f32 %v10426_v48 }
0x1e12   :  { %19389 = vpow2.f32 %v10422_v59 }
0x1e13   :  { %19391 = vpow2.f32 %v10424_v52 }
0x1e17   :  { %v21921_v45 = vpop.eup %19387 }
0x1e18   :  { %v10437_v7 = vsel %vm1367_vm2, %v21921_v45, 0.0  ;;  %v21925_v14 = vpop.eup %19389 }
0x1e19   :  { %v10431_v20 = vsel %vm1367_vm2, %v21925_v14, 0.0  ;;  %v21929_v60 = vpop.eup %19391 }
0x1e1a   :  { %v10434_v26 = vsel %vm1367_vm2, %v21929_v60, 0.0 }
0x1e29   :  { %v9457_v30 = vpop.permute.xlu1 %9456 }
0x1e2a   :  { %v9534_v28 = vrot.slane %v9457_v30, 4  ;;  %v9537_v29 = vsel %vm253_vm1, %v9457_v30, %v9536_v58 }
0x1e2b   :  { %v9545_v3 = vperm.slane %v9537_v29, %v19590_v23 }
0x1e2c   :  { %v9535_v18 = vsel %vm253_vm1, %v9534_v28, %v9449_v27 }
0x1e2d   :  { %v9541_v17 = vperm.slane %v9535_v18, %v19590_v23  ;;  %v9561_v24 = vsel %vm253_vm1, %v9545_v3, %v9560_v61  ;;  %v9558_v9 = vrot.slane %v9545_v3, 4 }
0x1e2e   :  { %v9569_v41 = vperm.slane %v9561_v24, %v19600_v38 }
0x1e2f   :  { %v9546_v0 = vrot.slane %v9541_v17, 4  ;;  %v9559_v1 = vsel %vm253_vm1, %v9558_v9, %v9533_v36  ;;  %v9549_v10 = vsel %vm253_vm1, %v9541_v17, %v9548_v5 }
0x1e30   :  { %12547 = vxpose.xlu2.b32.start.end [1/1] (short) (narrow) %v9569_v41, 8  ;;  %v9565_v34 = vperm.slane %v9559_v1, %v19600_v38  ;;  %v9557_v49 = vperm.slane %v9549_v10, %v19600_v38  ;;  %v9576_v12 = vrot.slane %v9569_v41, 4 }
0x1e31   :  { %v9547_v35 = vsel %vm253_vm1, %v9546_v0, %v9529_v53 }
0x1e32   :  { %v9553_v39 = vperm.slane %v9547_v35, %v19600_v38  ;;  %v9572_v42 = vrot.slane %v9557_v49, 4  ;;  %v9577_v15 = vsel %vm253_vm1, 0.0, %v9576_v12  ;;  %v9574_v55 = vrot.slane %v9565_v34, 4 }
0x1e34   :  { %12355 = vxpose.xlu0.b32.start.end [1/1] (short) (narrow) %v9553_v39, 8  ;;  %v9570_v11 = vrot.slane %v9553_v39, 4  ;;  %v9573_v16 = vsel %vm253_vm1, 0.0, %v9572_v42  ;;  %v9575_v33 = vsel %vm253_vm1, 0.0, %v9574_v55 }
0x1e36   :  { %v9571_v56 = vsel %vm253_vm1, 0.0, %v9570_v11 }
0x1e37   :  { %12387 = vxpose.xlu1.b32.start.end [1/1] (short) (narrow) %v9571_v56, 8 }
0x1e38   :  { %12483 = vxpose.xlu2.b32.start.end [1/1] (short) (narrow) %v9565_v34, 8 }
0x1e3c   :  { %12419 = vxpose.xlu0.b32.start.end [1/1] (short) (narrow) %v9557_v49, 8 }
0x1e40   :  { %12451 = vxpose.xlu2.b32.start.end [1/1] (short) (narrow) %v9573_v16, 8 }
0x1e44   :  { %12579 = vxpose.xlu0.b32.start.end [1/1] (short) (narrow) %v9577_v15, 8 }
0x1e4c   :  { %12515 = vxpose.xlu0.b32.start.end [1/1] (short) (narrow) %v9575_v33, 8 }
0x1eb1   :  { %10438 = vadd.xlane.f32.xlu2 %v10437_v7 }
0x1eb9   :  { %10432 = vadd.xlane.f32.xlu2 %v10431_v20 }
0x1ebd   :  { %10435 = vadd.xlane.f32.xlu0 %v10434_v26 }
0x1ec9   :  { %v12563_v8 = vpop.trf.xlu2 }
0x1eca   :  { %v12635_v51 = vrot.slane %v12563_v8, 4 }
0x1ed1   :  { %v12499_v44 = vpop.trf.xlu2 }
0x1ed2   :  { %v12637_v61 = vrot.slane %v12499_v44, 4  ;;  %v12636_v41 = vsel %vm253_vm1, %v12635_v51, %v12499_v44 }
0x1ed3   :  { %v12642_v11 = vperm.slane %v12636_v41, %v19590_v23 }
0x1ed4   :  { %v12638_v0 = vsel %vm253_vm1, %v12563_v8, %v12637_v61 }
0x1ed5   :  { %v12646_v10 = vperm.slane %v12638_v0, %v19590_v23  ;;  %v12685_v49 = vrot.slane %v12642_v11, 4 }
0x1ed7   :  { %v12697_v55 = vrot.slane %v12646_v10, 4 }
0x1ed8   :  { %v12371_v13 = vpop.trf.xlu0 }
0x1ed9   :  { %v12613_v2 = vrot.slane %v12371_v13, 4  ;;  %v12467_v27 = vpop.trf.xlu2 }
0x1eda   :  { %v12623_v36 = vrot.slane %v12467_v27, 4 }
0x1edb   :  { %v12403_v58 = vpop.trf.xlu1 }
0x1edc   :  { %v12625_v28 = vrot.slane %v12403_v58, 4  ;;  %v12624_v18 = vsel %vm253_vm1, %v12623_v36, %v12403_v58 }
0x1edd   :  { %v12630_v9 = vperm.slane %v12624_v18, %v19590_v23 }
0x1ede   :  { %v12626_v24 = vsel %vm253_vm1, %v12467_v27, %v12625_v28 }
0x1edf   :  { %v12634_v39 = vperm.slane %v12626_v24, %v19590_v23  ;;  %v12659_v34 = vrot.slane %v12630_v9, 4 }
0x1ee0   :  { %v12435_v25 = vpop.trf.xlu0 }
0x1ee1   :  { %v12614_v50 = vsel %vm253_vm1, %v12435_v25, %v12613_v2  ;;  %v12611_v30 = vrot.slane %v12435_v25, 4  ;;  %v12671_v62 = vrot.slane %v12634_v39, 4 }
0x1ee2   :  { %v12622_v29 = vperm.slane %v12614_v50, %v19590_v23 }
0x1ee3   :  { %v12612_v17 = vsel %vm253_vm1, %v12611_v30, %v12371_v13 }
0x1ee4   :  { %v12673_v53 = vrot.slane %v12622_v29, 4  ;;  %v12618_v35 = vperm.slane %v12612_v17, %v19590_v23  ;;  %v12672_v58 = vsel %vm253_vm1, %v12671_v62, %v12622_v29 }
0x1ee5   :  { %v12678_v30 = vperm.slane %v12672_v58, %v19600_v38 }
0x1ee6   :  { %v12661_v1 = vrot.slane %v12618_v35, 4  ;;  %v12674_v56 = vsel %vm253_vm1, %v12634_v39, %v12673_v53  ;;  %v12660_v6 = vsel %vm253_vm1, %v12659_v34, %v12618_v35 }
0x1ee7   :  { %v12682_v15 = vperm.slane %v12674_v56, %v19600_v38  ;;  %v12666_v2 = vperm.slane %v12660_v6, %v19600_v38  ;;  %v12717_v17 = vrot.slane %v12678_v30, 4 }
0x1ee8   :  { %v12595_v3 = vpop.trf.xlu0  ;;  %v12662_v54 = vsel %vm253_vm1, %v12630_v9, %v12661_v1 }
0x1ee9   :  { %v12647_v5 = vrot.slane %v12595_v3, 4  ;;  %v12721_v20 = vrot.slane %v12682_v15, 4  ;;  %v12670_v26 = vperm.slane %v12662_v54, %v19600_v38  ;;  %v12709_v41 = vrot.slane %v12666_v2, 4 }
0x1eeb   :  { %v12713_v0 = vrot.slane %v12670_v26, 4 }
0x1ef0   :  { %v12531_v42 = vpop.trf.xlu0 }
0x1ef1   :  { %v12648_v16 = vsel %vm253_vm1, %v12647_v5, %v12531_v42  ;;  %v12649_v12 = vrot.slane %v12531_v42, 4 }
0x1ef2   :  { %v12654_v33 = vperm.slane %v12648_v16, %v19590_v23 }
0x1ef3   :  { %v12650_v48 = vsel %vm253_vm1, %v12595_v3, %v12649_v12 }
0x1ef4   :  { %v12658_v59 = vperm.slane %v12650_v48, %v19590_v23  ;;  %v12683_v52 = vrot.slane %v12654_v33, 4  ;;  %v12686_v7 = vsel %vm253_vm1, %v12654_v33, %v12685_v49 }
0x1ef5   :  { %v12694_v8 = vperm.slane %v12686_v7, %v19600_v38 }
0x1ef6   :  { %v12684_v44 = vsel %vm253_vm1, %v12683_v52, %v12642_v11  ;;  %v12695_v13 = vrot.slane %v12658_v59, 4  ;;  %v12698_v25 = vsel %vm253_vm1, %v12658_v59, %v12697_v55 }
0x1ef7   :  { %v12690_v27 = vperm.slane %v12684_v44, %v19600_v38  ;;  %v12706_v50 = vperm.slane %v12698_v25, %v19600_v38  ;;  %v12711_v36 = vrot.slane %v12694_v8, 4  ;;  %v12714_v5 = vsel %vm253_vm1, %v12694_v8, %v12713_v0 }
0x1ef8   :  { %v12696_v28 = vsel %vm253_vm1, %v12695_v13, %v12646_v10 }
0x1ef9   :  { %v12707_v51 = vrot.slane %v12690_v27, 4  ;;  %v12722_v61 = vsel %vm253_vm1, %v12706_v50, %v12721_v20  ;;  %v12712_v3 = vsel %vm253_vm1, %v12711_v36, %v12670_v26  ;;  %v12702_v18 = vperm.slane %v12696_v28, %v19600_v38 }
0x1efa   :  { %12947 = vxpose.xlu2.b32.start.end [1/1] (short) (narrow) %v12722_v61, 8  ;;  %12787 = vxpose.xlu1.b32.start.end [1/1] (short) (narrow) %v12712_v3, 8  ;;  %v21973_v35 = vsel %vm253_vm1, %v12690_v27, %v12709_v41  ;;  %v12719_v39 = vrot.slane %v12706_v50, 4 }
0x1efb   :  { %v12708_v24 = vsel %vm253_vm1, %v12707_v51, %v12666_v2  ;;  %v12715_v53 = vrot.slane %v12702_v18, 4  ;;  %v12718_v29 = vsel %vm253_vm1, %v12702_v18, %v12717_v17 }
0x1efc   :  { %12723 = vxpose.xlu0.b32.start.end [1/1] (short) (narrow) %v12708_v24, 8  ;;  %v21977_v1 = vsel %vm253_vm1, %v12719_v39, %v12682_v15 }
0x1efd   :  { %v21970_v9 = vsel %vm253_vm1, %v12715_v53, %v12678_v30 }
0x1f24   :  { %v10439_v11 = vpop.xlane.xlu2 %10438 }
0x1f25   :  { %19393 = vrcp.f32 %v10439_v11 }
0x1f2b   :  { %v19394_v10 = vpop.eup %19393 }
0x1f2c   :  { %v10447_v56 = vmul.f32 %v19394_v10, %v21921_v45  ;;  %v10433_v34 = vpop.xlane.xlu2 %10432 }
0x1f2d   :  { %19395 = vrcp.f32 %v10433_v34 }
0x1f2e   :  { %18416 = vmatpush.xpose.msk.msrb.mxu2 %vm1367_vm2, %v10447_v56 }
0x1f30   :  { %v10436_v49 = vpop.xlane.xlu0 %10435 }
0x1f31   :  { %19397 = vrcp.f32 %v10436_v49  ;;  %18417 = vmatmul.msk.f32.vlgmr.msrb.gmra.mxu2 %vm1367_vm2, %v21859_v22  ;;  %v11151_v22 = vpop.f32.mrf.mxu3 }
0x1f32   :  { %12306 = vmatpush.msra.mxu2 %v21886_v43 }
0x1f33   :  { %v19396_v42 = vpop.eup %19395 }
0x1f34   :  { %v10445_v16 = vmul.f32 %v19396_v42, %v21925_v14 }
0x1f36   :  { %18412 = vmatpush.xpose.msk.msrb.mxu0 %vm1367_vm2, %v10445_v16 }
0x1f37   :  { %v19398_v12 = vpop.eup %19397 }
0x1f38   :  { %v10446_v45 = vmul.f32 %v19398_v12, %v21929_v60 }
0x1f39   :  { %18413 = vmatmul.msk.f32.vlgmr.msrb.gmra.mxu0 %vm1367_vm2, %v21853_v37  ;;  %18421 = vmatmul.msk.f32.vlgmr.msra.gmra.mxu2 %vm1367_vm2, %v21509_v4  ;;  %v12239_v43 = vpop.f32.mrf.mxu3 }
0x1f3a   :  { %12260 = vmatpush.msra.mxu0 %v21892_v57  ;;  %18414 = vmatpush.xpose.msk.msrb.mxu1 %vm1367_vm2, %v10446_v45  ;;  %v19480_v57 = vld [vmem:[%s19919_s29 + $0x8] sm:$0xff]  ;;  %s19515_s29 = smov 20  }
0x1f3b   :  { %v12240_v37 = vadd.f32 %v19480_v57, %v12239_v43 }
0x1f3d   :  { %18415 = vmatmul.msk.f32.vlgmr.msrb.gmra.mxu1 %vm1367_vm2, %v21856_v32  ;;  %v12311_v14 = vsel %vm1367_vm2, %v12240_v37, -inf }
0x1f3e   :  { %12283 = vmatpush.msra.mxu1 %v21895_v63 }
0x1f41   :  { %18419 = vmatmul.msk.f32.vlgmr.msra.gmra.mxu0 %vm1367_vm2, %v21514_v40 }
0x1f45   :  { %18420 = vmatmul.msk.f32.vlgmr.msra.gmra.mxu1 %vm1367_vm2, %v21503_v47 }
0x1f6d   :  { %12312 = vmax.xlane.f32.xlu0 %v12311_v14 }
0x1f93   :  { %v12963_v59 = vpop.trf.xlu2 }
0x1f94   :  { %v12997_v16 = vrot.slane %v12963_v59, 4 }
0x1f9e   :  { %v12803_v53 = vpop.trf.xlu1 }
0x1f9f   :  { %v12979_v12 = vrot.slane %v12803_v53, 4 }
0x1fa0   :  { %v22009_v6 = vpop.trf.xlu0 }
0x1fb4   :  { %v11229_v60 = vpop.f32.mrf.mxu2 }
0x1fb5   :  { %v19072_v24 = vpack.i.bf16 %v11229_v60, %v11151_v22 }
0x1fb6   :  { %v22002_v4 = vpop.f32.mrf.mxu0 }
0x1fba   :  { %v22004_v63 = vpop.f32.mrf.mxu1 }
0x1fbc   :  { %v12308_v40 = vpop.f32.mrf.mxu2 }
0x1fbd   :  { %v12309_v54 = vadd.f32 %v19480_v57, %v12308_v40 }
0x1fbe   :  { %v12262_v15 = vpop.f32.mrf.mxu0 }
0x1fbf   :  { %v12263_v32 = vadd.f32 %v19480_v57, %v12262_v15  ;;  %v12320_v62 = vsel %vm1367_vm2, %v12309_v54, -inf }
0x1fc1   :  { %v12314_v55 = vsel %vm1367_vm2, %v12263_v32, -inf }
0x1fc2   :  { %v12285_v33 = vpop.f32.mrf.mxu1  ;;  %12315 = vmax.xlane.f32.xlu2 %v12314_v55 }
0x1fc3   :  { %v12286_v47 = vadd.f32 %v19480_v57, %v12285_v33 }
0x1fc5   :  { %v12317_v48 = vsel %vm1367_vm2, %v12286_v47, -inf }
0x1fc6   :  { %12318 = vmax.xlane.f32.xlu0 %v12317_v48 }
0x1fca   :  { %12321 = vmax.xlane.f32.xlu2 %v12320_v62 }
0x1fe0   :  { %v12313_v52 = vpop.xlane.xlu0 %12312 }
0x1fe1   :  { %v12323_v30 = vsub.f32 %v12240_v37, %v12313_v52  ;;  %v12980_v37 = vsel %vm253_vm1, %v12979_v12, %v22009_v6 }
0x1fe3   :  { %v12327_v51 = vmul.f32 1.442695, %v12323_v30 }
0x1fef   :  { %12883 = vxpose.xlu0.b32.start.end [1/1] (short) (narrow) %v12718_v29, 8 }
0x1ff3   :  { %12819 = vxpose.xlu2.b32.start.end [1/1] (short) (narrow) %v12714_v5, 8 }
0x2035   :  { %v12316_v7 = vpop.xlane.xlu2 %12315 }
0x2036   :  { %v12324_v20 = vsub.f32 %v12263_v32, %v12316_v7  ;;  %v12984_v32 = vperm.slane %v12980_v37, %v19590_v23 }
0x2038   :  { %v12329_v26 = vmul.f32 1.442695, %v12324_v20  ;;  %v13005_v59 = vrot.slane %v12984_v32, 4 }
0x2039   :  { %v12319_v8 = vpop.xlane.xlu0 %12318 }
0x203a   :  { %19399 = vpow2.f32 %v12329_v26  ;;  %v12325_v44 = vsub.f32 %v12286_v47, %v12319_v8 }
0x203c   :  { %v12331_v13 = vmul.f32 1.442695, %v12325_v44 }
0x203d   :  { %v12322_v36 = vpop.xlane.xlu2 %12321 }
0x203e   :  { %19401 = vpow2.f32 %v12331_v13  ;;  %v12326_v58 = vsub.f32 %v12309_v54, %v12322_v36 }
0x2040   :  { %v19400_v2 = vpop.eup %19399  ;;  %v12333_v28 = vmul.f32 1.442695, %v12326_v58 }
0x2041   :  { %v12338_v25 = vsel %vm1367_vm2, %v19400_v2, 0.0 }
0x2042   :  { %12339 = vadd.xlane.f32.xlu1 %v12338_v25  ;;  %19403 = vpow2.f32 %v12333_v28 }
0x2043   :  { %19405 = vpow2.f32 %v12327_v51 }
0x2044   :  { %v19402_v27 = vpop.eup %19401 }
0x2045   :  { %v12341_v50 = vsel %vm1367_vm2, %v19402_v27, 0.0 }
0x2048   :  { %v19404_v61 = vpop.eup %19403 }
0x2049   :  { %v12344_v3 = vsel %vm1367_vm2, %v19404_v61, 0.0  ;;  %v19406_v18 = vpop.eup %19405 }
0x204a   :  { %12342 = vadd.xlane.f32.xlu1 %v12341_v50  ;;  %v12335_v17 = vsel %vm1367_vm2, %v19406_v18, 0.0 }
0x2060   :  { %12345 = vadd.xlane.f32.xlu0 %v12344_v3 }
0x2064   :  { %12336 = vadd.xlane.f32.xlu2 %v12335_v17 }
0x2084   :  { %12851 = vxpose.xlu1.b32.start.end [1/1] (short) (narrow) %v21970_v9, 8 }
0x2089   :  { %12755 = vxpose.xlu0.b32.start.end [1/1] (short) (narrow) %v21973_v35, 8 }
0x208c   :  { %v12835_v10 = vpop.trf.xlu2 }
0x208d   :  { %12915 = vxpose.xlu2.b32.start.end [1/1] (short) (narrow) %v21977_v1, 8  ;;  %v12985_v40 = vrot.slane %v12835_v10, 4 }
0x2091   :  { %19073 = vxpose.xlu0.b32.start.end [1/1] (short) (narrow) %v19072_v24, 8 }
0x2093   :  { %v12899_v9 = vpop.trf.xlu0 }
0x2094   :  { %v12998_v45 = vsel %vm253_vm1, %v12997_v16, %v12899_v9 }
0x2095   :  { %v13002_v43 = vperm.slane %v12998_v45, %v19590_v23 }
0x2097   :  { %v13015_v55 = vrot.slane %v13002_v43, 4 }
0x20b5   :  { %v12340_v41 = vpop.xlane.xlu1 %12339 }
0x20b6   :  { %19407 = vrcp.f32 %v12340_v41 }
0x20bc   :  { %v19408_v29 = vpop.eup %19407 }
0x20bd   :  { %v12352_v0 = vmul.f32 %v19408_v29, %v19400_v2  ;;  %v12343_v39 = vpop.xlane.xlu1 %12342 }
0x20be   :  { %19409 = vrcp.f32 %v12343_v39 }
0x20bf   :  { %18424 = vmatpush.xpose.msk.msrb.mxu0 %vm1367_vm2, %v12352_v0 }
0x20c4   :  { %v19410_v5 = vpop.eup %19409 }
0x20c5   :  { %v12353_v11 = vmul.f32 %v19410_v5, %v19402_v27 }
0x20c7   :  { %18426 = vmatpush.xpose.msk.msrb.mxu1 %vm1367_vm2, %v12353_v11 }
0x20d3   :  { %v12346_v35 = vpop.xlane.xlu0 %12345 }
0x20d4   :  { %19411 = vrcp.f32 %v12346_v35 }
0x20d7   :  { %v12337_v1 = vpop.xlane.xlu2 %12336 }
0x20d8   :  { %19413 = vrcp.f32 %v12337_v1 }
0x20da   :  { %v19412_v56 = vpop.eup %19411 }
0x20db   :  { %v12354_v34 = vmul.f32 %v19412_v56, %v19404_v61 }
0x20dd   :  { %18428 = vmatpush.xpose.msk.msrb.mxu2 %vm1367_vm2, %v12354_v34 }
0x20de   :  { %v19414_v49 = vpop.eup %19413 }
0x20df   :  { %v12351_v42 = vmul.f32 %v19414_v49, %v19406_v18 }
0x20e1   :  { %18422 = vmatpush.xpose.msk.msrb.mxu3 %vm1367_vm2, %v12351_v42 }
0x2126   :  { %v12931_v22 = vpop.trf.xlu2 }
0x2127   :  { %v12991_v57 = vrot.slane %v12931_v22, 4 }
0x2128   :  { %v12867_v14 = vpop.trf.xlu1 }
0x2129   :  { %v12992_v60 = vsel %vm253_vm1, %v12991_v57, %v12867_v14 }
0x212a   :  { %v12996_v15 = vperm.slane %v12992_v60, %v19590_v23 }
0x212c   :  { %v13017_v33 = vrot.slane %v12996_v15, 4  ;;  %v13016_v47 = vsel %vm253_vm1, %v13015_v55, %v12996_v15 }
0x212d   :  { %v12771_v54 = vpop.trf.xlu0  ;;  %v13022_v7 = vperm.slane %v13016_v47, %v19600_v38 }
0x212e   :  { %v13018_v48 = vsel %vm253_vm1, %v13002_v43, %v13017_v33  ;;  %v12986_v62 = vsel %vm253_vm1, %v12985_v40, %v12771_v54 }
0x212f   :  { %v13026_v6 = vperm.slane %v13018_v48, %v19600_v38  ;;  %v12990_v52 = vperm.slane %v12986_v62, %v19590_v23  ;;  %v13027_v27 = vrot.slane %v13022_v7, 4 }
0x2131   :  { %v13003_v20 = vrot.slane %v12990_v52, 4  ;;  %v13006_v26 = vsel %vm253_vm1, %v12990_v52, %v13005_v59  ;;  %v13031_v8 = vrot.slane %v13026_v6, 4 }
0x2132   :  { %v13014_v44 = vperm.slane %v13006_v26, %v19600_v38 }
0x2133   :  { %v13004_v13 = vsel %vm253_vm1, %v13003_v20, %v12984_v32 }
0x2134   :  { %v13032_v2 = vsel %vm253_vm1, %v13031_v8, %v13014_v44  ;;  %v13010_v25 = vperm.slane %v13004_v13, %v19600_v38  ;;  %v13033_v50 = vrot.slane %v13014_v44, 4 }
0x2135   :  { %18427 = vmatmul.msk.f32.vlgmr.msrb.gmra.mxu1 %vm1367_vm2, %v13032_v2  ;;  %v19074_v41 = vpop.trf.xlu0 }
0x2136   :  { %v13028_v36 = vsel %vm253_vm1, %v13027_v27, %v13010_v25  ;;  %v13034_v58 = vsel %vm253_vm1, %v13026_v6, %v13033_v50  ;;  %v13029_v30 = vrot.slane %v13010_v25, 4  ;;  %v19078_v29 = vunpack.i.h.bf16 %v19074_v41 }
0x2137   :  { %18423 = vmatmul.msk.f32.vlgmr.msrb.gmra.mxu3 %vm1367_vm2, %v13028_v36  ;;  %18429 = vmatmul.msk.f32.vlgmr.msrb.gmra.mxu2 %vm1367_vm2, %v13034_v58  ;;  %v19075_v9 = vunpack.i.l.bf16 %v19074_v41 }
0x2138   :  { %v13030_v28 = vsel %vm253_vm1, %v13022_v7, %v13029_v30  ;;  %v11372_v11 = vrot.slane %v19078_v29, 4 }
0x2139   :  { %18425 = vmatmul.msk.f32.vlgmr.msrb.gmra.mxu0 %vm1367_vm2, %v13030_v28  ;;  %v11362_v1 = vrot.slane %v19075_v9, 4 }
0x21b2   :  { %v13110_v24 = vpop.f32.mrf.mxu1 }
0x21b3   :  { %v19086_v53 = vpack.i.bf16 %v13110_v24, %v22004_v63 }
0x21b6   :  { %v13084_v51 = vpop.f32.mrf.mxu0 }
0x21b7   :  { %v19079_v61 = vpack.i.bf16 %v13084_v51, %v22002_v4 }
0x21b9   :  { %19080 = vxpose.xlu2.b32.start.end [1/1] (short) (narrow) %v19079_v61, 8 }
0x21ba   :  { %v13058_v3 = vpop.f32.mrf.mxu3  ;;  %v13136_v18 = vpop.f32.mrf.mxu2 }
0x21bb   :  { %v19093_v17 = vpack.i.bf16 %v13136_v18, %v13058_v3 }
0x21bd   :  { %19094 = vxpose.xlu1.b32.start.end [1/1] (short) (narrow) %v19093_v17, 8 }
0x21c1   :  { %19087 = vxpose.xlu2.b32.start.end [1/1] (short) (narrow) %v19086_v53, 8 }
0x2252   :  { %v19081_v0 = vpop.trf.xlu2 }
0x2253   :  { %v19082_v39 = vunpack.i.l.bf16 %v19081_v0  ;;  %v19085_v42 = vunpack.i.h.bf16 %v19081_v0 }
0x2255   :  { %v11374_v5 = vrot.slane %v19082_v39, 4  ;;  %v11373_v35 = vsel %vm253_vm1, %v11372_v11, %v19082_v39  ;;  %v13281_v15 = vrot.slane %v19085_v42, 4 }
0x2256   :  { %v11379_v49 = vperm.slane %v11373_v35, %v19590_v23 }
0x2257   :  { %v11375_v10 = vsel %vm253_vm1, %v19078_v29, %v11374_v5 }
0x2258   :  { %v11383_v4 = vperm.slane %v11375_v10, %v19590_v23  ;;  %v11384_v57 = vrot.slane %v11379_v49, 4 }
0x225a   :  { %v19088_v56 = vpop.trf.xlu2  ;;  %v11396_v63 = vrot.slane %v11383_v4, 4 }
0x225b   :  { %v19089_v34 = vunpack.i.l.bf16 %v19088_v56  ;;  %v19092_v16 = vunpack.i.h.bf16 %v19088_v56 }
0x225d   :  { %v11360_v12 = vrot.slane %v19089_v34, 4  ;;  %v11363_v45 = vsel %vm253_vm1, %v19089_v34, %v11362_v1  ;;  %v13267_v32 = vrot.slane %v19092_v16, 4 }
0x225e   :  { %v11371_v22 = vperm.slane %v11363_v45, %v19590_v23 }
0x225f   :  { %v11361_v43 = vsel %vm253_vm1, %v11360_v12, %v19075_v9 }
0x2260   :  { %v11367_v37 = vperm.slane %v11361_v43, %v19590_v23  ;;  %v11397_v14 = vsel %vm253_vm1, %v11396_v63, %v11371_v22  ;;  %v11398_v60 = vrot.slane %v11371_v22, 4 }
0x2261   :  { %v11403_v55 = vperm.slane %v11397_v14, %v19600_v38  ;;  %v19095_v40 = vpop.trf.xlu1 }
0x2262   :  { %v11385_v33 = vsel %vm253_vm1, %v11384_v57, %v11367_v37  ;;  %v11386_v47 = vrot.slane %v11367_v37, 4  ;;  %v11399_v54 = vsel %vm253_vm1, %v11383_v4, %v11398_v60  ;;  %v19099_v48 = vunpack.i.h.bf16 %v19095_v40 }
0x2263   :  { %v11391_v62 = vperm.slane %v11385_v33, %v19600_v38  ;;  %v11407_v59 = vperm.slane %v11399_v54, %v19600_v38  ;;  %v11412_v6 = vrot.slane %v11403_v55, 4  ;;  %v19096_v25 = vunpack.i.l.bf16 %v19095_v40 }
0x2264   :  { %v11387_v52 = vsel %vm253_vm1, %v11379_v49, %v11386_v47  ;;  %v13279_v7 = vrot.slane %v19099_v48, 4  ;;  %v13282_v20 = vsel %vm253_vm1, %v19099_v48, %v13281_v15 }
0x2265   :  { %v11395_v26 = vperm.slane %v11387_v52, %v19600_v38  ;;  %v11414_v8 = vrot.slane %v11407_v59, 4  ;;  %v11408_v44 = vrot.slane %v11391_v62, 4  ;;  %v13290_v2 = vperm.slane %v13282_v20, %v19590_v23 }
0x2266   :  { %v13280_v13 = vsel %vm253_vm1, %v13279_v7, %v19085_v42  ;;  %v11413_v50 = vsel %vm253_vm1, 0.0, %v11412_v6  ;;  %v13268_v61 = vsel %vm253_vm1, %v13267_v32, %v19096_v25  ;;  %v13269_v17 = vrot.slane %v19096_v25, 4 }
0x2267   :  { %v11410_v27 = vrot.slane %v11395_v26, 4  ;;  %v11415_v36 = vsel %vm253_vm1, 0.0, %v11414_v8  ;;  %v11427_v58 = vsel %vm253_vm1, %v11414_v8, %v11403_v55  ;;  %v13286_v28 = vperm.slane %v13280_v13, %v19590_v23 }
0x2268   :  { %v11432_v30 = vrot.slane %v11415_v36, 4  ;;  %v13303_v51 = vrot.slane %v13290_v2, 4  ;;  %v13274_v24 = vperm.slane %v13268_v61, %v19590_v23  ;;  %v11431_v0 = vperm.slane %v11427_v58, %v19590_v23 }
0x2269   :  { %v11411_v3 = vsel %vm253_vm1, 0.0, %v11410_v27  ;;  %v11416_v18 = vsel %vm253_vm1, %v11410_v27, %v11391_v62  ;;  %v13291_v41 = vrot.slane %v13286_v28, 4  ;;  %v11409_v39 = vsel %vm253_vm1, 0.0, %v11408_v44 }
0x226a   :  { %v11421_v53 = vrot.slane %v11411_v3, 4  ;;  %v11420_v29 = vperm.slane %v11416_v18, %v19590_v23  ;;  %v13270_v5 = vsel %vm253_vm1, %v19092_v16, %v13269_v17  ;;  %v13293_v11 = vrot.slane %v13274_v24, 4 }
0x226b   :  { %v11433_v9 = vsel %vm253_vm1, %v11432_v30, %v11413_v50  ;;  %v13278_v10 = vperm.slane %v13270_v5, %v19590_v23  ;;  %v13292_v4 = vsel %vm253_vm1, %v13291_v41, %v13274_v24  ;;  %v11452_v45 = vrot.slane %v11431_v0, 4 }
0x226c   :  { %v11422_v35 = vsel %vm253_vm1, %v11421_v53, %v11409_v39  ;;  %v11437_v1 = vperm.slane %v11433_v9, %v19590_v23  ;;  %v13294_v56 = vsel %vm253_vm1, %v13286_v28, %v13293_v11  ;;  %v13298_v34 = vperm.slane %v13292_v4, %v19600_v38 }
0x226d   :  { %v11426_v49 = vperm.slane %v11422_v35, %v19590_v23  ;;  %v11440_v63 = vrot.slane %v11420_v29, 4  ;;  %v13302_v42 = vperm.slane %v13294_v56, %v19600_v38  ;;  %v13304_v16 = vsel %vm253_vm1, %v13303_v51, %v13278_v10 }
0x226e   :  { %v13305_v12 = vrot.slane %v13278_v10, 4  ;;  %v13310_v22 = vperm.slane %v13304_v16, %v19600_v38  ;;  %v13315_v43 = vrot.slane %v13298_v34, 4  ;;  %v11453_v33 = vsel %vm253_vm1, %v11437_v1, %v11452_v45 }
0x226f   :  { %v13317_v37 = vrot.slane %v13302_v42, 4  ;;  %v11438_v14 = vrot.slane %v11426_v49, 4  ;;  %v11441_v15 = vsel %vm253_vm1, %v11426_v49, %v11440_v63  ;;  %v11450_v52 = vrot.slane %v11437_v1, 4 }
0x2270   :  { %v13306_v57 = vsel %vm253_vm1, %v13290_v2, %v13305_v12  ;;  %v13316_v32 = vsel %vm253_vm1, 0.0, %v13315_v43  ;;  %v13319_v47 = vrot.slane %v13310_v22, 4  ;;  %v11449_v59 = vperm.slane %v11441_v15, %v19600_v38  ;;  %v18594_v15 = vld [vmem:[%s20280_s3 + $0x18] sm:$0xff] }
0x2271   :  { %v13314_v60 = vperm.slane %v13306_v57, %v19600_v38  ;;  %v13318_v55 = vsel %vm253_vm1, 0.0, %v13317_v37  ;;  %v13323_v40 = vsel %vm253_vm1, %v13317_v37, %v13298_v34  ;;  %v11439_v6 = vsel %vm253_vm1, %v11438_v14, %v11420_v29  ;;  %v18590_v14 = vld [vmem:[%s20508_s1 + $0x18] sm:$0xff]  ;;  %13565 = vmatpush.bf16.msra.mxu1 %v18594_v15 }
0x2272   :  { %v13327_v48 = vperm.slane %v13323_v40, %v19590_v23  ;;  %v13328_v62 = vrot.slane %v13318_v55, 4  ;;  %v11461_v13 = vperm.slane %v11453_v33, %v19600_v38  ;;  %v13320_v27 = vsel %vm253_vm1, 0.0, %v13319_v47  ;;  %13417 = vmatpush.bf16.msra.mxu3 %v18590_v14 }
0x2273   :  { %v13321_v54 = vrot.slane %v13314_v60, 4  ;;  %v11445_v50 = vperm.slane %v11439_v6, %v19600_v38  ;;  %v11451_v36 = vsel %vm253_vm1, %v11450_v52, %v11431_v0  ;;  %v11468_v61 = vrot.slane %v11449_v59, 4  ;;  %v18589_v60 = vld [vmem:[%s20508_s1 + $0x10] sm:$0xff] }
0x2274   :  { %v13329_v20 = vsel %vm253_vm1, %v13328_v62, %v13316_v32  ;;  %v13347_v8 = vrot.slane %v13327_v48, 4  ;;  %v11457_v51 = vperm.slane %v11451_v36, %v19600_v38  ;;  %v11466_v24 = vrot.slane %v11461_v13, 4  ;;  %v18593_v32 = vld [vmem:[%s20280_s3 + $0x10] sm:$0xff] }
0x2275   :  { %v13322_v7 = vsel %vm253_vm1, 0.0, %v13321_v54  ;;  %v13334_v26 = vsel %vm253_vm1, %v13321_v54, %v13310_v22  ;;  %v13333_v2 = vperm.slane %v13329_v20, %v19590_v23  ;;  %v11464_v11 = vrot.slane %v11445_v50, 4  ;;  %13566 = vmatpush.bf16.msra.mxu1 %v18593_v32 }
0x2276   :  { %v13339_v44 = vrot.slane %v13322_v7, 4  ;;  %v13338_v25 = vperm.slane %v13334_v26, %v19590_v23  ;;  %v11462_v53 = vrot.slane %v11457_v51, 4  ;;  %v11469_v4 = vsel %vm253_vm1, %v11461_v13, %v11468_v61  ;;  %13418 = vmatpush.bf16.msra.mxu3 %v18589_v60  ;;  %v19288_v13 = vld [vmem:[%s20492_s26 + $0x1] ss:$0 sm:$0xff]  ;;  %s18228_s26 = sld [smem:[%s23070_s0 + %s19515_s29]]  }
0x2277   :  { %v13348_v30 = vsel %vm253_vm1, %v13333_v2, %v13347_v8  ;;  %v13345_v17 = vrot.slane %v13333_v2, 4  ;;  %v11467_v42 = vsel %vm253_vm1, %v11466_v24, %v11449_v59  ;;  %v11465_v12 = vsel %vm253_vm1, %v11457_v51, %v11464_v11  ;;  %v19289_v51 = vld [vmem:[%s20296_s14 + $0x1] ss:$0 sm:$0xff] }
0x2278   :  { %v13340_v58 = vsel %vm253_vm1, %v13339_v44, %v13320_v27  ;;  %v13359_v28 = vrot.slane %v13338_v25, 4  ;;  %v13356_v18 = vperm.slane %v13348_v30, %v19600_v38  ;;  %v11463_v10 = vsel %vm253_vm1, %v11462_v53, %v11445_v50  ;;  %18473 = vmatmul.msk.bf16.vlgmr.msra.gmra.mxu1 %vm185_vm0, %v20287_v46 }
0x2279   :  { %v13344_v3 = vperm.slane %v13340_v58, %v19590_v23  ;;  %v13346_v0 = vsel %vm253_vm1, %v13345_v17, %v13327_v48 }
0x227a   :  { %v13375_v29 = vrot.slane %v13356_v18, 4  ;;  %v13352_v9 = vperm.slane %v13346_v0, %v19600_v38 }
0x227b   :  { %v13360_v41 = vsel %vm253_vm1, %v13344_v3, %v13359_v28  ;;  %v13357_v39 = vrot.slane %v13344_v3, 4 }
0x227c   :  { %v13368_v5 = vperm.slane %v13360_v41, %v19600_v38  ;;  %v13371_v49 = vrot.slane %v13352_v9, 4 }
0x227d   :  { %v13358_v35 = vsel %vm253_vm1, %v13357_v39, %v13338_v25 }
0x227e   :  { %v13376_v1 = vsel %vm253_vm1, %v13368_v5, %v13375_v29  ;;  %v13373_v56 = vrot.slane %v13368_v5, 4  ;;  %v13364_v34 = vperm.slane %v13358_v35, %v19600_v38 }
0x227f   :  { %v19105_v63 = vpack.i.bf16 %v13376_v1, %v11469_v4 }
0x2280   :  { %v13374_v16 = vsel %vm253_vm1, %v13373_v56, %v13356_v18  ;;  %v13372_v45 = vsel %vm253_vm1, %v13364_v34, %v13371_v49  ;;  %v13369_v22 = vrot.slane %v13364_v34, 4 }
0x2281   :  { %19106 = vrot.lane.b32.xlu2 %v19105_v63, %s19497_s15  ;;  %v19100_v43 = vpack.i.bf16 %v13374_v16, %v11467_v42  ;;  %v19110_v57 = vpack.i.bf16 %v13372_v45, %v11465_v12 }
0x2282   :  { %v13370_v37 = vsel %vm253_vm1, %v13369_v22, %v13352_v9 }
0x2283   :  { %19101 = vrot.lane.b32.xlu1 %v19100_v43, %s23087_s17  ;;  %19111 = vrot.lane.b32.xlu0 %v19110_v57, %s23088_s21 }
0x22db   :  { %v19107_v55 = vpop.permute.xlu2 %19106 }
0x22dc   :  { %v19109_v59 = vunpack.i.h.bf16 %v19107_v55  ;;  %v19108_v6 = vunpack.i.l.bf16 %v19107_v55 }
0x22f5   :  { %v19102_v40 = vpop.permute.xlu1 %19101  ;;  %v19112_v33 = vpop.permute.xlu0 %19111 }
0x22f6   :  { %v19104_v47 = vunpack.i.h.bf16 %v19102_v40  ;;  %v19103_v54 = vunpack.i.l.bf16 %v19102_v40  ;;  %v19114_v48 = vunpack.i.h.bf16 %v19112_v33  ;;  %v19113_v62 = vunpack.i.l.bf16 %v19112_v33  ;;  %v13568_v61 = vpop.f32.mrf.mxu1 }
0x22f7   :  { %v13569_v3 = vadd.f32 %v19289_v51, %v13568_v61 }
0x22f8   :  { %v13389_v52 = vsel %vm1367_vm2, %v13370_v37, %v19114_v48  ;;  %v11482_v7 = vsel %vm1367_vm2, %v11463_v10, %v19113_v62 }
0x22f9   :  { %v13390_v20 = vsel %vm2539_vm3, %v13389_v52, %v19104_v47  ;;  %v11483_v26 = vsel %vm2539_vm3, %v11482_v7, %v19103_v54  ;;  %v13727_v56 = vrot.slane %v13569_v3, 4 }
0x22fa   :  { %v13391_v46 = vsel %vm2541_vm4, %v13390_v20, %v19109_v59  ;;  %v11484_v8 = vsel %vm2541_vm4, %v11483_v26, %v19108_v6 }
0x22fb   :  { %v13392_v44 = vpack.c.bf16 %v13391_v46, %v11484_v8 }
0x22fd   :  { %18438 = vmatmul.msk.bf16.vlgmr.msra.gmra.mxu3 %vm185_vm0, %v13392_v44 }
0x22fe   :  { %v13570_v29 = vpop.f32.mrf.mxu1 }
0x22ff   :  { %v22167_v0 = vadd.f32 %v19289_v51, %v13570_v29 }
0x2380   :  { %v13420_v2 = vpop.f32.mrf.mxu3 }
0x2381   :  { %v13421_v25 = vadd.f32 %v19288_v13, %v13420_v2 }
0x2383   :  { %v13425_v27 = vadd.f32 %v13421_v25, %v21356_v21 }
0x2385   :  { %v13427_v50 = vsel %vm185_vm0, %v13425_v27, 0.0 }
0x2386   :  { %13428 = vadd.xlane.f32.xlu1 %v13427_v50 }
0x2388   :  { %v13422_v36 = vpop.f32.mrf.mxu3 }
0x2389   :  { %v13423_v58 = vadd.f32 %v19288_v13, %v13422_v36 }
0x238b   :  { %v22149_v30 = vadd.f32 %v13423_v58, %v21358_v19 }
0x238d   :  { %v13430_v28 = vsel %vm185_vm0, %v22149_v30, 0.0 }
0x238e   :  { %13431 = vadd.xlane.f32.xlu0 %v13430_v28 }
0x239f   :  { %13719 = vrot.lane.b32.xlu1 %v13569_v3, %s23083_s6 }
0x23a2   :  { %13707 = vrot.lane.b32.xlu0 %v13569_v3, %s23085_s12 }
0x23a7   :  { %13837 = vrot.lane.b32.xlu1 %v13569_v3, %s23086_s22 }
0x23f9   :  { %v13429_v21 = vpop.xlane.xlu1 %13428 }
0x23fa   :  { %v13433_v18 = vmul.f32 %v13429_v21, %v20539_v31 }
0x23fc   :  { %v22158_v17 = vsub.f32 %v13425_v27, %v13433_v18 }
0x23fe   :  { %v13437_v19 = vmul.f32 %v22158_v17, %v22158_v17 }
0x2400   :  { %v13439_v24 = vsel %vm185_vm0, %v13437_v19, 0.0 }
0x2401   :  { %13440 = vadd.xlane.f32.xlu2 %v13439_v24  ;;  %v22163_v53 = vpop.xlane.xlu0 %13431 }
0x2411   :  { %v13720_v39 = vpop.permute.xlu1 %13719 }
0x2412   :  { %v13737_v11 = vrot.slane %v13720_v39, 4 }
0x2414   :  { %v13708_v41 = vpop.permute.xlu0 %13707 }
0x2415   :  { %v13739_v5 = vrot.slane %v13708_v41, 4  ;;  %v13738_v10 = vsel %vm253_vm1, %v13737_v11, %v13708_v41 }
0x2416   :  { %v13744_v35 = vperm.slane %v13738_v10, %v19590_v23 }
0x2417   :  { %v13740_v4 = vsel %vm253_vm1, %v13720_v39, %v13739_v5 }
0x2418   :  { %v13748_v1 = vperm.slane %v13740_v4, %v19590_v23  ;;  %v13749_v42 = vrot.slane %v13744_v35, 4 }
0x2419   :  { %13713 = vrot.lane.b32.xlu2 %v13569_v3, %s23084_s10  ;;  %v22203_v50 = vpop.permute.xlu1 %13837 }
0x241a   :  { %v13761_v16 = vrot.slane %v13748_v1, 4 }
0x2421   :  { %13841 = vrot.lane.b32.xlu2 %v13708_v41, %s23086_s22 }
0x2429   :  { %13709 = vrot.lane.b32.xlu2 %v22167_v0, %s23085_s12 }
0x2474   :  { %v22171_v9 = vpop.xlane.xlu2 %13440 }
0x247c   :  { %v13714_v34 = vpop.permute.xlu2 %13713 }
0x247d   :  { %v13725_v49 = vrot.slane %v13714_v34, 4  ;;  %v13728_v63 = vsel %vm253_vm1, %v13714_v34, %v13727_v56  ;;  %13845 = vrot.lane.b32.xlu1 %v13714_v34, %s23086_s22 }
0x247e   :  { %v13736_v12 = vperm.slane %v13728_v63, %v19590_v23 }
0x247f   :  { %v13726_v45 = vsel %vm253_vm1, %v13725_v49, %v13569_v3 }
0x2480   :  { %v13732_v22 = vperm.slane %v13726_v45, %v19590_v23  ;;  %v13763_v43 = vrot.slane %v13736_v12, 4  ;;  %v13762_v37 = vsel %vm253_vm1, %v13761_v16, %v13736_v12 }
0x2481   :  { %v13768_v33 = vperm.slane %v13762_v37, %v19600_v38 }
0x2482   :  { %v13751_v57 = vrot.slane %v13732_v22, 4  ;;  %v13750_v14 = vsel %vm253_vm1, %v13749_v42, %v13732_v22  ;;  %v13764_v15 = vsel %vm253_vm1, %v13748_v1, %v13763_v43 }
0x2483   :  { %v13756_v60 = vperm.slane %v13750_v14, %v19600_v38  ;;  %v13772_v55 = vperm.slane %v13764_v15, %v19600_v38  ;;  %v13777_v20 = vrot.slane %v13768_v33, 4 }
0x2484   :  { %v13752_v32 = vsel %vm253_vm1, %v13744_v35, %v13751_v57  ;;  %v22199_v44 = vpop.permute.xlu2 %13841 }
0x2485   :  { %v13760_v40 = vperm.slane %v13752_v32, %v19600_v38  ;;  %v13773_v47 = vrot.slane %v13756_v60, 4  ;;  %v13779_v59 = vrot.slane %v13772_v55, 4  ;;  %v13778_v46 = vsel %vm253_vm1, 0.0, %v13777_v20 }
0x2487   :  { %v19115_v54 = vpack.i.bf16 %v13768_v33, %v13760_v40  ;;  %v13774_v48 = vsel %vm253_vm1, 0.0, %v13773_v47  ;;  %v13780_v6 = vsel %vm253_vm1, 0.0, %v13779_v59  ;;  %v13775_v7 = vrot.slane %v13760_v40, 4 }
0x2488   :  { %v19136_v62 = vpack.i.bf16 %v13774_v48, %v13756_v60  ;;  %v19122_v52 = vpack.i.bf16 %v13780_v6, %v13772_v55 }
0x2489   :  { %19116 = vxpose.xlu0.b32.start.end [1/1] (short) (narrow) %v19115_v54, 8  ;;  %v13776_v26 = vsel %vm253_vm1, 0.0, %v13775_v7 }
0x248a   :  { %19137 = vxpose.xlu2.b32.start.end [1/1] (short) (narrow) %v19136_v62, 8  ;;  %v19129_v8 = vpack.i.bf16 %v13778_v46, %v13776_v26 }
0x248c   :  { %v22201_v13 = vpop.permute.xlu2 %13709 }
0x2491   :  { %19123 = vxpose.xlu0.b32.start.end [1/1] (short) (narrow) %v19122_v52, 8 }
0x24b2   :  { %19130 = vxpose.xlu1.b32.start.end [1/1] (short) (narrow) %v19129_v8, 8 }
0x24ef   :  { %v22205_v21 = vpop.permute.xlu1 %13845 }
0x24ff   :  { %13849 = vrot.lane.b32.xlu0 %v13720_v39, %s23086_s22 }
0x2507   :  { %13721 = vrot.lane.b32.xlu0 %v22167_v0, %s23083_s6 }
0x250f   :  { %13715 = vrot.lane.b32.xlu0 %v22167_v0, %s23084_s10 }
0x2523   :  { %v19138_v2 = vpop.trf.xlu2 }
0x2524   :  { %v19139_v36 = vunpack.i.l.bf16 %v19138_v2  ;;  %v19142_v24 = vunpack.i.h.bf16 %v19138_v2 }
0x2526   :  { %v14285_v61 = vrot.slane %v19139_v36, 4  ;;  %v14297_v35 = vrot.slane %v19142_v24, 4 }
0x252d   :  { %v19117_v25 = vpop.trf.xlu0 }
0x252e   :  { %v19121_v28 = vunpack.i.h.bf16 %v19117_v25  ;;  %v19118_v51 = vunpack.i.l.bf16 %v19117_v25 }
0x2530   :  { %v14309_v18 = vrot.slane %v19121_v28, 4  ;;  %v14283_v19 = vrot.slane %v19118_v51, 4  ;;  %v14286_v41 = vsel %vm253_vm1, %v19118_v51, %v14285_v61 }
0x2531   :  { %v14294_v10 = vperm.slane %v14286_v41, %v19590_v23 }
0x2532   :  { %v14284_v5 = vsel %vm253_vm1, %v14283_v19, %v19139_v36 }
0x2533   :  { %v14290_v56 = vperm.slane %v14284_v5, %v19590_v23  ;;  %v14345_v16 = vrot.slane %v14294_v10, 4 }
0x2535   :  { %v19124_v27 = vpop.trf.xlu0  ;;  %v14333_v37 = vrot.slane %v14290_v56, 4 }
0x2536   :  { %v19125_v58 = vunpack.i.l.bf16 %v19124_v27  ;;  %v19128_v29 = vunpack.i.h.bf16 %v19124_v27 }
0x2538   :  { %v14307_v3 = vrot.slane %v19125_v58, 4  ;;  %v14310_v11 = vsel %vm253_vm1, %v19125_v58, %v14309_v18  ;;  %v14319_v1 = vrot.slane %v19128_v29, 4 }
0x2539   :  { %v14318_v34 = vperm.slane %v14310_v11, %v19590_v23 }
0x253a   :  { %v14308_v39 = vsel %vm253_vm1, %v14307_v3, %v19121_v28 }
0x253b   :  { %v14314_v4 = vperm.slane %v14308_v39, %v19590_v23  ;;  %v14369_v15 = vrot.slane %v14318_v34, 4 }
0x253d   :  { %v14357_v12 = vrot.slane %v14314_v4, 4 }
0x2556   :  { %v19131_v49 = vpop.trf.xlu1 }
0x2557   :  { %v19135_v63 = vunpack.i.h.bf16 %v19131_v49  ;;  %v19132_v42 = vunpack.i.l.bf16 %v19131_v49 }
0x2559   :  { %v14320_v45 = vsel %vm253_vm1, %v14319_v1, %v19135_v63  ;;  %v14321_v22 = vrot.slane %v19135_v63, 4  ;;  %v14295_v43 = vrot.slane %v19132_v42, 4  ;;  %v14298_v57 = vsel %vm253_vm1, %v19132_v42, %v14297_v35 }
0x255a   :  { %v14326_v14 = vperm.slane %v14320_v45, %v19590_v23  ;;  %v14306_v60 = vperm.slane %v14298_v57, %v19590_v23  ;;  %v13875_v45 = vrot.slane %v22199_v44, 4 }
0x255b   :  { %v14322_v32 = vsel %vm253_vm1, %v19128_v29, %v14321_v22  ;;  %v14296_v55 = vsel %vm253_vm1, %v14295_v43, %v19142_v24  ;;  %v13863_v22 = vrot.slane %v22203_v50, 4  ;;  %v13861_v43 = vrot.slane %v22205_v21, 4 }
0x255c   :  { %v14330_v40 = vperm.slane %v14322_v32, %v19590_v23  ;;  %v14302_v33 = vperm.slane %v14296_v55, %v19590_v23  ;;  %v14343_v47 = vrot.slane %v14306_v60, 4  ;;  %v14355_v54 = vrot.slane %v14326_v14, 4 }
0x255d   :  { %v14346_v48 = vsel %vm253_vm1, %v14306_v60, %v14345_v16  ;;  %v14358_v62 = vsel %vm253_vm1, %v14326_v14, %v14357_v12  ;;  %v13862_v32 = vsel %vm253_vm1, %v13861_v43, %v22203_v50  ;;  %v13795_v50 = vrot.slane %v22201_v13, 4 }
0x255e   :  { %v14367_v59 = vrot.slane %v14330_v40, 4  ;;  %v14331_v6 = vrot.slane %v14302_v33, 4  ;;  %v14334_v52 = vsel %vm253_vm1, %v14302_v33, %v14333_v37  ;;  %v14354_v7 = vperm.slane %v14346_v48, %v19600_v38 }
0x255f   :  { %v14342_v20 = vperm.slane %v14334_v52, %v19600_v38  ;;  %v14366_v26 = vperm.slane %v14358_v62, %v19600_v38  ;;  %v14370_v46 = vsel %vm253_vm1, %v14330_v40, %v14369_v15  ;;  %v14344_v8 = vsel %vm253_vm1, %v14343_v47, %v14294_v10 }
0x2560   :  { %v14378_v2 = vperm.slane %v14370_v46, %v19600_v38  ;;  %v14393_v25 = vrot.slane %v14354_v7, 4  ;;  %v14350_v27 = vperm.slane %v14344_v8, %v19600_v38  ;;  %v14368_v36 = vsel %vm253_vm1, %v14367_v59, %v14318_v34 }
0x2561   :  { %v14385_v58 = vrot.slane %v14342_v20, 4  ;;  %v14374_v28 = vperm.slane %v14368_v36, %v19600_v38  ;;  %v14332_v51 = vsel %vm253_vm1, %v14331_v6, %v14290_v56  ;;  %v14356_v61 = vsel %vm253_vm1, %v14355_v54, %v14314_v4 }
0x2562   :  { %v14391_v3 = vrot.slane %v14378_v2, 4  ;;  %v14394_v18 = vsel %vm253_vm1, %v14378_v2, %v14393_v25  ;;  %v14389_v19 = vrot.slane %v14350_v27, 4  ;;  %v14338_v24 = vperm.slane %v14332_v51, %v19600_v38 }
0x2563   :  { %v14386_v41 = vsel %vm253_vm1, %v14366_v26, %v14385_v58  ;;  %v14362_v29 = vperm.slane %v14356_v61, %v19600_v38  ;;  %v14383_v39 = vrot.slane %v14366_v26, 4  ;;  %v14387_v5 = vrot.slane %v14374_v28, 4 }
0x2564   :  { %v19143_v11 = vpack.i.bf16 %v14386_v41, %v14394_v18  ;;  %v14390_v10 = vsel %vm253_vm1, %v14374_v28, %v14389_v19  ;;  %v14392_v35 = vsel %vm253_vm1, %v14391_v3, %v14354_v7  ;;  %v14381_v1 = vrot.slane %v14338_v24, 4 }
0x2565   :  { %v19157_v56 = vpack.i.bf16 %v14392_v35, %v14390_v10  ;;  %v14379_v4 = vrot.slane %v14362_v29, 4  ;;  %v14384_v49 = vsel %vm253_vm1, %v14383_v39, %v14342_v20  ;;  %v14388_v42 = vsel %vm253_vm1, %v14387_v5, %v14350_v27 }
0x2566   :  { %19144 = vxpose.xlu2.b32.start.end [1/1] (short) (narrow) %v19143_v11, 8  ;;  %v14382_v34 = vsel %vm253_vm1, %v14362_v29, %v14381_v1  ;;  %v13864_v37 = vsel %vm253_vm1, %v22205_v21, %v13863_v22  ;;  %v22263_v54 = vperm.slane %v13862_v32, %v19590_v23  ;;  %v13783_v27 = vrot.slane %v22167_v0, 4 }
0x2567   :  { %19158 = vxpose.xlu0.b32.start.end [1/1] (short) (narrow) %v19157_v56, 8  ;;  %v14380_v63 = vsel %vm253_vm1, %v14379_v4, %v14338_v24  ;;  %v19150_v16 = vpack.i.bf16 %v14384_v49, %v14382_v34  ;;  %v13872_v40 = vperm.slane %v13864_v37, %v19590_v23 }
0x2568   :  { %v19164_v12 = vpack.i.bf16 %v14380_v63, %v14388_v42 }
0x2569   :  { %v13899_v46 = vrot.slane %v13872_v40, 4 }
0x256e   :  { %19151 = vxpose.xlu2.b32.start.end [1/1] (short) (narrow) %v19150_v16, 8 }
0x256f   :  { %19165 = vxpose.xlu0.b32.start.end [1/1] (short) (narrow) %v19164_v12, 8 }
0x2571   :  { %v13850_v57 = vpop.permute.xlu0 %13849 }
0x2572   :  { %v13873_v14 = vrot.slane %v13850_v57, 4  ;;  %v13876_v60 = vsel %vm253_vm1, %v13850_v57, %v13875_v45 }
0x2573   :  { %v13884_v15 = vperm.slane %v13876_v60, %v19590_v23 }
0x2574   :  { %v13874_v55 = vsel %vm253_vm1, %v13873_v14, %v22199_v44 }
0x2575   :  { %v22260_v33 = vperm.slane %v13874_v55, %v19590_v23  ;;  %v13897_v47 = vrot.slane %v13884_v15, 4  ;;  %v13900_v25 = vsel %vm253_vm1, %v13884_v15, %v13899_v46 }
0x2576   :  { %v13908_v61 = vperm.slane %v13900_v25, %v19600_v38 }
0x2577   :  { %v13885_v21 = vrot.slane %v22260_v33, 4  ;;  %v13898_v48 = vsel %vm253_vm1, %v13897_v47, %v13872_v40  ;;  %v13434_v47 = vmul.f32 %v22163_v53, %v20539_v31 }
0x2578   :  { %v13904_v62 = vperm.slane %v13898_v48, %v19600_v38  ;;  %v13915_v45 = vrot.slane %v13908_v61, 4 }
0x2579   :  { %v22268_v59 = vpop.permute.xlu0 %13721  ;;  %v13886_v44 = vsel %vm253_vm1, %v13885_v21, %v22263_v54  ;;  %v22311_v21 = vsub.f32 %v22149_v30, %v13434_v47 }
0x257a   :  { %v13793_v6 = vrot.slane %v22268_v59, 4  ;;  %14971 = vxpose.xlu1.b32.start.end [1/1] (short) (narrow) %v13904_v62, 8  ;;  %v13892_v52 = vperm.slane %v13886_v44, %v19600_v38  ;;  %v13913_v7 = vrot.slane %v13904_v62, 4  ;;  %v13796_v20 = vsel %vm253_vm1, %v22268_v59, %v13795_v50 }
0x257b   :  { %v13804_v2 = vperm.slane %v13796_v20, %v19590_v23  ;;  %v13916_v57 = vsel %vm253_vm1, 0.0, %v13915_v45  ;;  %v13438_v48 = vmul.f32 %v22311_v21, %v22311_v21  ;;  %v13887_v44 = vrot.slane %v22263_v54, 4  ;;  %v18592_v54 = vld [vmem:[%s20574_s20 + $0x18] sm:$0xff] }
0x257c   :  { %14843 = vxpose.xlu2.b32.start.end [1/1] (short) (narrow) %v13892_v52, 8  ;;  %v13914_v26 = vsel %vm253_vm1, 0.0, %v13913_v7  ;;  %v13794_v8 = vsel %vm253_vm1, %v13793_v6, %v22201_v13  ;;  %v13909_v11 = vrot.slane %v13892_v52, 4  ;;  %v13445_v52 = vmul.f32 %v22171_v9, %v20539_v31  ;;  %13536 = vmatpush.bf16.msra.mxu0 %v18592_v54  ;;  %v19290_v54 = vld [vmem:[%s20537_s7 + $0x1] ss:$0 sm:$0xff] }
0x257d   :  { %15003 = vxpose.xlu0.b32.start.end [1/1] (short) (narrow) %v13914_v26, 8  ;;  %v13800_v36 = vperm.slane %v13794_v8, %v19590_v23  ;;  %v13817_v3 = vrot.slane %v13804_v2, 4  ;;  %v13442_v62 = vsel %vm185_vm0, %v13438_v48, 0.0  ;;  %v13888_v50 = vsel %vm253_vm1, %v22260_v33, %v13887_v44  ;;  %v18591_v33 = vld [vmem:[%s20574_s20 + $0x10] sm:$0xff]  ;;  %s19517_s20 = smov 31  }
0x257e   :  { %v13910_v63 = vsel %vm253_vm1, 0.0, %v13909_v11  ;;  %v13896_v6 = vperm.slane %v13888_v50, %v19600_v38  ;;  %v13447_v7 = vadd.f32 1e-05, %v13445_v52 }
0x257f   :  { %v13805_v24 = vrot.slane %v13800_v36, 4 }
0x2580   :  { %v13911_v53 = vrot.slane %v13896_v6, 4  ;;  %19415 = vrsqrt.f32 %v13447_v7  ;;  %13537 = vmatpush.bf16.msra.mxu0 %v18591_v33  ;;  %vm13455_vm15 = vweird.f32 %v13447_v7 }
0x2581   :  { %v22284_v58 = vpop.permute.xlu0 %13715 }
0x2582   :  { %v13781_v28 = vrot.slane %v22284_v58, 4  ;;  %v13784_v51 = vsel %vm253_vm1, %v22284_v58, %v13783_v27  ;;  %v13912_v30 = vsel %vm253_vm1, 0.0, %v13911_v53 }
0x2583   :  { %v13792_v18 = vperm.slane %v13784_v51, %v19590_v23 }
0x2584   :  { %v13782_v19 = vsel %vm253_vm1, %v13781_v28, %v22167_v0  ;;  %15035 = vxpose.xlu2.b32.start.end [1/1] (short) (narrow) %v13908_v61, 8 }
0x2585   :  { %v13788_v41 = vperm.slane %v13782_v19, %v19590_v23  ;;  %v13818_v29 = vsel %vm253_vm1, %v13817_v3, %v13792_v18  ;;  %v13819_v39 = vrot.slane %v13792_v18, 4 }
0x2586   :  { %v13824_v5 = vperm.slane %v13818_v29, %v19600_v38  ;;  %v22325_v26 = vpop.eup %19415 }
0x2587   :  { %v13820_v10 = vsel %vm253_vm1, %v13804_v2, %v13819_v39  ;;  %v13806_v35 = vsel %vm253_vm1, %v13805_v24, %v13788_v41  ;;  %v13807_v1 = vrot.slane %v13788_v41, 4  ;;  %v13450_v46 = vmul.f32 %v22325_v26, %v13447_v7 }
0x2588   :  { %v13828_v56 = vperm.slane %v13820_v10, %v19600_v38  ;;  %v13833_v4 = vrot.slane %v13824_v5, 4  ;;  %v13812_v34 = vperm.slane %v13806_v35, %v19600_v38  ;;  %vm13456_vm14 = vweird.f32 %v22325_v26 }
0x2589   :  { %v13808_v16 = vsel %vm253_vm1, %v13800_v36, %v13807_v1  ;;  %v13451_v8 = vmul.f32 %v22325_v26, %v13450_v46  ;;  %vm13457_vm5 = vmor %vm13455_vm15, %vm13456_vm14 }
0x258a   :  { %v13834_v49 = vsel %vm253_vm1, 0.0, %v13833_v4  ;;  %v13829_v12 = vrot.slane %v13812_v34, 4  ;;  %v13816_v22 = vperm.slane %v13808_v16, %v19600_v38  ;;  %v19171_v14 = vpack.i.bf16 %v13812_v34, %v13824_v5 }
0x258b   :  { %v19178_v42 = vpack.i.bf16 %v13828_v56, %v13834_v49  ;;  %v13835_v15 = vrot.slane %v13828_v56, 4  ;;  %v13452_v3 = vmul.f32 0.5, %v13451_v8 }
0x258c   :  { %14875 = vxpose.xlu2.b32.start.end [1/1] (short) (narrow) %v13910_v63, 8  ;;  %v13830_v43 = vsel %vm253_vm1, 0.0, %v13829_v12  ;;  %v13831_v60 = vrot.slane %v13816_v22, 4 }
0x258d   :  { %19179 = vxpose.xlu0.b32.start.end [1/1] (short) (narrow) %v19178_v42, 8  ;;  %v19185_v37 = vpack.i.bf16 %v13816_v22, %v13830_v43  ;;  %v13836_v55 = vsel %vm253_vm1, 0.0, %v13835_v15  ;;  %v13453_v39 = vsub.f32 1.5, %v13452_v3 }
0x258e   :  { %v13832_v32 = vsel %vm253_vm1, 0.0, %v13831_v60 }
0x258f   :  { %v19192_v40 = vpack.i.bf16 %v13832_v32, %v13836_v55  ;;  %v13454_v45 = vmul.f32 %v22325_v26, %v13453_v39 }
0x2591   :  { %v13458_v48 = vsel %vm13457_vm5, %v22325_v26, %v13454_v45 }
0x2592   :  { %v13469_v46 = vmul.f32 %v13458_v48, %v22158_v17 }
0x2594   :  { %15067 = vxpose.xlu2.b32.start.end [1/1] (short) (narrow) %v13916_v57, 8  ;;  %v13474_v17 = vmul.f32 %v19290_v54, %v13469_v46 }
0x2595   :  { %19186 = vxpose.xlu0.b32.start.end [1/1] (short) (narrow) %v19185_v37, 8 }
0x259c   :  { %19172 = vxpose.xlu2.b32.start.end [1/1] (short) (narrow) %v19171_v14, 8 }
0x25a4   :  { %19193 = vxpose.xlu2.b32.start.end [1/1] (short) (narrow) %v19192_v40, 8 }
0x25da   :  { %13443 = vadd.xlane.f32.xlu1 %v13442_v62 }
0x25ff   :  { %v19145_v2 = vpop.trf.xlu2 }
0x2600   :  { %v19146_v36 = vunpack.i.l.bf16 %v19145_v2  ;;  %v19149_v28 = vunpack.i.h.bf16 %v19145_v2 }
0x2602   :  { %v14669_v51 = vrot.slane %v19146_v36, 4  ;;  %v14657_v41 = vrot.slane %v19149_v28, 4 }
0x2607   :  { %v19152_v5 = vpop.trf.xlu2 }
0x2608   :  { %v19156_v35 = vunpack.i.h.bf16 %v19152_v5  ;;  %v19153_v1 = vunpack.i.l.bf16 %v19152_v5 }
0x260a   :  { %v14651_v34 = vrot.slane %v19156_v35, 4  ;;  %v14658_v49 = vsel %vm253_vm1, %v14657_v41, %v19153_v1 }
0x260b   :  { %v19159_v25 = vpop.trf.xlu0  ;;  %v14662_v16 = vperm.slane %v14658_v49, %v19590_v23 }
0x260c   :  { %v19160_v61 = vunpack.i.l.bf16 %v19159_v25  ;;  %v19163_v19 = vunpack.i.h.bf16 %v19159_v25 }
0x260d   :  { %v14675_v37 = vrot.slane %v14662_v16, 4 }
0x260e   :  { %v14670_v24 = vsel %vm253_vm1, %v14669_v51, %v19160_v61  ;;  %v14663_v11 = vrot.slane %v19163_v19, 4  ;;  %v19291_v51 = vld [vmem:[%s20552_s11 + $0x1] ss:$0 sm:$0xff] }
0x260f   :  { %v14674_v29 = vperm.slane %v14670_v24, %v19590_v23  ;;  %v22359_v19 = vadd.f32 %v19291_v51, %v13474_v17 }
0x2611   :  { %v14687_v63 = vrot.slane %v14674_v29, 4 }
0x2613   :  { %v19166_v10 = vpop.trf.xlu0 }
0x2614   :  { %14907 = vxpose.xlu1.b32.start.end [1/1] (short) (narrow) %v13896_v6, 8  ;;  %v19170_v56 = vunpack.i.h.bf16 %v19166_v10  ;;  %v19167_v4 = vunpack.i.l.bf16 %v19166_v10 }
0x2615   :  { %v22366_v41 = vpop.trf.xlu2 }
0x2616   :  { %v14664_v12 = vsel %vm253_vm1, %v14663_v11, %v19167_v4  ;;  %v14652_v43 = vsel %vm253_vm1, %v14651_v34, %v19170_v56 }
0x2617   :  { %v14668_v57 = vperm.slane %v14664_v12, %v19590_v23  ;;  %v14656_v14 = vperm.slane %v14652_v43, %v19590_v23 }
0x2619   :  { %v14689_v15 = vrot.slane %v14668_v57, 4  ;;  %v14688_v32 = vsel %vm253_vm1, %v14687_v63, %v14668_v57  ;;  %v14677_v55 = vrot.slane %v14656_v14, 4  ;;  %v14676_v40 = vsel %vm253_vm1, %v14675_v37, %v14656_v14 }
0x261a   :  { %v14694_v47 = vperm.slane %v14688_v32, %v19600_v38  ;;  %v14682_v53 = vperm.slane %v14676_v40, %v19600_v38 }
0x261b   :  { %v14690_v44 = vsel %vm253_vm1, %v14674_v29, %v14689_v15  ;;  %v14678_v50 = vsel %vm253_vm1, %v14662_v16, %v14677_v55 }
0x261c   :  { %14939 = vxpose.xlu1.b32.start.end [1/1] (short) (narrow) %v13912_v30, 8  ;;  %v14698_v6 = vperm.slane %v14690_v44, %v19600_v38  ;;  %v14699_v30 = vrot.slane %v14694_v47, 4  ;;  %v14686_v7 = vperm.slane %v14678_v50, %v19600_v38  ;;  %v14701_v8 = vrot.slane %v14682_v53, 4 }
0x261d   :  { %v22368_v29 = vpop.trf.xlu2 }
0x261e   :  { %v22323_v20 = vpop.trf.xlu1  ;;  %v14703_v33 = vrot.slane %v14698_v6, 4  ;;  %v14700_v26 = vsel %vm253_vm1, %v14699_v30, %v14682_v53  ;;  %v14705_v25 = vrot.slane %v14686_v7, 4  ;;  %v14702_v36 = vsel %vm253_vm1, %v14694_v47, %v14701_v8 }
0x261f   :  { %14725 = vmatpush.msra.mxu2 %v14700_v26 }
0x2620   :  { %v14706_v28 = vsel %vm253_vm1, %v14698_v6, %v14705_v25 }
0x2621   :  { %14748 = vmatpush.msrb.mxu2 %v14702_v36  ;;  %14794 = vmatpush.msrb.mxu0 %v14706_v28 }
0x2625   :  { %v22370_v39 = vpop.trf.xlu2 }
0x262d   :  { %v22372_v5 = vpop.trf.xlu2 }
0x2635   :  { %v19173_v11 = vpop.trf.xlu2 }
0x2636   :  { %v19177_v63 = vunpack.i.h.bf16 %v19173_v11 }
0x2638   :  { %v16207_v37 = vrot.slane %v19177_v63, 4 }
0x263d   :  { %v19194_v35 = vpop.trf.xlu2 }
0x263e   :  { %v19198_v56 = vunpack.i.h.bf16 %v19194_v35  ;;  %v19195_v4 = vunpack.i.l.bf16 %v19194_v35 }
0x2640   :  { %v16217_v45 = vrot.slane %v19198_v56, 4 }
0x264d   :  { %v13444_v27 = vpop.xlane.xlu1 %13443 }
0x264e   :  { %v13446_v9 = vmul.f32 %v13444_v27, %v20539_v31  ;;  %v14704_v27 = vsel %vm253_vm1, %v14703_v33, %v14686_v7 }
0x264f   :  { %14771 = vmatpush.msrb.mxu3 %v14704_v27 }
0x2650   :  { %v13448_v18 = vadd.f32 1e-05, %v13446_v9 }
0x2652   :  { %19417 = vrsqrt.f32 %v13448_v18  ;;  %vm13465_vm8 = vweird.f32 %v13448_v18 }
0x2658   :  { %v19418_v42 = vpop.eup %19417 }
0x2659   :  { %v13460_v22 = vmul.f32 %v19418_v42, %v13448_v18  ;;  %vm13466_vm6 = vweird.f32 %v19418_v42 }
0x265a   :  { %vm13467_vm9 = vmor %vm13465_vm8, %vm13466_vm6  ;;  %vm18196_vm8 = vcmask 72704  }
0x265b   :  { %v13461_v60 = vmul.f32 %v19418_v42, %v13460_v22  ;;  %v16241_v22 = vrot.slane %v19195_v4, 4 }
0x265d   :  { %v13462_v62 = vmul.f32 0.5, %v13461_v60 }
0x265f   :  { %v13463_v52 = vsub.f32 1.5, %v13462_v62 }
0x2661   :  { %v13464_v2 = vmul.f32 %v19418_v42, %v13463_v52 }
0x2663   :  { %v13468_v9 = vsel %vm13467_vm9, %v19418_v42, %v13464_v2  ;;  %v19174_v42 = vunpack.i.l.bf16 %v19173_v11 }
0x2664   :  { %v13470_v61 = vmul.f32 %v13468_v9, %v22311_v21  ;;  %v22374_v21 = vpop.trf.xlu0 }
0x2665   :  { %v16231_v14 = vrot.slane %v19174_v42, 4 }
0x2666   :  { %v13475_v3 = vmul.f32 %v19290_v54, %v13470_v61 }
0x2668   :  { %v22361_v18 = vadd.f32 %v19291_v51, %v13475_v3 }
0x266a   :  { %v13511_v24 = vpack.c.bf16 %v22361_v18, %v22359_v19 }
0x266c   :  { %18464 = vmatmul.msk.bf16.vlgmr.msra.gmra.mxu0 %vm185_vm0, %v13511_v24  ;;  %v19180_v10 = vpop.trf.xlu0  ;;  %v15125_v24 = vrot.slane %v22323_v20, 4 }
0x266d   :  { %v19184_v16 = vunpack.i.h.bf16 %v19180_v10  ;;  %v19181_v12 = vunpack.i.l.bf16 %v19180_v10  ;;  %v15137_v10 = vrot.slane %v22374_v21, 4 }
0x266f   :  { %v16229_v60 = vrot.slane %v19184_v16, 4  ;;  %v16243_v15 = vrot.slane %v19181_v12, 4  ;;  %v16242_v32 = vsel %vm253_vm1, %v16241_v22, %v19181_v12  ;;  %v16232_v48 = vsel %vm253_vm1, %v19184_v16, %v16231_v14 }
0x2670   :  { %v22383_v44 = vperm.slane %v16242_v32, %v19590_v23  ;;  %v16240_v50 = vperm.slane %v16232_v48, %v19590_v23  ;;  %v15126_v22 = vsel %vm253_vm1, %v22368_v29, %v15125_v24 }
0x2671   :  { %v16230_v47 = vsel %vm253_vm1, %v16229_v60, %v19174_v42  ;;  %v16244_v62 = vsel %vm253_vm1, %v19195_v4, %v16243_v15  ;;  %v15134_v32 = vperm.slane %v15126_v22, %v19590_v23 }
0x2672   :  { %v16252_v6 = vperm.slane %v16244_v62, %v19590_v23  ;;  %v22390_v52 = vperm.slane %v16230_v47, %v19590_v23  ;;  %v16277_v7 = vrot.slane %v22383_v44, 4  ;;  %v16291_v33 = vrot.slane %v16240_v50, 4 }
0x2673   :  { %v15101_v62 = vrot.slane %v22366_v41, 4 }
0x2674   :  { %v19187_v1 = vpop.trf.xlu0  ;;  %v16289_v25 = vrot.slane %v16252_v6, 4  ;;  %v16278_v28 = vsel %vm253_vm1, %v16277_v7, %v22390_v52  ;;  %v16292_v61 = vsel %vm253_vm1, %v16252_v6, %v16291_v33  ;;  %v15185_v6 = vrot.slane %v15134_v32, 4 }
0x2675   :  { %v19191_v34 = vunpack.i.h.bf16 %v19187_v1  ;;  %v19188_v49 = vunpack.i.l.bf16 %v19187_v1  ;;  %v22421_v4 = vperm.slane %v16292_v61, %v19600_v38 }
0x2677   :  { %v16205_v43 = vrot.slane %v19191_v34, 4  ;;  %v16219_v57 = vrot.slane %v19188_v49, 4  ;;  %v16218_v55 = vsel %vm253_vm1, %v16217_v45, %v19188_v49  ;;  %v16208_v30 = vsel %vm253_vm1, %v19191_v34, %v16207_v37 }
0x2678   :  { %v16216_v54 = vperm.slane %v16208_v30, %v19590_v23  ;;  %v22395_v46 = vperm.slane %v16218_v55, %v19590_v23  ;;  %v22424_v34 = vperm.slane %v16278_v28, %v19600_v38 }
0x2679   :  { %v16220_v40 = vsel %vm253_vm1, %v19198_v56, %v16219_v57  ;;  %v16206_v53 = vsel %vm253_vm1, %v16205_v43, %v19177_v63  ;;  %v16290_v56 = vsel %vm253_vm1, %v16289_v25, %v16240_v50  ;;  %v15123_v63 = vrot.slane %v22368_v29, 4 }
0x267a   :  { %v16228_v26 = vperm.slane %v16220_v40, %v19590_v23  ;;  %v16267_v8 = vrot.slane %v16216_v54, 4  ;;  %v16253_v2 = vrot.slane %v22395_v46, 4  ;;  %v22400_v27 = vperm.slane %v16206_v53, %v19590_v23 }
0x267b   :  { %v16296_v42 = vperm.slane %v16290_v56, %v19600_v38  ;;  %v15138_v43 = vsel %vm253_vm1, %v22372_v5, %v15137_v10  ;;  %v15124_v60 = vsel %vm253_vm1, %v15123_v63, %v22323_v20  ;;  %v15135_v40 = vrot.slane %v22372_v5, 4 }
0x267c   :  { %v16265_v36 = vrot.slane %v16228_v26, 4  ;;  %v16268_v9 = vsel %vm253_vm1, %v16228_v26, %v16267_v8  ;;  %v16254_v3 = vsel %vm253_vm1, %v16253_v2, %v22400_v27  ;;  %v15146_v29 = vperm.slane %v15138_v43, %v19590_v23 }
0x267d   :  { %v22407_v17 = vperm.slane %v16268_v9, %v19600_v38  ;;  %v22414_v11 = vperm.slane %v16254_v3, %v19600_v38  ;;  %v16309_v37 = vrot.slane %v16296_v42, 4  ;;  %v15130_v47 = vperm.slane %v15124_v60, %v19590_v23 }
0x267e   :  { %v16266_v51 = vsel %vm253_vm1, %v16265_v36, %v16216_v54  ;;  %v15183_v20 = vrot.slane %v15146_v29, 4  ;;  %v15136_v53 = vsel %vm253_vm1, %v15135_v40, %v22374_v21  ;;  %v15186_v26 = vsel %vm253_vm1, %v15146_v29, %v15185_v6 }
0x267f   :  { %v16315_v35 = vrot.slane %v22407_v17, 4  ;;  %v16272_v1 = vperm.slane %v16266_v51, %v19600_v38  ;;  %v16303_v49 = vrot.slane %v22414_v11, 4  ;;  %v15173_v7 = vrot.slane %v15130_v47, 4 }
0x2680   :  { %v15142_v33 = vperm.slane %v15136_v53, %v19590_v23  ;;  %v15184_v8 = vsel %vm253_vm1, %v15183_v20, %v15134_v32  ;;  %v15113_v2 = vrot.slane %v22370_v39, 4  ;;  %v16279_v63 = vrot.slane %v22390_v52, 4 }
0x2681   :  { %v16311_v16 = vrot.slane %v16272_v1, 4  ;;  %v22431_v12 = vsel %vm253_vm1, %v22424_v34, %v16303_v49  ;;  %v22435_v45 = vsel %vm253_vm1, %v22421_v4, %v16315_v35  ;;  %v22449_v15 = vsel %vm253_vm1, %v16309_v37, %v16272_v1 }
0x2682   :  { %v19206_v55 = vpack.i.bf16 %v22435_v45, %v22449_v15  ;;  %v15174_v25 = vsel %vm253_vm1, %v15142_v33, %v15173_v7  ;;  %v15190_v51 = vperm.slane %v15184_v8, %v19600_v38  ;;  %v16280_v20 = vsel %vm253_vm1, %v22383_v44, %v16279_v63 }
0x2683   :  { %v22442_v57 = vsel %vm253_vm1, %v16296_v42, %v16311_v16  ;;  %v15182_v10 = vperm.slane %v15174_v25, %v19600_v38  ;;  %v16313_v25 = vrot.slane %v22421_v4, 4 }
0x2684   :  { %v19220_v14 = vpack.i.bf16 %v22431_v12, %v22442_v57  ;;  %v15203_v22 = vrot.slane %v15190_v51, 4 }
0x26b8   :  { %v14923_v48 = vpop.trf.xlu1 }
0x26b9   :  { %v15099_v50 = vrot.slane %v14923_v48, 4  ;;  %v15102_v30 = vsel %vm253_vm1, %v14923_v48, %v15101_v62  ;;  %v15199_v48 = vrot.slane %v15182_v10, 4  ;;  %v15171_v62 = vrot.slane %v15142_v33, 4 }
0x26ba   :  { %v15110_v5 = vperm.slane %v15102_v30, %v19590_v23 }
0x26bb   :  { %v15100_v54 = vsel %vm253_vm1, %v15099_v50, %v22366_v41  ;;  %v15194_v41 = vperm.slane %v15186_v26, %v19600_v38  ;;  %v15172_v7 = vsel %vm253_vm1, %v15171_v62, %v15130_v47  ;;  %v16301_v47 = vrot.slane %v22424_v34, 4 }
0x26bc   :  { %v15106_v21 = vperm.slane %v15100_v54, %v19590_v23  ;;  %v15161_v61 = vrot.slane %v15110_v5, 4  ;;  %v16288_v54 = vperm.slane %v16280_v20, %v19600_v38  ;;  %v15178_v44 = vperm.slane %v15172_v7, %v19600_v38 }
0x26bd   :  { %v15207_v16 = vrot.slane %v15194_v41, 4 }
0x26be   :  { %v15149_v35 = vrot.slane %v15106_v21, 4 }
0x26c0   :  { %v14955_v36 = vpop.trf.xlu1 }
0x26c1   :  { %v15111_v9 = vrot.slane %v14955_v36, 4  ;;  %v15114_v28 = vsel %vm253_vm1, %v14955_v36, %v15113_v2  ;;  %v16305_v2 = vrot.slane %v16288_v54, 4 }
0x26c2   :  { %v15122_v3 = vperm.slane %v15114_v28, %v19590_v23 }
0x26c3   :  { %v15112_v24 = vsel %vm253_vm1, %v15111_v9, %v22370_v39  ;;  %v16255_v39 = vrot.slane %v22400_v27, 4  ;;  %v15195_v9 = vrot.slane %v15178_v44, 4 }
0x26c4   :  { %v15118_v1 = vperm.slane %v15112_v24, %v19590_v23  ;;  %v15159_v56 = vrot.slane %v15122_v3, 4  ;;  %v15162_v49 = vsel %vm253_vm1, %v15122_v3, %v15161_v61  ;;  %v16302_v61 = vsel %vm253_vm1, %v16301_v47, %v22414_v11 }
0x26c5   :  { %v15170_v42 = vperm.slane %v15162_v49, %v19600_v38  ;;  %v16256_v53 = vsel %vm253_vm1, %v22395_v46, %v16255_v39 }
0x26c6   :  { %v15147_v43 = vrot.slane %v15118_v1, 4  ;;  %v15160_v37 = vsel %vm253_vm1, %v15159_v56, %v15110_v5  ;;  %v15150_v60 = vsel %vm253_vm1, %v15118_v1, %v15149_v35  ;;  %v16264_v26 = vperm.slane %v16256_v53, %v19600_v38  ;;  %v22513_v1 = vld [vmem:[%s20585_s4 + $0x1] ss:$0 sm:$0xff] }
0x26c7   :  { %v15208_v32 = vsel %vm253_vm1, %v15207_v16, %v15170_v42  ;;  %v15166_v29 = vperm.slane %v15160_v37, %v19600_v38  ;;  %v15158_v40 = vperm.slane %v15150_v60, %v19600_v38  ;;  %v15209_v30 = vrot.slane %v15170_v42, 4 }
0x26c8   :  { %15403 = vxpose.xlu1.b32.start.end [1/1] (short) (narrow) %v15208_v32, 8  ;;  %v15148_v52 = vsel %vm253_vm1, %v15147_v43, %v15106_v21  ;;  %v16307_v36 = vrot.slane %v16264_v26, 4  ;;  %v16306_v28 = vsel %vm253_vm1, %v16305_v2, %v16264_v26 }
0x26c9   :  { %v15204_v50 = vsel %vm253_vm1, %v15203_v22, %v15166_v29  ;;  %v15200_v6 = vsel %vm253_vm1, %v15199_v48, %v15158_v40  ;;  %v15154_v27 = vperm.slane %v15148_v52, %v19600_v38  ;;  %v15201_v33 = vrot.slane %v15158_v40, 4 }
0x26ca   :  { %15339 = vxpose.xlu2.b32.start.end [1/1] (short) (narrow) %v15204_v50, 8  ;;  %15275 = vxpose.xlu0.b32.start.end [1/1] (short) (narrow) %v15200_v6, 8  ;;  %v15210_v8 = vsel %vm253_vm1, %v15194_v41, %v15209_v30  ;;  %v16314_v41 = vsel %vm253_vm1, %v16313_v25, %v22407_v17  ;;  %v16308_v4 = vsel %vm253_vm1, %v16288_v54, %v16307_v36 }
0x26cb   :  { %v15197_v5 = vrot.slane %v15154_v27, 4  ;;  %v15202_v21 = vsel %vm253_vm1, %v15182_v10, %v15201_v33  ;;  %v15196_v3 = vsel %vm253_vm1, %v15195_v9, %v15154_v27  ;;  %v19199_v24 = vpack.i.bf16 %v16306_v28, %v16314_v41 }
0x26cc   :  { %v19213_v34 = vpack.i.bf16 %v16308_v4, %v16302_v61  ;;  %v15205_v10 = vrot.slane %v15166_v29, 4 }
0x26cd   :  { %v15198_v46 = vsel %vm253_vm1, %v15178_v44, %v15197_v5 }
0x26ce   :  { %v15206_v35 = vsel %vm253_vm1, %v15190_v51, %v15205_v10 }
0x26d0   :  { %15435 = vxpose.xlu1.b32.start.end [1/1] (short) (narrow) %v15210_v8, 8 }
0x26d2   :  { %15307 = vxpose.xlu0.b32.start.end [1/1] (short) (narrow) %v15202_v21, 8  ;;  %15243 = vxpose.xlu2.b32.start.end [1/1] (short) (narrow) %v15198_v46, 8 }
0x26d8   :  { %15211 = vxpose.xlu1.b32.start.end [1/1] (short) (narrow) %v15196_v3, 8 }
0x26da   :  { %19200 = vxpose.xlu0.b32.start.end [1/1] (short) (narrow) %v19199_v24, 8  ;;  %19214 = vxpose.xlu2.b32.start.end [1/1] (short) (narrow) %v19213_v34, 8 }
0x26e0   :  { %15371 = vxpose.xlu1.b32.start.end [1/1] (short) (narrow) %v15206_v35, 8 }
0x26e9   :  { %v13539_v56 = vpop.f32.mrf.mxu0 }
0x26ea   :  { %v22516_v17 = vadd.f32 %v22513_v1, %v13539_v56 }
0x26ec   :  { %v13595_v56 = vrot.slane %v22516_v17, 4 }
0x273a   :  { %13575 = vrot.lane.b32.xlu1 %v22516_v17, %s23085_s12 }
0x2742   :  { %13587 = vrot.lane.b32.xlu1 %v22516_v17, %s23083_s6 }
0x2743   :  { %13839 = vrot.lane.b32.xlu2 %v22167_v0, %s23086_s22 }
0x2748   :  { %13581 = vrot.lane.b32.xlu0 %v22516_v17, %s23084_s10 }
0x2763   :  { %v15355_v11 = vpop.trf.xlu2 }
0x276a   :  { %19221 = vxpose.xlu0.b32.start.end [1/1] (short) (narrow) %v19220_v14, 8 }
0x276b   :  { %v15259_v51 = vpop.trf.xlu2 }
0x276c   :  { %v15419_v49 = vpop.trf.xlu1 }
0x276d   :  { %v15479_v63 = vrot.slane %v15419_v49, 4 }
0x276e   :  { %v15291_v42 = vpop.trf.xlu0 }
0x276f   :  { %v15480_v16 = vsel %vm253_vm1, %v15479_v63, %v15355_v11  ;;  %v15467_v60 = vrot.slane %v15291_v42, 4 }
0x2770   :  { %v15484_v40 = vperm.slane %v15480_v16, %v19590_v23 }
0x2773   :  { %v22530_v22 = vpop.trf.xlu2 }
0x2774   :  { %v15451_v43 = vpop.trf.xlu1  ;;  %v19216_v47 = vunpack.i.l.bf16 %v22530_v22 }
0x2775   :  { %v15485_v52 = vrot.slane %v15451_v43, 4 }
0x2776   :  { %v15323_v37 = vpop.trf.xlu0 }
0x2777   :  { %19207 = vxpose.xlu1.b32.start.end [1/1] (short) (narrow) %v19206_v55, 8  ;;  %v15473_v0 = vrot.slane %v15323_v37, 4  ;;  %v15505_v55 = vrot.slane %v15484_v40, 4 }
0x2779   :  { %v15474_v39 = vsel %vm253_vm1, %v15473_v0, %v15259_v51 }
0x277a   :  { %v15478_v12 = vperm.slane %v15474_v39, %v19590_v23 }
0x277c   :  { %v15227_v57 = vpop.trf.xlu1  ;;  %v15491_v14 = vrot.slane %v15478_v12, 4 }
0x277d   :  { %v15468_v32 = vsel %vm253_vm1, %v15467_v60, %v15227_v57 }
0x277e   :  { %v15472_v29 = vperm.slane %v15468_v32, %v19590_v23  ;;  %v22553_v2 = vpop.trf.xlu0 }
0x277f   :  { %v19205_v36 = vunpack.i.h.bf16 %v22553_v2 }
0x2780   :  { %v15493_v48 = vrot.slane %v15472_v29, 4  ;;  %v15492_v62 = vsel %vm253_vm1, %v15491_v14, %v15472_v29 }
0x2781   :  { %v15498_v20 = vperm.slane %v15492_v62, %v19600_v38  ;;  %v16573_v28 = vrot.slane %v19205_v36, 4 }
0x2782   :  { %v15494_v45 = vsel %vm253_vm1, %v15478_v12, %v15493_v48 }
0x2783   :  { %v15502_v15 = vperm.slane %v15494_v45, %v19600_v38  ;;  %v15517_v33 = vrot.slane %v15498_v20, 4  ;;  %v22567_v41 = vsel %vm253_vm1, %v16573_v28, %v19216_v47 }
0x2784   :  { %v15387_v50 = vpop.trf.xlu1 }
0x2785   :  { %v15486_v6 = vsel %vm253_vm1, %v15485_v52, %v15387_v50  ;;  %v15521_v53 = vrot.slane %v15502_v15, 4 }
0x2786   :  { %v15490_v27 = vperm.slane %v15486_v6, %v19590_v23 }
0x2788   :  { %v15503_v30 = vrot.slane %v15490_v27, 4  ;;  %v15506_v7 = vsel %vm253_vm1, %v15490_v27, %v15505_v55 }
0x2789   :  { %v15514_v54 = vperm.slane %v15506_v7, %v19600_v38 }
0x278a   :  { %v15504_v5 = vsel %vm253_vm1, %v15503_v30, %v15484_v40 }
0x278b   :  { %v15510_v26 = vperm.slane %v15504_v5, %v19600_v38  ;;  %v22551_v8 = vsel %vm253_vm1, %v15514_v54, %v15521_v53  ;;  %v15519_v44 = vrot.slane %v15514_v54, 4 }
0x278d   :  { %v15515_v25 = vrot.slane %v15510_v26, 4  ;;  %v22556_v21 = vsel %vm253_vm1, %v15519_v44, %v15502_v15  ;;  %v22559_v46 = vsel %vm253_vm1, %v15510_v26, %v15517_v33 }
0x278f   :  { %v22564_v9 = vsel %vm253_vm1, %v15515_v25, %v15498_v20 }
0x27ac   :  { %v13576_v61 = vpop.permute.xlu1 %13575 }
0x27ad   :  { %v13607_v4 = vrot.slane %v13576_v61, 4 }
0x27b4   :  { %v13588_v3 = vpop.permute.xlu1 %13587 }
0x27b5   :  { %v13605_v24 = vrot.slane %v13588_v3, 4  ;;  %v13608_v34 = vsel %vm253_vm1, %v13588_v3, %v13607_v4  ;;  %v13541_v4 = vpop.f32.mrf.mxu0 }
0x27b6   :  { %v13616_v35 = vperm.slane %v13608_v34, %v19590_v23 }
0x27b7   :  { %v13606_v10 = vsel %vm253_vm1, %v13605_v24, %v13576_v61 }
0x27b8   :  { %v13612_v11 = vperm.slane %v13606_v10, %v19590_v23  ;;  %v13629_v42 = vrot.slane %v13616_v35, 4 }
0x27ba   :  { %v13582_v51 = vpop.permute.xlu0 %13581  ;;  %v13617_v37 = vrot.slane %v13612_v11, 4 }
0x27bb   :  { %v13593_v49 = vrot.slane %v13582_v51, 4  ;;  %v13596_v63 = vsel %vm253_vm1, %v13582_v51, %v13595_v56  ;;  %v13542_v51 = vadd.f32 %v22513_v1, %v13541_v4 }
0x27bc   :  { %v13604_v16 = vperm.slane %v13596_v63, %v19590_v23 }
0x27bd   :  { %v13594_v43 = vsel %vm253_vm1, %v13593_v49, %v22516_v17 }
0x27be   :  { %v13600_v0 = vperm.slane %v13594_v43, %v19590_v23  ;;  %v13630_v60 = vsel %vm253_vm1, %v13629_v42, %v13604_v16  ;;  %v13631_v39 = vrot.slane %v13604_v16, 4 }
0x27bf   :  { %v13636_v12 = vperm.slane %v13630_v60, %v19600_v38 }
0x27c0   :  { %v13618_v57 = vsel %vm253_vm1, %v13617_v37, %v13600_v0  ;;  %v13619_v14 = vrot.slane %v13600_v0, 4  ;;  %v13632_v32 = vsel %vm253_vm1, %v13616_v35, %v13631_v39  ;;  %v19219_v39 = vunpack.i.h.bf16 %v22530_v22 }
0x27c1   :  { %v13624_v29 = vperm.slane %v13618_v57, %v19600_v38  ;;  %v13640_v40 = vperm.slane %v13632_v32, %v19600_v38  ;;  %v13645_v62 = vrot.slane %v13636_v12, 4  ;;  %v16578_v57 = vperm.slane %v22567_v41, %v19590_v23 }
0x27c2   :  { %v13620_v48 = vsel %vm253_vm1, %v13612_v11, %v13619_v14 }
0x27c3   :  { %v13628_v17 = vperm.slane %v13620_v48, %v19600_v38  ;;  %v13647_v52 = vrot.slane %v13640_v40, 4  ;;  %v13641_v45 = vrot.slane %v13624_v29, 4  ;;  %v13646_v53 = vsel %vm253_vm1, 0.0, %v13645_v62 }
0x27c4   :  { %v16599_v40 = vrot.slane %v16578_v57, 4 }
0x27c5   :  { %v13643_v15 = vrot.slane %v13628_v17, 4  ;;  %v13648_v55 = vsel %vm253_vm1, 0.0, %v13647_v52  ;;  %v13984_v50 = vsel %vm253_vm1, %v13647_v52, %v13636_v12  ;;  %v13642_v26 = vsel %vm253_vm1, 0.0, %v13641_v45 }
0x27c6   :  { %v13988_v6 = vperm.slane %v13984_v50, %v19590_v23  ;;  %v13989_v20 = vrot.slane %v13648_v55, 4  ;;  %v16579_v12 = vrot.slane %v19219_v39, 4 }
0x27c7   :  { %v13644_v27 = vsel %vm253_vm1, 0.0, %v13643_v15  ;;  %v13973_v30 = vsel %vm253_vm1, %v13643_v15, %v13624_v29 }
0x27c8   :  { %v13978_v7 = vrot.slane %v13644_v27, 4  ;;  %v13990_v54 = vsel %vm253_vm1, %v13989_v20, %v13646_v53  ;;  %v14009_v33 = vrot.slane %v13988_v6, 4  ;;  %v13977_v5 = vperm.slane %v13973_v30, %v19590_v23 }
0x27c9   :  { %v13994_v44 = vperm.slane %v13990_v54, %v19590_v23 }
0x27ca   :  { %v13979_v25 = vsel %vm253_vm1, %v13978_v7, %v13642_v26  ;;  %v13997_v47 = vrot.slane %v13977_v5, 4 }
0x27cb   :  { %v14007_v36 = vrot.slane %v13994_v44, 4  ;;  %v13983_v28 = vperm.slane %v13979_v25, %v19590_v23  ;;  %v14010_v61 = vsel %vm253_vm1, %v13994_v44, %v14009_v33 }
0x27cc   :  { %v14018_v3 = vperm.slane %v14010_v61, %v19600_v38 }
0x27cd   :  { %v13998_v24 = vsel %vm253_vm1, %v13983_v28, %v13997_v47  ;;  %v13995_v34 = vrot.slane %v13983_v28, 4  ;;  %v14008_v10 = vsel %vm253_vm1, %v14007_v36, %v13988_v6 }
0x27ce   :  { %v14006_v35 = vperm.slane %v13998_v24, %v19600_v38  ;;  %v14023_v56 = vrot.slane %v14018_v3, 4  ;;  %v14014_v11 = vperm.slane %v14008_v10, %v19600_v38 }
0x27cf   :  { %v13996_v49 = vsel %vm253_vm1, %v13995_v34, %v13977_v5 }
0x27d0   :  { %v14024_v63 = vsel %vm253_vm1, %v14023_v56, %v14006_v35  ;;  %v14002_v42 = vperm.slane %v13996_v49, %v19600_v38  ;;  %v14019_v16 = vrot.slane %v14014_v11, 4  ;;  %v14025_v43 = vrot.slane %v14006_v35, 4 }
0x27d1   :  { %13583 = vrot.lane.b32.xlu1 %v13542_v51, %s23084_s10  ;;  %18476 = vmatmul.msk.f32.vlgmr.msrb.gmra.mxu3 %vm1367_vm2, %v14024_v63  ;;  %v13651_v56 = vrot.slane %v13542_v51, 4  ;;  %s18240_s10 = sld [smem:[%s23070_s0 + %s19520_s19]]  }
0x27d2   :  { %v14020_v37 = vsel %vm253_vm1, %v14019_v16, %v14002_v42  ;;  %v14026_v0 = vsel %vm253_vm1, %v14018_v3, %v14025_v43  ;;  %v14021_v1 = vrot.slane %v14002_v42, 4 }
0x27d3   :  { %18474 = vmatmul.msk.f32.vlgmr.msra.gmra.mxu2 %vm1367_vm2, %v14020_v37  ;;  %18477 = vmatmul.msk.f32.vlgmr.msrb.gmra.mxu0 %vm1367_vm2, %v14026_v0  ;;  %v19481_v37 = vld [vmem:[%s20789_s9] ss:$0 sm:$0xff] }
0x27d4   :  { %v14022_v60 = vsel %vm253_vm1, %v14014_v11, %v14021_v1 }
0x27d8   :  { %13577 = vrot.lane.b32.xlu0 %v13542_v51, %s23085_s12  ;;  %s19521_s12 = smov 29  }
0x27d9   :  { %s18237_s29 = sld [smem:[%s23070_s0 + %s19521_s12]]  }
0x27db   :  { %18475 = vmatmul.msk.f32.vlgmr.msrb.gmra.mxu2 %vm1367_vm2, %v14022_v60 }
0x27e0   :  { %13589 = vrot.lane.b32.xlu0 %v13542_v51, %s23083_s6 }
0x27e8   :  { %13851 = vrot.lane.b32.xlu0 %v22268_v59, %s23086_s22  ;;  %v19202_v59 = vunpack.i.l.bf16 %v22553_v2 }
0x27ea   :  { %v16585_v45 = vrot.slane %v19202_v59, 4 }
0x280e   :  { %v19222_v14 = vpop.trf.xlu0 }
0x280f   :  { %v19226_v32 = vunpack.i.h.bf16 %v19222_v14  ;;  %v19223_v22 = vunpack.i.l.bf16 %v19222_v14 }
0x2811   :  { %v16580_v29 = vsel %vm253_vm1, %v16579_v12, %v19226_v32 }
0x2812   :  { %v16584_v48 = vperm.slane %v16580_v29, %v19590_v23 }
0x2814   :  { %v16597_v17 = vrot.slane %v16584_v48, 4  ;;  %v16600_v62 = vsel %vm253_vm1, %v16584_v48, %v16599_v40 }
0x2815   :  { %v16608_v53 = vperm.slane %v16600_v62, %v19600_v38 }
0x2816   :  { %v16598_v52 = vsel %vm253_vm1, %v16597_v17, %v16578_v57 }
0x2817   :  { %v16604_v54 = vperm.slane %v16598_v52, %v19600_v38  ;;  %v16627_v26 = vrot.slane %v16608_v53, 4 }
0x2819   :  { %v16623_v28 = vrot.slane %v16604_v54, 4 }
0x281b   :  { %v19208_v15 = vpop.trf.xlu1 }
0x281c   :  { %v19212_v55 = vunpack.i.h.bf16 %v19208_v15  ;;  %v19209_v50 = vunpack.i.l.bf16 %v19208_v15 }
0x281e   :  { %v16591_v41 = vrot.slane %v19212_v55, 4  ;;  %v16586_v6 = vsel %vm253_vm1, %v16585_v45, %v19209_v50 }
0x281f   :  { %v16590_v20 = vperm.slane %v16586_v6, %v19590_v23 }
0x2820   :  { %v16592_v27 = vsel %vm253_vm1, %v16591_v41, %v19223_v22 }
0x2821   :  { %v16596_v30 = vperm.slane %v16592_v27, %v19590_v23  ;;  %v16611_v7 = vrot.slane %v16590_v20, 4 }
0x2823   :  { %v16609_v2 = vrot.slane %v16596_v30, 4  ;;  %v16612_v33 = vsel %vm253_vm1, %v16596_v30, %v16611_v7 }
0x2824   :  { %v16620_v5 = vperm.slane %v16612_v33, %v19600_v38 }
0x2825   :  { %v16610_v44 = vsel %vm253_vm1, %v16609_v2, %v16590_v20 }
0x2826   :  { %v22639_v25 = vsel %vm253_vm1, %v16620_v5, %v16627_v26  ;;  %v16616_v47 = vperm.slane %v16610_v44, %v19600_v38  ;;  %v16625_v36 = vrot.slane %v16620_v5, 4 }
0x2828   :  { %v16621_v61 = vrot.slane %v16616_v47, 4  ;;  %v22643_v4 = vsel %vm253_vm1, %v16625_v36, %v16608_v53  ;;  %v22646_v3 = vsel %vm253_vm1, %v16616_v47, %v16623_v28 }
0x282a   :  { %v22649_v24 = vsel %vm253_vm1, %v16621_v61, %v16604_v54 }
0x2843   :  { %v13584_v34 = vpop.permute.xlu1 %13583 }
0x2844   :  { %v13649_v10 = vrot.slane %v13584_v34, 4  ;;  %v13652_v11 = vsel %vm253_vm1, %v13584_v34, %v13651_v56 }
0x2845   :  { %v13660_v63 = vperm.slane %v13652_v11, %v19590_v23 }
0x2846   :  { %v13650_v49 = vsel %vm253_vm1, %v13649_v10, %v13542_v51 }
0x2847   :  { %v13656_v16 = vperm.slane %v13650_v49, %v19590_v23  ;;  %v13687_v57 = vrot.slane %v13660_v63, 4 }
0x2849   :  { %v13675_v32 = vrot.slane %v13656_v16, 4 }
0x284a   :  { %v13578_v35 = vpop.permute.xlu0 %13577 }
0x284b   :  { %v13663_v43 = vrot.slane %v13578_v35, 4 }
0x2850   :  { %v14796_v42 = vpop.f32.mrf.mxu0 }
0x2851   :  { %v22656_v0 = vadd.f32 %v19481_v37, %v14796_v42 }
0x2852   :  { %v13590_v1 = vpop.permute.xlu0 %13589 }
0x2853   :  { %v13661_v60 = vrot.slane %v13590_v1, 4  ;;  %v13664_v39 = vsel %vm253_vm1, %v13590_v1, %v13663_v43  ;;  %v14808_v12 = vsel %vm1367_vm2, %v22656_v0, -inf }
0x2854   :  { %v13672_v14 = vperm.slane %v13664_v39, %v19590_v23  ;;  %14809 = vmax.xlane.f32.xlu1 %v14808_v12  ;;  %v14773_v51 = vpop.f32.mrf.mxu3 }
0x2855   :  { %v13662_v29 = vsel %vm253_vm1, %v13661_v60, %v13578_v35  ;;  %v22665_v62 = vadd.f32 %v19481_v37, %v14773_v51 }
0x2856   :  { %v13668_v40 = vperm.slane %v13662_v29, %v19590_v23  ;;  %v13685_v48 = vrot.slane %v13672_v14, 4  ;;  %v13688_v17 = vsel %vm253_vm1, %v13672_v14, %v13687_v57  ;;  %v14727_v52 = vpop.f32.mrf.mxu2 }
0x2857   :  { %v13696_v59 = vperm.slane %v13688_v17, %v19600_v38  ;;  %v22668_v45 = vadd.f32 %v19481_v37, %v14727_v52  ;;  %v14805_v53 = vsel %vm1367_vm2, %v22665_v62, -inf }
0x2858   :  { %v13673_v22 = vrot.slane %v13668_v40, 4  ;;  %v13676_v15 = vsel %vm253_vm1, %v13668_v40, %v13675_v32  ;;  %v13686_v55 = vsel %vm253_vm1, %v13685_v48, %v13660_v63 }
0x2859   :  { %v13684_v50 = vperm.slane %v13676_v15, %v19600_v38  ;;  %v13692_v41 = vperm.slane %v13686_v55, %v19600_v38  ;;  %v13703_v6 = vrot.slane %v13696_v59, 4  ;;  %v14799_v20 = vsel %vm1367_vm2, %v22668_v45, -inf }
0x285a   :  { %v13674_v27 = vsel %vm253_vm1, %v13673_v22, %v13656_v16  ;;  %14800 = vmax.xlane.f32.xlu0 %v14799_v20 }
0x285b   :  { %v13680_v30 = vperm.slane %v13674_v27, %v19600_v38  ;;  %v13699_v7 = vrot.slane %v13684_v50, 4  ;;  %v13701_v54 = vrot.slane %v13692_v41, 4  ;;  %v13704_v2 = vsel %vm253_vm1, 0.0, %v13703_v6 }
0x285c   :  { %v15906_v33 = vsel %vm253_vm1, %v13703_v6, %v13692_v41  ;;  %v15911_v5 = vrot.slane %v13704_v2, 4  ;;  %14806 = vmax.xlane.f32.xlu1 %v14805_v53  ;;  %v22713_v41 = vpop.permute.xlu0 %13851  ;;  %v22716_v53 = vpop.permute.xlu2 %13839 }
0x285d   :  { %v13697_v26 = vrot.slane %v13680_v30, 4  ;;  %v13700_v44 = vsel %vm253_vm1, 0.0, %v13699_v7  ;;  %v13702_v47 = vsel %vm253_vm1, 0.0, %v13701_v54  ;;  %v15895_v36 = vsel %vm253_vm1, %v13699_v7, %v13680_v30 }
0x285e   :  { %v15899_v28 = vperm.slane %v15895_v36, %v19590_v23  ;;  %v15900_v61 = vrot.slane %v13700_v44, 4  ;;  %v15910_v34 = vperm.slane %v15906_v33, %v19590_v23  ;;  %v15912_v10 = vsel %vm253_vm1, %v15911_v5, %v13702_v47  ;;  %v14750_v35 = vpop.f32.mrf.mxu2 }
0x285f   :  { %v13698_v56 = vsel %vm253_vm1, 0.0, %v13697_v26  ;;  %v14751_v11 = vadd.f32 %v19481_v37, %v14750_v35  ;;  %v15916_v49 = vperm.slane %v15912_v10, %v19590_v23 }
0x2860   :  { %v15901_v63 = vsel %vm253_vm1, %v15900_v61, %v13698_v56  ;;  %v15919_v42 = vrot.slane %v15899_v28, 4  ;;  %v15931_v16 = vrot.slane %v15910_v34, 4 }
0x2861   :  { %v14802_v43 = vsel %vm1367_vm2, %v14751_v11, -inf  ;;  %v15905_v1 = vperm.slane %v15901_v63, %v19590_v23  ;;  %v15929_v60 = vrot.slane %v15916_v49, 4 }
0x2862   :  { %14803 = vmax.xlane.f32.xlu2 %v14802_v43  ;;  %v15932_v39 = vsel %vm253_vm1, %v15916_v49, %v15931_v16 }
0x2863   :  { %v15920_v12 = vsel %vm253_vm1, %v15905_v1, %v15919_v42  ;;  %v15940_v57 = vperm.slane %v15932_v39, %v19600_v38  ;;  %v15917_v14 = vrot.slane %v15905_v1, 4  ;;  %v15930_v37 = vsel %vm253_vm1, %v15929_v60, %v15910_v34 }
0x2864   :  { %v15928_v51 = vperm.slane %v15920_v12, %v19600_v38  ;;  %v15936_v32 = vperm.slane %v15930_v37, %v19600_v38 }
0x2865   :  { %v15918_v29 = vsel %vm253_vm1, %v15917_v14, %v15899_v28  ;;  %v15945_v40 = vrot.slane %v15940_v57, 4  ;;  %v13929_v14 = vrot.slane %v22713_v41, 4 }
0x2866   :  { %v15947_v48 = vrot.slane %v15928_v51, 4  ;;  %v15924_v17 = vperm.slane %v15918_v29, %v19600_v38  ;;  %v15941_v52 = vrot.slane %v15936_v32, 4 }
0x2867   :  { %v22702_v59 = vsel %vm253_vm1, %v15945_v40, %v15928_v51  ;;  %v13919_v51 = vrot.slane %v22716_v53, 4 }
0x2868   :  { %v15948_v22 = vsel %vm253_vm1, %v15940_v57, %v15947_v48  ;;  %v22706_v15 = vsel %vm253_vm1, %v15941_v52, %v15924_v17  ;;  %v15943_v55 = vrot.slane %v15924_v17, 4 }
0x286a   :  { %v22709_v50 = vsel %vm253_vm1, %v15936_v32, %v15943_v55 }
0x2875   :  { %13843 = vrot.lane.b32.xlu1 %v22201_v13, %s23086_s22 }
0x28c7   :  { %v14810_v6 = vpop.xlane.xlu1 %14809 }
0x28c8   :  { %v14814_v20 = vsub.f32 %v22656_v0, %v14810_v6 }
0x28ca   :  { %v14821_v27 = vmul.f32 1.442695, %v14814_v20 }
0x28cc   :  { %19419 = vpow2.f32 %v14821_v27 }
0x28cd   :  { %v14801_v30 = vpop.xlane.xlu0 %14800 }
0x28ce   :  { %v14811_v7 = vsub.f32 %v22668_v45, %v14801_v30 }
0x28cf   :  { %v14807_v54 = vpop.xlane.xlu1 %14806 }
0x28d0   :  { %v14815_v2 = vmul.f32 1.442695, %v14811_v7  ;;  %v14813_v33 = vsub.f32 %v22665_v62, %v14807_v54 }
0x28d2   :  { %v19420_v5 = vpop.eup %19419  ;;  %19421 = vpow2.f32 %v14815_v2  ;;  %v14819_v26 = vmul.f32 1.442695, %v14813_v33 }
0x28d3   :  { %v14832_v13 = vsel %vm1367_vm2, %v19420_v5, 0.0 }
0x28d4   :  { %19423 = vpow2.f32 %v14819_v26  ;;  %14833 = vadd.xlane.f32.xlu2 %v14832_v13 }
0x28d5   :  { %v14804_v44 = vpop.xlane.xlu2 %14803 }
0x28d6   :  { %v14812_v0 = vsub.f32 %v14751_v11, %v14804_v44 }
0x28d8   :  { %v19422_v47 = vpop.eup %19421  ;;  %v14817_v36 = vmul.f32 1.442695, %v14812_v0 }
0x28d9   :  { %v14823_v28 = vsel %vm1367_vm2, %v19422_v47, 0.0 }
0x28da   :  { %v19424_v61 = vpop.eup %19423  ;;  %19425 = vpow2.f32 %v14817_v36  ;;  %14824 = vadd.xlane.f32.xlu0 %v14823_v28 }
0x28db   :  { %v14829_v45 = vsel %vm1367_vm2, %v19424_v61, 0.0 }
0x28dc   :  { %14830 = vadd.xlane.f32.xlu2 %v14829_v45 }
0x28e0   :  { %v19426_v62 = vpop.eup %19425 }
0x28e1   :  { %v14826_v34 = vsel %vm1367_vm2, %v19426_v62, 0.0 }
0x28e2   :  { %14827 = vadd.xlane.f32.xlu1 %v14826_v34 }
0x28e7   :  { %v13844_v35 = vpop.permute.xlu1 %13843 }
0x28e8   :  { %v13931_v12 = vrot.slane %v13844_v35, 4  ;;  %v13930_v37 = vsel %vm253_vm1, %v13929_v14, %v13844_v35 }
0x28e9   :  { %v13936_v32 = vperm.slane %v13930_v37, %v19590_v23 }
0x28fb   :  { %13847 = vrot.lane.b32.xlu1 %v22284_v58, %s23086_s22 }
0x2947   :  { %v14834_v10 = vpop.xlane.xlu2 %14833 }
0x2948   :  { %19427 = vrcp.f32 %v14834_v10 }
0x294d   :  { %v14825_v56 = vpop.xlane.xlu0 %14824 }
0x294e   :  { %v19428_v11 = vpop.eup %19427  ;;  %19429 = vrcp.f32 %v14825_v56 }
0x294f   :  { %v14842_v49 = vmul.f32 %v19428_v11, %v19420_v5  ;;  %v14831_v63 = vpop.xlane.xlu2 %14830 }
0x2950   :  { %19431 = vrcp.f32 %v14831_v63 }
0x2951   :  { %18484 = vmatpush.xpose.msk.msra.mxu0 %vm1367_vm2, %v14842_v49 }
0x2954   :  { %v19430_v42 = vpop.eup %19429  ;;  %18485 = vmatmul.msk.f32.vlgmr.msra.gmra.mxu0 %vm1367_vm2, %v22551_v8 }
0x2955   :  { %16716 = vmatpush.msrb.mxu0 %v22639_v25  ;;  %v14839_v16 = vmul.f32 %v19430_v42, %v19422_v47  ;;  %v14828_v43 = vpop.xlane.xlu1 %14827 }
0x2956   :  { %v19432_v58 = vpop.eup %19431  ;;  %19433 = vrcp.f32 %v14828_v43 }
0x2957   :  { %v14841_v1 = vmul.f32 %v19432_v58, %v19424_v61  ;;  %18478 = vmatpush.xpose.msk.msrb.mxu1 %vm1367_vm2, %v14839_v16  ;;  %v15880_v60 = vsel %vm1367_vm2, %v14839_v16, 0.0 }
0x2959   :  { %18482 = vmatpush.xpose.msk.msra.mxu3 %vm1367_vm2, %v14841_v1 }
0x295a   :  { %18479 = vmatmul.msk.f32.vlgmr.msrb.gmra.mxu1 %vm1367_vm2, %v22564_v9  ;;  %v15883_v9 = vsel %vm1367_vm2, %v14841_v1, 0.0 }
0x295b   :  { %16647 = vmatpush.msra.mxu1 %v22649_v24 }
0x295c   :  { %v19434_v25 = vpop.eup %19433  ;;  %18483 = vmatmul.msk.f32.vlgmr.msra.gmra.mxu3 %vm1367_vm2, %v22556_v21  ;;  %18489 = vmatmul.msk.f32.vlgmr.msrb.gmra.mxu0 %vm1367_vm2, %v15948_v22  ;;  %v13941_v22 = vrot.slane %v13936_v32, 4 }
0x295d   :  { %16693 = vmatpush.msrb.mxu3 %v22643_v4  ;;  %v14840_v8 = vmul.f32 %v19434_v25, %v19426_v62  ;;  %v15885_v4 = vsel %vm1367_vm2, %v14842_v49, 0.0  ;;  %v22786_v62 = vld [vmem:[%s20789_s9 + $0x1] ss:$0 sm:$0xff] }
0x295f   :  { %v15881_v39 = vsel %vm1367_vm2, %v14840_v8, 0.0  ;;  %18480 = vmatpush.xpose.msk.msra.mxu2 %vm1367_vm2, %v14840_v8 }
0x2960   :  { %v15882_v24 = vadd.f32 %v15881_v39, %v15880_v60 }
0x2962   :  { %18481 = vmatmul.msk.f32.vlgmr.msra.gmra.mxu2 %vm1367_vm2, %v22559_v46  ;;  %18486 = vmatmul.msk.f32.vlgmr.msra.gmra.mxu1 %vm1367_vm2, %v22706_v15  ;;  %v15884_v21 = vadd.f32 %v15883_v9, %v15882_v24 }
0x2963   :  { %16670 = vmatpush.msrb.mxu2 %v22646_v3  ;;  %v13932_v3 = vsel %vm253_vm1, %v22713_v41, %v13931_v12 }
0x2964   :  { %18488 = vmatmul.msk.f32.vlgmr.msrb.gmra.mxu3 %vm1367_vm2, %v22702_v59  ;;  %v22751_v57 = vadd.f32 %v15885_v4, %v15884_v21  ;;  %v13940_v46 = vperm.slane %v13932_v3, %v19590_v23 }
0x2966   :  { %v13953_v17 = vrot.slane %v13940_v46, 4 }
0x296a   :  { %18487 = vmatmul.msk.f32.vlgmr.msrb.gmra.mxu2 %vm1367_vm2, %v22709_v50 }
0x296d   :  { %v13848_v29 = vpop.permute.xlu1 %13847 }
0x296e   :  { %v13917_v40 = vrot.slane %v13848_v29, 4  ;;  %v13920_v48 = vsel %vm253_vm1, %v13848_v29, %v13919_v51 }
0x296f   :  { %v13928_v52 = vperm.slane %v13920_v48, %v19590_v23 }
0x2970   :  { %v13918_v59 = vsel %vm253_vm1, %v13917_v40, %v22716_v53 }
0x2971   :  { %v13924_v15 = vperm.slane %v13918_v59, %v19590_v23  ;;  %v13954_v55 = vsel %vm253_vm1, %v13953_v17, %v13928_v52  ;;  %v13955_v50 = vrot.slane %v13928_v52, 4 }
0x2972   :  { %v13960_v41 = vperm.slane %v13954_v55, %v19600_v38 }
0x2973   :  { %v13942_v6 = vsel %vm253_vm1, %v13941_v22, %v13924_v15  ;;  %v13956_v20 = vsel %vm253_vm1, %v13940_v46, %v13955_v50  ;;  %v13943_v54 = vrot.slane %v13924_v15, 4 }
0x2974   :  { %16893 = vxpose.xlu1.b32.start.end [1/1] (short) (narrow) %v13960_v41, 8  ;;  %v13948_v27 = vperm.slane %v13942_v6, %v19600_v38  ;;  %v13969_v30 = vrot.slane %v13960_v41, 4  ;;  %v13964_v7 = vperm.slane %v13956_v20, %v19600_v38 }
0x2975   :  { %v13944_v33 = vsel %vm253_vm1, %v13936_v32, %v13943_v54 }
0x2976   :  { %16765 = vxpose.xlu2.b32.start.end [1/1] (short) (narrow) %v13948_v27, 8  ;;  %v13970_v53 = vsel %vm253_vm1, 0.0, %v13969_v30  ;;  %v13971_v2 = vrot.slane %v13964_v7, 4  ;;  %v13952_v26 = vperm.slane %v13944_v33, %v19600_v38  ;;  %v13965_v13 = vrot.slane %v13948_v27, 4 }
0x2977   :  { %16925 = vxpose.xlu0.b32.start.end [1/1] (short) (narrow) %v13970_v53, 8 }
0x2978   :  { %v13972_v5 = vsel %vm253_vm1, 0.0, %v13971_v2  ;;  %v13967_v44 = vrot.slane %v13952_v26, 4  ;;  %v13966_v0 = vsel %vm253_vm1, 0.0, %v13965_v13 }
0x297a   :  { %v13968_v47 = vsel %vm253_vm1, 0.0, %v13967_v44 }
0x297c   :  { %16989 = vxpose.xlu1.b32.start.end [1/1] (short) (narrow) %v13972_v5, 8 }
0x297e   :  { %16957 = vxpose.xlu2.b32.start.end [1/1] (short) (narrow) %v13964_v7, 8 }
0x297f   :  { %16829 = vxpose.xlu0.b32.start.end [1/1] (short) (narrow) %v13952_v26, 8 }
0x2986   :  { %16797 = vxpose.xlu2.b32.start.end [1/1] (short) (narrow) %v13966_v0, 8 }
0x2987   :  { %16861 = vxpose.xlu0.b32.start.end [1/1] (short) (narrow) %v13968_v47, 8 }
0x29d1   :  { %v22779_v36 = vpop.f32.mrf.mxu0 }
0x29d7   :  { %v22781_v28 = vpop.f32.mrf.mxu1 }
0x29d8   :  { %v19227_v61 = vpack.i.bf16 %v22779_v36, %v22781_v28 }
0x29df   :  { %v16649_v45 = vpop.f32.mrf.mxu1 }
0x29e0   :  { %v22789_v34 = vadd.f32 %v22786_v62, %v16649_v45 }
0x29e2   :  { %v16721_v10 = vsel %vm1367_vm2, %v22789_v34, -inf }
0x29f8   :  { %16722 = vmax.xlane.f32.xlu0 %v16721_v10 }
0x2a0f   :  { %v16781_v35 = vpop.trf.xlu2 }
0x2a10   :  { %v17023_v4 = vrot.slane %v16781_v35, 4 }
0x2a17   :  { %v16973_v11 = vpop.trf.xlu2 }
0x2a18   :  { %v16909_v56 = vpop.trf.xlu1  ;;  %v17045_v42 = vrot.slane %v16973_v11, 4 }
0x2a19   :  { %v17047_v49 = vrot.slane %v16909_v56, 4 }
0x2a1a   :  { %v17046_v58 = vsel %vm253_vm1, %v17045_v42, %v16909_v56 }
0x2a1b   :  { %v16941_v63 = vpop.trf.xlu0  ;;  %v17048_v16 = vsel %vm253_vm1, %v16973_v11, %v17047_v49  ;;  %v17052_v24 = vperm.slane %v17046_v58, %v19590_v23 }
0x2a1c   :  { %v17059_v43 = vrot.slane %v16941_v63, 4  ;;  %v17056_v25 = vperm.slane %v17048_v16, %v19590_v23 }
0x2a1d   :  { %v17095_v29 = vrot.slane %v17052_v24, 4 }
0x2a1e   :  { %v17107_v3 = vrot.slane %v17056_v25, 4 }
0x2a1f   :  { %v16813_v46 = vpop.trf.xlu2 }
0x2a20   :  { %v17005_v1 = vpop.trf.xlu1  ;;  %v17035_v48 = vrot.slane %v16813_v46, 4 }
0x2a21   :  { %v17057_v8 = vrot.slane %v17005_v1, 4  ;;  %v17060_v60 = vsel %vm253_vm1, %v17005_v1, %v17059_v43 }
0x2a22   :  { %v17068_v39 = vperm.slane %v17060_v60, %v19590_v23 }
0x2a23   :  { %v16845_v9 = vpop.trf.xlu0  ;;  %v17058_v21 = vsel %vm253_vm1, %v17057_v8, %v16941_v63 }
0x2a24   :  { %v17021_v12 = vrot.slane %v16845_v9, 4  ;;  %v17064_v14 = vperm.slane %v17058_v21, %v19590_v23  ;;  %v17105_v37 = vrot.slane %v17068_v39, 4  ;;  %v17024_v51 = vsel %vm253_vm1, %v16845_v9, %v17023_v4 }
0x2a25   :  { %v17032_v52 = vperm.slane %v17024_v51, %v19590_v23  ;;  %v17108_v22 = vsel %vm253_vm1, %v17068_v39, %v17107_v3 }
0x2a26   :  { %v17093_v32 = vrot.slane %v17064_v14, 4  ;;  %v17022_v40 = vsel %vm253_vm1, %v17021_v12, %v16781_v35  ;;  %v17106_v59 = vsel %vm253_vm1, %v17105_v37, %v17056_v25  ;;  %v17096_v50 = vsel %vm253_vm1, %v17064_v14, %v17095_v29  ;;  %v22833_v14 = vpop.f32.mrf.mxu3 }
0x2a27   :  { %v17028_v15 = vperm.slane %v17022_v40, %v19590_v23  ;;  %v17116_v20 = vperm.slane %v17108_v22, %v19600_v38  ;;  %v17112_v27 = vperm.slane %v17106_v59, %v19600_v38  ;;  %v17083_v30 = vrot.slane %v17032_v52, 4 }
0x2a28   :  { %v17094_v17 = vsel %vm253_vm1, %v17093_v32, %v17052_v24  ;;  %v17104_v53 = vperm.slane %v17096_v50, %v19600_v38  ;;  %v16718_v32 = vpop.f32.mrf.mxu0 }
0x2a29   :  { %v17071_v2 = vrot.slane %v17028_v15, 4  ;;  %v17129_v44 = vrot.slane %v17116_v20, 4  ;;  %v17125_v0 = vrot.slane %v17112_v27, 4  ;;  %v17100_v35 = vperm.slane %v17094_v17, %v19600_v38 }
0x2a2a   :  { %v17121_v63 = vrot.slane %v17104_v53, 4  ;;  %v16719_v40 = vadd.f32 %v22786_v62, %v16718_v32 }
0x2a2b   :  { %v16877_v55 = vpop.trf.xlu0  ;;  %v17117_v25 = vrot.slane %v17100_v35, 4 }
0x2a2c   :  { %v17033_v41 = vrot.slane %v16877_v55, 4  ;;  %v17036_v6 = vsel %vm253_vm1, %v16877_v55, %v17035_v48  ;;  %v16730_v17 = vsel %vm1367_vm2, %v16719_v40, -inf }
0x2a2d   :  { %v17044_v7 = vperm.slane %v17036_v6, %v19590_v23 }
0x2a2e   :  { %v17034_v54 = vsel %vm253_vm1, %v17033_v41, %v16813_v46  ;;  %v16695_v3 = vpop.f32.mrf.mxu3 }
0x2a2f   :  { %v17040_v33 = vperm.slane %v17034_v54, %v19590_v23  ;;  %v17081_v5 = vrot.slane %v17044_v7, 4  ;;  %v17084_v26 = vsel %vm253_vm1, %v17044_v7, %v17083_v30  ;;  %v16696_v37 = vadd.f32 %v22786_v62, %v16695_v3 }
0x2a30   :  { %v17092_v13 = vperm.slane %v17084_v26, %v19600_v38 }
0x2a31   :  { %v17069_v47 = vrot.slane %v17040_v33, 4  ;;  %v17082_v45 = vsel %vm253_vm1, %v17081_v5, %v17032_v52  ;;  %v17072_v10 = vsel %vm253_vm1, %v17040_v33, %v17071_v2  ;;  %v16727_v51 = vsel %vm1367_vm2, %v16696_v37, -inf  ;;  %v22840_v52 = vpop.f32.mrf.mxu2 }
0x2a32   :  { %v17130_v56 = vsel %vm253_vm1, %v17129_v44, %v17092_v13  ;;  %v17088_v11 = vperm.slane %v17082_v45, %v19600_v38  ;;  %v17080_v49 = vperm.slane %v17072_v10, %v19600_v38  ;;  %v17131_v21 = vrot.slane %v17092_v13, 4 }
0x2a33   :  { %17325 = vxpose.xlu1.b32.start.end [1/1] (short) (narrow) %v17130_v56, 8  ;;  %v17070_v42 = vsel %vm253_vm1, %v17069_v47, %v17028_v15 }
0x2a34   :  { %v17126_v16 = vsel %vm253_vm1, %v17125_v0, %v17088_v11  ;;  %v17122_v43 = vsel %vm253_vm1, %v17121_v63, %v17080_v49  ;;  %v17123_v58 = vrot.slane %v17080_v49, 4  ;;  %v17076_v1 = vperm.slane %v17070_v42, %v19600_v38 }
0x2a35   :  { %17261 = vxpose.xlu0.b32.start.end [1/1] (short) (narrow) %v17126_v16, 8  ;;  %17197 = vxpose.xlu2.b32.start.end [1/1] (short) (narrow) %v17122_v43, 8  ;;  %v17127_v8 = vrot.slane %v17088_v11, 4  ;;  %v17132_v12 = vsel %vm253_vm1, %v17116_v20, %v17131_v21 }
0x2a36   :  { %v17124_v60 = vsel %vm253_vm1, %v17104_v53, %v17123_v58  ;;  %v17118_v39 = vsel %vm253_vm1, %v17117_v25, %v17076_v1  ;;  %v17119_v9 = vrot.slane %v17076_v1, 4 }
0x2a37   :  { %v17128_v24 = vsel %vm253_vm1, %v17112_v27, %v17127_v8 }
0x2a38   :  { %v17120_v4 = vsel %vm253_vm1, %v17100_v35, %v17119_v9 }
0x2a39   :  { %v16672_v15 = vpop.f32.mrf.mxu2 }
0x2a3a   :  { %v16673_v55 = vadd.f32 %v22786_v62, %v16672_v15 }
0x2a3c   :  { %v16724_v50 = vsel %vm1367_vm2, %v16673_v55, -inf }
0x2a3d   :  { %17357 = vxpose.xlu2.b32.start.end [1/1] (short) (narrow) %v17132_v12, 8 }
0x2a6b   :  { %v16723_v46 = vpop.xlane.xlu0 %16722 }
0x2a6c   :  { %v16733_v29 = vsub.f32 %v22789_v34, %v16723_v46 }
0x2a6e   :  { %v16737_v48 = vmul.f32 1.442695, %v16733_v29 }
0x2a70   :  { %19435 = vpow2.f32 %v16737_v48 }
0x2a76   :  { %v19436_v59 = vpop.eup %19435 }
0x2a77   :  { %v16745_v22 = vsel %vm1367_vm2, %v19436_v59, 0.0 }
0x2a93   :  { %16728 = vmax.xlane.f32.xlu1 %v16727_v51 }
0x2a9b   :  { %16731 = vmax.xlane.f32.xlu1 %v16730_v17 }
0x2aa6   :  { %16746 = vadd.xlane.f32.xlu0 %v16745_v22 }
0x2aae   :  { %16725 = vmax.xlane.f32.xlu2 %v16724_v50 }
0x2ace   :  { %v17213_v30 = vpop.trf.xlu2 }
0x2acf   :  { %17229 = vxpose.xlu0.b32.start.end [1/1] (short) (narrow) %v17124_v60, 8  ;;  %v17389_v12 = vrot.slane %v17213_v30, 4 }
0x2ad6   :  { %v17373_v2 = vpop.trf.xlu2 }
0x2ad7   :  { %17133 = vxpose.xlu2.b32.start.end [1/1] (short) (narrow) %v17118_v39, 8  ;;  %v17341_v34 = vpop.trf.xlu1 }
0x2ad8   :  { %v17401_v41 = vrot.slane %v17341_v34, 4 }
0x2ad9   :  { %v17277_v6 = vpop.trf.xlu0 }
0x2ada   :  { %v17402_v20 = vsel %vm253_vm1, %v17401_v41, %v17277_v6 }
0x2adb   :  { %v17406_v32 = vperm.slane %v17402_v20, %v19590_v23 }
0x2b06   :  { %v16729_v27 = vpop.xlane.xlu1 %16728 }
0x2b07   :  { %v16735_v35 = vsub.f32 %v16696_v37, %v16729_v27 }
0x2b09   :  { %v16741_v56 = vmul.f32 1.442695, %v16735_v35 }
0x2b0e   :  { %v16732_v7 = vpop.xlane.xlu1 %16731 }
0x2b0f   :  { %v16736_v54 = vsub.f32 %v16719_v40, %v16732_v7  ;;  %v17407_v40 = vrot.slane %v17373_v2, 4 }
0x2b11   :  { %v16743_v53 = vmul.f32 1.442695, %v16736_v54 }
0x2b13   :  { %19437 = vpow2.f32 %v16743_v53 }
0x2b19   :  { %v19438_v33 = vpop.eup %19437  ;;  %v16747_v5 = vpop.xlane.xlu0 %16746 }
0x2b1a   :  { %19439 = vrcp.f32 %v16747_v5  ;;  %v16754_v62 = vsel %vm1367_vm2, %v19438_v33, 0.0 }
0x2b1b   :  { %16755 = vadd.xlane.f32.xlu1 %v16754_v62 }
0x2b20   :  { %v19440_v26 = vpop.eup %19439 }
0x2b21   :  { %v16761_v13 = vmul.f32 %v19440_v26, %v19436_v59  ;;  %v16726_v44 = vpop.xlane.xlu2 %16725 }
0x2b22   :  { %v16734_v0 = vsub.f32 %v16673_v55, %v16726_v44  ;;  %v17427_v55 = vrot.slane %v17406_v32, 4 }
0x2b23   :  { %18490 = vmatpush.xpose.msk.msrb.mxu1 %vm1367_vm2, %v16761_v13  ;;  %v17802_v25 = vsel %vm1367_vm2, %v16761_v13, 0.0 }
0x2b24   :  { %v16739_v47 = vmul.f32 1.442695, %v16734_v0 }
0x2b26   :  { %19441 = vpow2.f32 %v16739_v47 }
0x2b27   :  { %19443 = vpow2.f32 %v16741_v56 }
0x2b2c   :  { %v19442_v45 = vpop.eup %19441 }
0x2b2d   :  { %v16748_v10 = vsel %vm1367_vm2, %v19442_v45, 0.0  ;;  %v19444_v11 = vpop.eup %19443 }
0x2b2e   :  { %16749 = vadd.xlane.f32.xlu1 %v16748_v10  ;;  %v16751_v49 = vsel %vm1367_vm2, %v19444_v11, 0.0 }
0x2b48   :  { %16752 = vadd.xlane.f32.xlu2 %v16751_v49 }
0x2b68   :  { %17293 = vxpose.xlu1.b32.start.end [1/1] (short) (narrow) %v17128_v24, 8 }
0x2b70   :  { %19228 = vxpose.xlu1.b32.start.end [1/1] (short) (narrow) %v19227_v61, 8  ;;  %v17149_v36 = vpop.trf.xlu2 }
0x2b71   :  { %17165 = vxpose.xlu2.b32.start.end [1/1] (short) (narrow) %v17120_v4, 8  ;;  %v17390_v37 = vsel %vm253_vm1, %v17389_v12, %v17149_v36 }
0x2b72   :  { %v17394_v51 = vperm.slane %v17390_v37, %v19590_v23 }
0x2b73   :  { %v17245_v3 = vpop.trf.xlu0 }
0x2b74   :  { %v17395_v46 = vrot.slane %v17245_v3, 4  ;;  %v17415_v17 = vrot.slane %v17394_v51, 4 }
0x2b8e   :  { %v16756_v63 = vpop.xlane.xlu1 %16755 }
0x2b8f   :  { %19445 = vrcp.f32 %v16756_v63 }
0x2b95   :  { %v19446_v42 = vpop.eup %19445 }
0x2b96   :  { %v16764_v16 = vmul.f32 %v19446_v42, %v19438_v33 }
0x2b98   :  { %18496 = vmatpush.xpose.msk.msra.mxu0 %vm1367_vm2, %v16764_v16  ;;  %v17807_v21 = vsel %vm1367_vm2, %v16764_v16, 0.0 }
0x2ba1   :  { %v16750_v43 = vpop.xlane.xlu1 %16749 }
0x2ba2   :  { %19447 = vrcp.f32 %v16750_v43 }
0x2ba8   :  { %v19448_v58 = vpop.eup %19447 }
0x2ba9   :  { %v16762_v1 = vmul.f32 %v19448_v58, %v19442_v45 }
0x2bab   :  { %v17803_v8 = vsel %vm1367_vm2, %v16762_v1, 0.0  ;;  %18492 = vmatpush.xpose.msk.msra.mxu2 %vm1367_vm2, %v16762_v1 }
0x2bac   :  { %v17804_v60 = vadd.f32 %v17803_v8, %v17802_v25 }
0x2bbb   :  { %v16753_v28 = vpop.xlane.xlu2 %16752 }
0x2bbc   :  { %19449 = vrcp.f32 %v16753_v28 }
0x2bc2   :  { %v19450_v61 = vpop.eup %19449 }
0x2bc3   :  { %v16763_v39 = vmul.f32 %v19450_v61, %v19444_v11 }
0x2bc5   :  { %v17805_v24 = vsel %vm1367_vm2, %v16763_v39, 0.0  ;;  %18494 = vmatpush.xpose.msk.msra.mxu3 %vm1367_vm2, %v16763_v39 }
0x2bc6   :  { %v17806_v9 = vadd.f32 %v17805_v24, %v17804_v60 }
0x2bc8   :  { %v22860_v4 = vadd.f32 %v17807_v21, %v17806_v9 }
0x2c0a   :  { %v17181_v29 = vpop.trf.xlu2 }
0x2c0b   :  { %v17396_v48 = vsel %vm253_vm1, %v17395_v46, %v17181_v29 }
0x2c0c   :  { %v17400_v59 = vperm.slane %v17396_v48, %v19590_v23  ;;  %v17309_v22 = vpop.trf.xlu1 }
0x2c0d   :  { %v17408_v15 = vsel %vm253_vm1, %v17407_v40, %v17309_v22 }
0x2c0e   :  { %v17413_v50 = vrot.slane %v17400_v59, 4  ;;  %v17416_v34 = vsel %vm253_vm1, %v17400_v59, %v17415_v17  ;;  %v17412_v41 = vperm.slane %v17408_v15, %v19590_v23 }
0x2c0f   :  { %v17424_v6 = vperm.slane %v17416_v34, %v19600_v38 }
0x2c10   :  { %v17414_v20 = vsel %vm253_vm1, %v17413_v50, %v17394_v51  ;;  %v17425_v27 = vrot.slane %v17412_v41, 4  ;;  %v17428_v30 = vsel %vm253_vm1, %v17412_v41, %v17427_v55 }
0x2c11   :  { %v17420_v7 = vperm.slane %v17414_v20, %v19600_v38  ;;  %v17436_v54 = vperm.slane %v17428_v30, %v19600_v38  ;;  %v17443_v53 = vrot.slane %v17424_v6, 4 }
0x2c12   :  { %v17426_v2 = vsel %vm253_vm1, %v17425_v27, %v17406_v32 }
0x2c13   :  { %v17444_v33 = vsel %vm253_vm1, %v17436_v54, %v17443_v53  ;;  %v17432_v5 = vperm.slane %v17426_v2, %v19600_v38  ;;  %v17439_v62 = vrot.slane %v17420_v7, 4  ;;  %v17441_v26 = vrot.slane %v17436_v54, 4 }
0x2c14   :  { %18497 = vmatmul.msk.f32.vlgmr.msra.gmra.mxu0 %vm1367_vm2, %v17444_v33  ;;  %v19229_v42 = vpop.trf.xlu1 }
0x2c15   :  { %v17440_v13 = vsel %vm253_vm1, %v17432_v5, %v17439_v62  ;;  %v17442_v44 = vsel %vm253_vm1, %v17441_v26, %v17424_v6  ;;  %v17437_v0 = vrot.slane %v17432_v5, 4  ;;  %v19230_v43 = vunpack.i.l.bf16 %v19229_v42 }
0x2c16   :  { %18493 = vmatmul.msk.f32.vlgmr.msra.gmra.mxu2 %vm1367_vm2, %v17440_v13  ;;  %18495 = vmatmul.msk.f32.vlgmr.msra.gmra.mxu3 %vm1367_vm2, %v17442_v44  ;;  %v19233_v36 = vunpack.i.h.bf16 %v19229_v42 }
0x2c17   :  { %v17438_v47 = vsel %vm253_vm1, %v17437_v0, %v17420_v7  ;;  %v15757_v25 = vrot.slane %v19230_v43, 4 }
0x2c18   :  { %18491 = vmatmul.msk.f32.vlgmr.msrb.gmra.mxu1 %vm1367_vm2, %v17438_v47  ;;  %v15767_v21 = vrot.slane %v19233_v36, 4 }
0x2c91   :  { %v17546_v45 = vpop.f32.mrf.mxu0 }
0x2c95   :  { %v17468_v10 = vpop.f32.mrf.mxu1 }
0x2c96   :  { %v19234_v35 = vpack.i.bf16 %v17546_v45, %v17468_v10 }
0x2c98   :  { %19235 = vxpose.xlu2.b32.start.end [1/1] (short) (narrow) %v19234_v35, 8 }
0x2c99   :  { %v17520_v56 = vpop.f32.mrf.mxu3  ;;  %v17494_v49 = vpop.f32.mrf.mxu2 }
0x2c9a   :  { %v19241_v11 = vpack.i.bf16 %v17520_v56, %v22833_v14  ;;  %v19248_v63 = vpack.i.bf16 %v17494_v49, %v22840_v52 }
0x2c9c   :  { %19242 = vxpose.xlu0.b32.start.end [1/1] (short) (narrow) %v19241_v11, 8 }
0x2ca4   :  { %19249 = vxpose.xlu0.b32.start.end [1/1] (short) (narrow) %v19248_v63, 8 }
0x2d31   :  { %v19236_v16 = vpop.trf.xlu2 }
0x2d32   :  { %v19237_v58 = vunpack.i.l.bf16 %v19236_v16  ;;  %v19240_v39 = vunpack.i.h.bf16 %v19236_v16 }
0x2d34   :  { %v17679_v24 = vrot.slane %v19237_v58, 4  ;;  %v17689_v12 = vrot.slane %v19240_v39, 4 }
0x2d40   :  { %v19243_v1 = vpop.trf.xlu0 }
0x2d41   :  { %v19247_v8 = vunpack.i.h.bf16 %v19243_v1  ;;  %v19244_v60 = vunpack.i.l.bf16 %v19243_v1 }
0x2d43   :  { %v17677_v28 = vrot.slane %v19247_v8, 4  ;;  %v15755_v61 = vrot.slane %v19244_v60, 4  ;;  %v15758_v9 = vsel %vm253_vm1, %v19244_v60, %v15757_v25  ;;  %v17680_v3 = vsel %vm253_vm1, %v19247_v8, %v17679_v24 }
0x2d44   :  { %v15766_v46 = vperm.slane %v15758_v9, %v19590_v23  ;;  %v17688_v48 = vperm.slane %v17680_v3, %v19590_v23 }
0x2d45   :  { %v15756_v14 = vsel %vm253_vm1, %v15755_v61, %v19230_v43  ;;  %v17678_v52 = vsel %vm253_vm1, %v17677_v28, %v19237_v58 }
0x2d46   :  { %v15762_v37 = vperm.slane %v15756_v14, %v19590_v23  ;;  %v17684_v51 = vperm.slane %v17678_v52, %v19590_v23  ;;  %v15793_v41 = vrot.slane %v15766_v46, 4  ;;  %v17715_v2 = vrot.slane %v17688_v48, 4 }
0x2d48   :  { %v19250_v32 = vpop.trf.xlu0  ;;  %v15781_v55 = vrot.slane %v15762_v37, 4  ;;  %v17703_v6 = vrot.slane %v17684_v51, 4 }
0x2d49   :  { %v19254_v29 = vunpack.i.h.bf16 %v19250_v32  ;;  %v19251_v40 = vunpack.i.l.bf16 %v19250_v32 }
0x2d4b   :  { %v17691_v17 = vrot.slane %v19254_v29, 4  ;;  %v15768_v59 = vsel %vm253_vm1, %v15767_v21, %v19251_v40  ;;  %v15769_v22 = vrot.slane %v19251_v40, 4  ;;  %v17690_v15 = vsel %vm253_vm1, %v17689_v12, %v19254_v29 }
0x2d4c   :  { %v15774_v50 = vperm.slane %v15768_v59, %v19590_v23  ;;  %v17696_v34 = vperm.slane %v17690_v15, %v19590_v23 }
0x2d4d   :  { %v15770_v20 = vsel %vm253_vm1, %v19233_v36, %v15769_v22  ;;  %v17692_v27 = vsel %vm253_vm1, %v19240_v39, %v17691_v17 }
0x2d4e   :  { %v15778_v30 = vperm.slane %v15770_v20, %v19590_v23  ;;  %v15779_v7 = vrot.slane %v15774_v50, 4  ;;  %v15782_v54 = vsel %vm253_vm1, %v15774_v50, %v15781_v55  ;;  %v17700_v53 = vperm.slane %v17692_v27, %v19590_v23 }
0x2d4f   :  { %v15790_v33 = vperm.slane %v15782_v54, %v19600_v38  ;;  %v17701_v5 = vrot.slane %v17696_v34, 4  ;;  %v17704_v62 = vsel %vm253_vm1, %v17696_v34, %v17703_v6 }
0x2d50   :  { %v15780_v26 = vsel %vm253_vm1, %v15779_v7, %v15762_v37  ;;  %v15791_v13 = vrot.slane %v15778_v30, 4  ;;  %v15794_v44 = vsel %vm253_vm1, %v15778_v30, %v15793_v41  ;;  %v17712_v0 = vperm.slane %v17704_v62, %v19600_v38 }
0x2d51   :  { %v15786_v47 = vperm.slane %v15780_v26, %v19600_v38  ;;  %v15802_v45 = vperm.slane %v15794_v44, %v19600_v38  ;;  %v15805_v10 = vrot.slane %v15790_v33, 4  ;;  %v17702_v35 = vsel %vm253_vm1, %v17701_v5, %v17684_v51 }
0x2d52   :  { %v15792_v56 = vsel %vm253_vm1, %v15791_v13, %v15766_v46  ;;  %v17708_v11 = vperm.slane %v17702_v35, %v19600_v38  ;;  %v17713_v49 = vrot.slane %v17700_v53, 4  ;;  %v17716_v63 = vsel %vm253_vm1, %v17700_v53, %v17715_v2 }
0x2d53   :  { %v15798_v42 = vperm.slane %v15792_v56, %v19600_v38  ;;  %v15803_v16 = vrot.slane %v15786_v47, 4  ;;  %v15806_v43 = vsel %vm253_vm1, 0.0, %v15805_v10  ;;  %v15809_v58 = vrot.slane %v15802_v45, 4 }
0x2d54   :  { %v15811_v1 = vsel %vm253_vm1, %v15805_v10, %v15786_v47  ;;  %v15816_v25 = vrot.slane %v15806_v43, 4  ;;  %v17714_v8 = vsel %vm253_vm1, %v17713_v49, %v17688_v48  ;;  %v17724_v60 = vperm.slane %v17716_v63, %v19600_v38 }
0x2d55   :  { %v15804_v36 = vsel %vm253_vm1, 0.0, %v15803_v16  ;;  %v15807_v28 = vrot.slane %v15798_v42, 4  ;;  %v15810_v61 = vsel %vm253_vm1, 0.0, %v15809_v58  ;;  %v17720_v39 = vperm.slane %v17714_v8, %v19600_v38 }
0x2d56   :  { %v15827_v24 = vrot.slane %v15810_v61, 4  ;;  %v17725_v14 = vrot.slane %v17708_v11, 4  ;;  %v17727_v9 = vrot.slane %v17712_v0, 4  ;;  %v17731_v52 = vrot.slane %v17724_v60, 4 }
0x2d57   :  { %v17729_v21 = vrot.slane %v17720_v39, 4  ;;  %v15808_v12 = vsel %vm253_vm1, 0.0, %v15807_v28  ;;  %v15815_v3 = vperm.slane %v15811_v1, %v19590_v23  ;;  %v15817_v37 = vsel %vm253_vm1, %v15816_v25, %v15804_v36 }
0x2d58   :  { %v17726_v46 = vsel %vm253_vm1, 0.0, %v17725_v14  ;;  %v17728_v51 = vsel %vm253_vm1, 0.0, %v17727_v9  ;;  %v17732_v32 = vsel %vm253_vm1, 0.0, %v17731_v52  ;;  %v17733_v29 = vsel %vm253_vm1, %v17727_v9, %v17708_v11 }
0x2d59   :  { %v17738_v40 = vrot.slane %v17728_v51, 4  ;;  %v17749_v48 = vrot.slane %v17732_v32, 4  ;;  %v15821_v17 = vperm.slane %v15817_v37, %v19590_v23  ;;  %v15822_v59 = vsel %vm253_vm1, %v15809_v58, %v15798_v42 }
0x2d5a   :  { %v15826_v22 = vperm.slane %v15822_v59, %v19590_v23  ;;  %v15828_v15 = vsel %vm253_vm1, %v15827_v24, %v15808_v12  ;;  %v15835_v55 = vrot.slane %v15815_v3, 4  ;;  %v17730_v50 = vsel %vm253_vm1, 0.0, %v17729_v21 }
0x2d5b   :  { %v15832_v34 = vperm.slane %v15828_v15, %v19590_v23  ;;  %v17737_v41 = vperm.slane %v17733_v29, %v19590_v23  ;;  %v17739_v6 = vsel %vm253_vm1, %v17738_v40, %v17726_v46  ;;  %v17744_v20 = vsel %vm253_vm1, %v17731_v52, %v17720_v39  ;;  %v18596_v29 = vld [vmem:[%s21267_s5 + $0x18] sm:$0xff]  ;;  %v18598_v40 = vld [vmem:[%s18228_s26 + $0x8] sm:$0xff] }
0x2d5c   :  { %v15836_v27 = vsel %vm253_vm1, %v15821_v17, %v15835_v55  ;;  %v15847_v30 = vrot.slane %v15826_v22, 4  ;;  %v17743_v7 = vperm.slane %v17739_v6, %v19590_v23  ;;  %v17748_v54 = vperm.slane %v17744_v20, %v19590_v23  ;;  %17835 = vmatpush.bf16.msra.mxu1 %v18596_v29  ;;  %17920 = vmatpush.bf16.msrb.mxu2 %v18598_v40 }
0x2d5d   :  { %v15844_v53 = vperm.slane %v15836_v27, %v19600_v38  ;;  %v17750_v2 = vsel %vm253_vm1, %v17749_v48, %v17730_v50  ;;  %v17757_v33 = vrot.slane %v17737_v41, 4  ;;  %v15833_v5 = vrot.slane %v15821_v17, 4  ;;  %v18595_v48 = vld [vmem:[%s21267_s5 + $0x10] sm:$0xff]  ;;  %v18597_v17 = vld [vmem:[%s18228_s26] sm:$0xff]  ;;  %s18239_s5 = sld [smem:[%s23070_s0 + %s19517_s20]]   ;;  %s19524_s26 = smov 33  }
0x2d5e   :  { %v15848_v62 = vsel %vm253_vm1, %v15832_v34, %v15847_v30  ;;  %v17754_v26 = vperm.slane %v17750_v2, %v19590_v23  ;;  %v17769_v13 = vrot.slane %v17748_v54, 4  ;;  %v15845_v44 = vrot.slane %v15832_v34, 4  ;;  %s18241_s7 = sld [smem:[%s23070_s0 + %s19524_s26]]  }
0x2d5f   :  { %v15856_v0 = vperm.slane %v15848_v62, %v19600_v38  ;;  %v15863_v47 = vrot.slane %v15844_v53, 4  ;;  %v17758_v45 = vsel %vm253_vm1, %v17743_v7, %v17757_v33  ;;  %v15834_v10 = vsel %vm253_vm1, %v15833_v5, %v15815_v3  ;;  %v19293_v5 = vld [vmem:[%s21255_s28 + $0x1] ss:$0 sm:$0xff] }
0x2d60   :  { %v17766_v35 = vperm.slane %v17758_v45, %v19600_v38  ;;  %v17770_v56 = vsel %vm253_vm1, %v17754_v26, %v17769_v13  ;;  %v15840_v11 = vperm.slane %v15834_v10, %v19600_v38  ;;  %v15846_v49 = vsel %vm253_vm1, %v15845_v44, %v15826_v22  ;;  %17836 = vmatpush.bf16.msra.mxu1 %v18595_v48 }
0x2d61   :  { %v15864_v63 = vsel %vm253_vm1, %v15856_v0, %v15863_v47  ;;  %v17778_v23 = vperm.slane %v17770_v56, %v19600_v38  ;;  %v15852_v42 = vperm.slane %v15846_v49, %v19600_v38  ;;  %v17755_v16 = vrot.slane %v17743_v7, 4  ;;  %17921 = vmatpush.bf16.msrb.mxu2 %v18597_v17 }
0x2d62   :  { %v17785_v43 = vrot.slane %v17766_v35, 4  ;;  %v15859_v58 = vrot.slane %v15840_v11, 4  ;;  %v17767_v1 = vrot.slane %v17754_v26, 4  ;;  %v15861_v25 = vrot.slane %v15856_v0, 4 }
0x2d63   :  { %v17756_v8 = vsel %vm253_vm1, %v17755_v16, %v17737_v41  ;;  %v17783_v60 = vrot.slane %v17778_v23, 4  ;;  %v15857_v36 = vrot.slane %v15852_v42, 4  ;;  %v22998_v49 = vld [vmem:[%s18239_s5] ss:$0 sm:$0xff] }
0x2d64   :  { %v17786_v28 = vsel %vm253_vm1, %v17778_v23, %v17785_v43  ;;  %v17762_v61 = vperm.slane %v17756_v8, %v19600_v38  ;;  %v17768_v39 = vsel %vm253_vm1, %v17767_v1, %v17748_v54  ;;  %v15862_v9 = vsel %vm253_vm1, %v15861_v25, %v15844_v53 }
0x2d65   :  { %v19265_v24 = vpack.i.bf16 %v17786_v28, %v15864_v63  ;;  %v17774_v14 = vperm.slane %v17768_v39, %v19600_v38  ;;  %v17784_v52 = vsel %vm253_vm1, %v17783_v60, %v17766_v35  ;;  %v15860_v21 = vsel %vm253_vm1, %v15852_v42, %v15859_v58  ;;  %v18599_v39 = vld [vmem:[%s21305_s23 + $0x10] sm:$0xff] }
0x2d66   :  { %v17781_v12 = vrot.slane %v17762_v61, 4  ;;  %v19260_v3 = vpack.i.bf16 %v17784_v52, %v15862_v9  ;;  %v15858_v37 = vsel %vm253_vm1, %v15857_v36, %v15840_v11  ;;  %v18600_v36 = vld [vmem:[%s21305_s23 + $0x18] sm:$0xff]  ;;  %s19518_s23 = smov 30  }
0x2d67   :  { %19266 = vrot.lane.b32.xlu0 %v19265_v24, %s19497_s15  ;;  %v17779_v46 = vrot.slane %v17774_v14, 4  ;;  %s19516_s15 = smov 21   ;;  %17960 = vmatpush.bf16.msrb.mxu3 %v18600_v36 }
0x2d68   :  { %v17782_v51 = vsel %vm253_vm1, %v17774_v14, %v17781_v12  ;;  %19261 = vrot.lane.b32.xlu2 %v19260_v3, %s23087_s17  ;;  %s18229_s11 = sld [smem:[%s23070_s0 + %s19516_s15]]  }
0x2d69   :  { %v19255_v38 = vpack.i.bf16 %v17782_v51, %v15860_v21  ;;  %v17780_v32 = vsel %vm253_vm1, %v17779_v46, %v17762_v61 }
0x2d6b   :  { %19256 = vrot.lane.b32.xlu1 %v19255_v38, %s23088_s21  ;;  %17961 = vmatpush.bf16.msrb.mxu3 %v18599_v39 }
0x2d6e   :  { %v22995_v35 = vld [vmem:[%s18229_s11] ss:$0 sm:$0xff] }
0x2dc2   :  { %v19262_v59 = vpop.permute.xlu2 %19261 }
0x2dc3   :  { %v19264_v34 = vunpack.i.h.bf16 %v19262_v59  ;;  %v19263_v41 = vunpack.i.l.bf16 %v19262_v59  ;;  %v19296_v59 = vld [vmem:[%s21284_s18 + $0x1] ss:$0 sm:$0xff]  ;;  %s23033_s18 = sld [smem:[%s23070_s0 + %s19518_s23]]  }
0x2dd9   :  { %v19267_v22 = vpop.permute.xlu0 %19266 }
0x2dda   :  { %v19269_v6 = vunpack.i.h.bf16 %v19267_v22  ;;  %v19268_v20 = vunpack.i.l.bf16 %v19267_v22 }
0x2ddd   :  { %v19257_v15 = vpop.permute.xlu1 %19256 }
0x2dde   :  { %v19259_v55 = vunpack.i.h.bf16 %v19257_v15  ;;  %v19258_v50 = vunpack.i.l.bf16 %v19257_v15 }
0x2de0   :  { %v15877_v27 = vsel %vm1367_vm2, %v15858_v37, %v19258_v50  ;;  %v17799_v30 = vsel %vm1367_vm2, %v17780_v32, %v19259_v55  ;;  %v19297_v50 = vld [vmem:[%s21295_s13 + $0x1] ss:$0 sm:$0xff]  ;;  %s19519_s13 = smov 28  }
0x2de1   :  { %v15878_v7 = vsel %vm2539_vm3, %v15877_v27, %v19263_v41  ;;  %v17800_v54 = vsel %vm2539_vm3, %v17799_v30, %v19264_v34  ;;  %s18236_s25 = sld [smem:[%s23070_s0 + %s19519_s13]]  }
0x2de2   :  { %v15879_v53 = vsel %vm2541_vm4, %v15878_v7, %v19268_v20  ;;  %v17801_v2 = vsel %vm2541_vm4, %v17800_v54, %v19269_v6  ;;  %v18604_v7 = vld [vmem:[%s21323_s2 + $0x38] sm:$0xff]  ;;  %v18603_v54 = vld [vmem:[%s21323_s2 + $0x30] sm:$0xff] }
0x2de3   :  { %v17810_v33 = vpack.c.bf16 %v17801_v2, %v15879_v53  ;;  %18016 = vmatpush.bf16.msrb.mxu0 %v18604_v7  ;;  %v18602_v53 = vld [vmem:[%s21323_s2 + $0x28] sm:$0xff]  ;;  %v18601_v2 = vld [vmem:[%s21323_s2 + $0x20] sm:$0xff] }
0x2de5   :  { %18506 = vmatmul.msk.bf16.vlgmr.msra.gmra.mxu1 %vm185_vm0, %v17810_v33  ;;  %18515 = vmatmul.msk.bf16.vlgmr.msrb.gmra.mxu2 %vm185_vm0, %v17810_v33 }
0x2de7   :  { %18017 = vmatpush.bf16.msrb.mxu0 %v18603_v54 }
0x2deb   :  { %18018 = vmatpush.bf16.msrb.mxu0 %v18602_v53 }
0x2def   :  { %18019 = vmatpush.bf16.msrb.mxu0 %v18601_v2 }
0x2e62   :  { %v17838_v62 = vpop.f32.mrf.mxu1 }
0x2e63   :  { %v17839_v26 = vadd.f32 %v19293_v5, %v17838_v62 }
0x2e65   :  { %v17843_v13 = vadd.f32 %v17839_v26, %v22359_v19 }
0x2e67   :  { %v17845_v44 = vsel %vm185_vm0, %v17843_v13, 0.0 }
0x2e68   :  { %v22992_v0 = vpop.f32.mrf.mxu2  ;;  %17846 = vadd.xlane.f32.xlu1 %v17845_v44 }
0x2e6a   :  { %v17840_v47 = vpop.f32.mrf.mxu1 }
0x2e6b   :  { %v17841_v45 = vadd.f32 %v19293_v5, %v17840_v47  ;;  %v19298_v5 = vld [vmem:[%s21300_s27 + $0x1] ss:$0 sm:$0xff] }
0x2e6d   :  { %v17844_v10 = vadd.f32 %v17841_v45, %v22361_v18 }
0x2e6f   :  { %v17848_v56 = vsel %vm185_vm0, %v17844_v10, 0.0 }
0x2e70   :  { %v17925_v11 = vpop.f32.mrf.mxu2  ;;  %17849 = vadd.xlane.f32.xlu2 %v17848_v56 }
0x2e71   :  { %v17926_v19 = vadd.f32 %v22995_v35, %v17925_v11 }
0x2e73   :  { %v23002_v63 = vmul.f32 %v22998_v49, %v17926_v19 }
0x2edb   :  { %v17847_v23 = vpop.xlane.xlu1 %17846 }
0x2edc   :  { %v17851_v42 = vmul.f32 %v17847_v23, %v20539_v31 }
0x2ede   :  { %v17853_v16 = vsub.f32 %v17843_v13, %v17851_v42 }
0x2ee0   :  { %v17855_v18 = vmul.f32 %v17853_v16, %v17853_v16 }
0x2ee2   :  { %v17857_v43 = vsel %vm185_vm0, %v17855_v18, 0.0 }
0x2ee3   :  { %v17850_v58 = vpop.xlane.xlu2 %17849  ;;  %17858 = vadd.xlane.f32.xlu0 %v17857_v43 }
0x2ee4   :  { %v17852_v1 = vmul.f32 %v17850_v58, %v20539_v31 }
0x2ee6   :  { %v17854_v25 = vsub.f32 %v17844_v10, %v17852_v1  ;;  %v19299_v10 = vld [vmem:[%s21317_s16 + $0x1] ss:$0 sm:$0xff] }
0x2ee8   :  { %v17856_v8 = vmul.f32 %v17854_v25, %v17854_v25 }
0x2eea   :  { %v17860_v60 = vsel %vm185_vm0, %v17856_v8, 0.0 }
0x2eeb   :  { %17861 = vadd.xlane.f32.xlu1 %v17860_v60 }
0x2f56   :  { %v17859_v28 = vpop.xlane.xlu0 %17858 }
0x2f57   :  { %v17863_v61 = vmul.f32 %v17859_v28, %v20539_v31 }
0x2f59   :  { %v17865_v24 = vadd.f32 1e-05, %v17863_v61 }
0x2f5b   :  { %19451 = vrsqrt.f32 %v17865_v24  ;;  %vm17873_vm3 = vweird.f32 %v17865_v24 }
0x2f5e   :  { %v17862_v14 = vpop.xlane.xlu1 %17861 }
0x2f5f   :  { %v17864_v9 = vmul.f32 %v17862_v14, %v20539_v31 }
0x2f61   :  { %v19452_v52 = vpop.eup %19451  ;;  %v17866_v21 = vadd.f32 1e-05, %v17864_v9 }
0x2f62   :  { %v17868_v12 = vmul.f32 %v19452_v52, %v17865_v24  ;;  %vm17874_vm1 = vweird.f32 %v19452_v52  ;;  %v17924_v24 = vadd.f32 %v22995_v35, %v22992_v0  ;;  %v18606_v0 = vld [vmem:[%s18236_s25 + $0x8] sm:$0xff] }
0x2f63   :  { %19453 = vrsqrt.f32 %v17866_v21  ;;  %vm17875_vm4 = vmor %vm17873_vm3, %vm17874_vm1  ;;  %vm17883_vm11 = vweird.f32 %v17866_v21  ;;  %18158 = vmatpush.bf16.msrb.mxu1 %v18606_v0 }
0x2f64   :  { %v17869_v3 = vmul.f32 %v19452_v52, %v17868_v12  ;;  %v18102_v9 = vmul.f32 %v22998_v49, %v17924_v24  ;;  %v18605_v12 = vld [vmem:[%s18236_s25] sm:$0xff] }
0x2f66   :  { %v17870_v37 = vmul.f32 0.5, %v17869_v3 }
0x2f67   :  { %18159 = vmatpush.bf16.msrb.mxu1 %v18605_v12 }
0x2f68   :  { %v17871_v46 = vsub.f32 1.5, %v17870_v37  ;;  %v75_v37 = vstv %s18240_s10 }
0x2f69   :  { %v19454_v51 = vpop.eup %19453  ;;  %76 = vst [vmem:[#allocation2] sm:$0x1] %v75_v37 }
0x2f6a   :  { %v17872_v38 = vmul.f32 %v19452_v52, %v17871_v46  ;;  %v17878_v32 = vmul.f32 %v19454_v51, %v17866_v21  ;;  %vm17884_vm10 = vweird.f32 %v19454_v51 }
0x2f6b   :  { %vm17885_vm12 = vmor %vm17883_vm11, %vm17884_vm10 }
0x2f6c   :  { %v17879_v29 = vmul.f32 %v19454_v51, %v17878_v32  ;;  %v17876_v40 = vsel %vm17875_vm4, %v19452_v52, %v17872_v38  ;;  %v18104_v52 = vsel %vm185_vm0, %v18102_v9, 0.0 }
0x2f6d   :  { %v17887_v22 = vmul.f32 %v17876_v40, %v17853_v16 }
0x2f6e   :  { %v17880_v48 = vmul.f32 0.5, %v17879_v29 }
0x2f6f   :  { %v17892_v34 = vmul.f32 %v19296_v59, %v17887_v22 }
0x2f70   :  { %v17881_v17 = vsub.f32 1.5, %v17880_v48 }
0x2f71   :  { %v17897_v20 = vadd.f32 %v19297_v50, %v17892_v34  ;;  %v19301_v34 = vld [vmem:[%s21346_s8 + $0x1] ss:$0 sm:$0xff] }
0x2f72   :  { %v17882_v15 = vmul.f32 %v19454_v51, %v17881_v17 }
0x2f74   :  { %v17886_v55 = vsel %vm17885_vm12, %v19454_v51, %v17882_v15  ;;  %v19300_v15 = vld [vmem:[%s21336_s24 + $0x1] ss:$0 sm:$0xff]  ;;  %s19523_s24 = smov 34  }
0x2f75   :  { %v17888_v41 = vmul.f32 %v17886_v55, %v17854_v25  ;;  %s18242_s14 = sld [smem:[%s23070_s0 + %s19523_s24]]  }
0x2f77   :  { %v17893_v6 = vmul.f32 %v19296_v59, %v17888_v41 }
0x2f79   :  { %v17898_v27 = vadd.f32 %v19297_v50, %v17893_v6 }
0x2f7b   :  { %v17935_v30 = vpack.c.bf16 %v17898_v27, %v17897_v20 }
0x2f7d   :  { %18529 = vmatmul.msk.bf16.vlgmr.msrb.gmra.mxu3 %vm185_vm0, %v17935_v30 }
0x3000   :  { %v17963_v33 = vpop.f32.mrf.mxu3 }
0x3001   :  { %v17964_v62 = vadd.f32 %v19298_v5, %v17963_v33 }
0x3003   :  { %v17968_v44 = vmax.f32 %v17964_v62, 0.0 }
0x3008   :  { %v17965_v26 = vpop.f32.mrf.mxu3 }
0x3009   :  { %v17966_v13 = vadd.f32 %v19298_v5, %v17965_v26 }
0x300b   :  { %v17969_v47 = vmax.f32 %v17966_v13, 0.0 }
0x300d   :  { %v17981_v45 = vpack.c.bf16 %v17969_v47, %v17968_v44  ;;  %v18107_v47 = vsel %vm185_vm0, %v23002_v63, 0.0 }
0x300f   :  { %18555 = vmatmul.msk.bf16.vlgmr.msrb.gmra.mxu0 %vm9015_vm7, %v17981_v45 }
0x308c   :  { %v18021_v56 = vpop.f32.mrf.mxu0 }
0x308d   :  { %v18022_v11 = vadd.f32 %v19299_v10, %v18021_v56  ;;  %v19303_v56 = vld [vmem:[#allocation2] ss:$0 sm:$0xff] }
0x308f   :  { %v18026_v19 = vadd.f32 %v18022_v11, %v17897_v20  ;;  %v19302_v20 = vld [vmem:[%s23033_s18] ss:$0 sm:$0xff] }
0x3091   :  { %v18032_v23 = vsel %vm185_vm0, %v18026_v19, 0.0 }
0x3092   :  { %18033 = vadd.xlane.f32.xlu1 %v18032_v23 }
0x3094   :  { %v18023_v42 = vpop.f32.mrf.mxu0 }
0x3095   :  { %v18024_v16 = vadd.f32 %v19299_v10, %v18023_v42 }
0x3097   :  { %v18027_v18 = vadd.f32 %v18024_v16, %v17898_v27 }
0x3099   :  { %v18035_v43 = vsel %vm185_vm0, %v18027_v18, 0.0 }
0x309a   :  { %18036 = vadd.xlane.f32.xlu2 %v18035_v43 }
0x3105   :  { %v18034_v58 = vpop.xlane.xlu1 %18033 }
0x3106   :  { %v18038_v1 = vmul.f32 %v18034_v58, %v20539_v31 }
0x3108   :  { %v18040_v25 = vsub.f32 %v18026_v19, %v18038_v1  ;;  %v19304_v19 = vld [vmem:[%s18237_s29] ss:$0 sm:$0xff] }
0x310a   :  { %v18042_v8 = vmul.f32 %v18040_v25, %v18040_v25 }
0x310c   :  { %v18044_v60 = vsel %vm185_vm0, %v18042_v8, 0.0 }
0x310d   :  { %v18037_v36 = vpop.xlane.xlu2 %18036  ;;  %18045 = vadd.xlane.f32.xlu1 %v18044_v60 }
0x310e   :  { %v18039_v28 = vmul.f32 %v18037_v36, %v20539_v31 }
0x3110   :  { %v18041_v61 = vsub.f32 %v18027_v18, %v18039_v28  ;;  %v19522_v28 = vmov 4.0  }
0x3112   :  { %v18043_v39 = vmul.f32 %v18041_v61, %v18041_v61 }
0x3114   :  { %v18047_v14 = vsel %vm185_vm0, %v18043_v39, 0.0 }
0x3115   :  { %18048 = vadd.xlane.f32.xlu0 %v18047_v14 }
0x311d   :  { %18105 = vadd.xlane.f32.xlu0 %v18104_v52 }
0x3180   :  { %v18046_v35 = vpop.xlane.xlu1 %18045 }
0x3181   :  { %v18050_v21 = vmul.f32 %v18046_v35, %v20539_v31 }
0x3183   :  { %v18052_v49 = vadd.f32 1e-05, %v18050_v21 }
0x3185   :  { %19455 = vrsqrt.f32 %v18052_v49  ;;  %vm18060_vm13 = vweird.f32 %v18052_v49 }
0x3188   :  { %v18049_v3 = vpop.xlane.xlu0 %18048 }
0x3189   :  { %v18051_v46 = vmul.f32 %v18049_v3, %v20539_v31 }
0x318b   :  { %v19456_v51 = vpop.eup %19455  ;;  %v18053_v38 = vadd.f32 1e-05, %v18051_v46 }
0x318c   :  { %v18055_v32 = vmul.f32 %v19456_v51, %v18052_v49  ;;  %vm18061_vm7 = vweird.f32 %v19456_v51 }
0x318d   :  { %19457 = vrsqrt.f32 %v18053_v38  ;;  %vm18062_vm14 = vmor %vm18060_vm13, %vm18061_vm7  ;;  %vm18070_vm5 = vweird.f32 %v18053_v38 }
0x318e   :  { %v18056_v29 = vmul.f32 %v19456_v51, %v18055_v32 }
0x3190   :  { %v18057_v40 = vmul.f32 0.5, %v18056_v29  ;;  %v18106_v10 = vpop.xlane.xlu0 %18105 }
0x3192   :  { %v18058_v48 = vsub.f32 1.5, %v18057_v40 }
0x3193   :  { %v19458_v17 = vpop.eup %19457 }
0x3194   :  { %v18059_v59 = vmul.f32 %v19456_v51, %v18058_v48  ;;  %v18065_v22 = vmul.f32 %v19458_v17, %v18053_v38  ;;  %vm18071_vm15 = vweird.f32 %v19458_v17 }
0x3195   :  { %vm18072_vm6 = vmor %vm18070_vm5, %vm18071_vm15 }
0x3196   :  { %v18063_v55 = vsel %vm18062_vm14, %v19456_v51, %v18059_v59  ;;  %v18066_v50 = vmul.f32 %v19458_v17, %v18065_v22 }
0x3197   :  { %v18074_v31 = vmul.f32 %v18063_v55, %v18040_v25 }
0x3198   :  { %v18067_v41 = vmul.f32 0.5, %v18066_v50 }
0x3199   :  { %v18079_v6 = vmul.f32 %v19300_v15, %v18074_v31 }
0x319a   :  { %v18068_v27 = vsub.f32 1.5, %v18067_v41 }
0x319b   :  { %v18084_v30 = vadd.f32 %v19301_v34, %v18079_v6 }
0x319c   :  { %v18069_v7 = vmul.f32 %v19458_v17, %v18068_v27 }
0x319d   :  { %v18090_v54 = vmul.f32 %v19302_v20, %v18084_v30 }
0x319e   :  { %v18073_v53 = vsel %vm18072_vm6, %v19458_v17, %v18069_v7 }
0x319f   :  { %v18075_v2 = vmul.f32 %v18073_v53, %v18041_v61  ;;  %v18092_v33 = vsel %vm185_vm0, %v18090_v54, 0.0 }
0x31a0   :  { %18093 = vadd.xlane.f32.xlu2 %v18092_v33 }
0x31a1   :  { %v18080_v5 = vmul.f32 %v19300_v15, %v18075_v2 }
0x31a3   :  { %v18085_v62 = vadd.f32 %v19301_v34, %v18080_v5 }
0x31a5   :  { %v18128_v26 = vpack.c.bf16 %v18085_v62, %v18084_v30  ;;  %v18091_v13 = vmul.f32 %v19302_v20, %v18085_v62 }
0x31a7   :  { %18566 = vmatmul.msk.bf16.vlgmr.msrb.gmra.mxu1 %vm185_vm0, %v18128_v26  ;;  %v18095_v44 = vsel %vm185_vm0, %v18091_v13, 0.0 }
0x31a8   :  { %18096 = vadd.xlane.f32.xlu1 %v18095_v44  ;;  %18108 = vadd.xlane.f32.xlu2 %v18107_v47 }
0x3213   :  { %v18094_v45 = vpop.xlane.xlu2 %18093 }
0x3214   :  { %v18110_v11 = vadd.f32 %v18106_v10, %v18094_v45 }
0x3216   :  { %v18116_v23 = vadd.f32 %v19303_v56, %v18110_v11 }
0x3218   :  { %v18118_v18 = vsub.f32 0.0, %v18116_v23 }
0x321a   :  { %v18120_v43 = vmul.f32 1.442695, %v18118_v18 }
0x321b   :  { %v18097_v60 = vpop.xlane.xlu1 %18096  ;;  %v18109_v36 = vpop.xlane.xlu2 %18108 }
0x321c   :  { %19459 = vpow2.f32 %v18120_v43  ;;  %v18111_v61 = vadd.f32 %v18109_v36, %v18097_v60 }
0x321e   :  { %v18117_v52 = vadd.f32 %v19303_v56, %v18111_v61 }
0x3220   :  { %v18119_v35 = vsub.f32 0.0, %v18117_v52 }
0x3222   :  { %v19460_v25 = vpop.eup %19459  ;;  %v18122_v46 = vmul.f32 1.442695, %v18119_v35 }
0x3223   :  { %v18124_v8 = vadd.f32 1.0, %v19460_v25 }
0x3224   :  { %v18161_v42 = vpop.f32.mrf.mxu1 }
0x3225   :  { %v18162_v16 = vadd.f32 %v19304_v19, %v18161_v42  ;;  %19461 = vrcp.f32 %v18124_v8 }
0x3226   :  { %19463 = vrcp.f32 %v19522_v28 }
0x3227   :  { %18166 = vmax.xlane.f32.xlu1 %v18162_v16 }
0x322b   :  { %v19462_v63 = vpop.eup %19461 }
0x322c   :  { %v18163_v58 = vpop.f32.mrf.mxu1  ;;  %v19464_v9 = vpop.eup %19463 }
0x322d   :  { %v18164_v1 = vadd.f32 %v19304_v19, %v18163_v58  ;;  %v15888_v0 = vmul.f32 4.0, %v19464_v9  ;;  %vm15892_vm0 = vweird.f32 %v19464_v9 }
0x322f   :  { %18168 = vmax.xlane.f32.xlu0 %v18164_v1  ;;  %v15889_v37 = vsub.f32 1.0, %v15888_v0 }
0x3231   :  { %v15890_v51 = vmul.f32 %v19464_v9, %v15889_v37 }
0x3233   :  { %v15891_v32 = vadd.f32 %v19464_v9, %v15890_v51 }
0x3235   :  { %v15893_v40 = vsel %vm15892_vm0, %v19464_v9, %v15891_v32 }
0x3236   :  { %v15894_v17 = vmul.f32 %v15893_v40, %v22751_v57  ;;  %v17809_v57 = vmul.f32 %v22860_v4, %v15893_v40 }
0x3243   :  { %18188 = vrot.lane.b32.xlu0 %v19462_v63, %s23088_s21 }
0x329a   :  { %v18167_v39 = vpop.xlane.xlu1 %18166 }
0x329b   :  { %v18170_v24 = vsub.f32 %v18162_v16, %v18167_v39 }
0x329d   :  { %v18172_v14 = vmul.f32 1.442695, %v18170_v24 }
0x329f   :  { %19465 = vpow2.f32 %v18172_v14 }
0x32a2   :  { %v18169_v21 = vpop.xlane.xlu0 %18168 }
0x32a3   :  { %v18171_v12 = vsub.f32 %v18164_v1, %v18169_v21 }
0x32a5   :  { %v19466_v49 = vpop.eup %19465  ;;  %v18174_v3 = vmul.f32 1.442695, %v18171_v12 }
0x32a6   :  { %18176 = vadd.xlane.f32.xlu2 %v19466_v49 }
0x32a7   :  { %19467 = vpow2.f32 %v18174_v3 }
0x32a8   :  { %19469 = vpow2.f32 %v18122_v46 }
0x32ad   :  { %v19468_v38 = vpop.eup %19467 }
0x32ae   :  { %18178 = vadd.xlane.f32.xlu1 %v19468_v38  ;;  %v19470_v29 = vpop.eup %19469 }
0x32af   :  { %v18125_v48 = vadd.f32 1.0, %v19470_v29 }
0x32b1   :  { %19471 = vrcp.f32 %v18125_v48 }
0x32b5   :  { %v18189_v59 = vpop.permute.xlu0 %18188 }
0x32b6   :  { %v18194_v22 = vsel %vm1367_vm2, %v15894_v17, %v18189_v59 }
0x32b7   :  { %v18197_v15 = vsel %vm18196_vm8, %v18194_v22, 0.0  ;;  %v19472_v55 = vpop.eup %19471 }
0x32b8   :  { %18199 = vst [vmem:[%s18242_s14] sm:$0xff] %v18197_v15 }
0x32be   :  { %18190 = vrot.lane.b32.xlu2 %v19472_v55, %s23088_s21 }
0x3319   :  { %v18177_v50 = vpop.xlane.xlu2 %18176 }
0x331a   :  { %19473 = vrcp.f32 %v18177_v50 }
0x3320   :  { %v19474_v31 = vpop.eup %19473 }
0x3321   :  { %v18182_v34 = vmul.f32 %v19474_v31, %v19466_v49  ;;  %v18191_v41 = vpop.permute.xlu2 %18190  ;;  %v18179_v6 = vpop.xlane.xlu1 %18178 }
0x3322   :  { %v18195_v20 = vsel %vm1367_vm2, %v17809_v57, %v18191_v41  ;;  %19475 = vrcp.f32 %v18179_v6 }
0x3323   :  { %18184 = vst [vmem:[%s18241_s7] sm:$0xff] %v18182_v34  ;;  %v18198_v27 = vsel %vm18196_vm8, %v18195_v20, 0.0 }
0x3324   :  { %18200 = vst [vmem:[%s18242_s14 + $0x8] sm:$0xff] %v18198_v27 }
0x3328   :  { %v19476_v30 = vpop.eup %19475 }
0x3329   :  { %v18183_v7 = vmul.f32 %v19476_v30, %v19468_v38 }
0x332b   :  { %18185 = vst [vmem:[%s18241_s7 + $0x8] sm:$0xff] %v18183_v7 }

</bundles_post_ra>
